<compile_context>
chip_gen: v6e
topology: v6e:2x2x1
jax: 0.10.0
libtpu: 0.0.40
codegen_flags: <defaults>
</compile_context>

<pallas_src>
import math
from functools import partial

import jax
import jax.numpy as jnp
from jax.experimental import pallas as pl
from jax.experimental.pallas import tpu as pltpu


def _round_up(x: int, m: int) -> int:
    return ((x + m - 1) // m) * m


# --------------------------------------------------------------------------- #
# Kernel 1: fused NiN block on an im2col patch tile (11x11 / stride-4 stem)
# --------------------------------------------------------------------------- #

def _stem_block_kernel(p_ref, w1_ref, b1_ref, w2_ref, b2_ref, w3_ref, b3_ref,
                       o_ref):
    """relu(relu(relu(p@w1+b1)@w2+b2)@w3+b3) on one M-tile, bf16 store."""
    h = jnp.dot(p_ref[...], w1_ref[...], preferred_element_type=jnp.float32)
    h = jnp.maximum(h + b1_ref[...], 0.0).astype(jnp.bfloat16)
    h = jnp.dot(h, w2_ref[...], preferred_element_type=jnp.float32)
    h = jnp.maximum(h + b2_ref[...], 0.0).astype(jnp.bfloat16)
    h = jnp.dot(h, w3_ref[...], preferred_element_type=jnp.float32)
    o_ref[...] = jnp.maximum(h + b3_ref[...], 0.0).astype(jnp.bfloat16)


def _stem_block(x, block_params, stride):
    """11x11/stride-4 NiN stem: bf16 pre-padded im2col + one fused kernel.

    x: (N, H, W, Cin) bf16.  Returns (N, OH, OW, Cp) bf16 where
    Cp = round_up(Cout, 128); channels >= Cout are exactly zero.
    """
    (w1, b1), (w2, b2), (w3, b3) = block_params
    kh, kw, cin, cout = w1.shape
    n, h, w, _ = x.shape
    oh = (h - kh) // stride + 1
    ow = (w - kw) // stride + 1
    m = n * oh * ow
    k = kh * kw * cin
    kp = _round_up(k, 128)
    cp = _round_up(cout, 128)

    # im2col built directly in bf16, K padding appended at concat time
    # (no separate f32 patch materialization + pad + convert pass).
    # TODO(synk): in-kernel tap accumulation for the stride-4 stem would need
    # strided sublane gathers; keep the (small, Cin=3) im2col here.
    taps = []
    for i in range(kh):
        for j in range(kw):
            taps.append(jax.lax.slice(
                x, (0, i, j, 0),
                (n, i + (oh - 1) * stride + 1, j + (ow - 1) * stride + 1, cin),
                (1, stride, stride, 1)))
    if kp > k:
        taps.append(jnp.zeros((n, oh, ow, kp - k), jnp.bfloat16))
    patches = jnp.concatenate(taps, axis=-1).reshape(m, kp)

    # >= 2 grid steps so the "parallel" axis spans both TensorCores on v7x;
    # cap at 512 rows to amortize per-step overhead (v6e review item).
    tm = min(512, _round_up(-(-m // 2), 16))
    mp = _round_up(m, tm)
    if mp > m:
        patches = jnp.pad(patches, ((0, mp - m), (0, 0)))

    w1p = jnp.pad(w1.reshape(k, cout),
                  ((0, kp - k), (0, cp - cout))).astype(jnp.bfloat16)
    w2p = jnp.pad(w2.reshape(cout, cout),
                  ((0, cp - cout), (0, cp - cout))).astype(jnp.bfloat16)
    w3p = jnp.pad(w3.reshape(cout, cout),
                  ((0, cp - cout), (0, cp - cout))).astype(jnp.bfloat16)
    b1p = jnp.pad(b1, (0, cp - cout)).reshape(1, cp).astype(jnp.float32)
    b2p = jnp.pad(b2, (0, cp - cout)).reshape(1, cp).astype(jnp.float32)
    b3p = jnp.pad(b3, (0, cp - cout)).reshape(1, cp).astype(jnp.float32)

    resident = lambda i: (0, 0)   # weights/biases stay put across M tiles
    # TODO(synk): on v7x, pipeline_mode=pl.Buffered(1) on the resident specs
    # would single-buffer them (pure VMEM headroom at these sizes).
    out = pl.pallas_call(
        _stem_block_kernel,
        out_shape=jax.ShapeDtypeStruct((mp, cp), jnp.bfloat16),
        grid=(mp // tm,),
        in_specs=[
            pl.BlockSpec((tm, kp), lambda i: (i, 0)),   # patches, tiled over M
            pl.BlockSpec((kp, cp), resident),           # w1
            pl.BlockSpec((1, cp), resident),            # b1
            pl.BlockSpec((cp, cp), resident),           # w2
            pl.BlockSpec((1, cp), resident),            # b2
            pl.BlockSpec((cp, cp), resident),           # w3
            pl.BlockSpec((1, cp), resident),            # b3
        ],
        out_specs=pl.BlockSpec((tm, cp), lambda i: (i, 0)),
        compiler_params=pltpu.CompilerParams(
            dimension_semantics=("parallel",)),
    )(patches, w1p, b1p, w2p, b2p, w3p, b3p)

    # Keep the (zero) lane padding: the next block consumes it as-is.
    return out[:m].reshape(n, oh, ow, cp)


# --------------------------------------------------------------------------- #
# Kernel 2: fused 3x3/stride-1 NiN block via in-kernel shift-and-matmul taps
# --------------------------------------------------------------------------- #

def _tap_block_kernel(x_ref, w1_ref, b1_ref, w2_ref, b2_ref, w3_ref, b3_ref,
                      o_ref, *, kh, kw, row_stride, n_rows):
    """Fused KxK(stride 1) conv + 1x1 + 1x1 + ReLUs for one image.

    x_ref : (1, Lx, Cinp) f32   row-major flattened, zero-padded image
    w1_ref: (kh*kw, Cinp, Cp) bf16  one (Cinp, Cp) matrix per conv tap
    o_ref : (1, n_rows, Cp) bf16 with n_rows = OH*Wp (cols >= OW are scratch)

    Output flat row r maps to (oh, ow) = divmod(r, Wp); tap (i, j) reads flat
    row r + i*Wp + j, so each tap contribution is one contiguous row-shifted
    slice of x -> a single matmul per tap, no im2col in HBM.
    """
    acc = None
    for t in range(kh * kw):
        i, j = divmod(t, kw)
        tap = x_ref[0, pl.ds(i * row_stride + j, n_rows), :].astype(jnp.bfloat16)
        p = jnp.dot(tap, w1_ref[t], preferred_element_type=jnp.float32)
        acc = p if acc is None else acc + p
    h = jnp.maximum(acc + b1_ref[...], 0.0).astype(jnp.bfloat16)
    h = jnp.dot(h, w2_ref[...], preferred_element_type=jnp.float32)
    h = jnp.maximum(h + b2_ref[...], 0.0).astype(jnp.bfloat16)
    h = jnp.dot(h, w3_ref[...], preferred_element_type=jnp.float32)
    o_ref[0] = jnp.maximum(h + b3_ref[...], 0.0).astype(jnp.bfloat16)


def _conv3x3_block(x, block_params, padding):
    """Fused 3x3/stride-1 NiN block, one grid step per image (no im2col).

    x: (N, H, W, Cinp) bf16, Cinp a multiple of 128 (extra lanes are zero).
    Returns (N, OH, OW, Cp) bf16 with Cp = round_up(Cout, 128); channels >=
    Cout are exactly zero, so blocks chain without re-padding.
    """
    (w1, b1), (w2, b2), (w3, b3) = block_params
    kh, kw, cin, cout = w1.shape
    n, h, w, cinp = x.shape
    assert cinp % 128 == 0 and cinp >= cin

    oh = h + 2 * padding - kh + 1          # stride 1
    ow = w + 2 * padding - kw + 1
    wp = w + 2 * padding                   # padded row length = flat row stride
    n_rows = oh * wp                       # rows computed per image
    cp = _round_up(cout, 128)

    # Conv zero padding + one extra zero row so every tap window stays in
    # bounds, then flatten row-major.  Staged in f32 because the tap slices
    # start at arbitrary (odd) sublane offsets, which is only robust for
    # 32-bit rows; this is a 1x copy of a tiny activation, not 9x im2col.
    xp = jnp.pad(x.astype(jnp.float32),
                 ((0, 0), (padding, padding + 1), (padding, padding), (0, 0)))
    lx = xp.shape[1] * wp
    x_flat = xp.reshape(n, lx, cinp)

    w1p = jnp.pad(w1, ((0, 0), (0, 0), (0, cinp - cin), (0, cp - cout)))
    w1p = w1p.reshape(kh * kw, cinp, cp).astype(jnp.bfloat16)
    w2p = jnp.pad(w2.reshape(cout, cout),
                  ((0, cp - cout), (0, cp - cout))).astype(jnp.bfloat16)
    w3p = jnp.pad(w3.reshape(cout, cout),
                  ((0, cp - cout), (0, cp - cout))).astype(jnp.bfloat16)
    b1p = jnp.pad(b1, (0, cp - cout)).reshape(1, cp).astype(jnp.float32)
    b2p = jnp.pad(b2, (0, cp - cout)).reshape(1, cp).astype(jnp.float32)
    b3p = jnp.pad(b3, (0, cp - cout)).reshape(1, cp).astype(jnp.float32)

    kernel = partial(_tap_block_kernel, kh=kh, kw=kw, row_stride=wp,
                     n_rows=n_rows)
    res2 = lambda b: (0, 0)
    res3 = lambda b: (0, 0, 0)
    # TODO(synk): pipeline_mode=pl.Buffered(1) on the resident weight specs
    # would single-buffer them on v7x (pure VMEM headroom at these sizes).
    out = pl.pallas_call(
        kernel,
        out_shape=jax.ShapeDtypeStruct((n, n_rows, cp), jnp.bfloat16),
        grid=(n,),        # one image per step; N >= 2 -> both TCs on v7x
        in_specs=[
            pl.BlockSpec((1, lx, cinp), lambda b: (b, 0, 0)),   # image
            pl.BlockSpec((kh * kw, cinp, cp), res3),            # w1 taps
            pl.BlockSpec((1, cp), res2),                        # b1
            pl.BlockSpec((cp, cp), res2),                       # w2
            pl.BlockSpec((1, cp), res2),                        # b2
            pl.BlockSpec((cp, cp), res2),                       # w3
            pl.BlockSpec((1, cp), res2),                        # b3
        ],
        out_specs=pl.BlockSpec((1, n_rows, cp), lambda b: (b, 0, 0)),
        compiler_params=pltpu.CompilerParams(
            dimension_semantics=("parallel",)),
    )(x_flat, w1p, b1p, w2p, b2p, w3p, b3p)

    # Rows are (OH, Wp) row-major; columns >= OW are scratch rows — drop them.
    return out.reshape(n, oh, wp, cp)[:, :, :ow, :]


# --------------------------- plain-JAX glue ---------------------------------- #

def maxpool2d(x, k=3, stride=2):
    """MaxPool2d(kernel=k, stride=stride), floor mode, NHWC, dtype preserving.
    jnp.maximum tree over strided views: pure VPU work, no HBM blow-up.
    TODO(synk): could be folded into the next block's tap gather."""
    n, h, w, c = x.shape
    oh = (h - k) // stride + 1
    ow = (w - k) // stride + 1
    out = None
    for i in range(k):
        for j in range(k):
            v = jax.lax.slice(
                x, (0, i, j, 0),
                (n, i + (oh - 1) * stride + 1, j + (ow - 1) * stride + 1, c),
                (1, stride, stride, 1))
            out = v if out is None else jnp.maximum(out, v)
    return out


# --------------------------- NiN model --------------------------------------- #

def _block_cfg(num_classes):
    # (out_channels, kernel_size, stride, padding, maxpool_after)
    return [
        (96, 11, 4, 0, True),
        (256, 3, 1, 1, True),
        (384, 3, 1, 1, True),
        (num_classes, 3, 1, 1, False),
    ]


def _xavier_uniform(key, kh, kw, cin, cout):
    fan_in = cin * kh * kw
    fan_out = cout * kh * kw
    bound = math.sqrt(6.0 / (fan_in + fan_out))
    return jax.random.uniform(key, (kh, kw, cin, cout), jnp.float32,
                              -bound, bound)


def init_params(key, in_channels, num_classes=10):
    """Deterministic xavier-uniform weights, biases = 0.0001 (as in module)."""
    params = []
    cin = in_channels
    for (cout, k, _s, _p, _pool) in _block_cfg(num_classes):
        block = []
        for ki, cin_i in [(k, cin), (1, cout), (1, cout)]:
            key, sub = jax.random.split(key)
            w = _xavier_uniform(sub, ki, ki, cin_i, cout)
            b = jnp.full((cout,), 1e-4, jnp.float32)
            block.append((w, b))
        params.append(block)
        cin = cout
    return params


def nin_forward(x_nchw, params, num_classes=10):
    # NCHW -> NHWC, cast to bf16 once; activations stay bf16 between blocks
    # (kernel outputs are bf16, maxpool is dtype-preserving).
    x = jnp.transpose(x_nchw, (0, 2, 3, 1)).astype(jnp.bfloat16)
    cfg = _block_cfg(num_classes)
    for bi, (block, (_cout, _k, stride, pad, pool)) in enumerate(zip(params, cfg)):
        if bi == 0:
            x = _stem_block(x, block, stride=stride)        # 11x11 / stride 4
        else:
            x = _conv3x3_block(x, block, padding=pad)       # 3x3 / stride 1
        if pool:
            x = maxpool2d(x, 3, 2)                          # MaxPool2d(3, 2)
    # AdaptiveAvgPool2d((1,1)) + Flatten; drop zero-padded lanes, f32 logits.
    # (left to XLA: launch-overhead dominated at this size)
    x = x[..., :num_classes].astype(jnp.float32)
    return jnp.mean(x, axis=(1, 2))


# --------------------------- main --------------------------------------------- #

if __name__ == "__main__":
    key = jax.random.PRNGKey(0)
    kx, kparams = jax.random.split(key)
    # Small NCHW input (PyTorch convention). 68x68 is (near) the smallest
    # spatial size that survives the 11x11/stride-4 stem + three stride-2 pools.
    x = jax.random.normal(kx, (2, 3, 68, 68), jnp.float32)
    params = init_params(kparams, in_channels=3, num_classes=10)

    fwd = jax.jit(partial(nin_forward, num_classes=10))
    out = fwd(x, params)
    jax.block_until_ready(out)
    assert out.shape == (2, 10), out.shape
    print("KERNEL_OK")
</pallas_src>

<mosaic_0001>
module attributes {stable_mosaic.version = 11 : i64} {
  func.func @_stem_block_kernel(%arg0: i32, %arg1: memref<240x384xbf16, #tpu.memory_space<vmem>>, %arg2: memref<384x128xbf16, #tpu.memory_space<vmem>>, %arg3: memref<1x128xf32, #tpu.memory_space<vmem>>, %arg4: memref<128x128xbf16, #tpu.memory_space<vmem>>, %arg5: memref<1x128xf32, #tpu.memory_space<vmem>>, %arg6: memref<128x128xbf16, #tpu.memory_space<vmem>>, %arg7: memref<1x128xf32, #tpu.memory_space<vmem>>, %arg8: memref<240x128xbf16, #tpu.memory_space<vmem>>) attributes {dimension_semantics = [#tpu.dimension_semantics<parallel>], iteration_bounds = array<i64: 2>, scalar_prefetch = 0 : i64, scratch_operands = 0 : i64, tpu.core_type = #tpu.core_type<tc>, window_params = [{transform_indices = @transform_0, window_bounds = array<i64: 240, 384>}, {pipeline_mode = #tpu.pipeline_mode<synchronous>, transform_indices = @transform_1, window_bounds = array<i64: 384, 128>}, {pipeline_mode = #tpu.pipeline_mode<synchronous>, transform_indices = @transform_2, window_bounds = array<i64: 1, 128>}, {pipeline_mode = #tpu.pipeline_mode<synchronous>, transform_indices = @transform_3, window_bounds = array<i64: 128, 128>}, {pipeline_mode = #tpu.pipeline_mode<synchronous>, transform_indices = @transform_4, window_bounds = array<i64: 1, 128>}, {pipeline_mode = #tpu.pipeline_mode<synchronous>, transform_indices = @transform_5, window_bounds = array<i64: 128, 128>}, {pipeline_mode = #tpu.pipeline_mode<synchronous>, transform_indices = @transform_6, window_bounds = array<i64: 1, 128>}, {transform_indices = @transform_7, window_bounds = array<i64: 240, 128>}]} {
    %c0 = arith.constant 0 : index
    %c0_0 = arith.constant 0 : index
    %0 = vector.load %arg1[%c0, %c0_0] : memref<240x384xbf16, #tpu.memory_space<vmem>>, vector<240x384xbf16>
    %c0_1 = arith.constant 0 : index
    %c0_2 = arith.constant 0 : index
    %1 = vector.load %arg2[%c0_1, %c0_2] : memref<384x128xbf16, #tpu.memory_space<vmem>>, vector<384x128xbf16>
    %cst = arith.constant dense<0.000000e+00> : vector<240x128xf32>
    %2 = tpu.matmul %0, %1, %cst {dimension_numbers = #tpu.dot_dimension_numbers<[1], [0], [0], [1], [0, 0, 1, 1], [], []>} : vector<240x384xbf16>, vector<384x128xbf16>, vector<240x128xf32> -> vector<240x128xf32>
    %c0_3 = arith.constant 0 : index
    %c0_4 = arith.constant 0 : index
    %3 = vector.load %arg3[%c0_3, %c0_4] : memref<1x128xf32, #tpu.memory_space<vmem>>, vector<1x128xf32>
    %4 = vector.broadcast %3 : vector<1x128xf32> to vector<240x128xf32>
    %5 = arith.addf %2, %4 : vector<240x128xf32>
    %cst_5 = arith.constant 0.000000e+00 : f32
    %6 = vector.broadcast %cst_5 : f32 to vector<240x128xf32>
    %7 = arith.maximumf %5, %6 : vector<240x128xf32>
    %8 = arith.truncf %7 : vector<240x128xf32> to vector<240x128xbf16>
    %c0_6 = arith.constant 0 : index
    %c0_7 = arith.constant 0 : index
    %9 = vector.load %arg4[%c0_6, %c0_7] : memref<128x128xbf16, #tpu.memory_space<vmem>>, vector<128x128xbf16>
    %cst_8 = arith.constant dense<0.000000e+00> : vector<240x128xf32>
    %10 = tpu.matmul %8, %9, %cst_8 {dimension_numbers = #tpu.dot_dimension_numbers<[1], [0], [0], [1], [0, 0, 1, 1], [], []>} : vector<240x128xbf16>, vector<128x128xbf16>, vector<240x128xf32> -> vector<240x128xf32>
    %c0_9 = arith.constant 0 : index
    %c0_10 = arith.constant 0 : index
    %11 = vector.load %arg5[%c0_9, %c0_10] : memref<1x128xf32, #tpu.memory_space<vmem>>, vector<1x128xf32>
    %12 = vector.broadcast %11 : vector<1x128xf32> to vector<240x128xf32>
    %13 = arith.addf %10, %12 : vector<240x128xf32>
    %cst_11 = arith.constant 0.000000e+00 : f32
    %14 = vector.broadcast %cst_11 : f32 to vector<240x128xf32>
    %15 = arith.maximumf %13, %14 : vector<240x128xf32>
    %16 = arith.truncf %15 : vector<240x128xf32> to vector<240x128xbf16>
    %c0_12 = arith.constant 0 : index
    %c0_13 = arith.constant 0 : index
    %17 = vector.load %arg6[%c0_12, %c0_13] : memref<128x128xbf16, #tpu.memory_space<vmem>>, vector<128x128xbf16>
    %cst_14 = arith.constant dense<0.000000e+00> : vector<240x128xf32>
    %18 = tpu.matmul %16, %17, %cst_14 {dimension_numbers = #tpu.dot_dimension_numbers<[1], [0], [0], [1], [0, 0, 1, 1], [], []>} : vector<240x128xbf16>, vector<128x128xbf16>, vector<240x128xf32> -> vector<240x128xf32>
    %c0_15 = arith.constant 0 : index
    %c0_16 = arith.constant 0 : index
    %19 = vector.load %arg7[%c0_15, %c0_16] : memref<1x128xf32, #tpu.memory_space<vmem>>, vector<1x128xf32>
    %20 = vector.broadcast %19 : vector<1x128xf32> to vector<240x128xf32>
    %21 = arith.addf %18, %20 : vector<240x128xf32>
    %cst_17 = arith.constant 0.000000e+00 : f32
    %22 = vector.broadcast %cst_17 : f32 to vector<240x128xf32>
    %23 = arith.maximumf %21, %22 : vector<240x128xf32>
    %24 = arith.truncf %23 : vector<240x128xf32> to vector<240x128xbf16>
    %c0_18 = arith.constant 0 : index
    %c0_19 = arith.constant 0 : index
    %25 = vector.load %arg8[%c0_18, %c0_19] : memref<240x128xbf16, #tpu.memory_space<vmem>>, vector<240x128xbf16>
    tpu.vector_store %arg8[%c0_18, %c0_19], %24 {strides = array<i32>} : memref<240x128xbf16, #tpu.memory_space<vmem>>, vector<240x128xbf16>,
    return
  }
  func.func @transform_0(%arg0: i32) -> (i32, i32) {
    %c0_i32 = arith.constant 0 : i32
    %c0_i32_0 = arith.constant 0 : i32
    return %arg0, %c0_i32 : i32, i32
  }
  func.func @transform_1(%arg0: i32) -> (i32, i32) {
    %c0_i32 = arith.constant 0 : i32
    %c0_i32_0 = arith.constant 0 : i32
    %c0_i32_1 = arith.constant 0 : i32
    return %c0_i32, %c0_i32_0 : i32, i32
  }
  func.func @transform_2(%arg0: i32) -> (i32, i32) {
    %c0_i32 = arith.constant 0 : i32
    %c0_i32_0 = arith.constant 0 : i32
    %c0_i32_1 = arith.constant 0 : i32
    return %c0_i32, %c0_i32_0 : i32, i32
  }
  func.func @transform_3(%arg0: i32) -> (i32, i32) {
    %c0_i32 = arith.constant 0 : i32
    %c0_i32_0 = arith.constant 0 : i32
    %c0_i32_1 = arith.constant 0 : i32
    return %c0_i32, %c0_i32_0 : i32, i32
  }
  func.func @transform_4(%arg0: i32) -> (i32, i32) {
    %c0_i32 = arith.constant 0 : i32
    %c0_i32_0 = arith.constant 0 : i32
    %c0_i32_1 = arith.constant 0 : i32
    return %c0_i32, %c0_i32_0 : i32, i32
  }
  func.func @transform_5(%arg0: i32) -> (i32, i32) {
    %c0_i32 = arith.constant 0 : i32
    %c0_i32_0 = arith.constant 0 : i32
    %c0_i32_1 = arith.constant 0 : i32
    return %c0_i32, %c0_i32_0 : i32, i32
  }
  func.func @transform_6(%arg0: i32) -> (i32, i32) {
    %c0_i32 = arith.constant 0 : i32
    %c0_i32_0 = arith.constant 0 : i32
    %c0_i32_1 = arith.constant 0 : i32
    return %c0_i32, %c0_i32_0 : i32, i32
  }
  func.func @transform_7(%arg0: i32) -> (i32, i32) {
    %c0_i32 = arith.constant 0 : i32
    %c0_i32_0 = arith.constant 0 : i32
    return %arg0, %c0_i32 : i32, i32
  }
}

module attributes {stable_mosaic.version = 11 : i64} {
  func.func @_tap_block_kernel(%arg0: i32, %arg1: memref<1x90x128xf32, #tpu.memory_space<vmem>>, %arg2: memref<9x128x256xbf16, #tpu.memory_space<vmem>>, %arg3: memref<1x256xf32, #tpu.memory_space<vmem>>, %arg4: memref<256x256xbf16, #tpu.memory_space<vmem>>, %arg5: memref<1x256xf32, #tpu.memory_space<vmem>>, %arg6: memref<256x256xbf16, #tpu.memory_space<vmem>>, %arg7: memref<1x256xf32, #tpu.memory_space<vmem>>, %arg8: memref<1x63x256xbf16, #tpu.memory_space<vmem>>) attributes {dimension_semantics = [#tpu.dimension_semantics<parallel>], iteration_bounds = array<i64: 2>, scalar_prefetch = 0 : i64, scratch_operands = 0 : i64, tpu.core_type = #tpu.core_type<tc>, window_params = [{transform_indices = @transform_0, window_bounds = array<i64: 1, 90, 128>}, {pipeline_mode = #tpu.pipeline_mode<synchronous>, transform_indices = @transform_1, window_bounds = array<i64: 9, 128, 256>}, {pipeline_mode = #tpu.pipeline_mode<synchronous>, transform_indices = @transform_2, window_bounds = array<i64: 1, 256>}, {pipeline_mode = #tpu.pipeline_mode<synchronous>, transform_indices = @transform_3, window_bounds = array<i64: 256, 256>}, {pipeline_mode = #tpu.pipeline_mode<synchronous>, transform_indices = @transform_4, window_bounds = array<i64: 1, 256>}, {pipeline_mode = #tpu.pipeline_mode<synchronous>, transform_indices = @transform_5, window_bounds = array<i64: 256, 256>}, {pipeline_mode = #tpu.pipeline_mode<synchronous>, transform_indices = @transform_6, window_bounds = array<i64: 1, 256>}, {transform_indices = @transform_7, window_bounds = array<i64: 1, 63, 256>}]} {
    %c0 = arith.constant 0 : index
    %c0_0 = arith.constant 0 : index
    %c0_1 = arith.constant 0 : index
    %0 = vector.load %arg1[%c0, %c0_0, %c0_1] : memref<1x90x128xf32, #tpu.memory_space<vmem>>, vector<1x63x128xf32>
    %1 = vector.shape_cast %0 : vector<1x63x128xf32> to vector<63x128xf32>
    %2 = arith.truncf %1 : vector<63x128xf32> to vector<63x128xbf16>
    %c0_2 = arith.constant 0 : index
    %c0_3 = arith.constant 0 : index
    %c0_4 = arith.constant 0 : index
    %3 = vector.load %arg2[%c0_2, %c0_3, %c0_4] : memref<9x128x256xbf16, #tpu.memory_space<vmem>>, vector<1x128x256xbf16>
    %4 = vector.shape_cast %3 : vector<1x128x256xbf16> to vector<128x256xbf16>
    %cst = arith.constant dense<0.000000e+00> : vector<63x256xf32>
    %5 = tpu.matmul %2, %4, %cst {dimension_numbers = #tpu.dot_dimension_numbers<[1], [0], [0], [1], [0, 0, 1, 1], [], []>} : vector<63x128xbf16>, vector<128x256xbf16>, vector<63x256xf32> -> vector<63x256xf32>
    %c0_5 = arith.constant 0 : index
    %c1 = arith.constant 1 : index
    %c0_6 = arith.constant 0 : index
    %6 = vector.load %arg1[%c0_5, %c1, %c0_6] : memref<1x90x128xf32, #tpu.memory_space<vmem>>, vector<1x63x128xf32>
    %7 = vector.shape_cast %6 : vector<1x63x128xf32> to vector<63x128xf32>
    %8 = arith.truncf %7 : vector<63x128xf32> to vector<63x128xbf16>
    %c1_7 = arith.constant 1 : index
    %c0_8 = arith.constant 0 : index
    %c0_9 = arith.constant 0 : index
    %9 = vector.load %arg2[%c1_7, %c0_8, %c0_9] : memref<9x128x256xbf16, #tpu.memory_space<vmem>>, vector<1x128x256xbf16>
    %10 = vector.shape_cast %9 : vector<1x128x256xbf16> to vector<128x256xbf16>
    %cst_10 = arith.constant dense<0.000000e+00> : vector<63x256xf32>
    %11 = tpu.matmul %8, %10, %cst_10 {dimension_numbers = #tpu.dot_dimension_numbers<[1], [0], [0], [1], [0, 0, 1, 1], [], []>} : vector<63x128xbf16>, vector<128x256xbf16>, vector<63x256xf32> -> vector<63x256xf32>
    %12 = arith.addf %5, %11 : vector<63x256xf32>
    %c0_11 = arith.constant 0 : index
    %c2 = arith.constant 2 : index
    %c0_12 = arith.constant 0 : index
    %13 = vector.load %arg1[%c0_11, %c2, %c0_12] : memref<1x90x128xf32, #tpu.memory_space<vmem>>, vector<1x63x128xf32>
    %14 = vector.shape_cast %13 : vector<1x63x128xf32> to vector<63x128xf32>
    %15 = arith.truncf %14 : vector<63x128xf32> to vector<63x128xbf16>
    %c2_13 = arith.constant 2 : index
    %c0_14 = arith.constant 0 : index
    %c0_15 = arith.constant 0 : index
    %16 = vector.load %arg2[%c2_13, %c0_14, %c0_15] : memref<9x128x256xbf16, #tpu.memory_space<vmem>>, vector<1x128x256xbf16>
    %17 = vector.shape_cast %16 : vector<1x128x256xbf16> to vector<128x256xbf16>
    %cst_16 = arith.constant dense<0.000000e+00> : vector<63x256xf32>
    %18 = tpu.matmul %15, %17, %cst_16 {dimension_numbers = #tpu.dot_dimension_numbers<[1], [0], [0], [1], [0, 0, 1, 1], [], []>} : vector<63x128xbf16>, vector<128x256xbf16>, vector<63x256xf32> -> vector<63x256xf32>
    %19 = arith.addf %12, %18 : vector<63x256xf32>
    %c0_17 = arith.constant 0 : index
    %c9 = arith.constant 9 : index
    %c0_18 = arith.constant 0 : index
    %20 = vector.load %arg1[%c0_17, %c9, %c0_18] : memref<1x90x128xf32, #tpu.memory_space<vmem>>, vector<1x63x128xf32>
    %21 = vector.shape_cast %20 : vector<1x63x128xf32> to vector<63x128xf32>
    %22 = arith.truncf %21 : vector<63x128xf32> to vector<63x128xbf16>
    %c3 = arith.constant 3 : index
    %c0_19 = arith.constant 0 : index
    %c0_20 = arith.constant 0 : index
    %23 = vector.load %arg2[%c3, %c0_19, %c0_20] : memref<9x128x256xbf16, #tpu.memory_space<vmem>>, vector<1x128x256xbf16>
    %24 = vector.shape_cast %23 : vector<1x128x256xbf16> to vector<128x256xbf16>
    %cst_21 = arith.constant dense<0.000000e+00> : vector<63x256xf32>
    %25 = tpu.matmul %22, %24, %cst_21 {dimension_numbers = #tpu.dot_dimension_numbers<[1], [0], [0], [1], [0, 0, 1, 1], [], []>} : vector<63x128xbf16>, vector<128x256xbf16>, vector<63x256xf32> -> vector<63x256xf32>
    %26 = arith.addf %19, %25 : vector<63x256xf32>
    %c0_22 = arith.constant 0 : index
    %c10 = arith.constant 10 : index
    %c0_23 = arith.constant 0 : index
    %27 = vector.load %arg1[%c0_22, %c10, %c0_23] : memref<1x90x128xf32, #tpu.memory_space<vmem>>, vector<1x63x128xf32>
    %28 = vector.shape_cast %27 : vector<1x63x128xf32> to vector<63x128xf32>
    %29 = arith.truncf %28 : vector<63x128xf32> to vector<63x128xbf16>
    %c4 = arith.constant 4 : index
    %c0_24 = arith.constant 0 : index
    %c0_25 = arith.constant 0 : index
    %30 = vector.load %arg2[%c4, %c0_24, %c0_25] : memref<9x128x256xbf16, #tpu.memory_space<vmem>>, vector<1x128x256xbf16>
    %31 = vector.shape_cast %30 : vector<1x128x256xbf16> to vector<128x256xbf16>
    %cst_26 = arith.constant dense<0.000000e+00> : vector<63x256xf32>
    %32 = tpu.matmul %29, %31, %cst_26 {dimension_numbers = #tpu.dot_dimension_numbers<[1], [0], [0], [1], [0, 0, 1, 1], [], []>} : vector<63x128xbf16>, vector<128x256xbf16>, vector<63x256xf32> -> vector<63x256xf32>
    %33 = arith.addf %26, %32 : vector<63x256xf32>
    %c0_27 = arith.constant 0 : index
    %c11 = arith.constant 11 : index
    %c0_28 = arith.constant 0 : index
    %34 = vector.load %arg1[%c0_27, %c11, %c0_28] : memref<1x90x128xf32, #tpu.memory_space<vmem>>, vector<1x63x128xf32>
    %35 = vector.shape_cast %34 : vector<1x63x128xf32> to vector<63x128xf32>
    %36 = arith.truncf %35 : vector<63x128xf32> to vector<63x128xbf16>
    %c5 = arith.constant 5 : index
    %c0_29 = arith.constant 0 : index
    %c0_30 = arith.constant 0 : index
    %37 = vector.load %arg2[%c5, %c0_29, %c0_30] : memref<9x128x256xbf16, #tpu.memory_space<vmem>>, vector<1x128x256xbf16>
    %38 = vector.shape_cast %37 : vector<1x128x256xbf16> to vector<128x256xbf16>
    %cst_31 = arith.constant dense<0.000000e+00> : vector<63x256xf32>
    %39 = tpu.matmul %36, %38, %cst_31 {dimension_numbers = #tpu.dot_dimension_numbers<[1], [0], [0], [1], [0, 0, 1, 1], [], []>} : vector<63x128xbf16>, vector<128x256xbf16>, vector<63x256xf32> -> vector<63x256xf32>
    %40 = arith.addf %33, %39 : vector<63x256xf32>
    %c0_32 = arith.constant 0 : index
    %c18 = arith.constant 18 : index
    %c0_33 = arith.constant 0 : index
    %41 = vector.load %arg1[%c0_32, %c18, %c0_33] : memref<1x90x128xf32, #tpu.memory_space<vmem>>, vector<1x63x128xf32>
    %42 = vector.shape_cast %41 : vector<1x63x128xf32> to vector<63x128xf32>
    %43 = arith.truncf %42 : vector<63x128xf32> to vector<63x128xbf16>
    %c6 = arith.constant 6 : index
    %c0_34 = arith.constant 0 : index
    %c0_35 = arith.constant 0 : index
    %44 = vector.load %arg2[%c6, %c0_34, %c0_35] : memref<9x128x256xbf16, #tpu.memory_space<vmem>>, vector<1x128x256xbf16>
    %45 = vector.shape_cast %44 : vector<1x128x256xbf16> to vector<128x256xbf16>
    %cst_36 = arith.constant dense<0.000000e+00> : vector<63x256xf32>
    %46 = tpu.matmul %43, %45, %cst_36 {dimension_numbers = #tpu.dot_dimension_numbers<[1], [0], [0], [1], [0, 0, 1, 1], [], []>} : vector<63x128xbf16>, vector<128x256xbf16>, vector<63x256xf32> -> vector<63x256xf32>
    %47 = arith.addf %40, %46 : vector<63x256xf32>
    %c0_37 = arith.constant 0 : index
    %c19 = arith.constant 19 : index
    %c0_38 = arith.constant 0 : index
    %48 = vector.load %arg1[%c0_37, %c19, %c0_38] : memref<1x90x128xf32, #tpu.memory_space<vmem>>, vector<1x63x128xf32>
    %49 = vector.shape_cast %48 : vector<1x63x128xf32> to vector<63x128xf32>
    %50 = arith.truncf %49 : vector<63x128xf32> to vector<63x128xbf16>
    %c7 = arith.constant 7 : index
    %c0_39 = arith.constant 0 : index
    %c0_40 = arith.constant 0 : index
    %51 = vector.load %arg2[%c7, %c0_39, %c0_40] : memref<9x128x256xbf16, #tpu.memory_space<vmem>>, vector<1x128x256xbf16>
    %52 = vector.shape_cast %51 : vector<1x128x256xbf16> to vector<128x256xbf16>
    %cst_41 = arith.constant dense<0.000000e+00> : vector<63x256xf32>
    %53 = tpu.matmul %50, %52, %cst_41 {dimension_numbers = #tpu.dot_dimension_numbers<[1], [0], [0], [1], [0, 0, 1, 1], [], []>} : vector<63x128xbf16>, vector<128x256xbf16>, vector<63x256xf32> -> vector<63x256xf32>
    %54 = arith.addf %47, %53 : vector<63x256xf32>
    %c0_42 = arith.constant 0 : index
    %c20 = arith.constant 20 : index
    %c0_43 = arith.constant 0 : index
    %55 = vector.load %arg1[%c0_42, %c20, %c0_43] : memref<1x90x128xf32, #tpu.memory_space<vmem>>, vector<1x63x128xf32>
    %56 = vector.shape_cast %55 : vector<1x63x128xf32> to vector<63x128xf32>
    %57 = arith.truncf %56 : vector<63x128xf32> to vector<63x128xbf16>
    %c8 = arith.constant 8 : index
    %c0_44 = arith.constant 0 : index
    %c0_45 = arith.constant 0 : index
    %58 = vector.load %arg2[%c8, %c0_44, %c0_45] : memref<9x128x256xbf16, #tpu.memory_space<vmem>>, vector<1x128x256xbf16>
    %59 = vector.shape_cast %58 : vector<1x128x256xbf16> to vector<128x256xbf16>
    %cst_46 = arith.constant dense<0.000000e+00> : vector<63x256xf32>
    %60 = tpu.matmul %57, %59, %cst_46 {dimension_numbers = #tpu.dot_dimension_numbers<[1], [0], [0], [1], [0, 0, 1, 1], [], []>} : vector<63x128xbf16>, vector<128x256xbf16>, vector<63x256xf32> -> vector<63x256xf32>
    %61 = arith.addf %54, %60 : vector<63x256xf32>
    %c0_47 = arith.constant 0 : index
    %c0_48 = arith.constant 0 : index
    %62 = vector.load %arg3[%c0_47, %c0_48] : memref<1x256xf32, #tpu.memory_space<vmem>>, vector<1x256xf32>
    %63 = vector.broadcast %62 : vector<1x256xf32> to vector<63x256xf32>
    %64 = arith.addf %61, %63 : vector<63x256xf32>
    %cst_49 = arith.constant 0.000000e+00 : f32
    %65 = vector.broadcast %cst_49 : f32 to vector<63x256xf32>
    %66 = arith.maximumf %64, %65 : vector<63x256xf32>
    %67 = arith.truncf %66 : vector<63x256xf32> to vector<63x256xbf16>
    %c0_50 = arith.constant 0 : index
    %c0_51 = arith.constant 0 : index
    %68 = vector.load %arg4[%c0_50, %c0_51] : memref<256x256xbf16, #tpu.memory_space<vmem>>, vector<256x256xbf16>
    %cst_52 = arith.constant dense<0.000000e+00> : vector<63x256xf32>
    %69 = tpu.matmul %67, %68, %cst_52 {dimension_numbers = #tpu.dot_dimension_numbers<[1], [0], [0], [1], [0, 0, 1, 1], [], []>} : vector<63x256xbf16>, vector<256x256xbf16>, vector<63x256xf32> -> vector<63x256xf32>
    %c0_53 = arith.constant 0 : index
    %c0_54 = arith.constant 0 : index
    %70 = vector.load %arg5[%c0_53, %c0_54] : memref<1x256xf32, #tpu.memory_space<vmem>>, vector<1x256xf32>
    %71 = vector.broadcast %70 : vector<1x256xf32> to vector<63x256xf32>
    %72 = arith.addf %69, %71 : vector<63x256xf32>
    %cst_55 = arith.constant 0.000000e+00 : f32
    %73 = vector.broadcast %cst_55 : f32 to vector<63x256xf32>
    %74 = arith.maximumf %72, %73 : vector<63x256xf32>
    %75 = arith.truncf %74 : vector<63x256xf32> to vector<63x256xbf16>
    %c0_56 = arith.constant 0 : index
    %c0_57 = arith.constant 0 : index
    %76 = vector.load %arg6[%c0_56, %c0_57] : memref<256x256xbf16, #tpu.memory_space<vmem>>, vector<256x256xbf16>
    %cst_58 = arith.constant dense<0.000000e+00> : vector<63x256xf32>
    %77 = tpu.matmul %75, %76, %cst_58 {dimension_numbers = #tpu.dot_dimension_numbers<[1], [0], [0], [1], [0, 0, 1, 1], [], []>} : vector<63x256xbf16>, vector<256x256xbf16>, vector<63x256xf32> -> vector<63x256xf32>
    %c0_59 = arith.constant 0 : index
    %c0_60 = arith.constant 0 : index
    %78 = vector.load %arg7[%c0_59, %c0_60] : memref<1x256xf32, #tpu.memory_space<vmem>>, vector<1x256xf32>
    %79 = vector.broadcast %78 : vector<1x256xf32> to vector<63x256xf32>
    %80 = arith.addf %77, %79 : vector<63x256xf32>
    %cst_61 = arith.constant 0.000000e+00 : f32
    %81 = vector.broadcast %cst_61 : f32 to vector<63x256xf32>
    %82 = arith.maximumf %80, %81 : vector<63x256xf32>
    %83 = arith.truncf %82 : vector<63x256xf32> to vector<63x256xbf16>
    %c0_62 = arith.constant 0 : index
    %c0_63 = arith.constant 0 : index
    %c0_64 = arith.constant 0 : index
    %84 = vector.load %arg8[%c0_62, %c0_63, %c0_64] : memref<1x63x256xbf16, #tpu.memory_space<vmem>>, vector<1x63x256xbf16>
    %85 = vector.shape_cast %84 : vector<1x63x256xbf16> to vector<63x256xbf16>
    %86 = vector.shape_cast %83 : vector<63x256xbf16> to vector<1x63x256xbf16>
    tpu.vector_store %arg8[%c0_62, %c0_63, %c0_64], %86 {strides = array<i32>} : memref<1x63x256xbf16, #tpu.memory_space<vmem>>, vector<1x63x256xbf16>,
    return
  }
  func.func @transform_0(%arg0: i32) -> (i32, i32, i32) {
    %c0_i32 = arith.constant 0 : i32
    %c0_i32_0 = arith.constant 0 : i32
    %c0_i32_1 = arith.constant 0 : i32
    return %arg0, %c0_i32, %c0_i32_0 : i32, i32, i32
  }
  func.func @transform_1(%arg0: i32) -> (i32, i32, i32) {
    %c0_i32 = arith.constant 0 : i32
    %c0_i32_0 = arith.constant 0 : i32
    %c0_i32_1 = arith.constant 0 : i32
    %c0_i32_2 = arith.constant 0 : i32
    return %c0_i32, %c0_i32_0, %c0_i32_1 : i32, i32, i32
  }
  func.func @transform_2(%arg0: i32) -> (i32, i32) {
    %c0_i32 = arith.constant 0 : i32
    %c0_i32_0 = arith.constant 0 : i32
    %c0_i32_1 = arith.constant 0 : i32
    return %c0_i32, %c0_i32_0 : i32, i32
  }
  func.func @transform_3(%arg0: i32) -> (i32, i32) {
    %c0_i32 = arith.constant 0 : i32
    %c0_i32_0 = arith.constant 0 : i32
    %c0_i32_1 = arith.constant 0 : i32
    return %c0_i32, %c0_i32_0 : i32, i32
  }
  func.func @transform_4(%arg0: i32) -> (i32, i32) {
    %c0_i32 = arith.constant 0 : i32
    %c0_i32_0 = arith.constant 0 : i32
    %c0_i32_1 = arith.constant 0 : i32
    return %c0_i32, %c0_i32_0 : i32, i32
  }
  func.func @transform_5(%arg0: i32) -> (i32, i32) {
    %c0_i32 = arith.constant 0 : i32
    %c0_i32_0 = arith.constant 0 : i32
    %c0_i32_1 = arith.constant 0 : i32
    return %c0_i32, %c0_i32_0 : i32, i32
  }
  func.func @transform_6(%arg0: i32) -> (i32, i32) {
    %c0_i32 = arith.constant 0 : i32
    %c0_i32_0 = arith.constant 0 : i32
    %c0_i32_1 = arith.constant 0 : i32
    return %c0_i32, %c0_i32_0 : i32, i32
  }
  func.func @transform_7(%arg0: i32) -> (i32, i32, i32) {
    %c0_i32 = arith.constant 0 : i32
    %c0_i32_0 = arith.constant 0 : i32
    %c0_i32_1 = arith.constant 0 : i32
    return %arg0, %c0_i32, %c0_i32_0 : i32, i32, i32
  }
}

module attributes {stable_mosaic.version = 11 : i64} {
  func.func @_tap_block_kernel(%arg0: i32, %arg1: memref<1x30x256xf32, #tpu.memory_space<vmem>>, %arg2: memref<9x256x384xbf16, #tpu.memory_space<vmem>>, %arg3: memref<1x384xf32, #tpu.memory_space<vmem>>, %arg4: memref<384x384xbf16, #tpu.memory_space<vmem>>, %arg5: memref<1x384xf32, #tpu.memory_space<vmem>>, %arg6: memref<384x384xbf16, #tpu.memory_space<vmem>>, %arg7: memref<1x384xf32, #tpu.memory_space<vmem>>, %arg8: memref<1x15x384xbf16, #tpu.memory_space<vmem>>) attributes {dimension_semantics = [#tpu.dimension_semantics<parallel>], iteration_bounds = array<i64: 2>, scalar_prefetch = 0 : i64, scratch_operands = 0 : i64, tpu.core_type = #tpu.core_type<tc>, window_params = [{transform_indices = @transform_0, window_bounds = array<i64: 1, 30, 256>}, {pipeline_mode = #tpu.pipeline_mode<synchronous>, transform_indices = @transform_1, window_bounds = array<i64: 9, 256, 384>}, {pipeline_mode = #tpu.pipeline_mode<synchronous>, transform_indices = @transform_2, window_bounds = array<i64: 1, 384>}, {pipeline_mode = #tpu.pipeline_mode<synchronous>, transform_indices = @transform_3, window_bounds = array<i64: 384, 384>}, {pipeline_mode = #tpu.pipeline_mode<synchronous>, transform_indices = @transform_4, window_bounds = array<i64: 1, 384>}, {pipeline_mode = #tpu.pipeline_mode<synchronous>, transform_indices = @transform_5, window_bounds = array<i64: 384, 384>}, {pipeline_mode = #tpu.pipeline_mode<synchronous>, transform_indices = @transform_6, window_bounds = array<i64: 1, 384>}, {transform_indices = @transform_7, window_bounds = array<i64: 1, 15, 384>}]} {
    %c0 = arith.constant 0 : index
    %c0_0 = arith.constant 0 : index
    %c0_1 = arith.constant 0 : index
    %0 = vector.load %arg1[%c0, %c0_0, %c0_1] : memref<1x30x256xf32, #tpu.memory_space<vmem>>, vector<1x15x256xf32>
    %1 = vector.shape_cast %0 : vector<1x15x256xf32> to vector<15x256xf32>
    %2 = arith.truncf %1 : vector<15x256xf32> to vector<15x256xbf16>
    %c0_2 = arith.constant 0 : index
    %c0_3 = arith.constant 0 : index
    %c0_4 = arith.constant 0 : index
    %3 = vector.load %arg2[%c0_2, %c0_3, %c0_4] : memref<9x256x384xbf16, #tpu.memory_space<vmem>>, vector<1x256x384xbf16>
    %4 = vector.shape_cast %3 : vector<1x256x384xbf16> to vector<256x384xbf16>
    %cst = arith.constant dense<0.000000e+00> : vector<15x384xf32>
    %5 = tpu.matmul %2, %4, %cst {dimension_numbers = #tpu.dot_dimension_numbers<[1], [0], [0], [1], [0, 0, 1, 1], [], []>} : vector<15x256xbf16>, vector<256x384xbf16>, vector<15x384xf32> -> vector<15x384xf32>
    %c0_5 = arith.constant 0 : index
    %c1 = arith.constant 1 : index
    %c0_6 = arith.constant 0 : index
    %6 = vector.load %arg1[%c0_5, %c1, %c0_6] : memref<1x30x256xf32, #tpu.memory_space<vmem>>, vector<1x15x256xf32>
    %7 = vector.shape_cast %6 : vector<1x15x256xf32> to vector<15x256xf32>
    %8 = arith.truncf %7 : vector<15x256xf32> to vector<15x256xbf16>
    %c1_7 = arith.constant 1 : index
    %c0_8 = arith.constant 0 : index
    %c0_9 = arith.constant 0 : index
    %9 = vector.load %arg2[%c1_7, %c0_8, %c0_9] : memref<9x256x384xbf16, #tpu.memory_space<vmem>>, vector<1x256x384xbf16>
    %10 = vector.shape_cast %9 : vector<1x256x384xbf16> to vector<256x384xbf16>
    %cst_10 = arith.constant dense<0.000000e+00> : vector<15x384xf32>
    %11 = tpu.matmul %8, %10, %cst_10 {dimension_numbers = #tpu.dot_dimension_numbers<[1], [0], [0], [1], [0, 0, 1, 1], [], []>} : vector<15x256xbf16>, vector<256x384xbf16>, vector<15x384xf32> -> vector<15x384xf32>
    %12 = arith.addf %5, %11 : vector<15x384xf32>
    %c0_11 = arith.constant 0 : index
    %c2 = arith.constant 2 : index
    %c0_12 = arith.constant 0 : index
    %13 = vector.load %arg1[%c0_11, %c2, %c0_12] : memref<1x30x256xf32, #tpu.memory_space<vmem>>, vector<1x15x256xf32>
    %14 = vector.shape_cast %13 : vector<1x15x256xf32> to vector<15x256xf32>
    %15 = arith.truncf %14 : vector<15x256xf32> to vector<15x256xbf16>
    %c2_13 = arith.constant 2 : index
    %c0_14 = arith.constant 0 : index
    %c0_15 = arith.constant 0 : index
    %16 = vector.load %arg2[%c2_13, %c0_14, %c0_15] : memref<9x256x384xbf16, #tpu.memory_space<vmem>>, vector<1x256x384xbf16>
    %17 = vector.shape_cast %16 : vector<1x256x384xbf16> to vector<256x384xbf16>
    %cst_16 = arith.constant dense<0.000000e+00> : vector<15x384xf32>
    %18 = tpu.matmul %15, %17, %cst_16 {dimension_numbers = #tpu.dot_dimension_numbers<[1], [0], [0], [1], [0, 0, 1, 1], [], []>} : vector<15x256xbf16>, vector<256x384xbf16>, vector<15x384xf32> -> vector<15x384xf32>
    %19 = arith.addf %12, %18 : vector<15x384xf32>
    %c0_17 = arith.constant 0 : index
    %c5 = arith.constant 5 : index
    %c0_18 = arith.constant 0 : index
    %20 = vector.load %arg1[%c0_17, %c5, %c0_18] : memref<1x30x256xf32, #tpu.memory_space<vmem>>, vector<1x15x256xf32>
    %21 = vector.shape_cast %20 : vector<1x15x256xf32> to vector<15x256xf32>
    %22 = arith.truncf %21 : vector<15x256xf32> to vector<15x256xbf16>
    %c3 = arith.constant 3 : index
    %c0_19 = arith.constant 0 : index
    %c0_20 = arith.constant 0 : index
    %23 = vector.load %arg2[%c3, %c0_19, %c0_20] : memref<9x256x384xbf16, #tpu.memory_space<vmem>>, vector<1x256x384xbf16>
    %24 = vector.shape_cast %23 : vector<1x256x384xbf16> to vector<256x384xbf16>
    %cst_21 = arith.constant dense<0.000000e+00> : vector<15x384xf32>
    %25 = tpu.matmul %22, %24, %cst_21 {dimension_numbers = #tpu.dot_dimension_numbers<[1], [0], [0], [1], [0, 0, 1, 1], [], []>} : vector<15x256xbf16>, vector<256x384xbf16>, vector<15x384xf32> -> vector<15x384xf32>
    %26 = arith.addf %19, %25 : vector<15x384xf32>
    %c0_22 = arith.constant 0 : index
    %c6 = arith.constant 6 : index
    %c0_23 = arith.constant 0 : index
    %27 = vector.load %arg1[%c0_22, %c6, %c0_23] : memref<1x30x256xf32, #tpu.memory_space<vmem>>, vector<1x15x256xf32>
    %28 = vector.shape_cast %27 : vector<1x15x256xf32> to vector<15x256xf32>
    %29 = arith.truncf %28 : vector<15x256xf32> to vector<15x256xbf16>
    %c4 = arith.constant 4 : index
    %c0_24 = arith.constant 0 : index
    %c0_25 = arith.constant 0 : index
    %30 = vector.load %arg2[%c4, %c0_24, %c0_25] : memref<9x256x384xbf16, #tpu.memory_space<vmem>>, vector<1x256x384xbf16>
    %31 = vector.shape_cast %30 : vector<1x256x384xbf16> to vector<256x384xbf16>
    %cst_26 = arith.constant dense<0.000000e+00> : vector<15x384xf32>
    %32 = tpu.matmul %29, %31, %cst_26 {dimension_numbers = #tpu.dot_dimension_numbers<[1], [0], [0], [1], [0, 0, 1, 1], [], []>} : vector<15x256xbf16>, vector<256x384xbf16>, vector<15x384xf32> -> vector<15x384xf32>
    %33 = arith.addf %26, %32 : vector<15x384xf32>
    %c0_27 = arith.constant 0 : index
    %c7 = arith.constant 7 : index
    %c0_28 = arith.constant 0 : index
    %34 = vector.load %arg1[%c0_27, %c7, %c0_28] : memref<1x30x256xf32, #tpu.memory_space<vmem>>, vector<1x15x256xf32>
    %35 = vector.shape_cast %34 : vector<1x15x256xf32> to vector<15x256xf32>
    %36 = arith.truncf %35 : vector<15x256xf32> to vector<15x256xbf16>
    %c5_29 = arith.constant 5 : index
    %c0_30 = arith.constant 0 : index
    %c0_31 = arith.constant 0 : index
    %37 = vector.load %arg2[%c5_29, %c0_30, %c0_31] : memref<9x256x384xbf16, #tpu.memory_space<vmem>>, vector<1x256x384xbf16>
    %38 = vector.shape_cast %37 : vector<1x256x384xbf16> to vector<256x384xbf16>
    %cst_32 = arith.constant dense<0.000000e+00> : vector<15x384xf32>
    %39 = tpu.matmul %36, %38, %cst_32 {dimension_numbers = #tpu.dot_dimension_numbers<[1], [0], [0], [1], [0, 0, 1, 1], [], []>} : vector<15x256xbf16>, vector<256x384xbf16>, vector<15x384xf32> -> vector<15x384xf32>
    %40 = arith.addf %33, %39 : vector<15x384xf32>
    %c0_33 = arith.constant 0 : index
    %c10 = arith.constant 10 : index
    %c0_34 = arith.constant 0 : index
    %41 = vector.load %arg1[%c0_33, %c10, %c0_34] : memref<1x30x256xf32, #tpu.memory_space<vmem>>, vector<1x15x256xf32>
    %42 = vector.shape_cast %41 : vector<1x15x256xf32> to vector<15x256xf32>
    %43 = arith.truncf %42 : vector<15x256xf32> to vector<15x256xbf16>
    %c6_35 = arith.constant 6 : index
    %c0_36 = arith.constant 0 : index
    %c0_37 = arith.constant 0 : index
    %44 = vector.load %arg2[%c6_35, %c0_36, %c0_37] : memref<9x256x384xbf16, #tpu.memory_space<vmem>>, vector<1x256x384xbf16>
    %45 = vector.shape_cast %44 : vector<1x256x384xbf16> to vector<256x384xbf16>
    %cst_38 = arith.constant dense<0.000000e+00> : vector<15x384xf32>
    %46 = tpu.matmul %43, %45, %cst_38 {dimension_numbers = #tpu.dot_dimension_numbers<[1], [0], [0], [1], [0, 0, 1, 1], [], []>} : vector<15x256xbf16>, vector<256x384xbf16>, vector<15x384xf32> -> vector<15x384xf32>
    %47 = arith.addf %40, %46 : vector<15x384xf32>
    %c0_39 = arith.constant 0 : index
    %c11 = arith.constant 11 : index
    %c0_40 = arith.constant 0 : index
    %48 = vector.load %arg1[%c0_39, %c11, %c0_40] : memref<1x30x256xf32, #tpu.memory_space<vmem>>, vector<1x15x256xf32>
    %49 = vector.shape_cast %48 : vector<1x15x256xf32> to vector<15x256xf32>
    %50 = arith.truncf %49 : vector<15x256xf32> to vector<15x256xbf16>
    %c7_41 = arith.constant 7 : index
    %c0_42 = arith.constant 0 : index
    %c0_43 = arith.constant 0 : index
    %51 = vector.load %arg2[%c7_41, %c0_42, %c0_43] : memref<9x256x384xbf16, #tpu.memory_space<vmem>>, vector<1x256x384xbf16>
    %52 = vector.shape_cast %51 : vector<1x256x384xbf16> to vector<256x384xbf16>
    %cst_44 = arith.constant dense<0.000000e+00> : vector<15x384xf32>
    %53 = tpu.matmul %50, %52, %cst_44 {dimension_numbers = #tpu.dot_dimension_numbers<[1], [0], [0], [1], [0, 0, 1, 1], [], []>} : vector<15x256xbf16>, vector<256x384xbf16>, vector<15x384xf32> -> vector<15x384xf32>
    %54 = arith.addf %47, %53 : vector<15x384xf32>
    %c0_45 = arith.constant 0 : index
    %c12 = arith.constant 12 : index
    %c0_46 = arith.constant 0 : index
    %55 = vector.load %arg1[%c0_45, %c12, %c0_46] : memref<1x30x256xf32, #tpu.memory_space<vmem>>, vector<1x15x256xf32>
    %56 = vector.shape_cast %55 : vector<1x15x256xf32> to vector<15x256xf32>
    %57 = arith.truncf %56 : vector<15x256xf32> to vector<15x256xbf16>
    %c8 = arith.constant 8 : index
    %c0_47 = arith.constant 0 : index
    %c0_48 = arith.constant 0 : index
    %58 = vector.load %arg2[%c8, %c0_47, %c0_48] : memref<9x256x384xbf16, #tpu.memory_space<vmem>>, vector<1x256x384xbf16>
    %59 = vector.shape_cast %58 : vector<1x256x384xbf16> to vector<256x384xbf16>
    %cst_49 = arith.constant dense<0.000000e+00> : vector<15x384xf32>
    %60 = tpu.matmul %57, %59, %cst_49 {dimension_numbers = #tpu.dot_dimension_numbers<[1], [0], [0], [1], [0, 0, 1, 1], [], []>} : vector<15x256xbf16>, vector<256x384xbf16>, vector<15x384xf32> -> vector<15x384xf32>
    %61 = arith.addf %54, %60 : vector<15x384xf32>
    %c0_50 = arith.constant 0 : index
    %c0_51 = arith.constant 0 : index
    %62 = vector.load %arg3[%c0_50, %c0_51] : memref<1x384xf32, #tpu.memory_space<vmem>>, vector<1x384xf32>
    %63 = vector.broadcast %62 : vector<1x384xf32> to vector<15x384xf32>
    %64 = arith.addf %61, %63 : vector<15x384xf32>
    %cst_52 = arith.constant 0.000000e+00 : f32
    %65 = vector.broadcast %cst_52 : f32 to vector<15x384xf32>
    %66 = arith.maximumf %64, %65 : vector<15x384xf32>
    %67 = arith.truncf %66 : vector<15x384xf32> to vector<15x384xbf16>
    %c0_53 = arith.constant 0 : index
    %c0_54 = arith.constant 0 : index
    %68 = vector.load %arg4[%c0_53, %c0_54] : memref<384x384xbf16, #tpu.memory_space<vmem>>, vector<384x384xbf16>
    %cst_55 = arith.constant dense<0.000000e+00> : vector<15x384xf32>
    %69 = tpu.matmul %67, %68, %cst_55 {dimension_numbers = #tpu.dot_dimension_numbers<[1], [0], [0], [1], [0, 0, 1, 1], [], []>} : vector<15x384xbf16>, vector<384x384xbf16>, vector<15x384xf32> -> vector<15x384xf32>
    %c0_56 = arith.constant 0 : index
    %c0_57 = arith.constant 0 : index
    %70 = vector.load %arg5[%c0_56, %c0_57] : memref<1x384xf32, #tpu.memory_space<vmem>>, vector<1x384xf32>
    %71 = vector.broadcast %70 : vector<1x384xf32> to vector<15x384xf32>
    %72 = arith.addf %69, %71 : vector<15x384xf32>
    %cst_58 = arith.constant 0.000000e+00 : f32
    %73 = vector.broadcast %cst_58 : f32 to vector<15x384xf32>
    %74 = arith.maximumf %72, %73 : vector<15x384xf32>
    %75 = arith.truncf %74 : vector<15x384xf32> to vector<15x384xbf16>
    %c0_59 = arith.constant 0 : index
    %c0_60 = arith.constant 0 : index
    %76 = vector.load %arg6[%c0_59, %c0_60] : memref<384x384xbf16, #tpu.memory_space<vmem>>, vector<384x384xbf16>
    %cst_61 = arith.constant dense<0.000000e+00> : vector<15x384xf32>
    %77 = tpu.matmul %75, %76, %cst_61 {dimension_numbers = #tpu.dot_dimension_numbers<[1], [0], [0], [1], [0, 0, 1, 1], [], []>} : vector<15x384xbf16>, vector<384x384xbf16>, vector<15x384xf32> -> vector<15x384xf32>
    %c0_62 = arith.constant 0 : index
    %c0_63 = arith.constant 0 : index
    %78 = vector.load %arg7[%c0_62, %c0_63] : memref<1x384xf32, #tpu.memory_space<vmem>>, vector<1x384xf32>
    %79 = vector.broadcast %78 : vector<1x384xf32> to vector<15x384xf32>
    %80 = arith.addf %77, %79 : vector<15x384xf32>
    %cst_64 = arith.constant 0.000000e+00 : f32
    %81 = vector.broadcast %cst_64 : f32 to vector<15x384xf32>
    %82 = arith.maximumf %80, %81 : vector<15x384xf32>
    %83 = arith.truncf %82 : vector<15x384xf32> to vector<15x384xbf16>
    %c0_65 = arith.constant 0 : index
    %c0_66 = arith.constant 0 : index
    %c0_67 = arith.constant 0 : index
    %84 = vector.load %arg8[%c0_65, %c0_66, %c0_67] : memref<1x15x384xbf16, #tpu.memory_space<vmem>>, vector<1x15x384xbf16>
    %85 = vector.shape_cast %84 : vector<1x15x384xbf16> to vector<15x384xbf16>
    %86 = vector.shape_cast %83 : vector<15x384xbf16> to vector<1x15x384xbf16>
    tpu.vector_store %arg8[%c0_65, %c0_66, %c0_67], %86 {strides = array<i32>} : memref<1x15x384xbf16, #tpu.memory_space<vmem>>, vector<1x15x384xbf16>,
    return
  }
  func.func @transform_0(%arg0: i32) -> (i32, i32, i32) {
    %c0_i32 = arith.constant 0 : i32
    %c0_i32_0 = arith.constant 0 : i32
    %c0_i32_1 = arith.constant 0 : i32
    return %arg0, %c0_i32, %c0_i32_0 : i32, i32, i32
  }
  func.func @transform_1(%arg0: i32) -> (i32, i32, i32) {
    %c0_i32 = arith.constant 0 : i32
    %c0_i32_0 = arith.constant 0 : i32
    %c0_i32_1 = arith.constant 0 : i32
    %c0_i32_2 = arith.constant 0 : i32
    return %c0_i32, %c0_i32_0, %c0_i32_1 : i32, i32, i32
  }
  func.func @transform_2(%arg0: i32) -> (i32, i32) {
    %c0_i32 = arith.constant 0 : i32
    %c0_i32_0 = arith.constant 0 : i32
    %c0_i32_1 = arith.constant 0 : i32
    return %c0_i32, %c0_i32_0 : i32, i32
  }
  func.func @transform_3(%arg0: i32) -> (i32, i32) {
    %c0_i32 = arith.constant 0 : i32
    %c0_i32_0 = arith.constant 0 : i32
    %c0_i32_1 = arith.constant 0 : i32
    return %c0_i32, %c0_i32_0 : i32, i32
  }
  func.func @transform_4(%arg0: i32) -> (i32, i32) {
    %c0_i32 = arith.constant 0 : i32
    %c0_i32_0 = arith.constant 0 : i32
    %c0_i32_1 = arith.constant 0 : i32
    return %c0_i32, %c0_i32_0 : i32, i32
  }
  func.func @transform_5(%arg0: i32) -> (i32, i32) {
    %c0_i32 = arith.constant 0 : i32
    %c0_i32_0 = arith.constant 0 : i32
    %c0_i32_1 = arith.constant 0 : i32
    return %c0_i32, %c0_i32_0 : i32, i32
  }
  func.func @transform_6(%arg0: i32) -> (i32, i32) {
    %c0_i32 = arith.constant 0 : i32
    %c0_i32_0 = arith.constant 0 : i32
    %c0_i32_1 = arith.constant 0 : i32
    return %c0_i32, %c0_i32_0 : i32, i32
  }
  func.func @transform_7(%arg0: i32) -> (i32, i32, i32) {
    %c0_i32 = arith.constant 0 : i32
    %c0_i32_0 = arith.constant 0 : i32
    %c0_i32_1 = arith.constant 0 : i32
    return %arg0, %c0_i32, %c0_i32_0 : i32, i32, i32
  }
}

module attributes {stable_mosaic.version = 11 : i64} {
  func.func @_tap_block_kernel(%arg0: i32, %arg1: memref<1x12x384xf32, #tpu.memory_space<vmem>>, %arg2: memref<9x384x128xbf16, #tpu.memory_space<vmem>>, %arg3: memref<1x128xf32, #tpu.memory_space<vmem>>, %arg4: memref<128x128xbf16, #tpu.memory_space<vmem>>, %arg5: memref<1x128xf32, #tpu.memory_space<vmem>>, %arg6: memref<128x128xbf16, #tpu.memory_space<vmem>>, %arg7: memref<1x128xf32, #tpu.memory_space<vmem>>, %arg8: memref<1x3x128xbf16, #tpu.memory_space<vmem>>) attributes {dimension_semantics = [#tpu.dimension_semantics<parallel>], iteration_bounds = array<i64: 2>, scalar_prefetch = 0 : i64, scratch_operands = 0 : i64, tpu.core_type = #tpu.core_type<tc>, window_params = [{transform_indices = @transform_0, window_bounds = array<i64: 1, 12, 384>}, {pipeline_mode = #tpu.pipeline_mode<synchronous>, transform_indices = @transform_1, window_bounds = array<i64: 9, 384, 128>}, {pipeline_mode = #tpu.pipeline_mode<synchronous>, transform_indices = @transform_2, window_bounds = array<i64: 1, 128>}, {pipeline_mode = #tpu.pipeline_mode<synchronous>, transform_indices = @transform_3, window_bounds = array<i64: 128, 128>}, {pipeline_mode = #tpu.pipeline_mode<synchronous>, transform_indices = @transform_4, window_bounds = array<i64: 1, 128>}, {pipeline_mode = #tpu.pipeline_mode<synchronous>, transform_indices = @transform_5, window_bounds = array<i64: 128, 128>}, {pipeline_mode = #tpu.pipeline_mode<synchronous>, transform_indices = @transform_6, window_bounds = array<i64: 1, 128>}, {transform_indices = @transform_7, window_bounds = array<i64: 1, 3, 128>}]} {
    %c0 = arith.constant 0 : index
    %c0_0 = arith.constant 0 : index
    %c0_1 = arith.constant 0 : index
    %0 = vector.load %arg1[%c0, %c0_0, %c0_1] : memref<1x12x384xf32, #tpu.memory_space<vmem>>, vector<1x3x384xf32>
    %1 = vector.shape_cast %0 : vector<1x3x384xf32> to vector<3x384xf32>
    %2 = arith.truncf %1 : vector<3x384xf32> to vector<3x384xbf16>
    %c0_2 = arith.constant 0 : index
    %c0_3 = arith.constant 0 : index
    %c0_4 = arith.constant 0 : index
    %3 = vector.load %arg2[%c0_2, %c0_3, %c0_4] : memref<9x384x128xbf16, #tpu.memory_space<vmem>>, vector<1x384x128xbf16>
    %4 = vector.shape_cast %3 : vector<1x384x128xbf16> to vector<384x128xbf16>
    %cst = arith.constant dense<0.000000e+00> : vector<3x128xf32>
    %5 = tpu.matmul %2, %4, %cst {dimension_numbers = #tpu.dot_dimension_numbers<[1], [0], [0], [1], [0, 0, 1, 1], [], []>} : vector<3x384xbf16>, vector<384x128xbf16>, vector<3x128xf32> -> vector<3x128xf32>
    %c0_5 = arith.constant 0 : index
    %c1 = arith.constant 1 : index
    %c0_6 = arith.constant 0 : index
    %6 = vector.load %arg1[%c0_5, %c1, %c0_6] : memref<1x12x384xf32, #tpu.memory_space<vmem>>, vector<1x3x384xf32>
    %7 = vector.shape_cast %6 : vector<1x3x384xf32> to vector<3x384xf32>
    %8 = arith.truncf %7 : vector<3x384xf32> to vector<3x384xbf16>
    %c1_7 = arith.constant 1 : index
    %c0_8 = arith.constant 0 : index
    %c0_9 = arith.constant 0 : index
    %9 = vector.load %arg2[%c1_7, %c0_8, %c0_9] : memref<9x384x128xbf16, #tpu.memory_space<vmem>>, vector<1x384x128xbf16>
    %10 = vector.shape_cast %9 : vector<1x384x128xbf16> to vector<384x128xbf16>
    %cst_10 = arith.constant dense<0.000000e+00> : vector<3x128xf32>
    %11 = tpu.matmul %8, %10, %cst_10 {dimension_numbers = #tpu.dot_dimension_numbers<[1], [0], [0], [1], [0, 0, 1, 1], [], []>} : vector<3x384xbf16>, vector<384x128xbf16>, vector<3x128xf32> -> vector<3x128xf32>
    %12 = arith.addf %5, %11 : vector<3x128xf32>
    %c0_11 = arith.constant 0 : index
    %c2 = arith.constant 2 : index
    %c0_12 = arith.constant 0 : index
    %13 = vector.load %arg1[%c0_11, %c2, %c0_12] : memref<1x12x384xf32, #tpu.memory_space<vmem>>, vector<1x3x384xf32>
    %14 = vector.shape_cast %13 : vector<1x3x384xf32> to vector<3x384xf32>
    %15 = arith.truncf %14 : vector<3x384xf32> to vector<3x384xbf16>
    %c2_13 = arith.constant 2 : index
    %c0_14 = arith.constant 0 : index
    %c0_15 = arith.constant 0 : index
    %16 = vector.load %arg2[%c2_13, %c0_14, %c0_15] : memref<9x384x128xbf16, #tpu.memory_space<vmem>>, vector<1x384x128xbf16>
    %17 = vector.shape_cast %16 : vector<1x384x128xbf16> to vector<384x128xbf16>
    %cst_16 = arith.constant dense<0.000000e+00> : vector<3x128xf32>
    %18 = tpu.matmul %15, %17, %cst_16 {dimension_numbers = #tpu.dot_dimension_numbers<[1], [0], [0], [1], [0, 0, 1, 1], [], []>} : vector<3x384xbf16>, vector<384x128xbf16>, vector<3x128xf32> -> vector<3x128xf32>
    %19 = arith.addf %12, %18 : vector<3x128xf32>
    %c0_17 = arith.constant 0 : index
    %c3 = arith.constant 3 : index
    %c0_18 = arith.constant 0 : index
    %20 = vector.load %arg1[%c0_17, %c3, %c0_18] : memref<1x12x384xf32, #tpu.memory_space<vmem>>, vector<1x3x384xf32>
    %21 = vector.shape_cast %20 : vector<1x3x384xf32> to vector<3x384xf32>
    %22 = arith.truncf %21 : vector<3x384xf32> to vector<3x384xbf16>
    %c3_19 = arith.constant 3 : index
    %c0_20 = arith.constant 0 : index
    %c0_21 = arith.constant 0 : index
    %23 = vector.load %arg2[%c3_19, %c0_20, %c0_21] : memref<9x384x128xbf16, #tpu.memory_space<vmem>>, vector<1x384x128xbf16>
    %24 = vector.shape_cast %23 : vector<1x384x128xbf16> to vector<384x128xbf16>
    %cst_22 = arith.constant dense<0.000000e+00> : vector<3x128xf32>
    %25 = tpu.matmul %22, %24, %cst_22 {dimension_numbers = #tpu.dot_dimension_numbers<[1], [0], [0], [1], [0, 0, 1, 1], [], []>} : vector<3x384xbf16>, vector<384x128xbf16>, vector<3x128xf32> -> vector<3x128xf32>
    %26 = arith.addf %19, %25 : vector<3x128xf32>
    %c0_23 = arith.constant 0 : index
    %c4 = arith.constant 4 : index
    %c0_24 = arith.constant 0 : index
    %27 = vector.load %arg1[%c0_23, %c4, %c0_24] : memref<1x12x384xf32, #tpu.memory_space<vmem>>, vector<1x3x384xf32>
    %28 = vector.shape_cast %27 : vector<1x3x384xf32> to vector<3x384xf32>
    %29 = arith.truncf %28 : vector<3x384xf32> to vector<3x384xbf16>
    %c4_25 = arith.constant 4 : index
    %c0_26 = arith.constant 0 : index
    %c0_27 = arith.constant 0 : index
    %30 = vector.load %arg2[%c4_25, %c0_26, %c0_27] : memref<9x384x128xbf16, #tpu.memory_space<vmem>>, vector<1x384x128xbf16>
    %31 = vector.shape_cast %30 : vector<1x384x128xbf16> to vector<384x128xbf16>
    %cst_28 = arith.constant dense<0.000000e+00> : vector<3x128xf32>
    %32 = tpu.matmul %29, %31, %cst_28 {dimension_numbers = #tpu.dot_dimension_numbers<[1], [0], [0], [1], [0, 0, 1, 1], [], []>} : vector<3x384xbf16>, vector<384x128xbf16>, vector<3x128xf32> -> vector<3x128xf32>
    %33 = arith.addf %26, %32 : vector<3x128xf32>
    %c0_29 = arith.constant 0 : index
    %c5 = arith.constant 5 : index
    %c0_30 = arith.constant 0 : index
    %34 = vector.load %arg1[%c0_29, %c5, %c0_30] : memref<1x12x384xf32, #tpu.memory_space<vmem>>, vector<1x3x384xf32>
    %35 = vector.shape_cast %34 : vector<1x3x384xf32> to vector<3x384xf32>
    %36 = arith.truncf %35 : vector<3x384xf32> to vector<3x384xbf16>
    %c5_31 = arith.constant 5 : index
    %c0_32 = arith.constant 0 : index
    %c0_33 = arith.constant 0 : index
    %37 = vector.load %arg2[%c5_31, %c0_32, %c0_33] : memref<9x384x128xbf16, #tpu.memory_space<vmem>>, vector<1x384x128xbf16>
    %38 = vector.shape_cast %37 : vector<1x384x128xbf16> to vector<384x128xbf16>
    %cst_34 = arith.constant dense<0.000000e+00> : vector<3x128xf32>
    %39 = tpu.matmul %36, %38, %cst_34 {dimension_numbers = #tpu.dot_dimension_numbers<[1], [0], [0], [1], [0, 0, 1, 1], [], []>} : vector<3x384xbf16>, vector<384x128xbf16>, vector<3x128xf32> -> vector<3x128xf32>
    %40 = arith.addf %33, %39 : vector<3x128xf32>
    %c0_35 = arith.constant 0 : index
    %c6 = arith.constant 6 : index
    %c0_36 = arith.constant 0 : index
    %41 = vector.load %arg1[%c0_35, %c6, %c0_36] : memref<1x12x384xf32, #tpu.memory_space<vmem>>, vector<1x3x384xf32>
    %42 = vector.shape_cast %41 : vector<1x3x384xf32> to vector<3x384xf32>
    %43 = arith.truncf %42 : vector<3x384xf32> to vector<3x384xbf16>
    %c6_37 = arith.constant 6 : index
    %c0_38 = arith.constant 0 : index
    %c0_39 = arith.constant 0 : index
    %44 = vector.load %arg2[%c6_37, %c0_38, %c0_39] : memref<9x384x128xbf16, #tpu.memory_space<vmem>>, vector<1x384x128xbf16>
    %45 = vector.shape_cast %44 : vector<1x384x128xbf16> to vector<384x128xbf16>
    %cst_40 = arith.constant dense<0.000000e+00> : vector<3x128xf32>
    %46 = tpu.matmul %43, %45, %cst_40 {dimension_numbers = #tpu.dot_dimension_numbers<[1], [0], [0], [1], [0, 0, 1, 1], [], []>} : vector<3x384xbf16>, vector<384x128xbf16>, vector<3x128xf32> -> vector<3x128xf32>
    %47 = arith.addf %40, %46 : vector<3x128xf32>
    %c0_41 = arith.constant 0 : index
    %c7 = arith.constant 7 : index
    %c0_42 = arith.constant 0 : index
    %48 = vector.load %arg1[%c0_41, %c7, %c0_42] : memref<1x12x384xf32, #tpu.memory_space<vmem>>, vector<1x3x384xf32>
    %49 = vector.shape_cast %48 : vector<1x3x384xf32> to vector<3x384xf32>
    %50 = arith.truncf %49 : vector<3x384xf32> to vector<3x384xbf16>
    %c7_43 = arith.constant 7 : index
    %c0_44 = arith.constant 0 : index
    %c0_45 = arith.constant 0 : index
    %51 = vector.load %arg2[%c7_43, %c0_44, %c0_45] : memref<9x384x128xbf16, #tpu.memory_space<vmem>>, vector<1x384x128xbf16>
    %52 = vector.shape_cast %51 : vector<1x384x128xbf16> to vector<384x128xbf16>
    %cst_46 = arith.constant dense<0.000000e+00> : vector<3x128xf32>
    %53 = tpu.matmul %50, %52, %cst_46 {dimension_numbers = #tpu.dot_dimension_numbers<[1], [0], [0], [1], [0, 0, 1, 1], [], []>} : vector<3x384xbf16>, vector<384x128xbf16>, vector<3x128xf32> -> vector<3x128xf32>
    %54 = arith.addf %47, %53 : vector<3x128xf32>
    %c0_47 = arith.constant 0 : index
    %c8 = arith.constant 8 : index
    %c0_48 = arith.constant 0 : index
    %55 = vector.load %arg1[%c0_47, %c8, %c0_48] : memref<1x12x384xf32, #tpu.memory_space<vmem>>, vector<1x3x384xf32>
    %56 = vector.shape_cast %55 : vector<1x3x384xf32> to vector<3x384xf32>
    %57 = arith.truncf %56 : vector<3x384xf32> to vector<3x384xbf16>
    %c8_49 = arith.constant 8 : index
    %c0_50 = arith.constant 0 : index
    %c0_51 = arith.constant 0 : index
    %58 = vector.load %arg2[%c8_49, %c0_50, %c0_51] : memref<9x384x128xbf16, #tpu.memory_space<vmem>>, vector<1x384x128xbf16>
    %59 = vector.shape_cast %58 : vector<1x384x128xbf16> to vector<384x128xbf16>
    %cst_52 = arith.constant dense<0.000000e+00> : vector<3x128xf32>
    %60 = tpu.matmul %57, %59, %cst_52 {dimension_numbers = #tpu.dot_dimension_numbers<[1], [0], [0], [1], [0, 0, 1, 1], [], []>} : vector<3x384xbf16>, vector<384x128xbf16>, vector<3x128xf32> -> vector<3x128xf32>
    %61 = arith.addf %54, %60 : vector<3x128xf32>
    %c0_53 = arith.constant 0 : index
    %c0_54 = arith.constant 0 : index
    %62 = vector.load %arg3[%c0_53, %c0_54] : memref<1x128xf32, #tpu.memory_space<vmem>>, vector<1x128xf32>
    %63 = vector.broadcast %62 : vector<1x128xf32> to vector<3x128xf32>
    %64 = arith.addf %61, %63 : vector<3x128xf32>
    %cst_55 = arith.constant 0.000000e+00 : f32
    %65 = vector.broadcast %cst_55 : f32 to vector<3x128xf32>
    %66 = arith.maximumf %64, %65 : vector<3x128xf32>
    %67 = arith.truncf %66 : vector<3x128xf32> to vector<3x128xbf16>
    %c0_56 = arith.constant 0 : index
    %c0_57 = arith.constant 0 : index
    %68 = vector.load %arg4[%c0_56, %c0_57] : memref<128x128xbf16, #tpu.memory_space<vmem>>, vector<128x128xbf16>
    %cst_58 = arith.constant dense<0.000000e+00> : vector<3x128xf32>
    %69 = tpu.matmul %67, %68, %cst_58 {dimension_numbers = #tpu.dot_dimension_numbers<[1], [0], [0], [1], [0, 0, 1, 1], [], []>} : vector<3x128xbf16>, vector<128x128xbf16>, vector<3x128xf32> -> vector<3x128xf32>
    %c0_59 = arith.constant 0 : index
    %c0_60 = arith.constant 0 : index
    %70 = vector.load %arg5[%c0_59, %c0_60] : memref<1x128xf32, #tpu.memory_space<vmem>>, vector<1x128xf32>
    %71 = vector.broadcast %70 : vector<1x128xf32> to vector<3x128xf32>
    %72 = arith.addf %69, %71 : vector<3x128xf32>
    %cst_61 = arith.constant 0.000000e+00 : f32
    %73 = vector.broadcast %cst_61 : f32 to vector<3x128xf32>
    %74 = arith.maximumf %72, %73 : vector<3x128xf32>
    %75 = arith.truncf %74 : vector<3x128xf32> to vector<3x128xbf16>
    %c0_62 = arith.constant 0 : index
    %c0_63 = arith.constant 0 : index
    %76 = vector.load %arg6[%c0_62, %c0_63] : memref<128x128xbf16, #tpu.memory_space<vmem>>, vector<128x128xbf16>
    %cst_64 = arith.constant dense<0.000000e+00> : vector<3x128xf32>
    %77 = tpu.matmul %75, %76, %cst_64 {dimension_numbers = #tpu.dot_dimension_numbers<[1], [0], [0], [1], [0, 0, 1, 1], [], []>} : vector<3x128xbf16>, vector<128x128xbf16>, vector<3x128xf32> -> vector<3x128xf32>
    %c0_65 = arith.constant 0 : index
    %c0_66 = arith.constant 0 : index
    %78 = vector.load %arg7[%c0_65, %c0_66] : memref<1x128xf32, #tpu.memory_space<vmem>>, vector<1x128xf32>
    %79 = vector.broadcast %78 : vector<1x128xf32> to vector<3x128xf32>
    %80 = arith.addf %77, %79 : vector<3x128xf32>
    %cst_67 = arith.constant 0.000000e+00 : f32
    %81 = vector.broadcast %cst_67 : f32 to vector<3x128xf32>
    %82 = arith.maximumf %80, %81 : vector<3x128xf32>
    %83 = arith.truncf %82 : vector<3x128xf32> to vector<3x128xbf16>
    %c0_68 = arith.constant 0 : index
    %c0_69 = arith.constant 0 : index
    %c0_70 = arith.constant 0 : index
    %84 = vector.load %arg8[%c0_68, %c0_69, %c0_70] : memref<1x3x128xbf16, #tpu.memory_space<vmem>>, vector<1x3x128xbf16>
    %85 = vector.shape_cast %84 : vector<1x3x128xbf16> to vector<3x128xbf16>
    %86 = vector.shape_cast %83 : vector<3x128xbf16> to vector<1x3x128xbf16>
    tpu.vector_store %arg8[%c0_68, %c0_69, %c0_70], %86 {strides = array<i32>} : memref<1x3x128xbf16, #tpu.memory_space<vmem>>, vector<1x3x128xbf16>,
    return
  }
  func.func @transform_0(%arg0: i32) -> (i32, i32, i32) {
    %c0_i32 = arith.constant 0 : i32
    %c0_i32_0 = arith.constant 0 : i32
    %c0_i32_1 = arith.constant 0 : i32
    return %arg0, %c0_i32, %c0_i32_0 : i32, i32, i32
  }
  func.func @transform_1(%arg0: i32) -> (i32, i32, i32) {
    %c0_i32 = arith.constant 0 : i32
    %c0_i32_0 = arith.constant 0 : i32
    %c0_i32_1 = arith.constant 0 : i32
    %c0_i32_2 = arith.constant 0 : i32
    return %c0_i32, %c0_i32_0, %c0_i32_1 : i32, i32, i32
  }
  func.func @transform_2(%arg0: i32) -> (i32, i32) {
    %c0_i32 = arith.constant 0 : i32
    %c0_i32_0 = arith.constant 0 : i32
    %c0_i32_1 = arith.constant 0 : i32
    return %c0_i32, %c0_i32_0 : i32, i32
  }
  func.func @transform_3(%arg0: i32) -> (i32, i32) {
    %c0_i32 = arith.constant 0 : i32
    %c0_i32_0 = arith.constant 0 : i32
    %c0_i32_1 = arith.constant 0 : i32
    return %c0_i32, %c0_i32_0 : i32, i32
  }
  func.func @transform_4(%arg0: i32) -> (i32, i32) {
    %c0_i32 = arith.constant 0 : i32
    %c0_i32_0 = arith.constant 0 : i32
    %c0_i32_1 = arith.constant 0 : i32
    return %c0_i32, %c0_i32_0 : i32, i32
  }
  func.func @transform_5(%arg0: i32) -> (i32, i32) {
    %c0_i32 = arith.constant 0 : i32
    %c0_i32_0 = arith.constant 0 : i32
    %c0_i32_1 = arith.constant 0 : i32
    return %c0_i32, %c0_i32_0 : i32, i32
  }
  func.func @transform_6(%arg0: i32) -> (i32, i32) {
    %c0_i32 = arith.constant 0 : i32
    %c0_i32_0 = arith.constant 0 : i32
    %c0_i32_1 = arith.constant 0 : i32
    return %c0_i32, %c0_i32_0 : i32, i32
  }
  func.func @transform_7(%arg0: i32) -> (i32, i32, i32) {
    %c0_i32 = arith.constant 0 : i32
    %c0_i32_0 = arith.constant 0 : i32
    %c0_i32_1 = arith.constant 0 : i32
    return %arg0, %c0_i32, %c0_i32_0 : i32, i32, i32
  }
}

</mosaic_0001>

<bundles_post_ra>
// kernel: nin_forward.4
= control target key start
LH: loop header
LB: loop body
LE: loop exit
PB: predicated region body
PF: predicated region fallthrough
CT: control target
= control target key end

     0   :  { %s2675_s24 = smov 0   ;;  %s3099_s0 = inlined_call_operand.vmem [shape: bf16[480,384], index: 0, kind: input, shape index: {}]   ;;  %s3100_s1 = inlined_call_operand.vmem [shape: bf16[384,128], index: 1, kind: input, shape index: {}]   ;;  %s3101_s2 = inlined_call_operand.vmem [shape: f32[1,128], index: 2, kind: input, shape index: {}]   ;;  %s3102_s3 = inlined_call_operand.vmem [shape: bf16[128,128], index: 3, kind: input, shape index: {}]   ;;  %s3103_s4 = inlined_call_operand.vmem [shape: f32[1,128], index: 4, kind: input, shape index: {}]   ;;  %s3104_s5 = inlined_call_operand.vmem [shape: bf16[128,128], index: 5, kind: input, shape index: {}]   ;;  %s3105_s6 = inlined_call_operand.vmem [shape: f32[1,128], index: 6, kind: input, shape index: {}]   ;;  %s3106_s7 = inlined_call_operand.vmem [shape: bf16[480,128], index: 7, kind: output, shape index: {}]  }
   0x1 LB: > { %s1865_s25 = sadd.s32 4294967295, %s2631_s24   ;;  %p1869_p0 = scmp.ge.s32.totalorder %s2631_s24, 1  ;;  %s2631_s24 = sphi %s2675_s24, %s17_s24  }
   0x2   : > { %p239_p1 = scmp.lt.s32.totalorder %s2631_s24, 3 }
   0x4   : > { %p240_p2 = pnand %p1869_p0, %p239_p1 }
   0x5   : > { %s272_s17 = smul.u32 (!%p240_p2), 30, %s1865_s25 }
   0x6   : > { %243 = sbr.rel (%p240_p2) target bundleno = 772 (0x304), region = 48 }
   0x7   : > { %p273_p3 = scmp.lt.s32.totalorder (!%p240_p2), %s272_s17, 59 }
   0xb   : > { %v2525_v0 = vld [vmem:[%s3100_s1 + $0x78] sm:$0xff]   ;;  %v2633_v1 = vmov 0.0   ;;  %v2528_v4 = vld [vmem:[%s3100_s1 + $0x70] sm:$0xff]   ;;  %vm2634_vm0 = vmmov 0   ;;  %v2531_v7 = vld [vmem:[%s3100_s1 + $0x68] sm:$0xff]   ;;  %s3108_s17 = smov (!%p273_p3, %s272_s17), 59 }
   0xc   : > { %2286 = vmatprep.subr.bf16.mxu1 %v2633_v1  ;;  %v2526_v2 = vld [vmem:[%s3100_s1 + $0x38] sm:$0xff]   ;;  %2111 = vmatprep.subr.bf16.mxu0 %v2525_v0  ;;  %v2529_v5 = vld [vmem:[%s3100_s1 + $0x30] sm:$0xff]   ;;  %v2532_v8 = vld [vmem:[%s3100_s1 + $0x28] sm:$0xff]   ;;  %s2514_s16 = smul.u32 12, %s3108_s17  ;;  %s1871_s10 = sshll.u32 %s3108_s17, 2 }
   0xd   : > { %v2527_v3 = vld [vmem:[%s3100_s1 + $0xb8] sm:$0xff]   ;;  %2112 = vmatpush3.bf16.msra.mxu0 %v2526_v2  ;;  %2302 = vmatprep.mubr.msk.bf16.mxu1 %vm2634_vm0, %v2633_v1  ;;  %v2530_v6 = vld [vmem:[%s3100_s1 + $0xb0] sm:$0xff]   ;;  %v2533_v9 = vld [vmem:[%s3100_s1 + $0xa8] sm:$0xff]  }
   0xe   : > { %2287 = vmatpush3.bf16.msra.mxu1 %v2527_v3  ;;  %2113 = vmatprep.subr.bf16.mxu0 %v2528_v4  ;;  %v2534_v10 = vld [vmem:[%s3100_s1 + $0x60] sm:$0xff]   ;;  %v2537_v13 = vld [vmem:[%s3100_s1 + $0x58] sm:$0xff]   ;;  %v2540_v16 = vld [vmem:[%s3100_s1 + $0x50] sm:$0xff]   ;;  %s2757_s25 = scalar_lea.vmem %s3099_s0, %s2514_s16 }
   0xf   : > { %2288 = vmatprep.subr.bf16.mxu1 %v2633_v1  ;;  %v2535_v11 = vld [vmem:[%s3100_s1 + $0x20] sm:$0xff]   ;;  %v2538_v14 = vld [vmem:[%s3100_s1 + $0x18] sm:$0xff]   ;;  %v2541_v17 = vld [vmem:[%s3100_s1 + $0x10] sm:$0xff]  }
  0x10   : > { %v2536_v12 = vld [vmem:[%s3100_s1 + $0xa0] sm:$0xff]   ;;  %v2539_v15 = vld [vmem:[%s3100_s1 + $0x98] sm:$0xff]   ;;  %v2542_v18 = vld [vmem:[%s3100_s1 + $0x90] sm:$0xff]  }
  0x11   : > { %2114 = vmatpush3.bf16.msra.mxu0 %v2529_v5  ;;  %v2543_v19 = vld [vmem:[%s3100_s1 + $0x48] sm:$0xff]   ;;  %v2546_v22 = vld [vmem:[%s3100_s1 + $0x40] sm:$0xff]   ;;  %v2559_v32 = vld [vmem:[%s2757_s25 + $0x30] ss:$12 sps:$4 sm:$0xff]  }
  0x12   : > { %2289 = vmatpush3.bf16.msra.mxu1 %v2530_v6  ;;  %2115 = vmatprep.subr.bf16.mxu0 %v2531_v7  ;;  %v2544_v20 = vld [vmem:[%s3100_s1 + $0x8] sm:$0xff]   ;;  %v2551_v23 = vld [vmem:[%s2757_s25 + $0x4] ss:$12 sps:$4 sm:$0xff]   ;;  %v2557_v31 = vld [vmem:[%s2757_s25 + $0x34] ss:$12 sps:$4 sm:$0xff]  }
  0x13   : > { %2290 = vmatprep.subr.bf16.mxu1 %v2633_v1  ;;  %v2545_v21 = vld [vmem:[%s3100_s1 + $0x88] sm:$0xff]   ;;  %v2547_v24 = vld [vmem:[%s3100_s1] sm:$0xff]   ;;  %817 = vmatprep.mubr.bf16.mxu0 %v2551_v23  ;;  %v2597_v35 = vld [vmem:[%s3102_s3 + $0x38] sm:$0xff]  }
  0x14   : > { %v2548_v25 = vld [vmem:[%s3100_s1 + $0x80] sm:$0xff]   ;;  %v2552_v27 = vld [vmem:[%s2757_s25 + $0x8] ss:$12 sps:$4 sm:$0xff]   ;;  %v2561_v34 = vld [vmem:[%s2757_s25 + $0x4c] ss:$12 sps:$4 sm:$0xff]  }
  0x15   : > { %2116 = vmatpush3.bf16.msra.mxu0 %v2532_v8  ;;  %v2549_v26 = vld [vmem:[%s2757_s25] ss:$12 sps:$4 sm:$0xff]   ;;  %v2553_v28 = vld [vmem:[%s2757_s25 + $0x1c] ss:$12 sps:$4 sm:$0xff]   ;;  %v2555_v29 = vld [vmem:[%s2757_s25 + $0x18] ss:$12 sps:$4 sm:$0xff]  }
  0x16   : > { %2291 = vmatpush3.bf16.msra.mxu1 %v2533_v9  ;;  %2117 = vmatprep.subr.bf16.mxu0 %v2534_v10  ;;  %v2556_v30 = vld [vmem:[%s2757_s25 + $0x20] ss:$12 sps:$4 sm:$0xff]   ;;  %v2560_v33 = vld [vmem:[%s2757_s25 + $0x38] ss:$12 sps:$4 sm:$0xff]   ;;  %v2563_v36 = vld [vmem:[%s2757_s25 + $0x48] ss:$12 sps:$4 sm:$0xff]  }
  0x17   : > { %2292 = vmatprep.subr.bf16.mxu1 %v2633_v1  ;;  %v2564_v37 = vld [vmem:[%s2757_s25 + $0x50] ss:$12 sps:$4 sm:$0xff]   ;;  %v2567_v40 = vld [vmem:[%s2757_s25 + $0x60] ss:$12 sps:$4 sm:$0xff]   ;;  %v2568_v42 = vld [vmem:[%s2757_s25 + $0x68] ss:$12 sps:$4 sm:$0xff]  }
  0x18   : > { %v2565_v38 = vld [vmem:[%s2757_s25 + $0x64] ss:$12 sps:$4 sm:$0xff]   ;;  %v2611_v41 = vld [vmem:[%s3102_s3 + $0x28] sm:$0xff]   ;;  %v2613_v45 = vld [vmem:[%s3102_s3 + $0x18] sm:$0xff]  }
  0x19   : > { %2118 = vmatpush3.bf16.msra.mxu0 %v2535_v11  ;;  %v2606_v39 = vld [vmem:[%s3102_s3 + $0x30] sm:$0xff]   ;;  %v2569_v43 = vld [vmem:[%s2757_s25 + $0x7c] ss:$12 sps:$4 sm:$0xff]   ;;  %v2612_v44 = vld [vmem:[%s3102_s3 + $0x20] sm:$0xff]  }
  0x1a   : > { %2293 = vmatpush3.bf16.msra.mxu1 %v2536_v12  ;;  %2119 = vmatprep.subr.bf16.mxu0 %v2537_v13  ;;  %v2571_v46 = vld [vmem:[%s2757_s25 + $0x78] ss:$12 sps:$4 sm:$0xff]   ;;  %v2572_v47 = vld [vmem:[%s2757_s25 + $0x80] ss:$12 sps:$4 sm:$0xff]   ;;  %v2614_v49 = vld [vmem:[%s3102_s3 + $0x10] sm:$0xff]  }
  0x1b   : > { %2294 = vmatprep.subr.bf16.mxu1 %v2633_v1  ;;  %v2573_v48 = vld [vmem:[%s2757_s25 + $0x94] ss:$12 sps:$4 sm:$0xff]   ;;  %v2615_v50 = vld [vmem:[%s3102_s3 + $0x8] sm:$0xff]   ;;  %v2575_v51 = vld [vmem:[%s2757_s25 + $0x90] ss:$12 sps:$4 sm:$0xff]  }
  0x1c   : > { %v2576_v52 = vld [vmem:[%s2757_s25 + $0x98] ss:$12 sps:$4 sm:$0xff]   ;;  %v2579_v54 = vld [vmem:[%s2757_s25 + $0xa8] ss:$12 sps:$4 sm:$0xff]   ;;  %v2580_v55 = vld [vmem:[%s2757_s25 + $0xb0] ss:$12 sps:$4 sm:$0xff]  }
  0x1d   : > { %2120 = vmatpush3.bf16.msra.mxu0 %v2538_v14  ;;  %v2577_v53 = vld [vmem:[%s2757_s25 + $0xac] ss:$12 sps:$4 sm:$0xff]   ;;  %v2581_v56 = vld [vmem:[%s2757_s25 + $0xc4] ss:$12 sps:$4 sm:$0xff]   ;;  %v2584_v58 = vld [vmem:[%s2757_s25 + $0xc8] ss:$12 sps:$4 sm:$0xff]  }
  0x1e   : > { %2295 = vmatpush3.bf16.msra.mxu1 %v2539_v15  ;;  %2121 = vmatprep.subr.bf16.mxu0 %v2540_v16  ;;  %v2583_v57 = vld [vmem:[%s2757_s25 + $0xc0] ss:$12 sps:$4 sm:$0xff]   ;;  %v2585_v59 = vld [vmem:[%s2757_s25 + $0xdc] ss:$12 sps:$4 sm:$0xff]   ;;  %v2587_v60 = vld [vmem:[%s2757_s25 + $0xd8] ss:$12 sps:$4 sm:$0xff]  }
  0x1f   : > { %2296 = vmatprep.subr.bf16.mxu1 %v2633_v1  ;;  %v2588_v61 = vld [vmem:[%s2757_s25 + $0xe0] ss:$12 sps:$4 sm:$0xff]   ;;  %v2591_v0 = vld [vmem:[%s2757_s25 + $0xf0] ss:$12 sps:$4 sm:$0xff]   ;;  %v2592_v2 = vld [vmem:[%s2757_s25 + $0xf8] ss:$12 sps:$4 sm:$0xff]  }
  0x20   : > { %v2589_v62 = vld [vmem:[%s2757_s25 + $0xf4] ss:$12 sps:$4 sm:$0xff]   ;;  %v2593_v3 = vld [vmem:[%s2757_s25 + $0x10c] ss:$12 sps:$4 sm:$0xff]   ;;  %v2596_v5 = vld [vmem:[%s2757_s25 + $0x110] ss:$12 sps:$4 sm:$0xff]  }
  0x21   : > { %2122 = vmatpush3.bf16.msra.mxu0 %v2541_v17  ;;  %v2616_v63 = vld [vmem:[%s3102_s3] sm:$0xff]   ;;  %v2595_v4 = vld [vmem:[%s2757_s25 + $0x108] ss:$12 sps:$4 sm:$0xff]   ;;  %v2609_v13 = vld [vmem:[%s2757_s25 + $0x150] ss:$12 sps:$4 sm:$0xff]  }
  0x22   : > { %2297 = vmatpush3.bf16.msra.mxu1 %v2542_v18  ;;  %2123 = vmatprep.subr.bf16.mxu0 %v2543_v19  ;;  %v2598_v6 = vld [vmem:[%s2757_s25 + $0x124] ss:$12 sps:$4 sm:$0xff]   ;;  %v2600_v7 = vld [vmem:[%s2757_s25 + $0x120] ss:$12 sps:$4 sm:$0xff]   ;;  %v2601_v8 = vld [vmem:[%s2757_s25 + $0x128] ss:$12 sps:$4 sm:$0xff]  }
  0x23   : > { %2298 = vmatprep.subr.bf16.mxu1 %v2633_v1  ;;  %v2602_v9 = vld [vmem:[%s2757_s25 + $0x13c] ss:$12 sps:$4 sm:$0xff]   ;;  %v2604_v10 = vld [vmem:[%s2757_s25 + $0x138] ss:$12 sps:$4 sm:$0xff]   ;;  %v2605_v11 = vld [vmem:[%s2757_s25 + $0x140] ss:$12 sps:$4 sm:$0xff]  }
  0x24   : > { %v2607_v12 = vld [vmem:[%s2757_s25 + $0x154] ss:$12 sps:$4 sm:$0xff]   ;;  %v2610_v14 = vld [vmem:[%s2757_s25 + $0x158] ss:$12 sps:$4 sm:$0xff]   ;;  %v2619_v19 = vld [vmem:[%s3104_s5 + $0x28] sm:$0xff]   ;;  %s3051_s25 = scalar_lea.vmem %s3106_s7, %s1871_s10 }
  0x25   : > { %2124 = vmatpush3.bf16.msra.mxu0 %v2544_v20  ;;  %v2617_v15 = vld [vmem:[%s3104_s5 + $0x38] sm:$0xff]   ;;  %v2618_v16 = vld [vmem:[%s3104_s5 + $0x30] sm:$0xff]   ;;  %v2897_v20 = vld [vmem:[%s3101_s2] ss:$0 sm:$0xff] }
  0x26   : > { %2299 = vmatpush3.bf16.msra.mxu1 %v2545_v21  ;;  %2125 = vmatprep.subr.bf16.mxu0 %v2546_v22 }
  0x27   : > { %2300 = vmatprep.subr.bf16.mxu1 %v2633_v1 }
  0x29   : > { %2126 = vmatpush3.bf16.msra.mxu0 %v2547_v24  ;;  %v2620_v24 = vld [vmem:[%s3104_s5 + $0x20] sm:$0xff]  }
  0x2a   : > { %2301 = vmatpush3.bf16.msra.mxu1 %v2548_v25  ;;  %2362 = vmatprep.subr.bf16.mxu0 %v2633_v1 }
  0x2b   : > { %2438 = vmatprep.subr.bf16.mxu1 %v2633_v1 }
  0x2c   : > { %818 = vmatmul.mubr.bf16.vlgmr.msra.gmra.mxu0 %v2549_v26 }
  0x2d   : > { %2303 = vmatmul.mubr.bf16.vlgmr.msra.gmra.mxu1 %v2552_v27  ;;  %825 = vmatprep.mubr.bf16.mxu0 %v2553_v28 }
  0x2e   : > { %2306 = vmatprep.mubr.msk.bf16.mxu1 %vm2634_vm0, %v2633_v1  ;;  %2363 = vmatpush3.bf16.msra.mxu0 %v2597_v35 }
  0x2f   : > { %2364 = vmatprep.subr.bf16.mxu0 %v2633_v1  ;;  %2439 = vmatpush3.bf16.msra.mxu1 %v2617_v15 }
  0x30   : > { %2440 = vmatprep.subr.bf16.mxu1 %v2633_v1 }
  0x32   : > { %2365 = vmatpush3.bf16.msra.mxu0 %v2606_v39 }
  0x33   : > { %2366 = vmatprep.subr.bf16.mxu0 %v2633_v1  ;;  %2441 = vmatpush3.bf16.msra.mxu1 %v2618_v16 }
  0x34   : > { %826 = vmatmul.mubr.bf16.gmra.mxu0 %v2555_v29  ;;  %2442 = vmatprep.subr.bf16.mxu1 %v2633_v1 }
  0x35   : > { %2307 = vmatmul.mubr.bf16.gmra.mxu1 %v2556_v30  ;;  %833 = vmatprep.mubr.bf16.mxu0 %v2557_v31  ;;  %v2621_v31 = vld [vmem:[%s3104_s5 + $0x18] sm:$0xff]  }
  0x36   : > { %2310 = vmatprep.mubr.msk.bf16.mxu1 %vm2634_vm0, %v2633_v1  ;;  %2367 = vmatpush3.bf16.msra.mxu0 %v2611_v41 }
  0x37   : > { %2368 = vmatprep.subr.bf16.mxu0 %v2633_v1  ;;  %2443 = vmatpush3.bf16.msra.mxu1 %v2619_v19 }
  0x38   : > { %2444 = vmatprep.subr.bf16.mxu1 %v2633_v1 }
  0x3a   : > { %2369 = vmatpush3.bf16.msra.mxu0 %v2612_v44 }
  0x3b   : > { %2370 = vmatprep.subr.bf16.mxu0 %v2633_v1  ;;  %2445 = vmatpush3.bf16.msra.mxu1 %v2620_v24 }
  0x3c   : > { %834 = vmatmul.mubr.bf16.gmra.mxu0 %v2559_v32  ;;  %2446 = vmatprep.subr.bf16.mxu1 %v2633_v1 }
  0x3d   : > { %2311 = vmatmul.mubr.bf16.gmra.mxu1 %v2560_v33  ;;  %841 = vmatprep.mubr.bf16.mxu0 %v2561_v34 }
  0x3e   : > { %2314 = vmatprep.mubr.msk.bf16.mxu1 %vm2634_vm0, %v2633_v1  ;;  %2371 = vmatpush3.bf16.msra.mxu0 %v2613_v45 }
  0x3f   : > { %2372 = vmatprep.subr.bf16.mxu0 %v2633_v1  ;;  %2447 = vmatpush3.bf16.msra.mxu1 %v2621_v31 }
  0x40   : > { %2448 = vmatprep.subr.bf16.mxu1 %v2633_v1 }
  0x42   : > { %2373 = vmatpush3.bf16.msra.mxu0 %v2614_v49 }
  0x43   : > { %2374 = vmatprep.subr.bf16.mxu0 %v2633_v1 }
  0x44   : > { %842 = vmatmul.mubr.bf16.gmra.mxu0 %v2563_v36 }
  0x45   : > { %2315 = vmatmul.mubr.bf16.gmra.mxu1 %v2564_v37  ;;  %849 = vmatprep.mubr.bf16.mxu0 %v2565_v38 }
  0x46   : > { %2318 = vmatprep.mubr.msk.bf16.mxu1 %vm2634_vm0, %v2633_v1  ;;  %2375 = vmatpush3.bf16.msra.mxu0 %v2615_v50  ;;  %v2623_v50 = vld [vmem:[%s3104_s5 + $0x8] sm:$0xff]  }
  0x47   : > { %2376 = vmatprep.subr.bf16.mxu0 %v2633_v1 }
  0x4a   : > { %2377 = vmatpush3.bf16.msra.mxu0 %v2616_v63 }
  0x4c   : > { %850 = vmatmul.mubr.bf16.gmra.mxu0 %v2567_v40  ;;  %v2622_v40 = vld [vmem:[%s3104_s5 + $0x10] sm:$0xff]  }
  0x4d   : > { %2319 = vmatmul.mubr.bf16.gmra.mxu1 %v2568_v42  ;;  %857 = vmatprep.mubr.bf16.mxu0 %v2569_v43 }
  0x4e   : > { %2322 = vmatprep.mubr.msk.bf16.mxu1 %vm2634_vm0, %v2633_v1  ;;  %2449 = vmatpush3.bf16.msra.mxu1 %v2622_v40 }
  0x4f   : > { %2450 = vmatprep.subr.bf16.mxu1 %v2633_v1 }
  0x52   : > { %2451 = vmatpush3.bf16.msra.mxu1 %v2623_v50 }
  0x53   : > { %2452 = vmatprep.subr.bf16.mxu1 %v2633_v1 }
  0x54   : > { %858 = vmatmul.mubr.bf16.gmra.mxu0 %v2571_v46 }
  0x55   : > { %2323 = vmatmul.mubr.bf16.gmra.mxu1 %v2572_v47  ;;  %865 = vmatprep.mubr.bf16.mxu0 %v2573_v48 }
  0x56   : > { %2326 = vmatprep.mubr.msk.bf16.mxu1 %vm2634_vm0, %v2633_v1 }
  0x5c   : > { %866 = vmatmul.mubr.bf16.gmra.mxu0 %v2575_v51 }
  0x5d   : > { %2327 = vmatmul.mubr.bf16.gmra.mxu1 %v2576_v52  ;;  %873 = vmatprep.mubr.bf16.mxu0 %v2577_v53 }
  0x5e   : > { %2330 = vmatprep.mubr.msk.bf16.mxu1 %vm2634_vm0, %v2633_v1 }
  0x64   : > { %874 = vmatmul.mubr.bf16.gmra.mxu0 %v2579_v54 }
  0x65   : > { %2331 = vmatmul.mubr.bf16.gmra.mxu1 %v2580_v55  ;;  %881 = vmatprep.mubr.bf16.mxu0 %v2581_v56 }
  0x66   : > { %2334 = vmatprep.mubr.msk.bf16.mxu1 %vm2634_vm0, %v2633_v1 }
  0x6c   : > { %882 = vmatmul.mubr.bf16.gmra.mxu0 %v2583_v57 }
  0x6d   : > { %2335 = vmatmul.mubr.bf16.gmra.mxu1 %v2584_v58  ;;  %889 = vmatprep.mubr.bf16.mxu0 %v2585_v59  ;;  %v2624_v59 = vld [vmem:[%s3104_s5] sm:$0xff]  }
  0x6e   : > { %2338 = vmatprep.mubr.msk.bf16.mxu1 %vm2634_vm0, %v2633_v1  ;;  %2453 = vmatpush3.bf16.msra.mxu1 %v2624_v59 }
  0x74   : > { %890 = vmatmul.mubr.bf16.gmra.mxu0 %v2587_v60 }
  0x75   : > { %2339 = vmatmul.mubr.bf16.gmra.mxu1 %v2588_v61  ;;  %897 = vmatprep.mubr.bf16.mxu0 %v2589_v62 }
  0x76   : > { %2342 = vmatprep.mubr.msk.bf16.mxu1 %vm2634_vm0, %v2633_v1 }
  0x7c   : > { %898 = vmatmul.mubr.bf16.gmra.mxu0 %v2591_v0 }
  0x7d   : > { %2343 = vmatmul.mubr.bf16.gmra.mxu1 %v2592_v2  ;;  %905 = vmatprep.mubr.bf16.mxu0 %v2593_v3 }
  0x7e   : > { %2346 = vmatprep.mubr.msk.bf16.mxu1 %vm2634_vm0, %v2633_v1 }
  0x84   : > { %906 = vmatmul.mubr.bf16.gmra.mxu0 %v2595_v4 }
  0x85   : > { %2347 = vmatmul.mubr.bf16.gmra.mxu1 %v2596_v5  ;;  %913 = vmatprep.mubr.bf16.mxu0 %v2598_v6 }
  0x86   : > { %2350 = vmatprep.mubr.msk.bf16.mxu1 %vm2634_vm0, %v2633_v1 }
  0x8c   : > { %914 = vmatmul.mubr.bf16.gmra.mxu0 %v2600_v7 }
  0x8d   : > { %2351 = vmatmul.mubr.bf16.gmra.mxu1 %v2601_v8  ;;  %921 = vmatprep.mubr.bf16.mxu0 %v2602_v9 }
  0x8e   : > { %2354 = vmatprep.mubr.msk.bf16.mxu1 %vm2634_vm0, %v2633_v1 }
  0x94   : > { %922 = vmatmul.mubr.bf16.gmra.mxu0 %v2604_v10 }
  0x95   : > { %2355 = vmatmul.mubr.bf16.gmra.mxu1 %v2605_v11  ;;  %929 = vmatprep.mubr.bf16.mxu0 %v2607_v12 }
  0x96   : > { %2358 = vmatprep.mubr.msk.bf16.mxu1 %vm2634_vm0, %v2633_v1 }
  0x9c   : > { %930 = vmatmul.mubr.bf16.gmra.mxu0 %v2609_v13 }
  0x9d   : > { %2359 = vmatmul.mubr.bf16.gmra.mxu1 %v2610_v14  ;;  %2378 = vmatprep.mubr.msk.bf16.mxu0 %vm2634_vm0, %v2633_v1 }
  0x9e   : > { %2454 = vmatprep.mubr.msk.bf16.mxu1 %vm2634_vm0, %v2633_v1 }
  0xec   : > { %v2127_v17 = vpop.f32.mrf.mxu0 }
  0xed   : > { %v972_v18 = vpop.f32.mrf.mxu1 }
  0xee   : > { %v2128_v21 = vpop.f32.mrf.mxu0 }
  0xef   : > { %v2129_v22 = vadd.f32 %v2128_v21, %v2127_v17  ;;  %v2304_v23 = vpop.f32.mrf.mxu1 }
  0xf0   : > { %v2130_v25 = vpop.f32.mrf.mxu0 }
  0xf1   : > { %v820_v26 = vadd.f32 %v2129_v22, %v2897_v20  ;;  %v975_v27 = vpop.f32.mrf.mxu1 }
  0xf2   : > { %v2131_v28 = vpop.f32.mrf.mxu0 }
  0xf3   : > { %v2132_v29 = vadd.f32 %v2131_v28, %v2130_v25  ;;  %v2305_v30 = vpop.f32.mrf.mxu1  ;;  %v973_v33 = vadd.f32 %v972_v18, %v820_v26 }
  0xf4   : > { %v2133_v32 = vpop.f32.mrf.mxu0 }
  0xf5   : > { %v823_v34 = vadd.f32 %v2132_v29, %v2897_v20  ;;  %v980_v35 = vpop.f32.mrf.mxu1  ;;  %v1091_v42 = vmax.f32 %v973_v33, 0.0 }
  0xf6   : > { %v2134_v36 = vpop.f32.mrf.mxu0 }
  0xf7   : > { %v976_v37 = vadd.f32 %v975_v27, %v823_v34  ;;  %v2135_v38 = vadd.f32 %v2134_v36, %v2133_v32  ;;  %v2308_v39 = vpop.f32.mrf.mxu1 }
  0xf8   : > { %v2136_v41 = vpop.f32.mrf.mxu0 }
  0xf9   : > { %v1092_v43 = vmax.f32 %v976_v37, 0.0  ;;  %v828_v44 = vadd.f32 %v2135_v38, %v2897_v20  ;;  %v983_v45 = vpop.f32.mrf.mxu1 }
  0xfa   : > { %v2137_v46 = vpop.f32.mrf.mxu0 }
  0xfb   : > { %v1121_v47 = vpack.c.bf16 %v1092_v43, %v1091_v42  ;;  %v2138_v48 = vadd.f32 %v2137_v46, %v2136_v41  ;;  %v2309_v49 = vpop.f32.mrf.mxu1  ;;  %v981_v52 = vadd.f32 %v980_v35, %v828_v44 }
  0xfc   : > { %v2139_v51 = vpop.f32.mrf.mxu0 }
  0xfd   : > { %v831_v53 = vadd.f32 %v2138_v48, %v2897_v20  ;;  %v988_v54 = vpop.f32.mrf.mxu1  ;;  %2379 = vmatmul.mubr.bf16.vlgmr.msra.gmra.mxu0 %v1121_v47  ;;  %v1093_v61 = vmax.f32 %v981_v52, 0.0 }
  0xfe   : > { %v2140_v55 = vpop.f32.mrf.mxu0  ;;  %2382 = vmatprep.mubr.msk.bf16.mxu0 %vm2634_vm0, %v2633_v1 }
  0xff   : > { %v984_v56 = vadd.f32 %v983_v45, %v831_v53  ;;  %v2141_v57 = vadd.f32 %v2140_v55, %v2139_v51  ;;  %v2312_v58 = vpop.f32.mrf.mxu1 }
 0x100   : > { %v2142_v60 = vpop.f32.mrf.mxu0 }
 0x101   : > { %v836_v62 = vadd.f32 %v2141_v57, %v2897_v20  ;;  %v991_v63 = vpop.f32.mrf.mxu1  ;;  %v1094_v0 = vmax.f32 %v984_v56, 0.0 }
 0x102   : > { %v2143_v2 = vpop.f32.mrf.mxu0 }
 0x103   : > { %v2144_v3 = vadd.f32 %v2143_v2, %v2142_v60  ;;  %v2313_v4 = vpop.f32.mrf.mxu1  ;;  %v1122_v5 = vpack.c.bf16 %v1094_v0, %v1093_v61  ;;  %v989_v7 = vadd.f32 %v988_v54, %v836_v62 }
 0x104   : > { %v2145_v6 = vpop.f32.mrf.mxu0 }
 0x105   : > { %v839_v8 = vadd.f32 %v2144_v3, %v2897_v20  ;;  %v996_v9 = vpop.f32.mrf.mxu1  ;;  %2383 = vmatmul.mubr.bf16.gmra.mxu0 %v1122_v5  ;;  %v1095_v15 = vmax.f32 %v989_v7, 0.0 }
 0x106   : > { %v2146_v10 = vpop.f32.mrf.mxu0  ;;  %2386 = vmatprep.mubr.msk.bf16.mxu0 %vm2634_vm0, %v2633_v1 }
 0x107   : > { %v992_v11 = vadd.f32 %v991_v63, %v839_v8  ;;  %v2147_v12 = vadd.f32 %v2146_v10, %v2145_v6  ;;  %v2316_v13 = vpop.f32.mrf.mxu1 }
 0x108   : > { %v2148_v14 = vpop.f32.mrf.mxu0 }
 0x109   : > { %v1096_v16 = vmax.f32 %v992_v11, 0.0  ;;  %v844_v17 = vadd.f32 %v2147_v12, %v2897_v20  ;;  %v999_v18 = vpop.f32.mrf.mxu1 }
 0x10a   : > { %v2149_v19 = vpop.f32.mrf.mxu0 }
 0x10b   : > { %v2150_v21 = vadd.f32 %v2149_v19, %v2148_v14  ;;  %v2317_v22 = vpop.f32.mrf.mxu1  ;;  %v1123_v23 = vpack.c.bf16 %v1096_v16, %v1095_v15  ;;  %v997_v25 = vadd.f32 %v996_v9, %v844_v17 }
 0x10c   : > { %v2151_v24 = vpop.f32.mrf.mxu0 }
 0x10d   : > { %v847_v26 = vadd.f32 %v2150_v21, %v2897_v20  ;;  %v1004_v27 = vpop.f32.mrf.mxu1  ;;  %2387 = vmatmul.mubr.bf16.gmra.mxu0 %v1123_v23  ;;  %v1097_v33 = vmax.f32 %v997_v25, 0.0 }
 0x10e   : > { %v2152_v28 = vpop.f32.mrf.mxu0  ;;  %2390 = vmatprep.mubr.msk.bf16.mxu0 %vm2634_vm0, %v2633_v1 }
 0x10f   : > { %v1000_v29 = vadd.f32 %v999_v18, %v847_v26  ;;  %v2153_v30 = vadd.f32 %v2152_v28, %v2151_v24  ;;  %v2320_v31 = vpop.f32.mrf.mxu1 }
 0x110   : > { %v2154_v32 = vpop.f32.mrf.mxu0 }
 0x111   : > { %v1098_v34 = vmax.f32 %v1000_v29, 0.0  ;;  %v852_v35 = vadd.f32 %v2153_v30, %v2897_v20  ;;  %v1007_v36 = vpop.f32.mrf.mxu1 }
 0x112   : > { %v2155_v37 = vpop.f32.mrf.mxu0 }
 0x113   : > { %v2156_v38 = vadd.f32 %v2155_v37, %v2154_v32  ;;  %v2321_v39 = vpop.f32.mrf.mxu1  ;;  %v1124_v40 = vpack.c.bf16 %v1098_v34, %v1097_v33  ;;  %v1005_v42 = vadd.f32 %v1004_v27, %v852_v35 }
 0x114   : > { %v2157_v41 = vpop.f32.mrf.mxu0 }
 0x115   : > { %v855_v43 = vadd.f32 %v2156_v38, %v2897_v20  ;;  %v1012_v44 = vpop.f32.mrf.mxu1  ;;  %2391 = vmatmul.mubr.bf16.gmra.mxu0 %v1124_v40  ;;  %v1099_v50 = vmax.f32 %v1005_v42, 0.0 }
 0x116   : > { %v2158_v45 = vpop.f32.mrf.mxu0  ;;  %2394 = vmatprep.mubr.msk.bf16.mxu0 %vm2634_vm0, %v2633_v1 }
 0x117   : > { %v1008_v46 = vadd.f32 %v1007_v36, %v855_v43  ;;  %v2159_v47 = vadd.f32 %v2158_v45, %v2157_v41  ;;  %v2324_v48 = vpop.f32.mrf.mxu1 }
 0x118   : > { %v2160_v49 = vpop.f32.mrf.mxu0 }
 0x119   : > { %v1100_v51 = vmax.f32 %v1008_v46, 0.0  ;;  %v860_v52 = vadd.f32 %v2159_v47, %v2897_v20  ;;  %v1015_v53 = vpop.f32.mrf.mxu1 }
 0x11a   : > { %v2161_v54 = vpop.f32.mrf.mxu0 }
 0x11b   : > { %v2162_v55 = vadd.f32 %v2161_v54, %v2160_v49  ;;  %v2325_v56 = vpop.f32.mrf.mxu1  ;;  %v1125_v57 = vpack.c.bf16 %v1100_v51, %v1099_v50  ;;  %v1013_v59 = vadd.f32 %v1012_v44, %v860_v52 }
 0x11c   : > { %v2163_v58 = vpop.f32.mrf.mxu0 }
 0x11d   : > { %v863_v60 = vadd.f32 %v2162_v55, %v2897_v20  ;;  %v1020_v61 = vpop.f32.mrf.mxu1  ;;  %2395 = vmatmul.mubr.bf16.gmra.mxu0 %v1125_v57  ;;  %v1101_v4 = vmax.f32 %v1013_v59, 0.0 }
 0x11e   : > { %v2164_v62 = vpop.f32.mrf.mxu0  ;;  %2398 = vmatprep.mubr.msk.bf16.mxu0 %vm2634_vm0, %v2633_v1 }
 0x11f   : > { %v1016_v63 = vadd.f32 %v1015_v53, %v863_v60  ;;  %v2165_v0 = vadd.f32 %v2164_v62, %v2163_v58  ;;  %v2328_v2 = vpop.f32.mrf.mxu1 }
 0x120   : > { %v2166_v3 = vpop.f32.mrf.mxu0 }
 0x121   : > { %v1102_v5 = vmax.f32 %v1016_v63, 0.0  ;;  %v868_v6 = vadd.f32 %v2165_v0, %v2897_v20  ;;  %v1023_v7 = vpop.f32.mrf.mxu1 }
 0x122   : > { %v2167_v8 = vpop.f32.mrf.mxu0 }
 0x123   : > { %v2168_v9 = vadd.f32 %v2167_v8, %v2166_v3  ;;  %v2329_v10 = vpop.f32.mrf.mxu1  ;;  %v1126_v11 = vpack.c.bf16 %v1102_v5, %v1101_v4  ;;  %v1021_v13 = vadd.f32 %v1020_v61, %v868_v6 }
 0x124   : > { %v2169_v12 = vpop.f32.mrf.mxu0 }
 0x125   : > { %v871_v14 = vadd.f32 %v2168_v9, %v2897_v20  ;;  %v1028_v15 = vpop.f32.mrf.mxu1  ;;  %2399 = vmatmul.mubr.bf16.gmra.mxu0 %v1126_v11  ;;  %v1103_v22 = vmax.f32 %v1021_v13, 0.0 }
 0x126   : > { %v2170_v16 = vpop.f32.mrf.mxu0  ;;  %2402 = vmatprep.mubr.msk.bf16.mxu0 %vm2634_vm0, %v2633_v1 }
 0x127   : > { %v1024_v17 = vadd.f32 %v1023_v7, %v871_v14  ;;  %v2171_v18 = vadd.f32 %v2170_v16, %v2169_v12  ;;  %v2332_v19 = vpop.f32.mrf.mxu1 }
 0x128   : > { %v2172_v21 = vpop.f32.mrf.mxu0 }
 0x129   : > { %v1104_v23 = vmax.f32 %v1024_v17, 0.0  ;;  %v876_v24 = vadd.f32 %v2171_v18, %v2897_v20  ;;  %v1031_v25 = vpop.f32.mrf.mxu1 }
 0x12a   : > { %v2173_v26 = vpop.f32.mrf.mxu0 }
 0x12b   : > { %v2174_v27 = vadd.f32 %v2173_v26, %v2172_v21  ;;  %v2333_v28 = vpop.f32.mrf.mxu1  ;;  %v1127_v29 = vpack.c.bf16 %v1104_v23, %v1103_v22  ;;  %v1029_v31 = vadd.f32 %v1028_v15, %v876_v24 }
 0x12c   : > { %v2175_v30 = vpop.f32.mrf.mxu0 }
 0x12d   : > { %v879_v32 = vadd.f32 %v2174_v27, %v2897_v20  ;;  %v1036_v33 = vpop.f32.mrf.mxu1  ;;  %2403 = vmatmul.mubr.bf16.gmra.mxu0 %v1127_v29  ;;  %v1105_v39 = vmax.f32 %v1029_v31, 0.0 }
 0x12e   : > { %v2176_v34 = vpop.f32.mrf.mxu0  ;;  %2406 = vmatprep.mubr.msk.bf16.mxu0 %vm2634_vm0, %v2633_v1 }
 0x12f   : > { %v1032_v35 = vadd.f32 %v1031_v25, %v879_v32  ;;  %v2177_v36 = vadd.f32 %v2176_v34, %v2175_v30  ;;  %v2336_v37 = vpop.f32.mrf.mxu1 }
 0x130   : > { %v2178_v38 = vpop.f32.mrf.mxu0 }
 0x131   : > { %v1106_v40 = vmax.f32 %v1032_v35, 0.0  ;;  %v884_v41 = vadd.f32 %v2177_v36, %v2897_v20  ;;  %v1039_v42 = vpop.f32.mrf.mxu1 }
 0x132   : > { %v2179_v43 = vpop.f32.mrf.mxu0 }
 0x133   : > { %v2180_v44 = vadd.f32 %v2179_v43, %v2178_v38  ;;  %v2337_v45 = vpop.f32.mrf.mxu1  ;;  %v1128_v46 = vpack.c.bf16 %v1106_v40, %v1105_v39  ;;  %v1037_v48 = vadd.f32 %v1036_v33, %v884_v41 }
 0x134   : > { %v2181_v47 = vpop.f32.mrf.mxu0 }
 0x135   : > { %v887_v49 = vadd.f32 %v2180_v44, %v2897_v20  ;;  %v1044_v50 = vpop.f32.mrf.mxu1  ;;  %2407 = vmatmul.mubr.bf16.gmra.mxu0 %v1128_v46  ;;  %v1107_v56 = vmax.f32 %v1037_v48, 0.0 }
 0x136   : > { %v2182_v51 = vpop.f32.mrf.mxu0  ;;  %2410 = vmatprep.mubr.msk.bf16.mxu0 %vm2634_vm0, %v2633_v1 }
 0x137   : > { %v1040_v52 = vadd.f32 %v1039_v42, %v887_v49  ;;  %v2183_v53 = vadd.f32 %v2182_v51, %v2181_v47  ;;  %v2340_v54 = vpop.f32.mrf.mxu1 }
 0x138   : > { %v2184_v55 = vpop.f32.mrf.mxu0 }
 0x139   : > { %v1108_v57 = vmax.f32 %v1040_v52, 0.0  ;;  %v892_v58 = vadd.f32 %v2183_v53, %v2897_v20  ;;  %v1047_v59 = vpop.f32.mrf.mxu1 }
 0x13a   : > { %v2185_v60 = vpop.f32.mrf.mxu0 }
 0x13b   : > { %v2186_v61 = vadd.f32 %v2185_v60, %v2184_v55  ;;  %v2341_v62 = vpop.f32.mrf.mxu1  ;;  %v1129_v63 = vpack.c.bf16 %v1108_v57, %v1107_v56  ;;  %v1045_v2 = vadd.f32 %v1044_v50, %v892_v58 }
 0x13c   : > { %v2187_v0 = vpop.f32.mrf.mxu0 }
 0x13d   : > { %v895_v3 = vadd.f32 %v2186_v61, %v2897_v20  ;;  %v1052_v4 = vpop.f32.mrf.mxu1  ;;  %2411 = vmatmul.mubr.bf16.gmra.mxu0 %v1129_v63  ;;  %v1109_v10 = vmax.f32 %v1045_v2, 0.0 }
 0x13e   : > { %v2188_v5 = vpop.f32.mrf.mxu0  ;;  %2414 = vmatprep.mubr.msk.bf16.mxu0 %vm2634_vm0, %v2633_v1 }
 0x13f   : > { %v1048_v6 = vadd.f32 %v1047_v59, %v895_v3  ;;  %v2189_v7 = vadd.f32 %v2188_v5, %v2187_v0  ;;  %v2344_v8 = vpop.f32.mrf.mxu1 }
 0x140   : > { %v2190_v9 = vpop.f32.mrf.mxu0 }
 0x141   : > { %v1110_v11 = vmax.f32 %v1048_v6, 0.0  ;;  %v900_v12 = vadd.f32 %v2189_v7, %v2897_v20  ;;  %v1055_v13 = vpop.f32.mrf.mxu1 }
 0x142   : > { %v2191_v14 = vpop.f32.mrf.mxu0 }
 0x143   : > { %v2192_v15 = vadd.f32 %v2191_v14, %v2190_v9  ;;  %v2345_v16 = vpop.f32.mrf.mxu1  ;;  %v1130_v17 = vpack.c.bf16 %v1110_v11, %v1109_v10  ;;  %v1053_v19 = vadd.f32 %v1052_v4, %v900_v12 }
 0x144   : > { %v2193_v18 = vpop.f32.mrf.mxu0 }
 0x145   : > { %v903_v21 = vadd.f32 %v2192_v15, %v2897_v20  ;;  %v1060_v22 = vpop.f32.mrf.mxu1  ;;  %2415 = vmatmul.mubr.bf16.gmra.mxu0 %v1130_v17  ;;  %v1111_v28 = vmax.f32 %v1053_v19, 0.0 }
 0x146   : > { %v2194_v23 = vpop.f32.mrf.mxu0  ;;  %2418 = vmatprep.mubr.msk.bf16.mxu0 %vm2634_vm0, %v2633_v1 }
 0x147   : > { %v1056_v24 = vadd.f32 %v1055_v13, %v903_v21  ;;  %v2195_v25 = vadd.f32 %v2194_v23, %v2193_v18  ;;  %v2348_v26 = vpop.f32.mrf.mxu1 }
 0x148   : > { %v2196_v27 = vpop.f32.mrf.mxu0 }
 0x149   : > { %v1112_v29 = vmax.f32 %v1056_v24, 0.0  ;;  %v908_v30 = vadd.f32 %v2195_v25, %v2897_v20  ;;  %v1063_v31 = vpop.f32.mrf.mxu1 }
 0x14a   : > { %v2197_v32 = vpop.f32.mrf.mxu0 }
 0x14b   : > { %v2198_v33 = vadd.f32 %v2197_v32, %v2196_v27  ;;  %v2349_v34 = vpop.f32.mrf.mxu1  ;;  %v1131_v35 = vpack.c.bf16 %v1112_v29, %v1111_v28  ;;  %v1061_v37 = vadd.f32 %v1060_v22, %v908_v30 }
 0x14c   : > { %v2199_v36 = vpop.f32.mrf.mxu0 }
 0x14d   : > { %v911_v38 = vadd.f32 %v2198_v33, %v2897_v20  ;;  %v1068_v39 = vpop.f32.mrf.mxu1  ;;  %2419 = vmatmul.mubr.bf16.gmra.mxu0 %v1131_v35  ;;  %v1113_v45 = vmax.f32 %v1061_v37, 0.0 }
 0x14e   : > { %v2200_v40 = vpop.f32.mrf.mxu0  ;;  %2422 = vmatprep.mubr.msk.bf16.mxu0 %vm2634_vm0, %v2633_v1 }
 0x14f   : > { %v1064_v41 = vadd.f32 %v1063_v31, %v911_v38  ;;  %v2201_v42 = vadd.f32 %v2200_v40, %v2199_v36  ;;  %v2352_v43 = vpop.f32.mrf.mxu1  ;;  %v2980_v31 = vld [vmem:[%s3103_s4] ss:$0 sm:$0xff] }
 0x150   : > { %v2202_v44 = vpop.f32.mrf.mxu0 }
 0x151   : > { %v1114_v46 = vmax.f32 %v1064_v41, 0.0  ;;  %v916_v47 = vadd.f32 %v2201_v42, %v2897_v20  ;;  %v1071_v48 = vpop.f32.mrf.mxu1 }
 0x152   : > { %v2203_v49 = vpop.f32.mrf.mxu0 }
 0x153   : > { %v2204_v50 = vadd.f32 %v2203_v49, %v2202_v44  ;;  %v2353_v51 = vpop.f32.mrf.mxu1  ;;  %v1132_v52 = vpack.c.bf16 %v1114_v46, %v1113_v45  ;;  %v1069_v54 = vadd.f32 %v1068_v39, %v916_v47 }
 0x154   : > { %v2205_v53 = vpop.f32.mrf.mxu0 }
 0x155   : > { %v919_v55 = vadd.f32 %v2204_v50, %v2897_v20  ;;  %v1076_v56 = vpop.f32.mrf.mxu1  ;;  %2423 = vmatmul.mubr.bf16.gmra.mxu0 %v1132_v52  ;;  %v1115_v62 = vmax.f32 %v1069_v54, 0.0 }
 0x156   : > { %v2206_v57 = vpop.f32.mrf.mxu0  ;;  %2426 = vmatprep.mubr.msk.bf16.mxu0 %vm2634_vm0, %v2633_v1 }
 0x157   : > { %v1072_v58 = vadd.f32 %v1071_v48, %v919_v55  ;;  %v2207_v59 = vadd.f32 %v2206_v57, %v2205_v53  ;;  %v2356_v60 = vpop.f32.mrf.mxu1 }
 0x158   : > { %v2208_v61 = vpop.f32.mrf.mxu0 }
 0x159   : > { %v1116_v63 = vmax.f32 %v1072_v58, 0.0  ;;  %v924_v0 = vadd.f32 %v2207_v59, %v2897_v20  ;;  %v1079_v2 = vpop.f32.mrf.mxu1 }
 0x15a   : > { %v2209_v3 = vpop.f32.mrf.mxu0 }
 0x15b   : > { %v2210_v4 = vadd.f32 %v2209_v3, %v2208_v61  ;;  %v2357_v5 = vpop.f32.mrf.mxu1  ;;  %v1133_v6 = vpack.c.bf16 %v1116_v63, %v1115_v62  ;;  %v1077_v8 = vadd.f32 %v1076_v56, %v924_v0 }
 0x15c   : > { %v2211_v7 = vpop.f32.mrf.mxu0 }
 0x15d   : > { %v927_v9 = vadd.f32 %v2210_v4, %v2897_v20  ;;  %v1084_v10 = vpop.f32.mrf.mxu1  ;;  %2427 = vmatmul.mubr.bf16.gmra.mxu0 %v1133_v6  ;;  %v1117_v16 = vmax.f32 %v1077_v8, 0.0 }
 0x15e   : > { %v2212_v11 = vpop.f32.mrf.mxu0  ;;  %2430 = vmatprep.mubr.msk.bf16.mxu0 %vm2634_vm0, %v2633_v1 }
 0x15f   : > { %v1080_v12 = vadd.f32 %v1079_v2, %v927_v9  ;;  %v2213_v13 = vadd.f32 %v2212_v11, %v2211_v7  ;;  %v2360_v14 = vpop.f32.mrf.mxu1 }
 0x160   : > { %v2214_v15 = vpop.f32.mrf.mxu0 }
 0x161   : > { %v1118_v17 = vmax.f32 %v1080_v12, 0.0  ;;  %v932_v18 = vadd.f32 %v2213_v13, %v2897_v20  ;;  %v1087_v19 = vpop.f32.mrf.mxu1 }
 0x162   : > { %v2215_v21 = vpop.f32.mrf.mxu0 }
 0x163   : > { %v1134_v22 = vpack.c.bf16 %v1118_v17, %v1117_v16  ;;  %v2216_v23 = vadd.f32 %v2215_v21, %v2214_v15  ;;  %v2361_v24 = vpop.f32.mrf.mxu1  ;;  %v1085_v25 = vadd.f32 %v1084_v10, %v932_v18 }
 0x165   : > { %v935_v26 = vadd.f32 %v2216_v23, %v2897_v20  ;;  %2431 = vmatmul.mubr.bf16.gmra.mxu0 %v1134_v22  ;;  %v1119_v28 = vmax.f32 %v1085_v25, 0.0 }
 0x166   : > { %2434 = vmatprep.mubr.msk.bf16.mxu0 %vm2634_vm0, %v2633_v1 }
 0x167   : > { %v1088_v27 = vadd.f32 %v1087_v19, %v935_v26 }
 0x169   : > { %v1120_v29 = vmax.f32 %v1088_v27, 0.0 }
 0x16b   : > { %v1135_v30 = vpack.c.bf16 %v1120_v29, %v1119_v28 }
 0x16d   : > { %2435 = vmatmul.mubr.bf16.gmra.mxu0 %v1135_v30 }
 0x1bd   : > { %v1241_v32 = vpop.f32.mrf.mxu0 }
 0x1be   : > { %v1242_v34 = vadd.f32 %v2980_v31, %v1241_v32 }
 0x1bf   : > { %v2380_v33 = vpop.f32.mrf.mxu0 }
 0x1c0   : > { %v1360_v37 = vmax.f32 %v1242_v34, 0.0 }
 0x1c1   : > { %v1244_v35 = vpop.f32.mrf.mxu0 }
 0x1c2   : > { %v1245_v20 = vadd.f32 %v2980_v31, %v1244_v35 }
 0x1c3   : > { %v2381_v36 = vpop.f32.mrf.mxu0 }
 0x1c4   : > { %v1361_v38 = vmax.f32 %v1245_v20, 0.0 }
 0x1c5   : > { %v1249_v39 = vpop.f32.mrf.mxu0 }
 0x1c6   : > { %v1390_v40 = vpack.c.bf16 %v1361_v38, %v1360_v37  ;;  %v1250_v42 = vadd.f32 %v2980_v31, %v1249_v39 }
 0x1c7   : > { %v2384_v41 = vpop.f32.mrf.mxu0 }
 0x1c8   : > { %2455 = vmatmul.mubr.bf16.vlgmr.msra.gmra.mxu1 %v1390_v40  ;;  %v1362_v46 = vmax.f32 %v1250_v42, 0.0 }
 0x1c9   : > { %v1252_v43 = vpop.f32.mrf.mxu0  ;;  %2458 = vmatprep.mubr.msk.bf16.mxu1 %vm2634_vm0, %v2633_v1 }
 0x1ca   : > { %v1253_v44 = vadd.f32 %v2980_v31, %v1252_v43 }
 0x1cb   : > { %v2385_v45 = vpop.f32.mrf.mxu0 }
 0x1cc   : > { %v1363_v47 = vmax.f32 %v1253_v44, 0.0 }
 0x1cd   : > { %v1257_v48 = vpop.f32.mrf.mxu0 }
 0x1ce   : > { %v1391_v49 = vpack.c.bf16 %v1363_v47, %v1362_v46  ;;  %v1258_v51 = vadd.f32 %v2980_v31, %v1257_v48 }
 0x1cf   : > { %v2388_v50 = vpop.f32.mrf.mxu0 }
 0x1d0   : > { %2459 = vmatmul.mubr.bf16.gmra.mxu1 %v1391_v49  ;;  %v1364_v55 = vmax.f32 %v1258_v51, 0.0 }
 0x1d1   : > { %v1260_v52 = vpop.f32.mrf.mxu0  ;;  %2462 = vmatprep.mubr.msk.bf16.mxu1 %vm2634_vm0, %v2633_v1 }
 0x1d2   : > { %v1261_v53 = vadd.f32 %v2980_v31, %v1260_v52 }
 0x1d3   : > { %v2389_v54 = vpop.f32.mrf.mxu0 }
 0x1d4   : > { %v1365_v56 = vmax.f32 %v1261_v53, 0.0 }
 0x1d5   : > { %v1265_v57 = vpop.f32.mrf.mxu0 }
 0x1d6   : > { %v1392_v58 = vpack.c.bf16 %v1365_v56, %v1364_v55  ;;  %v1266_v60 = vadd.f32 %v2980_v31, %v1265_v57 }
 0x1d7   : > { %v2392_v59 = vpop.f32.mrf.mxu0 }
 0x1d8   : > { %2463 = vmatmul.mubr.bf16.gmra.mxu1 %v1392_v58  ;;  %v1366_v0 = vmax.f32 %v1266_v60, 0.0 }
 0x1d9   : > { %v1268_v61 = vpop.f32.mrf.mxu0  ;;  %2466 = vmatprep.mubr.msk.bf16.mxu1 %vm2634_vm0, %v2633_v1 }
 0x1da   : > { %v1269_v62 = vadd.f32 %v2980_v31, %v1268_v61 }
 0x1db   : > { %v2393_v63 = vpop.f32.mrf.mxu0 }
 0x1dc   : > { %v1367_v2 = vmax.f32 %v1269_v62, 0.0 }
 0x1dd   : > { %v1273_v3 = vpop.f32.mrf.mxu0 }
 0x1de   : > { %v1393_v4 = vpack.c.bf16 %v1367_v2, %v1366_v0  ;;  %v1274_v6 = vadd.f32 %v2980_v31, %v1273_v3 }
 0x1df   : > { %v2396_v5 = vpop.f32.mrf.mxu0 }
 0x1e0   : > { %2467 = vmatmul.mubr.bf16.gmra.mxu1 %v1393_v4  ;;  %v1368_v10 = vmax.f32 %v1274_v6, 0.0 }
 0x1e1   : > { %v1276_v7 = vpop.f32.mrf.mxu0  ;;  %2470 = vmatprep.mubr.msk.bf16.mxu1 %vm2634_vm0, %v2633_v1 }
 0x1e2   : > { %v1277_v8 = vadd.f32 %v2980_v31, %v1276_v7 }
 0x1e3   : > { %v2397_v9 = vpop.f32.mrf.mxu0 }
 0x1e4   : > { %v1369_v11 = vmax.f32 %v1277_v8, 0.0 }
 0x1e5   : > { %v1281_v12 = vpop.f32.mrf.mxu0 }
 0x1e6   : > { %v1394_v13 = vpack.c.bf16 %v1369_v11, %v1368_v10  ;;  %v1282_v15 = vadd.f32 %v2980_v31, %v1281_v12 }
 0x1e7   : > { %v2400_v14 = vpop.f32.mrf.mxu0 }
 0x1e8   : > { %2471 = vmatmul.mubr.bf16.gmra.mxu1 %v1394_v13  ;;  %v1370_v19 = vmax.f32 %v1282_v15, 0.0 }
 0x1e9   : > { %v1284_v16 = vpop.f32.mrf.mxu0  ;;  %2474 = vmatprep.mubr.msk.bf16.mxu1 %vm2634_vm0, %v2633_v1 }
 0x1ea   : > { %v1285_v17 = vadd.f32 %v2980_v31, %v1284_v16 }
 0x1eb   : > { %v2401_v18 = vpop.f32.mrf.mxu0 }
 0x1ec   : > { %v1371_v21 = vmax.f32 %v1285_v17, 0.0 }
 0x1ed   : > { %v1289_v22 = vpop.f32.mrf.mxu0 }
 0x1ee   : > { %v1395_v23 = vpack.c.bf16 %v1371_v21, %v1370_v19  ;;  %v1290_v25 = vadd.f32 %v2980_v31, %v1289_v22 }
 0x1ef   : > { %v2404_v24 = vpop.f32.mrf.mxu0 }
 0x1f0   : > { %2475 = vmatmul.mubr.bf16.gmra.mxu1 %v1395_v23  ;;  %v1372_v29 = vmax.f32 %v1290_v25, 0.0 }
 0x1f1   : > { %v1292_v26 = vpop.f32.mrf.mxu0  ;;  %2478 = vmatprep.mubr.msk.bf16.mxu1 %vm2634_vm0, %v2633_v1 }
 0x1f2   : > { %v1293_v27 = vadd.f32 %v2980_v31, %v1292_v26 }
 0x1f3   : > { %v2405_v28 = vpop.f32.mrf.mxu0 }
 0x1f4   : > { %v1373_v30 = vmax.f32 %v1293_v27, 0.0 }
 0x1f5   : > { %v1297_v32 = vpop.f32.mrf.mxu0 }
 0x1f6   : > { %v1396_v33 = vpack.c.bf16 %v1373_v30, %v1372_v29  ;;  %v1298_v35 = vadd.f32 %v2980_v31, %v1297_v32 }
 0x1f7   : > { %v2408_v34 = vpop.f32.mrf.mxu0 }
 0x1f8   : > { %2479 = vmatmul.mubr.bf16.gmra.mxu1 %v1396_v33  ;;  %v1374_v38 = vmax.f32 %v1298_v35, 0.0 }
 0x1f9   : > { %v1300_v20 = vpop.f32.mrf.mxu0  ;;  %2482 = vmatprep.mubr.msk.bf16.mxu1 %vm2634_vm0, %v2633_v1 }
 0x1fa   : > { %v1301_v36 = vadd.f32 %v2980_v31, %v1300_v20 }
 0x1fb   : > { %v2409_v37 = vpop.f32.mrf.mxu0 }
 0x1fc   : > { %v1375_v39 = vmax.f32 %v1301_v36, 0.0 }
 0x1fd   : > { %v1305_v40 = vpop.f32.mrf.mxu0 }
 0x1fe   : > { %v1397_v41 = vpack.c.bf16 %v1375_v39, %v1374_v38  ;;  %v1306_v43 = vadd.f32 %v2980_v31, %v1305_v40 }
 0x1ff   : > { %v2412_v42 = vpop.f32.mrf.mxu0 }
 0x200   : > { %2483 = vmatmul.mubr.bf16.gmra.mxu1 %v1397_v41  ;;  %v1376_v47 = vmax.f32 %v1306_v43, 0.0  ;;  %v3043_v42 = vld [vmem:[%s3105_s6] ss:$0 sm:$0xff] }
 0x201   : > { %v1308_v44 = vpop.f32.mrf.mxu0  ;;  %2486 = vmatprep.mubr.msk.bf16.mxu1 %vm2634_vm0, %v2633_v1 }
 0x202   : > { %v1309_v45 = vadd.f32 %v2980_v31, %v1308_v44 }
 0x203   : > { %v2413_v46 = vpop.f32.mrf.mxu0 }
 0x204   : > { %v1377_v48 = vmax.f32 %v1309_v45, 0.0 }
 0x205   : > { %v1313_v49 = vpop.f32.mrf.mxu0 }
 0x206   : > { %v1398_v50 = vpack.c.bf16 %v1377_v48, %v1376_v47  ;;  %v1314_v52 = vadd.f32 %v2980_v31, %v1313_v49 }
 0x207   : > { %v2416_v51 = vpop.f32.mrf.mxu0 }
 0x208   : > { %2487 = vmatmul.mubr.bf16.gmra.mxu1 %v1398_v50  ;;  %v1378_v56 = vmax.f32 %v1314_v52, 0.0 }
 0x209   : > { %v1316_v53 = vpop.f32.mrf.mxu0  ;;  %2490 = vmatprep.mubr.msk.bf16.mxu1 %vm2634_vm0, %v2633_v1 }
 0x20a   : > { %v1317_v54 = vadd.f32 %v2980_v31, %v1316_v53 }
 0x20b   : > { %v2417_v55 = vpop.f32.mrf.mxu0 }
 0x20c   : > { %v1379_v57 = vmax.f32 %v1317_v54, 0.0 }
 0x20d   : > { %v1321_v58 = vpop.f32.mrf.mxu0 }
 0x20e   : > { %v1399_v59 = vpack.c.bf16 %v1379_v57, %v1378_v56  ;;  %v1322_v61 = vadd.f32 %v2980_v31, %v1321_v58 }
 0x20f   : > { %v2420_v60 = vpop.f32.mrf.mxu0 }
 0x210   : > { %2491 = vmatmul.mubr.bf16.gmra.mxu1 %v1399_v59  ;;  %v1380_v2 = vmax.f32 %v1322_v61, 0.0 }
 0x211   : > { %v1324_v62 = vpop.f32.mrf.mxu0  ;;  %2494 = vmatprep.mubr.msk.bf16.mxu1 %vm2634_vm0, %v2633_v1 }
 0x212   : > { %v1325_v63 = vadd.f32 %v2980_v31, %v1324_v62 }
 0x213   : > { %v2421_v0 = vpop.f32.mrf.mxu0 }
 0x214   : > { %v1381_v3 = vmax.f32 %v1325_v63, 0.0 }
 0x215   : > { %v1329_v4 = vpop.f32.mrf.mxu0 }
 0x216   : > { %v1400_v5 = vpack.c.bf16 %v1381_v3, %v1380_v2  ;;  %v1330_v7 = vadd.f32 %v2980_v31, %v1329_v4 }
 0x217   : > { %v2424_v6 = vpop.f32.mrf.mxu0 }
 0x218   : > { %2495 = vmatmul.mubr.bf16.gmra.mxu1 %v1400_v5  ;;  %v1382_v11 = vmax.f32 %v1330_v7, 0.0 }
 0x219   : > { %v1332_v8 = vpop.f32.mrf.mxu0  ;;  %2498 = vmatprep.mubr.msk.bf16.mxu1 %vm2634_vm0, %v2633_v1 }
 0x21a   : > { %v1333_v9 = vadd.f32 %v2980_v31, %v1332_v8 }
 0x21b   : > { %v2425_v10 = vpop.f32.mrf.mxu0 }
 0x21c   : > { %v1383_v12 = vmax.f32 %v1333_v9, 0.0 }
 0x21d   : > { %v1337_v13 = vpop.f32.mrf.mxu0 }
 0x21e   : > { %v1401_v14 = vpack.c.bf16 %v1383_v12, %v1382_v11  ;;  %v1338_v16 = vadd.f32 %v2980_v31, %v1337_v13 }
 0x21f   : > { %v2428_v15 = vpop.f32.mrf.mxu0 }
 0x220   : > { %2499 = vmatmul.mubr.bf16.gmra.mxu1 %v1401_v14  ;;  %v1384_v21 = vmax.f32 %v1338_v16, 0.0 }
 0x221   : > { %v1340_v17 = vpop.f32.mrf.mxu0  ;;  %2502 = vmatprep.mubr.msk.bf16.mxu1 %vm2634_vm0, %v2633_v1 }
 0x222   : > { %v1341_v18 = vadd.f32 %v2980_v31, %v1340_v17 }
 0x223   : > { %v2429_v19 = vpop.f32.mrf.mxu0 }
 0x224   : > { %v1385_v22 = vmax.f32 %v1341_v18, 0.0 }
 0x225   : > { %v1345_v23 = vpop.f32.mrf.mxu0 }
 0x226   : > { %v1402_v24 = vpack.c.bf16 %v1385_v22, %v1384_v21  ;;  %v1346_v26 = vadd.f32 %v2980_v31, %v1345_v23 }
 0x227   : > { %v2432_v25 = vpop.f32.mrf.mxu0 }
 0x228   : > { %2503 = vmatmul.mubr.bf16.gmra.mxu1 %v1402_v24  ;;  %v1386_v30 = vmax.f32 %v1346_v26, 0.0 }
 0x229   : > { %v1348_v27 = vpop.f32.mrf.mxu0  ;;  %2506 = vmatprep.mubr.msk.bf16.mxu1 %vm2634_vm0, %v2633_v1 }
 0x22a   : > { %v1349_v28 = vadd.f32 %v2980_v31, %v1348_v27 }
 0x22b   : > { %v2433_v29 = vpop.f32.mrf.mxu0 }
 0x22c   : > { %v1387_v32 = vmax.f32 %v1349_v28, 0.0 }
 0x22d   : > { %v1353_v33 = vpop.f32.mrf.mxu0 }
 0x22e   : > { %v1403_v34 = vpack.c.bf16 %v1387_v32, %v1386_v30  ;;  %v1354_v20 = vadd.f32 %v2980_v31, %v1353_v33 }
 0x22f   : > { %v2436_v35 = vpop.f32.mrf.mxu0 }
 0x230   : > { %2507 = vmatmul.mubr.bf16.gmra.mxu1 %v1403_v34  ;;  %v1388_v39 = vmax.f32 %v1354_v20, 0.0 }
 0x231   : > { %v1356_v36 = vpop.f32.mrf.mxu0  ;;  %2510 = vmatprep.mubr.msk.bf16.mxu1 %vm2634_vm0, %v2633_v1 }
 0x232   : > { %v1357_v37 = vadd.f32 %v2980_v31, %v1356_v36 }
 0x233   : > { %v2437_v38 = vpop.f32.mrf.mxu0 }
 0x234   : > { %v1389_v40 = vmax.f32 %v1357_v37, 0.0 }
 0x236   : > { %v1404_v41 = vpack.c.bf16 %v1389_v40, %v1388_v39 }
 0x238   : > { %2511 = vmatmul.mubr.bf16.gmra.mxu1 %v1404_v41 }
 0x288   : > { %v1510_v43 = vpop.f32.mrf.mxu1 }
 0x289   : > { %v1511_v45 = vadd.f32 %v3043_v42, %v1510_v43 }
 0x28a   : > { %v2456_v44 = vpop.f32.mrf.mxu1 }
 0x28b   : > { %v1629_v31 = vmax.f32 %v1511_v45, 0.0 }
 0x28c   : > { %v1513_v46 = vpop.f32.mrf.mxu1 }
 0x28d   : > { %v1514_v1 = vadd.f32 %v3043_v42, %v1513_v46 }
 0x28e   : > { %v2457_v47 = vpop.f32.mrf.mxu1 }
 0x28f   : > { %v1630_v48 = vmax.f32 %v1514_v1, 0.0 }
 0x290   : > { %v1518_v49 = vpop.f32.mrf.mxu1 }
 0x291   : > { %v2025_v50 = vpack.c.bf16 %v1630_v48, %v1629_v31  ;;  %v1519_v52 = vadd.f32 %v3043_v42, %v1518_v49 }
 0x292   : > { %v2460_v51 = vpop.f32.mrf.mxu1 }
 0x293   : > { %2026 = vst [vmem:[%s3051_s25] sm:$0xff] %v2025_v50   ;;  %v1631_v56 = vmax.f32 %v1519_v52, 0.0 }
 0x294   : > { %v1521_v53 = vpop.f32.mrf.mxu1 }
 0x295   : > { %v1522_v54 = vadd.f32 %v3043_v42, %v1521_v53 }
 0x296   : > { %v2461_v55 = vpop.f32.mrf.mxu1 }
 0x297   : > { %v1632_v57 = vmax.f32 %v1522_v54, 0.0 }
 0x298   : > { %v1526_v58 = vpop.f32.mrf.mxu1 }
 0x299   : > { %v2030_v59 = vpack.c.bf16 %v1632_v57, %v1631_v56  ;;  %v1527_v61 = vadd.f32 %v3043_v42, %v1526_v58 }
 0x29a   : > { %v2464_v60 = vpop.f32.mrf.mxu1 }
 0x29b   : > { %2097 = vst [vmem:[%s3051_s25 + $0x8] sm:$0xff] %v2030_v59   ;;  %v1633_v2 = vmax.f32 %v1527_v61, 0.0 }
 0x29c   : > { %v1529_v62 = vpop.f32.mrf.mxu1 }
 0x29d   : > { %v1530_v63 = vadd.f32 %v3043_v42, %v1529_v62 }
 0x29e   : > { %v2465_v0 = vpop.f32.mrf.mxu1 }
 0x29f   : > { %v1634_v3 = vmax.f32 %v1530_v63, 0.0 }
 0x2a0   : > { %v1534_v4 = vpop.f32.mrf.mxu1 }
 0x2a1   : > { %v2035_v5 = vpack.c.bf16 %v1634_v3, %v1633_v2  ;;  %v1535_v7 = vadd.f32 %v3043_v42, %v1534_v4 }
 0x2a2   : > { %v2468_v6 = vpop.f32.mrf.mxu1 }
 0x2a3   : > { %2098 = vst [vmem:[%s3051_s25 + $0x10] sm:$0xff] %v2035_v5   ;;  %v1635_v11 = vmax.f32 %v1535_v7, 0.0 }
 0x2a4   : > { %v1537_v8 = vpop.f32.mrf.mxu1 }
 0x2a5   : > { %v1538_v9 = vadd.f32 %v3043_v42, %v1537_v8 }
 0x2a6   : > { %v2469_v10 = vpop.f32.mrf.mxu1 }
 0x2a7   : > { %v1636_v12 = vmax.f32 %v1538_v9, 0.0 }
 0x2a8   : > { %v1542_v13 = vpop.f32.mrf.mxu1 }
 0x2a9   : > { %v2040_v14 = vpack.c.bf16 %v1636_v12, %v1635_v11  ;;  %v1543_v16 = vadd.f32 %v3043_v42, %v1542_v13 }
 0x2aa   : > { %v2472_v15 = vpop.f32.mrf.mxu1 }
 0x2ab   : > { %2099 = vst [vmem:[%s3051_s25 + $0x18] sm:$0xff] %v2040_v14   ;;  %v1637_v21 = vmax.f32 %v1543_v16, 0.0 }
 0x2ac   : > { %v1545_v17 = vpop.f32.mrf.mxu1 }
 0x2ad   : > { %v1546_v18 = vadd.f32 %v3043_v42, %v1545_v17 }
 0x2ae   : > { %v2473_v19 = vpop.f32.mrf.mxu1 }
 0x2af   : > { %v1638_v22 = vmax.f32 %v1546_v18, 0.0 }
 0x2b0   : > { %v1550_v23 = vpop.f32.mrf.mxu1 }
 0x2b1   : > { %v2045_v24 = vpack.c.bf16 %v1638_v22, %v1637_v21  ;;  %v1551_v26 = vadd.f32 %v3043_v42, %v1550_v23 }
 0x2b2   : > { %v2476_v25 = vpop.f32.mrf.mxu1 }
 0x2b3   : > { %2100 = vst [vmem:[%s3051_s25 + $0x20] sm:$0xff] %v2045_v24   ;;  %v1639_v30 = vmax.f32 %v1551_v26, 0.0 }
 0x2b4   : > { %v1553_v27 = vpop.f32.mrf.mxu1 }
 0x2b5   : > { %v1554_v28 = vadd.f32 %v3043_v42, %v1553_v27 }
 0x2b6   : > { %v2477_v29 = vpop.f32.mrf.mxu1 }
 0x2b7   : > { %v1640_v32 = vmax.f32 %v1554_v28, 0.0 }
 0x2b8   : > { %v1558_v33 = vpop.f32.mrf.mxu1 }
 0x2b9   : > { %v2050_v34 = vpack.c.bf16 %v1640_v32, %v1639_v30  ;;  %v1559_v20 = vadd.f32 %v3043_v42, %v1558_v33 }
 0x2ba   : > { %v2480_v35 = vpop.f32.mrf.mxu1 }
 0x2bb   : > { %2101 = vst [vmem:[%s3051_s25 + $0x28] sm:$0xff] %v2050_v34   ;;  %v1641_v39 = vmax.f32 %v1559_v20, 0.0 }
 0x2bc   : > { %v1561_v36 = vpop.f32.mrf.mxu1 }
 0x2bd   : > { %v1562_v37 = vadd.f32 %v3043_v42, %v1561_v36 }
 0x2be   : > { %v2481_v38 = vpop.f32.mrf.mxu1 }
 0x2bf   : > { %v1642_v40 = vmax.f32 %v1562_v37, 0.0 }
 0x2c0   : > { %v1566_v41 = vpop.f32.mrf.mxu1 }
 0x2c1   : > { %v2055_v43 = vpack.c.bf16 %v1642_v40, %v1641_v39  ;;  %v1567_v45 = vadd.f32 %v3043_v42, %v1566_v41 }
 0x2c2   : > { %v2484_v44 = vpop.f32.mrf.mxu1 }
 0x2c3   : > { %2102 = vst [vmem:[%s3051_s25 + $0x30] sm:$0xff] %v2055_v43   ;;  %v1643_v31 = vmax.f32 %v1567_v45, 0.0 }
 0x2c4   : > { %v1569_v46 = vpop.f32.mrf.mxu1 }
 0x2c5   : > { %v1570_v1 = vadd.f32 %v3043_v42, %v1569_v46 }
 0x2c6   : > { %v2485_v47 = vpop.f32.mrf.mxu1 }
 0x2c7   : > { %v1644_v48 = vmax.f32 %v1570_v1, 0.0 }
 0x2c8   : > { %v1574_v49 = vpop.f32.mrf.mxu1 }
 0x2c9   : > { %v2060_v50 = vpack.c.bf16 %v1644_v48, %v1643_v31  ;;  %v1575_v52 = vadd.f32 %v3043_v42, %v1574_v49 }
 0x2ca   : > { %v2488_v51 = vpop.f32.mrf.mxu1 }
 0x2cb   : > { %2103 = vst [vmem:[%s3051_s25 + $0x38] sm:$0xff] %v2060_v50   ;;  %v1645_v56 = vmax.f32 %v1575_v52, 0.0 }
 0x2cc   : > { %v1577_v53 = vpop.f32.mrf.mxu1 }
 0x2cd   : > { %v1578_v54 = vadd.f32 %v3043_v42, %v1577_v53 }
 0x2ce   : > { %v2489_v55 = vpop.f32.mrf.mxu1 }
 0x2cf   : > { %v1646_v57 = vmax.f32 %v1578_v54, 0.0 }
 0x2d0   : > { %v1582_v58 = vpop.f32.mrf.mxu1 }
 0x2d1   : > { %v2065_v59 = vpack.c.bf16 %v1646_v57, %v1645_v56  ;;  %v1583_v61 = vadd.f32 %v3043_v42, %v1582_v58 }
 0x2d2   : > { %v2492_v60 = vpop.f32.mrf.mxu1 }
 0x2d3   : > { %2104 = vst [vmem:[%s3051_s25 + $0x40] sm:$0xff] %v2065_v59   ;;  %v1647_v2 = vmax.f32 %v1583_v61, 0.0 }
 0x2d4   : > { %v1585_v62 = vpop.f32.mrf.mxu1 }
 0x2d5   : > { %v1586_v63 = vadd.f32 %v3043_v42, %v1585_v62 }
 0x2d6   : > { %v2493_v0 = vpop.f32.mrf.mxu1 }
 0x2d7   : > { %v1648_v3 = vmax.f32 %v1586_v63, 0.0 }
 0x2d8   : > { %v1590_v4 = vpop.f32.mrf.mxu1 }
 0x2d9   : > { %v2070_v5 = vpack.c.bf16 %v1648_v3, %v1647_v2  ;;  %v1591_v7 = vadd.f32 %v3043_v42, %v1590_v4 }
 0x2da   : > { %v2496_v6 = vpop.f32.mrf.mxu1 }
 0x2db   : > { %2105 = vst [vmem:[%s3051_s25 + $0x48] sm:$0xff] %v2070_v5   ;;  %v1649_v11 = vmax.f32 %v1591_v7, 0.0 }
 0x2dc   : > { %v1593_v8 = vpop.f32.mrf.mxu1 }
 0x2dd   : > { %v1594_v9 = vadd.f32 %v3043_v42, %v1593_v8 }
 0x2de   : > { %v2497_v10 = vpop.f32.mrf.mxu1 }
 0x2df   : > { %v1650_v12 = vmax.f32 %v1594_v9, 0.0 }
 0x2e0   : > { %v1598_v13 = vpop.f32.mrf.mxu1 }
 0x2e1   : > { %v2075_v14 = vpack.c.bf16 %v1650_v12, %v1649_v11  ;;  %v1599_v16 = vadd.f32 %v3043_v42, %v1598_v13 }
 0x2e2   : > { %v2500_v15 = vpop.f32.mrf.mxu1 }
 0x2e3   : > { %2106 = vst [vmem:[%s3051_s25 + $0x50] sm:$0xff] %v2075_v14   ;;  %v1651_v21 = vmax.f32 %v1599_v16, 0.0 }
 0x2e4   : > { %v1601_v17 = vpop.f32.mrf.mxu1 }
 0x2e5   : > { %v1602_v18 = vadd.f32 %v3043_v42, %v1601_v17 }
 0x2e6   : > { %v2501_v19 = vpop.f32.mrf.mxu1 }
 0x2e7   : > { %v1652_v22 = vmax.f32 %v1602_v18, 0.0 }
 0x2e8   : > { %v1606_v23 = vpop.f32.mrf.mxu1 }
 0x2e9   : > { %v2080_v24 = vpack.c.bf16 %v1652_v22, %v1651_v21  ;;  %v1607_v26 = vadd.f32 %v3043_v42, %v1606_v23 }
 0x2ea   : > { %v2504_v25 = vpop.f32.mrf.mxu1 }
 0x2eb   : > { %2107 = vst [vmem:[%s3051_s25 + $0x58] sm:$0xff] %v2080_v24   ;;  %v1653_v30 = vmax.f32 %v1607_v26, 0.0 }
 0x2ec   : > { %v1609_v27 = vpop.f32.mrf.mxu1 }
 0x2ed   : > { %v1610_v28 = vadd.f32 %v3043_v42, %v1609_v27 }
 0x2ee   : > { %v2505_v29 = vpop.f32.mrf.mxu1 }
 0x2ef   : > { %v1654_v32 = vmax.f32 %v1610_v28, 0.0 }
 0x2f0   : > { %v1614_v33 = vpop.f32.mrf.mxu1 }
 0x2f1   : > { %v2085_v34 = vpack.c.bf16 %v1654_v32, %v1653_v30  ;;  %v1615_v20 = vadd.f32 %v3043_v42, %v1614_v33 }
 0x2f2   : > { %v2508_v35 = vpop.f32.mrf.mxu1 }
 0x2f3   : > { %2108 = vst [vmem:[%s3051_s25 + $0x60] sm:$0xff] %v2085_v34   ;;  %v1655_v39 = vmax.f32 %v1615_v20, 0.0 }
 0x2f4   : > { %v1617_v36 = vpop.f32.mrf.mxu1 }
 0x2f5   : > { %v1618_v37 = vadd.f32 %v3043_v42, %v1617_v36 }
 0x2f6   : > { %v2509_v38 = vpop.f32.mrf.mxu1 }
 0x2f7   : > { %v1656_v40 = vmax.f32 %v1618_v37, 0.0 }
 0x2f8   : > { %v1622_v41 = vpop.f32.mrf.mxu1 }
 0x2f9   : > { %v2090_v43 = vpack.c.bf16 %v1656_v40, %v1655_v39  ;;  %v1623_v45 = vadd.f32 %v3043_v42, %v1622_v41 }
 0x2fa   : > { %v2512_v44 = vpop.f32.mrf.mxu1 }
 0x2fb   : > { %2109 = vst [vmem:[%s3051_s25 + $0x68] sm:$0xff] %v2090_v43   ;;  %v1657_v31 = vmax.f32 %v1623_v45, 0.0 }
 0x2fc   : > { %v1625_v46 = vpop.f32.mrf.mxu1 }
 0x2fd   : > { %v1626_v1 = vadd.f32 %v3043_v42, %v1625_v46 }
 0x2fe   : > { %v2513_v47 = vpop.f32.mrf.mxu1 }
 0x2ff   : > { %v1658_v48 = vmax.f32 %v1626_v1, 0.0 }
 0x301   : > { %v2095_v49 = vpack.c.bf16 %v1658_v48, %v1657_v31 }
 0x303   : > { %2110 = vst [vmem:[%s3051_s25 + $0x70] sm:$0xff] %v2095_v49  }
 0x304 PF: > { %s17_s24 = sadd.s32 1, %s2631_s24  }
 0x305   : > { %p14_p4 = scmp.ge.s32.totalorder %s17_s24, 4  }
 0x307   :  { %16 = sbr.rel (!%p14_p4) target bundleno = 1 (0x1), region = 78 }

// kernel: nin_forward.5
= control target key start
LH: loop header
LB: loop body
LE: loop exit
PB: predicated region body
PF: predicated region fallthrough
CT: control target
= control target key end

     0   :  { %s3529_s24 = smov 0   ;;  %s4683_s0 = inlined_call_operand.vmem [shape: f32[2,90,128], index: 0, kind: input, shape index: {}]   ;;  %s4684_s1 = inlined_call_operand.vmem [shape: bf16[9,128,256], index: 1, kind: input, shape index: {}]   ;;  %s4685_s2 = inlined_call_operand.vmem [shape: f32[1,256], index: 2, kind: input, shape index: {}]   ;;  %s4686_s3 = inlined_call_operand.vmem [shape: bf16[256,256], index: 3, kind: input, shape index: {}]   ;;  %s4687_s4 = inlined_call_operand.vmem [shape: f32[1,256], index: 4, kind: input, shape index: {}]   ;;  %s4688_s5 = inlined_call_operand.vmem [shape: bf16[256,256], index: 5, kind: input, shape index: {}]   ;;  %s4689_s6 = inlined_call_operand.vmem [shape: f32[1,256], index: 6, kind: input, shape index: {}]   ;;  %s4690_s7 = inlined_call_operand.vmem [shape: bf16[2,63,256], index: 7, kind: output, shape index: {}]  }
   0x1 LB: > { %s2795_s25 = sadd.s32 4294967295, %s3486_s24   ;;  %p2799_p0 = scmp.ge.s32.totalorder %s3486_s24, 1  ;;  %s3486_s24 = sphi %s3529_s24, %s17_s24  }
   0x2   : > { %p237_p1 = scmp.lt.s32.totalorder %s3486_s24, 3 }
   0x4   : > { %p238_p2 = pnand %p2799_p0, %p237_p1 }
   0x6   : > { %241 = sbr.rel (%p238_p2) target bundleno = 818 (0x332), region = 48 }
   0xb   : > { %v3168_v0 = vld [vmem:[%s4684_s1 + $0xf4] ss:$8 sps:$4 sm:$0xff]   ;;  %v3488_v2 = vmov 0   ;;  %v3172_v3 = vld [vmem:[%s4684_s1 + $0xf0] ss:$8 sps:$4 sm:$0xff]   ;;  %p269_p3 = scmp.lt.s32.totalorder %s2795_s25, 1 }
   0xc   : > { %v3170_v1 = vld [vmem:[%s4684_s1 + $0x74] ss:$8 sps:$4 sm:$0xff]   ;;  %449 = vmatprep.mubr.bf16.mxu0 %v3488_v2  ;;  %602 = vmatprep.mubr.bf16.mxu1 %v3488_v2  ;;  %v3173_v4 = vld [vmem:[%s4684_s1 + $0x70] ss:$8 sps:$4 sm:$0xff]   ;;  %v3174_v5 = vld [vmem:[%s4684_s1 + $0xe4] ss:$8 sps:$4 sm:$0xff]  }
   0xd   : > { %417 = vmatprep.subr.bf16.mxu0 %v3168_v0  ;;  %570 = vmatprep.subr.bf16.mxu1 %v3170_v1  ;;  %v3176_v6 = vld [vmem:[%s4684_s1 + $0x64] ss:$8 sps:$4 sm:$0xff]   ;;  %v3178_v7 = vld [vmem:[%s4684_s1 + $0xe0] ss:$8 sps:$4 sm:$0xff]   ;;  %v3180_v9 = vld [vmem:[%s4684_s1 + $0xd4] ss:$8 sps:$4 sm:$0xff]  }
   0xe   : > { %418 = vmatpush1.bf16.msra.mxu0 %v3172_v3  ;;  %571 = vmatpush1.bf16.msra.mxu1 %v3173_v4  ;;  %v3179_v8 = vld [vmem:[%s4684_s1 + $0x60] ss:$8 sps:$4 sm:$0xff]   ;;  %v3182_v10 = vld [vmem:[%s4684_s1 + $0x54] ss:$8 sps:$4 sm:$0xff]   ;;  %v3184_v11 = vld [vmem:[%s4684_s1 + $0xd0] ss:$8 sps:$4 sm:$0xff]  }
   0xf   : > { %419 = vmatprep.subr.bf16.mxu0 %v3174_v5  ;;  %572 = vmatprep.subr.bf16.mxu1 %v3176_v6  ;;  %v3185_v12 = vld [vmem:[%s4684_s1 + $0x50] ss:$8 sps:$4 sm:$0xff]   ;;  %v3186_v13 = vld [vmem:[%s4684_s1 + $0xc4] ss:$8 sps:$4 sm:$0xff]   ;;  %v3190_v15 = vld [vmem:[%s4684_s1 + $0xc0] ss:$8 sps:$4 sm:$0xff]  }
  0x10   : > { %v3188_v14 = vld [vmem:[%s4684_s1 + $0x44] ss:$8 sps:$4 sm:$0xff]   ;;  %v3191_v16 = vld [vmem:[%s4684_s1 + $0x40] ss:$8 sps:$4 sm:$0xff]   ;;  %v3192_v17 = vld [vmem:[%s4684_s1 + $0xb4] ss:$8 sps:$4 sm:$0xff]  }
  0x11   : > { %v3194_v18 = vld [vmem:[%s4684_s1 + $0x34] ss:$8 sps:$4 sm:$0xff]   ;;  %v3196_v19 = vld [vmem:[%s4684_s1 + $0xb0] ss:$8 sps:$4 sm:$0xff]   ;;  %v3198_v21 = vld [vmem:[%s4684_s1 + $0xa4] ss:$8 sps:$4 sm:$0xff]  }
  0x12   : > { %420 = vmatpush1.bf16.msra.mxu0 %v3178_v7  ;;  %573 = vmatpush1.bf16.msra.mxu1 %v3179_v8  ;;  %v3197_v20 = vld [vmem:[%s4684_s1 + $0x30] ss:$8 sps:$4 sm:$0xff]   ;;  %s4746_s25 = smov (!%p269_p3, %s2795_s25), 1  ;;  %v3200_v22 = vld [vmem:[%s4684_s1 + $0x24] ss:$8 sps:$4 sm:$0xff]   ;;  %vm2730_vm0 = vcmask 1043456  }
  0x13   : > { %421 = vmatprep.subr.bf16.mxu0 %v3180_v9  ;;  %574 = vmatprep.subr.bf16.mxu1 %v3182_v10  ;;  %v3202_v23 = vld [vmem:[%s4684_s1 + $0xa0] ss:$8 sps:$4 sm:$0xff]   ;;  %s3158_s9 = smul.u32 96, %s4746_s25  ;;  %v3204_v25 = vld [vmem:[%s4684_s1 + $0x94] ss:$8 sps:$4 sm:$0xff]   ;;  %s3149_s20 = sshll.u32 %s4746_s25, 6 }
  0x14   : > { %v3203_v24 = vld [vmem:[%s4684_s1 + $0x20] ss:$8 sps:$4 sm:$0xff]   ;;  %v3206_v26 = vld [vmem:[%s4684_s1 + $0x14] ss:$8 sps:$4 sm:$0xff]   ;;  %v3208_v27 = vld [vmem:[%s4684_s1 + $0x90] ss:$8 sps:$4 sm:$0xff]   ;;  %s4656_s26 = scalar_lea.vmem %s4690_s7, %s3149_s20 }
  0x15   : > { %v3209_v28 = vld [vmem:[%s4684_s1 + $0x10] ss:$8 sps:$4 sm:$0xff]   ;;  %v3210_v29 = vld [vmem:[%s4684_s1 + $0x84] ss:$8 sps:$4 sm:$0xff]   ;;  %s3636_s22 = scalar_lea.vmem %s4683_s0, %s3158_s9  ;;  %v3214_v31 = vld [vmem:[%s4684_s1 + $0x80] ss:$8 sps:$4 sm:$0xff]  }
  0x16   : > { %422 = vmatpush1.bf16.msra.mxu0 %v3184_v11  ;;  %575 = vmatpush1.bf16.msra.mxu1 %v3185_v12  ;;  %v3212_v30 = vld [vmem:[%s4684_s1 + $0x4] ss:$8 sps:$4 sm:$0xff]   ;;  %v3215_v32 = vld [vmem:[%s4684_s1] ss:$8 sps:$4 sm:$0xff]   ;;  %v3218_v37 = vld [vmem:[%s4684_s1 + $0x174] ss:$8 sps:$4 sm:$0xff]  }
  0x17   : > { %423 = vmatprep.subr.bf16.mxu0 %v3186_v13  ;;  %576 = vmatprep.subr.bf16.mxu1 %v3188_v14  ;;  %v308_v33 = vld [vmem:[%s3636_s22 + $0x1] sm:$0xff]  ;;  %v3649_v34 = vld [vmem:[%s3636_s22 + $0x9] sm:$0xff]  ;;  %v3221_v38 = vld [vmem:[%s4684_s1 + $0x1f4] ss:$8 sps:$4 sm:$0xff]   ;;  %vm2731_vm1 = vsmask.f32 3328 }
  0x18   : > { %v280_v35 = vld [vmem:[%s3636_s22] sm:$0xff]  ;;  %v281_v36 = vld [vmem:[%s3636_s22 + $0x8] sm:$0xff]  ;;  %v316_v39 = vpack.c.bf16 %v3649_v34, %v308_v33  ;;  %v3216_v41 = vld [vmem:[%s4684_s1 + $0x170] ss:$8 sps:$4 sm:$0xff]   ;;  %vm2733_vm2 = vcmask 1047556  }
  0x19   : > { %v288_v40 = vpack.c.bf16 %v281_v36, %v280_v35  ;;  %v3219_v42 = vld [vmem:[%s4684_s1 + $0x1f0] ss:$8 sps:$4 sm:$0xff]   ;;  %v3224_v43 = vld [vmem:[%s4684_s1 + $0x164] ss:$8 sps:$4 sm:$0xff]   ;;  %v3222_v45 = vld [vmem:[%s4684_s1 + $0x160] ss:$8 sps:$4 sm:$0xff]  }
  0x1a   : > { %424 = vmatpush1.bf16.msra.mxu0 %v3190_v15  ;;  %577 = vmatpush1.bf16.msra.mxu1 %v3191_v16  ;;  %v3227_v44 = vld [vmem:[%s4684_s1 + $0x1e4] ss:$8 sps:$4 sm:$0xff]   ;;  %v3225_v46 = vld [vmem:[%s4684_s1 + $0x1e0] ss:$8 sps:$4 sm:$0xff]   ;;  %v3679_v47 = vld [vmem:[%s3636_s22 + $0x11] sm:$0xff] }
  0x1b   : > { %425 = vmatprep.subr.bf16.mxu0 %v3192_v17  ;;  %578 = vmatprep.subr.bf16.mxu1 %v3194_v18  ;;  %v3682_v48 = vld [vmem:[%s3636_s22 + $0x19] sm:$0xff]  ;;  %v282_v49 = vld [vmem:[%s3636_s22 + $0x10] sm:$0xff]  ;;  %v3236_v57 = vld [vmem:[%s4684_s1 + $0x144] ss:$8 sps:$4 sm:$0xff]   ;;  %vm2734_vm3 = vsmask.f32 7424 }
  0x1c   : > { %v283_v50 = vld [vmem:[%s3636_s22 + $0x18] sm:$0xff]  ;;  %v317_v53 = vpack.c.bf16 %v3682_v48, %v3679_v47  ;;  %v3239_v58 = vld [vmem:[%s4684_s1 + $0x1c4] ss:$8 sps:$4 sm:$0xff]   ;;  %v3234_v59 = vld [vmem:[%s4684_s1 + $0x140] ss:$8 sps:$4 sm:$0xff]  }
  0x1d   : > { %v3230_v51 = vld [vmem:[%s4684_s1 + $0x154] ss:$8 sps:$4 sm:$0xff]   ;;  %v289_v54 = vpack.c.bf16 %v283_v50, %v282_v49  ;;  %v3228_v55 = vld [vmem:[%s4684_s1 + $0x150] ss:$8 sps:$4 sm:$0xff]   ;;  %v3237_v60 = vld [vmem:[%s4684_s1 + $0x1c0] ss:$8 sps:$4 sm:$0xff]  }
  0x1e   : > { %426 = vmatpush1.bf16.msra.mxu0 %v3196_v19  ;;  %579 = vmatpush1.bf16.msra.mxu1 %v3197_v20  ;;  %v3233_v52 = vld [vmem:[%s4684_s1 + $0x1d4] ss:$8 sps:$4 sm:$0xff]   ;;  %v3231_v56 = vld [vmem:[%s4684_s1 + $0x1d0] ss:$8 sps:$4 sm:$0xff]   ;;  %v3715_v61 = vld [vmem:[%s3636_s22 + $0x21] sm:$0xff] }
  0x1f   : > { %427 = vmatprep.subr.bf16.mxu0 %v3198_v21  ;;  %580 = vmatprep.subr.bf16.mxu1 %v3200_v22  ;;  %v3718_v62 = vld [vmem:[%s3636_s22 + $0x29] sm:$0xff]  ;;  %v284_v63 = vld [vmem:[%s3636_s22 + $0x20] sm:$0xff]  ;;  %v3242_v1 = vld [vmem:[%s4684_s1 + $0x134] ss:$8 sps:$4 sm:$0xff]  }
  0x20   : > { %v285_v0 = vld [vmem:[%s3636_s22 + $0x28] sm:$0xff]  ;;  %v3245_v3 = vld [vmem:[%s4684_s1 + $0x1b4] ss:$8 sps:$4 sm:$0xff]   ;;  %v318_v4 = vpack.c.bf16 %v3718_v62, %v3715_v61  ;;  %v3240_v6 = vld [vmem:[%s4684_s1 + $0x130] ss:$8 sps:$4 sm:$0xff]  }
  0x21   : > { %v290_v5 = vpack.c.bf16 %v285_v0, %v284_v63  ;;  %v3243_v7 = vld [vmem:[%s4684_s1 + $0x1b0] ss:$8 sps:$4 sm:$0xff]   ;;  %v3248_v8 = vld [vmem:[%s4684_s1 + $0x124] ss:$8 sps:$4 sm:$0xff]   ;;  %v3246_v10 = vld [vmem:[%s4684_s1 + $0x120] ss:$8 sps:$4 sm:$0xff]  }
  0x22   : > { %428 = vmatpush1.bf16.msra.mxu0 %v3202_v23  ;;  %581 = vmatpush1.bf16.msra.mxu1 %v3203_v24  ;;  %v3251_v9 = vld [vmem:[%s4684_s1 + $0x1a4] ss:$8 sps:$4 sm:$0xff]   ;;  %v3249_v11 = vld [vmem:[%s4684_s1 + $0x1a0] ss:$8 sps:$4 sm:$0xff]   ;;  %v3751_v12 = vld [vmem:[%s3636_s22 + $0x31] sm:$0xff] }
  0x23   : > { %429 = vmatprep.subr.bf16.mxu0 %v3204_v25  ;;  %582 = vmatprep.subr.bf16.mxu1 %v3206_v26  ;;  %v315_v13 = vld [vmem:[%s3636_s22 + $0x39] sm:$0x7f]  ;;  %v286_v14 = vld [vmem:[%s3636_s22 + $0x30] sm:$0xff]  ;;  %v3260_v22 = vld [vmem:[%s4684_s1 + $0x104] ss:$8 sps:$4 sm:$0xff]  }
  0x24   : > { %v287_v15 = vld [vmem:[%s3636_s22 + $0x38] sm:$0x7f]  ;;  %v319_v18 = vpack.c.bf16 %v315_v13, %v3751_v12  ;;  %v3263_v23 = vld [vmem:[%s4684_s1 + $0x184] ss:$8 sps:$4 sm:$0xff]   ;;  %v3258_v24 = vld [vmem:[%s4684_s1 + $0x100] ss:$8 sps:$4 sm:$0xff]  }
  0x25   : > { %v3254_v16 = vld [vmem:[%s4684_s1 + $0x114] ss:$8 sps:$4 sm:$0xff]   ;;  %v291_v19 = vpack.c.bf16 %v287_v15, %v286_v14  ;;  %v3252_v20 = vld [vmem:[%s4684_s1 + $0x110] ss:$8 sps:$4 sm:$0xff]   ;;  %v3261_v25 = vld [vmem:[%s4684_s1 + $0x180] ss:$8 sps:$4 sm:$0xff]  }
  0x26   : > { %430 = vmatpush1.bf16.msra.mxu0 %v3208_v27  ;;  %583 = vmatpush1.bf16.msra.mxu1 %v3209_v28  ;;  %v3257_v17 = vld [vmem:[%s4684_s1 + $0x194] ss:$8 sps:$4 sm:$0xff]   ;;  %v3255_v21 = vld [vmem:[%s4684_s1 + $0x190] ss:$8 sps:$4 sm:$0xff]   ;;  %v643_v26 = vld [vmem:[%s3636_s22 + $0x2] sm:$0xff] }
  0x27   : > { %431 = vmatprep.subr.bf16.mxu0 %v3210_v29  ;;  %584 = vmatprep.subr.bf16.mxu1 %v3212_v30  ;;  %v3785_v27 = vld [vmem:[%s3636_s22 + $0xa] sm:$0xff]  ;;  %v3266_v28 = vld [vmem:[%s4684_s1 + $0x274] ss:$8 sps:$4 sm:$0xff]   ;;  %v3856_v50 = vld [vmem:[%s3636_s22 + $0x22] sm:$0xff] }
  0x28   : > { %v3269_v29 = vld [vmem:[%s4684_s1 + $0x2f4] ss:$8 sps:$4 sm:$0xff]   ;;  %v651_v30 = vpack.c.bf16 %v3785_v27, %v643_v26  ;;  %v3267_v33 = vld [vmem:[%s4684_s1 + $0x2f0] ss:$8 sps:$4 sm:$0xff]   ;;  %v3272_v35 = vld [vmem:[%s4684_s1 + $0x264] ss:$8 sps:$4 sm:$0xff]  }
  0x29   : > { %v3270_v36 = vld [vmem:[%s4684_s1 + $0x260] ss:$8 sps:$4 sm:$0xff]   ;;  %v3314_v13 = vld [vmem:[%s4684_s1 + $0x374] ss:$8 sps:$4 sm:$0xff]   ;;  %vm2732_vm4 = vmand %vm2730_vm0, %vm2731_vm1 }
  0x2a   : > { %432 = vmatpush1.bf16.msra.mxu0 %v3214_v31  ;;  %585 = vmatpush1.bf16.msra.mxu1 %v3215_v32  ;;  %v849_v31 = vpack.c.bf16 %v3679_v47, %v3649_v34  ;;  %v3264_v32 = vld [vmem:[%s4684_s1 + $0x270] ss:$8 sps:$4 sm:$0xff]   ;;  %v3275_v34 = vld [vmem:[%s4684_s1 + $0x2e4] ss:$8 sps:$4 sm:$0xff]   ;;  %v3285_v49 = vld [vmem:[%s4684_s1 + $0x2c0] ss:$8 sps:$4 sm:$0xff]  }
  0x2b   : > { %752 = vmatprep.subr.bf16.mxu0 %v3218_v37  ;;  %950 = vmatprep.subr.bf16.mxu1 %v3221_v38  ;;  %v3273_v37 = vld [vmem:[%s4684_s1 + $0x2e0] ss:$8 sps:$4 sm:$0xff]   ;;  %v3817_v38 = vld [vmem:[%s3636_s22 + $0x12] sm:$0xff]  ;;  %v3287_v47 = vld [vmem:[%s4684_s1 + $0x2c4] ss:$8 sps:$4 sm:$0xff]  }
  0x2c   : > { %v650_v63 = vld [vmem:[%s3636_s22 + $0x3a] sm:$0x7f]  ;;  %v1237_v14 = vld [vmem:[%s3636_s22 + $0xb] sm:$0xff]  ;;  %vm2735_vm5 = vmand %vm2733_vm2, %vm2734_vm3 }
  0x2d   : > { %450 = vmatmul.mubr.bf16.vlgmr.msra.gmra.mxu0 %v316_v39  ;;  %603 = vmatmul.mubr.bf16.vlgmr.msra.gmra.mxu1 %v288_v40  ;;  %v3820_v39 = vld [vmem:[%s3636_s22 + $0x1a] sm:$0xff]  ;;  %vm2736_vm6 = vmor %vm2735_vm5, %vm2732_vm4 }
  0x2e   : > { %753 = vmatpush1.bf16.msra.mxu0 %v3216_v41  ;;  %951 = vmatpush1.bf16.msra.mxu1 %v3219_v42  ;;  %v3278_v40 = vld [vmem:[%s4684_s1 + $0x254] ss:$8 sps:$4 sm:$0xff]   ;;  %v3832_v42 = vpack.c.bf16 %v3820_v39, %v3817_v38 }
  0x2f   : > { %754 = vmatprep.subr.bf16.mxu0 %v3224_v43  ;;  %952 = vmatprep.subr.bf16.mxu1 %v3227_v44  ;;  %v3281_v41 = vld [vmem:[%s4684_s1 + $0x2d4] ss:$8 sps:$4 sm:$0xff]   ;;  %v850_v43 = vpack.c.bf16 %v3715_v61, %v3682_v48  ;;  %v3276_v44 = vld [vmem:[%s4684_s1 + $0x250] ss:$8 sps:$4 sm:$0xff]   ;;  %v3282_v48 = vld [vmem:[%s4684_s1 + $0x240] ss:$8 sps:$4 sm:$0xff]  }
  0x30   : > { %459 = vmatprep.mubr.bf16.mxu0 %v3488_v2  ;;  %612 = vmatprep.mubr.bf16.mxu1 %v3488_v2  ;;  %v3297_v61 = vld [vmem:[%s4684_s1 + $0x2a0] ss:$8 sps:$4 sm:$0xff]   ;;  %v3932_v15 = vld [vmem:[%s3636_s22 + $0x13] sm:$0xff] }
  0x31   : > { %v847_v0 = vld [vmem:[%s3636_s22 + $0x39] sm:$0xff] }
  0x32   : > { %755 = vmatpush1.bf16.msra.mxu0 %v3222_v45  ;;  %953 = vmatpush1.bf16.msra.mxu1 %v3225_v46  ;;  %v3279_v45 = vld [vmem:[%s4684_s1 + $0x2d0] ss:$8 sps:$4 sm:$0xff]   ;;  %v3284_v46 = vld [vmem:[%s4684_s1 + $0x244] ss:$8 sps:$4 sm:$0xff]  }
  0x33   : > { %756 = vmatprep.subr.bf16.mxu0 %v3230_v51  ;;  %954 = vmatprep.subr.bf16.mxu1 %v3233_v52  ;;  %v3859_v51 = vld [vmem:[%s3636_s22 + $0x2a] sm:$0xff]  ;;  %v3290_v52 = vld [vmem:[%s4684_s1 + $0x234] ss:$8 sps:$4 sm:$0xff]  }
  0x34   : > { %v3964_v26 = vld [vmem:[%s3636_s22 + $0x1b] sm:$0xff] }
  0x35   : > { %460 = vmatmul.mubr.bf16.gmra.mxu0 %v317_v53  ;;  %613 = vmatmul.mubr.bf16.gmra.mxu1 %v289_v54  ;;  %v3293_v53 = vld [vmem:[%s4684_s1 + $0x2b4] ss:$8 sps:$4 sm:$0xff]   ;;  %v3871_v54 = vpack.c.bf16 %v3859_v51, %v3856_v50 }
  0x36   : > { %757 = vmatpush1.bf16.msra.mxu0 %v3228_v55  ;;  %955 = vmatpush1.bf16.msra.mxu1 %v3231_v56  ;;  %v851_v55 = vpack.c.bf16 %v3751_v12, %v3718_v62  ;;  %v3288_v56 = vld [vmem:[%s4684_s1 + $0x230] ss:$8 sps:$4 sm:$0xff]   ;;  %v3309_v12 = vld [vmem:[%s4684_s1 + $0x280] ss:$8 sps:$4 sm:$0xff]  }
  0x37   : > { %758 = vmatprep.subr.bf16.mxu0 %v3236_v57  ;;  %956 = vmatprep.subr.bf16.mxu1 %v3239_v58  ;;  %v3291_v57 = vld [vmem:[%s4684_s1 + $0x2b0] ss:$8 sps:$4 sm:$0xff]   ;;  %v3296_v58 = vld [vmem:[%s4684_s1 + $0x224] ss:$8 sps:$4 sm:$0xff]  }
  0x38   : > { %469 = vmatprep.mubr.bf16.mxu0 %v3488_v2  ;;  %622 = vmatprep.mubr.bf16.mxu1 %v3488_v2  ;;  %v3894_v62 = vld [vmem:[%s3636_s22 + $0x32] sm:$0xff] }
  0x3a   : > { %759 = vmatpush1.bf16.msra.mxu0 %v3234_v59  ;;  %957 = vmatpush1.bf16.msra.mxu1 %v3237_v60  ;;  %v3299_v59 = vld [vmem:[%s4684_s1 + $0x2a4] ss:$8 sps:$4 sm:$0xff]   ;;  %v3294_v60 = vld [vmem:[%s4684_s1 + $0x220] ss:$8 sps:$4 sm:$0xff]  }
  0x3b   : > { %760 = vmatprep.subr.bf16.mxu0 %v3242_v1  ;;  %958 = vmatprep.subr.bf16.mxu1 %v3245_v3  ;;  %v848_v1 = vld [vmem:[%s3636_s22 + $0x41] sm:$0x7f]  ;;  %v3302_v3 = vld [vmem:[%s4684_s1 + $0x214] ss:$8 sps:$4 sm:$0xff]  }
  0x3d   : > { %470 = vmatmul.mubr.bf16.gmra.mxu0 %v318_v4  ;;  %623 = vmatmul.mubr.bf16.gmra.mxu1 %v290_v5  ;;  %v3305_v4 = vld [vmem:[%s4684_s1 + $0x294] ss:$8 sps:$4 sm:$0xff]   ;;  %v654_v5 = vpack.c.bf16 %v650_v63, %v3894_v62  ;;  %v3359_v63 = vld [vmem:[%s4684_s1 + $0x384] ss:$8 sps:$4 sm:$0xff]  }
  0x3e   : > { %761 = vmatpush1.bf16.msra.mxu0 %v3240_v6  ;;  %959 = vmatpush1.bf16.msra.mxu1 %v3243_v7  ;;  %v3300_v6 = vld [vmem:[%s4684_s1 + $0x210] ss:$8 sps:$4 sm:$0xff]   ;;  %v852_v7 = vpack.c.bf16 %v848_v1, %v847_v0  ;;  %v3354_v0 = vld [vmem:[%s4684_s1 + $0x300] ss:$8 sps:$4 sm:$0xff]  }
  0x3f   : > { %762 = vmatprep.subr.bf16.mxu0 %v3248_v8  ;;  %960 = vmatprep.subr.bf16.mxu1 %v3251_v9  ;;  %v3303_v8 = vld [vmem:[%s4684_s1 + $0x290] ss:$8 sps:$4 sm:$0xff]   ;;  %v3308_v9 = vld [vmem:[%s4684_s1 + $0x204] ss:$8 sps:$4 sm:$0xff]   ;;  %v3357_v1 = vld [vmem:[%s4684_s1 + $0x380] ss:$8 sps:$4 sm:$0xff]  }
  0x40   : > { %479 = vmatprep.mubr.bf16.mxu0 %v3488_v2  ;;  %632 = vmatprep.mubr.bf16.mxu1 %v3488_v2 }
  0x42   : > { %763 = vmatpush1.bf16.msra.mxu0 %v3246_v10  ;;  %961 = vmatpush1.bf16.msra.mxu1 %v3249_v11  ;;  %v3311_v10 = vld [vmem:[%s4684_s1 + $0x284] ss:$8 sps:$4 sm:$0xff]   ;;  %v3306_v11 = vld [vmem:[%s4684_s1 + $0x200] ss:$8 sps:$4 sm:$0xff]  }
  0x43   : > { %764 = vmatprep.subr.bf16.mxu0 %v3254_v16  ;;  %962 = vmatprep.subr.bf16.mxu1 %v3257_v17  ;;  %v3317_v16 = vld [vmem:[%s4684_s1 + $0x3f4] ss:$8 sps:$4 sm:$0xff]   ;;  %v1047_v17 = vpack.c.bf16 %v3817_v38, %v3785_v27  ;;  %v3967_v27 = vld [vmem:[%s3636_s22 + $0x23] sm:$0xff] }
  0x44   : > { %v4000_v38 = vld [vmem:[%s3636_s22 + $0x33] sm:$0xff] }
  0x45   : > { %480 = vmatmul.mubr.bf16.gmra.mxu0 %v319_v18  ;;  %633 = vmatmul.mubr.bf16.gmra.mxu1 %v291_v19  ;;  %v3312_v18 = vld [vmem:[%s4684_s1 + $0x370] ss:$8 sps:$4 sm:$0xff]   ;;  %v1245_v19 = vpack.c.bf16 %v3932_v15, %v1237_v14 }
  0x46   : > { %765 = vmatpush1.bf16.msra.mxu0 %v3252_v20  ;;  %963 = vmatpush1.bf16.msra.mxu1 %v3255_v21  ;;  %v3315_v20 = vld [vmem:[%s4684_s1 + $0x3f0] ss:$8 sps:$4 sm:$0xff]   ;;  %v3320_v21 = vld [vmem:[%s4684_s1 + $0x364] ss:$8 sps:$4 sm:$0xff]  }
  0x47   : > { %766 = vmatprep.subr.bf16.mxu0 %v3260_v22  ;;  %964 = vmatprep.subr.bf16.mxu1 %v3263_v23  ;;  %v3323_v22 = vld [vmem:[%s4684_s1 + $0x3e4] ss:$8 sps:$4 sm:$0xff]   ;;  %v3318_v23 = vld [vmem:[%s4684_s1 + $0x360] ss:$8 sps:$4 sm:$0xff]   ;;  %v3372_v14 = vld [vmem:[%s4684_s1 + $0x430] ss:$8 sps:$4 sm:$0xff]  }
  0x48   : > { %784 = vmatprep.mubr.bf16.mxu0 %v3488_v2  ;;  %982 = vmatprep.mubr.bf16.mxu1 %v3488_v2 }
  0x4a   : > { %767 = vmatpush1.bf16.msra.mxu0 %v3258_v24  ;;  %965 = vmatpush1.bf16.msra.mxu1 %v3261_v25  ;;  %v3321_v24 = vld [vmem:[%s4684_s1 + $0x3e0] ss:$8 sps:$4 sm:$0xff]   ;;  %v3326_v25 = vld [vmem:[%s4684_s1 + $0x354] ss:$8 sps:$4 sm:$0xff]  }
  0x4b   : > { %1148 = vmatprep.subr.bf16.mxu0 %v3266_v28  ;;  %1346 = vmatprep.subr.bf16.mxu1 %v3269_v29  ;;  %v3329_v28 = vld [vmem:[%s4684_s1 + $0x3d4] ss:$8 sps:$4 sm:$0xff]   ;;  %v1048_v29 = vpack.c.bf16 %v3856_v50, %v3820_v39 }
  0x4c   : > { %v3338_v39 = vld [vmem:[%s4684_s1 + $0x334] ss:$8 sps:$4 sm:$0xff]  }
  0x4d   : > { %785 = vmatmul.mubr.bf16.vlgmr.msra.gmra.mxu0 %v651_v30  ;;  %983 = vmatmul.mubr.bf16.vlgmr.msra.gmra.mxu1 %v849_v31  ;;  %v3324_v30 = vld [vmem:[%s4684_s1 + $0x350] ss:$8 sps:$4 sm:$0xff]   ;;  %v1246_v31 = vpack.c.bf16 %v3967_v27, %v3964_v26 }
  0x4e   : > { %1149 = vmatpush1.bf16.msra.mxu0 %v3264_v32  ;;  %1347 = vmatpush1.bf16.msra.mxu1 %v3267_v33  ;;  %v3327_v32 = vld [vmem:[%s4684_s1 + $0x3d0] ss:$8 sps:$4 sm:$0xff]   ;;  %v3332_v33 = vld [vmem:[%s4684_s1 + $0x344] ss:$8 sps:$4 sm:$0xff]  }
  0x4f   : > { %1150 = vmatprep.subr.bf16.mxu0 %v3272_v35  ;;  %1348 = vmatprep.subr.bf16.mxu1 %v3275_v34  ;;  %v3335_v35 = vld [vmem:[%s4684_s1 + $0x3c4] ss:$8 sps:$4 sm:$0xff]   ;;  %v3330_v34 = vld [vmem:[%s4684_s1 + $0x340] ss:$8 sps:$4 sm:$0xff]  }
  0x50   : > { %794 = vmatprep.mubr.bf16.mxu0 %v3488_v2  ;;  %992 = vmatprep.mubr.bf16.mxu1 %v3488_v2  ;;  %v4033_v50 = vld [vmem:[%s3636_s22 + $0x3a] sm:$0xff] }
  0x52   : > { %1151 = vmatpush1.bf16.msra.mxu0 %v3270_v36  ;;  %1349 = vmatpush1.bf16.msra.mxu1 %v3273_v37  ;;  %v3333_v36 = vld [vmem:[%s4684_s1 + $0x3c0] ss:$8 sps:$4 sm:$0xff]  }
  0x53   : > { %1152 = vmatprep.subr.bf16.mxu0 %v3278_v40  ;;  %1350 = vmatprep.subr.bf16.mxu1 %v3281_v41  ;;  %v3997_v37 = vld [vmem:[%s3636_s22 + $0x2b] sm:$0xff]  ;;  %v3341_v40 = vld [vmem:[%s4684_s1 + $0x3b4] ss:$8 sps:$4 sm:$0xff]  }
  0x54   : > { %v3336_v41 = vld [vmem:[%s4684_s1 + $0x330] ss:$8 sps:$4 sm:$0xff]  }
  0x55   : > { %795 = vmatmul.mubr.bf16.gmra.mxu0 %v3832_v42  ;;  %993 = vmatmul.mubr.bf16.gmra.mxu1 %v850_v43  ;;  %v1049_v43 = vpack.c.bf16 %v3894_v62, %v3859_v51  ;;  %v1046_v51 = vld [vmem:[%s3636_s22 + $0x42] sm:$0x7f] }
  0x56   : > { %1153 = vmatpush1.bf16.msra.mxu0 %v3276_v44  ;;  %1351 = vmatpush1.bf16.msra.mxu1 %v3279_v45  ;;  %v1247_v44 = vpack.c.bf16 %v4000_v38, %v3997_v37  ;;  %v3339_v45 = vld [vmem:[%s4684_s1 + $0x3b0] ss:$8 sps:$4 sm:$0xff]  }
  0x57   : > { %1154 = vmatprep.subr.bf16.mxu0 %v3284_v46  ;;  %1352 = vmatprep.subr.bf16.mxu1 %v3287_v47  ;;  %v3344_v46 = vld [vmem:[%s4684_s1 + $0x324] ss:$8 sps:$4 sm:$0xff]  }
  0x58   : > { %804 = vmatprep.mubr.bf16.mxu0 %v3488_v2  ;;  %1002 = vmatprep.mubr.bf16.mxu1 %v3488_v2  ;;  %v3347_v47 = vld [vmem:[%s4684_s1 + $0x3a4] ss:$8 sps:$4 sm:$0xff]  }
  0x5a   : > { %1155 = vmatpush1.bf16.msra.mxu0 %v3282_v48  ;;  %1353 = vmatpush1.bf16.msra.mxu1 %v3285_v49  ;;  %v3342_v48 = vld [vmem:[%s4684_s1 + $0x320] ss:$8 sps:$4 sm:$0xff]  }
  0x5b   : > { %1156 = vmatprep.subr.bf16.mxu0 %v3290_v52  ;;  %1354 = vmatprep.subr.bf16.mxu1 %v3293_v53  ;;  %v3345_v49 = vld [vmem:[%s4684_s1 + $0x3a0] ss:$8 sps:$4 sm:$0xff]  }
  0x5c   : > { %v4037_v52 = vld [vmem:[%s3636_s22 + $0x3b] sm:$0xff]  ;;  %v1244_v53 = vld [vmem:[%s3636_s22 + $0x43] sm:$0x7f] }
  0x5d   : > { %805 = vmatmul.mubr.bf16.gmra.mxu0 %v3871_v54  ;;  %1003 = vmatmul.mubr.bf16.gmra.mxu1 %v851_v55  ;;  %v3350_v55 = vld [vmem:[%s4684_s1 + $0x314] ss:$8 sps:$4 sm:$0xff]  }
  0x5e   : > { %1157 = vmatpush1.bf16.msra.mxu0 %v3288_v56  ;;  %1355 = vmatpush1.bf16.msra.mxu1 %v3291_v57  ;;  %v3353_v56 = vld [vmem:[%s4684_s1 + $0x394] ss:$8 sps:$4 sm:$0xff]   ;;  %v3348_v57 = vld [vmem:[%s4684_s1 + $0x310] ss:$8 sps:$4 sm:$0xff]  }
  0x5f   : > { %1158 = vmatprep.subr.bf16.mxu0 %v3296_v58  ;;  %1356 = vmatprep.subr.bf16.mxu1 %v3299_v59  ;;  %v3351_v58 = vld [vmem:[%s4684_s1 + $0x390] ss:$8 sps:$4 sm:$0xff]   ;;  %v1050_v59 = vpack.c.bf16 %v1046_v51, %v4033_v50 }
  0x60   : > { %814 = vmatprep.mubr.bf16.mxu0 %v3488_v2  ;;  %1012 = vmatprep.mubr.bf16.mxu1 %v3488_v2  ;;  %v3402_v51 = vld [vmem:[%s4686_s3 + $0x10] ss:$8 sps:$4 sm:$0xff]  }
  0x62   : > { %1159 = vmatpush1.bf16.msra.mxu0 %v3294_v60  ;;  %1357 = vmatpush1.bf16.msra.mxu1 %v3297_v61  ;;  %v1248_v60 = vpack.c.bf16 %v1244_v53, %v4037_v52  ;;  %v3356_v61 = vld [vmem:[%s4684_s1 + $0x304] ss:$8 sps:$4 sm:$0xff]   ;;  %v3405_v53 = vld [vmem:[%s4686_s3] ss:$8 sps:$4 sm:$0xff]  }
  0x63   : > { %1160 = vmatprep.subr.bf16.mxu0 %v3302_v3  ;;  %1358 = vmatprep.subr.bf16.mxu1 %v3305_v4  ;;  %v3362_v3 = vld [vmem:[%s4684_s1 + $0x474] ss:$8 sps:$4 sm:$0xff]   ;;  %v3360_v4 = vld [vmem:[%s4684_s1 + $0x470] ss:$8 sps:$4 sm:$0xff]  }
  0x65   : > { %815 = vmatmul.mubr.bf16.gmra.mxu0 %v654_v5  ;;  %1013 = vmatmul.mubr.bf16.gmra.mxu1 %v852_v7  ;;  %v1641_v5 = vpack.c.bf16 %v3964_v26, %v3932_v15  ;;  %v3363_v7 = vld [vmem:[%s4684_s1 + $0x460] ss:$8 sps:$4 sm:$0xff]   ;;  %v3377_v15 = vld [vmem:[%s4684_s1 + $0x424] ss:$8 sps:$4 sm:$0xff]   ;;  %v1831_v26 = vld [vmem:[%s3636_s22 + $0x14] sm:$0xff] }
  0x66   : > { %1161 = vmatpush1.bf16.msra.mxu0 %v3300_v6  ;;  %1359 = vmatpush1.bf16.msra.mxu1 %v3303_v8  ;;  %v3365_v6 = vld [vmem:[%s4684_s1 + $0x464] ss:$8 sps:$4 sm:$0xff]   ;;  %v3368_v8 = vld [vmem:[%s4684_s1 + $0x454] ss:$8 sps:$4 sm:$0xff]  }
  0x67   : > { %1162 = vmatprep.subr.bf16.mxu0 %v3308_v9  ;;  %1360 = vmatprep.subr.bf16.mxu1 %v3311_v10  ;;  %v1642_v9 = vpack.c.bf16 %v3997_v37, %v3967_v27  ;;  %v3366_v10 = vld [vmem:[%s4684_s1 + $0x450] ss:$8 sps:$4 sm:$0xff]   ;;  %v1832_v27 = vld [vmem:[%s3636_s22 + $0x1c] sm:$0xff]  ;;  %v1837_v37 = vld [vmem:[%s3636_s22 + $0x44] sm:$0xff] }
  0x68   : > { %1180 = vmatprep.mubr.bf16.mxu0 %v3488_v2  ;;  %1378 = vmatprep.mubr.bf16.mxu1 %v3488_v2 }
  0x6a   : > { %1163 = vmatpush1.bf16.msra.mxu0 %v3306_v11  ;;  %1361 = vmatpush1.bf16.msra.mxu1 %v3309_v12  ;;  %v3369_v11 = vld [vmem:[%s4684_s1 + $0x440] ss:$8 sps:$4 sm:$0xff]   ;;  %v3374_v12 = vld [vmem:[%s4684_s1 + $0x434] ss:$8 sps:$4 sm:$0xff]  }
  0x6b   : > { %1544 = vmatprep.subr.bf16.mxu0 %v3314_v13  ;;  %1742 = vmatprep.subr.bf16.mxu1 %v3317_v16  ;;  %v1643_v13 = vpack.c.bf16 %v4037_v52, %v4000_v38  ;;  %v3375_v16 = vld [vmem:[%s4684_s1 + $0x420] ss:$8 sps:$4 sm:$0xff]   ;;  %v1838_v38 = vld [vmem:[%s3636_s22 + $0x4c] sm:$0x7f] }
  0x6c   : > { %v3407_v52 = vld [vmem:[%s4686_s3 + $0x4] ss:$8 sps:$4 sm:$0xff]  }
  0x6d   : > { %1181 = vmatmul.mubr.bf16.vlgmr.msra.gmra.mxu0 %v1047_v17  ;;  %1379 = vmatmul.mubr.bf16.vlgmr.msra.gmra.mxu1 %v1245_v19  ;;  %v1442_v17 = vld [vmem:[%s3636_s22 + $0x4a] sm:$0x7f] }
  0x6e   : > { %1545 = vmatpush1.bf16.msra.mxu0 %v3312_v18  ;;  %1743 = vmatpush1.bf16.msra.mxu1 %v3315_v20  ;;  %v1639_v18 = vld [vmem:[%s3636_s22 + $0x43] sm:$0xff]  ;;  %v1640_v19 = vld [vmem:[%s3636_s22 + $0x4b] sm:$0x7f]  ;;  %v3380_v20 = vld [vmem:[%s4684_s1 + $0x414] ss:$8 sps:$4 sm:$0xff]  }
  0x6f   : > { %1546 = vmatprep.subr.bf16.mxu0 %v3320_v21  ;;  %1744 = vmatprep.subr.bf16.mxu1 %v3323_v22  ;;  %v1644_v22 = vpack.c.bf16 %v1640_v19, %v1639_v18 }
  0x70   : > { %1190 = vmatprep.mubr.bf16.mxu0 %v3488_v2  ;;  %1388 = vmatprep.mubr.bf16.mxu1 %v3488_v2 }
  0x72   : > { %1547 = vmatpush1.bf16.msra.mxu0 %v3318_v23  ;;  %1745 = vmatpush1.bf16.msra.mxu1 %v3321_v24  ;;  %v3378_v23 = vld [vmem:[%s4684_s1 + $0x410] ss:$8 sps:$4 sm:$0xff]   ;;  %v3383_v24 = vld [vmem:[%s4684_s1 + $0x404] ss:$8 sps:$4 sm:$0xff]  }
  0x73   : > { %1548 = vmatprep.subr.bf16.mxu0 %v3326_v25  ;;  %1746 = vmatprep.subr.bf16.mxu1 %v3329_v28  ;;  %v3381_v25 = vld [vmem:[%s4684_s1 + $0x400] ss:$8 sps:$4 sm:$0xff]   ;;  %v1839_v28 = vpack.c.bf16 %v1832_v27, %v1831_v26 }
  0x75   : > { %1191 = vmatmul.mubr.bf16.gmra.mxu0 %v1048_v29  ;;  %1389 = vmatmul.mubr.bf16.gmra.mxu1 %v1246_v31  ;;  %v1833_v29 = vld [vmem:[%s3636_s22 + $0x24] sm:$0xff] }
  0x76   : > { %1549 = vmatpush1.bf16.msra.mxu0 %v3324_v30  ;;  %1747 = vmatpush1.bf16.msra.mxu1 %v3327_v32  ;;  %v1834_v30 = vld [vmem:[%s3636_s22 + $0x2c] sm:$0xff]  ;;  %v1835_v32 = vld [vmem:[%s3636_s22 + $0x34] sm:$0xff] }
  0x77   : > { %1550 = vmatprep.subr.bf16.mxu0 %v3332_v33  ;;  %1748 = vmatprep.subr.bf16.mxu1 %v3335_v35  ;;  %v1840_v31 = vpack.c.bf16 %v1834_v30, %v1833_v29  ;;  %v1836_v33 = vld [vmem:[%s3636_s22 + $0x3c] sm:$0xff] }
  0x78   : > { %1200 = vmatprep.mubr.bf16.mxu0 %v3488_v2  ;;  %1398 = vmatprep.mubr.bf16.mxu1 %v3488_v2  ;;  %v1841_v35 = vpack.c.bf16 %v1836_v33, %v1835_v32 }
  0x7a   : > { %1551 = vmatpush1.bf16.msra.mxu0 %v3330_v34  ;;  %1749 = vmatpush1.bf16.msra.mxu1 %v3333_v36  ;;  %v3386_v34 = vld [vmem:[%s4686_s3 + $0x74] ss:$8 sps:$4 sm:$0xff]   ;;  %v3384_v36 = vld [vmem:[%s4686_s3 + $0x70] ss:$8 sps:$4 sm:$0xff]  }
  0x7b   : > { %1552 = vmatprep.subr.bf16.mxu0 %v3338_v39  ;;  %1750 = vmatprep.subr.bf16.mxu1 %v3341_v40  ;;  %v3389_v39 = vld [vmem:[%s4686_s3 + $0x64] ss:$8 sps:$4 sm:$0xff]   ;;  %v3387_v40 = vld [vmem:[%s4686_s3 + $0x60] ss:$8 sps:$4 sm:$0xff]  }
  0x7d   : > { %1201 = vmatmul.mubr.bf16.gmra.mxu0 %v1049_v43  ;;  %1399 = vmatmul.mubr.bf16.gmra.mxu1 %v1247_v44  ;;  %v3392_v43 = vld [vmem:[%s4686_s3 + $0x54] ss:$8 sps:$4 sm:$0xff]   ;;  %v3395_v44 = vld [vmem:[%s4686_s3 + $0x44] ss:$8 sps:$4 sm:$0xff]  }
  0x7e   : > { %1553 = vmatpush1.bf16.msra.mxu0 %v3336_v41  ;;  %1751 = vmatpush1.bf16.msra.mxu1 %v3339_v45  ;;  %v1842_v41 = vpack.c.bf16 %v1838_v38, %v1837_v37  ;;  %v3393_v45 = vld [vmem:[%s4686_s3 + $0x40] ss:$8 sps:$4 sm:$0xff]  }
  0x7f   : > { %1554 = vmatprep.subr.bf16.mxu0 %v3344_v46  ;;  %1752 = vmatprep.subr.bf16.mxu1 %v3347_v47  ;;  %v3398_v46 = vld [vmem:[%s4686_s3 + $0x34] ss:$8 sps:$4 sm:$0xff]   ;;  %v3396_v47 = vld [vmem:[%s4686_s3 + $0x30] ss:$8 sps:$4 sm:$0xff]  }
  0x80   : > { %1210 = vmatprep.mubr.bf16.mxu0 %v3488_v2  ;;  %1408 = vmatprep.mubr.bf16.mxu1 %v3488_v2 }
  0x82   : > { %1555 = vmatpush1.bf16.msra.mxu0 %v3342_v48  ;;  %1753 = vmatpush1.bf16.msra.mxu1 %v3345_v49  ;;  %v3401_v48 = vld [vmem:[%s4686_s3 + $0x24] ss:$8 sps:$4 sm:$0xff]   ;;  %v3399_v49 = vld [vmem:[%s4686_s3 + $0x20] ss:$8 sps:$4 sm:$0xff]  }
  0x83   : > { %1556 = vmatprep.subr.bf16.mxu0 %v3350_v55  ;;  %1754 = vmatprep.subr.bf16.mxu1 %v3353_v56  ;;  %v3410_v55 = vld [vmem:[%s4686_s3 + $0xf4] ss:$8 sps:$4 sm:$0xff]   ;;  %v3408_v56 = vld [vmem:[%s4686_s3 + $0xf0] ss:$8 sps:$4 sm:$0xff]  }
  0x85   : > { %1211 = vmatmul.mubr.bf16.gmra.mxu0 %v1050_v59  ;;  %1409 = vmatmul.mubr.bf16.gmra.mxu1 %v1248_v60  ;;  %v3416_v59 = vld [vmem:[%s4686_s3 + $0xd4] ss:$8 sps:$4 sm:$0xff]   ;;  %v3414_v60 = vld [vmem:[%s4686_s3 + $0xd0] ss:$8 sps:$4 sm:$0xff]  }
  0x86   : > { %1557 = vmatpush1.bf16.msra.mxu0 %v3348_v57  ;;  %1755 = vmatpush1.bf16.msra.mxu1 %v3351_v58  ;;  %v3413_v57 = vld [vmem:[%s4686_s3 + $0xe4] ss:$8 sps:$4 sm:$0xff]   ;;  %v3411_v58 = vld [vmem:[%s4686_s3 + $0xe0] ss:$8 sps:$4 sm:$0xff]  }
  0x87   : > { %1558 = vmatprep.subr.bf16.mxu0 %v3356_v61  ;;  %1756 = vmatprep.subr.bf16.mxu1 %v3359_v63  ;;  %v3419_v61 = vld [vmem:[%s4686_s3 + $0xc4] ss:$8 sps:$4 sm:$0xff]   ;;  %v3417_v63 = vld [vmem:[%s4686_s3 + $0xc0] ss:$8 sps:$4 sm:$0xff]  }
  0x88   : > { %1576 = vmatprep.mubr.bf16.mxu0 %v3488_v2  ;;  %1774 = vmatprep.mubr.bf16.mxu1 %v3488_v2 }
  0x8a   : > { %1559 = vmatpush1.bf16.msra.mxu0 %v3354_v0  ;;  %1757 = vmatpush1.bf16.msra.mxu1 %v3357_v1  ;;  %v3422_v0 = vld [vmem:[%s4686_s3 + $0xb4] ss:$8 sps:$4 sm:$0xff]   ;;  %v3420_v1 = vld [vmem:[%s4686_s3 + $0xb0] ss:$8 sps:$4 sm:$0xff]  }
  0x8b   : > { %1940 = vmatprep.subr.bf16.mxu0 %v3362_v3  ;;  %2285 = vmatprep.subr.bf16.mxu1 %v3386_v34 }
  0x8d   : > { %1577 = vmatmul.mubr.bf16.vlgmr.msra.gmra.mxu0 %v3832_v42  ;;  %1775 = vmatmul.mubr.bf16.vlgmr.msra.gmra.mxu1 %v1641_v5  ;;  %v3371_v42 = vld [vmem:[%s4684_s1 + $0x444] ss:$8 sps:$4 sm:$0xff]  }
  0x8e   : > { %1941 = vmatpush1.bf16.msra.mxu0 %v3360_v4  ;;  %1586 = vmatprep.mubr.bf16.mxu0 %v3488_v2 }
  0x8f   : > { %1942 = vmatprep.subr.bf16.mxu0 %v3365_v6  ;;  %1784 = vmatprep.mubr.bf16.mxu1 %v3488_v2 }
  0x90   : > { %2286 = vmatpush1.bf16.msra.mxu1 %v3384_v36 }
  0x91   : > { %2287 = vmatprep.subr.bf16.mxu1 %v3389_v39 }
  0x92   : > { %1943 = vmatpush1.bf16.msra.mxu0 %v3363_v7 }
  0x93   : > { %1944 = vmatprep.subr.bf16.mxu0 %v3368_v8  ;;  %v3425_v8 = vld [vmem:[%s4686_s3 + $0xa4] ss:$8 sps:$4 sm:$0xff]  }
  0x94   : > { %2288 = vmatpush1.bf16.msra.mxu1 %v3387_v40 }
  0x95   : > { %1587 = vmatmul.mubr.bf16.gmra.mxu0 %v3871_v54  ;;  %1785 = vmatmul.mubr.bf16.gmra.mxu1 %v1642_v9  ;;  %v1445_v54 = vpack.c.bf16 %v4033_v50, %v3894_v62  ;;  %v1441_v62 = vld [vmem:[%s3636_s22 + $0x42] sm:$0xff]  ;;  %v3404_v50 = vld [vmem:[%s4686_s3 + $0x14] ss:$8 sps:$4 sm:$0xff]  }
  0x96   : > { %1945 = vmatpush1.bf16.msra.mxu0 %v3366_v10  ;;  %1596 = vmatprep.mubr.bf16.mxu0 %v3488_v2  ;;  %v1446_v21 = vpack.c.bf16 %v1442_v17, %v1441_v62  ;;  %v3423_v10 = vld [vmem:[%s4686_s3 + $0xa0] ss:$8 sps:$4 sm:$0xff]  }
  0x97   : > { %1946 = vmatprep.subr.bf16.mxu0 %v3371_v42  ;;  %1794 = vmatprep.mubr.bf16.mxu1 %v3488_v2 }
  0x98   : > { %2289 = vmatprep.subr.bf16.mxu1 %v3392_v43 }
  0x9a   : > { %1947 = vmatpush1.bf16.msra.mxu0 %v3369_v11 }
  0x9b   : > { %1948 = vmatprep.subr.bf16.mxu0 %v3374_v12 }
  0x9d   : > { %1597 = vmatmul.mubr.bf16.gmra.mxu0 %v1445_v54  ;;  %1795 = vmatmul.mubr.bf16.gmra.mxu1 %v1643_v13 }
  0x9e   : > { %1949 = vmatpush1.bf16.msra.mxu0 %v3372_v14  ;;  %1606 = vmatprep.mubr.bf16.mxu0 %v3488_v2  ;;  %v3428_v14 = vld [vmem:[%s4686_s3 + $0x94] ss:$8 sps:$4 sm:$0xff]  }
  0x9f   : > { %1950 = vmatprep.subr.bf16.mxu0 %v3377_v15  ;;  %1804 = vmatprep.mubr.bf16.mxu1 %v3488_v2 }
  0xa2   : > { %1951 = vmatpush1.bf16.msra.mxu0 %v3375_v16  ;;  %v3426_v16 = vld [vmem:[%s4686_s3 + $0x90] ss:$8 sps:$4 sm:$0xff]  }
  0xa3   : > { %1952 = vmatprep.subr.bf16.mxu0 %v3380_v20 }
  0xa5   : > { %1607 = vmatmul.mubr.bf16.gmra.mxu0 %v1446_v21  ;;  %1805 = vmatmul.mubr.bf16.gmra.mxu1 %v1644_v22  ;;  %v3431_v21 = vld [vmem:[%s4686_s3 + $0x84] ss:$8 sps:$4 sm:$0xff]  }
  0xa6   : > { %1953 = vmatpush1.bf16.msra.mxu0 %v3378_v23  ;;  %1972 = vmatprep.mubr.bf16.mxu0 %v3488_v2  ;;  %v3429_v23 = vld [vmem:[%s4686_s3 + $0x80] ss:$8 sps:$4 sm:$0xff]  }
  0xa7   : > { %1954 = vmatprep.subr.bf16.mxu0 %v3383_v24 }
  0xaa   : > { %1955 = vmatpush1.bf16.msra.mxu0 %v3381_v25 }
  0xad   : > { %1973 = vmatmul.mubr.bf16.vlgmr.msra.gmra.mxu0 %v1839_v28 }
  0xae   : > { %1982 = vmatprep.mubr.bf16.mxu0 %v3488_v2 }
  0xb5   : > { %1983 = vmatmul.mubr.bf16.gmra.mxu0 %v1840_v31 }
  0xb6   : > { %1992 = vmatprep.mubr.bf16.mxu0 %v3488_v2 }
  0xbd   : > { %1993 = vmatmul.mubr.bf16.gmra.mxu0 %v1841_v35 }
  0xbe   : > { %2002 = vmatprep.mubr.bf16.mxu0 %v3488_v2  ;;  %v3390_v2 = vld [vmem:[%s4686_s3 + $0x50] ss:$8 sps:$4 sm:$0xff]  }
  0xbf   : > { %2290 = vmatpush1.bf16.msra.mxu1 %v3390_v2 }
  0xc0   : > { %2291 = vmatprep.subr.bf16.mxu1 %v3395_v44 }
  0xc3   : > { %2292 = vmatpush1.bf16.msra.mxu1 %v3393_v45 }
  0xc4   : > { %2293 = vmatprep.subr.bf16.mxu1 %v3398_v46 }
  0xc5   : > { %2003 = vmatmul.mubr.bf16.gmra.mxu0 %v1842_v41 }
  0xc7   : > { %2294 = vmatpush1.bf16.msra.mxu1 %v3396_v47 }
  0xc8   : > { %2295 = vmatprep.subr.bf16.mxu1 %v3401_v48 }
  0xcb   : > { %2296 = vmatpush1.bf16.msra.mxu1 %v3399_v49 }
  0xcc   : > { %2297 = vmatprep.subr.bf16.mxu1 %v3404_v50 }
  0xcf   : > { %2298 = vmatpush1.bf16.msra.mxu1 %v3402_v51 }
  0xd0   : > { %2299 = vmatprep.subr.bf16.mxu1 %v3407_v52 }
  0xd3   : > { %2300 = vmatpush1.bf16.msra.mxu1 %v3405_v53 }
  0xd4   : > { %2301 = vmatprep.subr.bf16.mxu1 %v3410_v55 }
  0xd7   : > { %2302 = vmatpush2.bf16.msra.mxu1 %v3408_v56 }
  0xd8   : > { %2303 = vmatprep.subr.bf16.mxu1 %v3413_v57 }
  0xdb   : > { %2304 = vmatpush2.bf16.msra.mxu1 %v3411_v58 }
  0xdc   : > { %2305 = vmatprep.subr.bf16.mxu1 %v3416_v59 }
  0xdf   : > { %2306 = vmatpush2.bf16.msra.mxu1 %v3414_v60 }
  0xe0   : > { %2307 = vmatprep.subr.bf16.mxu1 %v3419_v61 }
  0xe3   : > { %2308 = vmatpush2.bf16.msra.mxu1 %v3417_v63 }
  0xe4   : > { %2309 = vmatprep.subr.bf16.mxu1 %v3422_v0 }
  0xe7   : > { %2310 = vmatpush2.bf16.msra.mxu1 %v3420_v1 }
  0xe8   : > { %2311 = vmatprep.subr.bf16.mxu1 %v3425_v8  ;;  %v3434_v8 = vld [vmem:[%s4688_s5 + $0x74] ss:$8 sps:$4 sm:$0xff]  }
  0xe9   : > { %2586 = vmatprep.subr.bf16.mxu0 %v3434_v8  ;;  %v3458_v8 = vld [vmem:[%s4688_s5 + $0xf4] ss:$8 sps:$4 sm:$0xff]  }
  0xeb   : > { %2312 = vmatpush2.bf16.msra.mxu1 %v3423_v10  ;;  %v3437_v10 = vld [vmem:[%s4688_s5 + $0x64] ss:$8 sps:$4 sm:$0xff]  }
  0xec   : > { %2313 = vmatprep.subr.bf16.mxu1 %v3428_v14 }
  0xed   : > { %v451_v3 = vpop.f32.mrf.mxu0  ;;  %v604_v4 = vpop.f32.mrf.mxu1 }
  0xee   : > { %v605_v5 = vadd.f32 %v604_v4, %v451_v3 }
  0xef   : > { %v453_v6 = vpop.f32.mrf.mxu0  ;;  %v606_v7 = vpop.f32.mrf.mxu1  ;;  %2314 = vmatpush2.bf16.msra.mxu1 %v3426_v16 }
  0xf0   : > { %v607_v9 = vadd.f32 %v606_v7, %v453_v6  ;;  %2315 = vmatprep.subr.bf16.mxu1 %v3431_v21 }
  0xf1   : > { %v455_v42 = vpop.f32.mrf.mxu0  ;;  %v608_v11 = vpop.f32.mrf.mxu1 }
  0xf2   : > { %v609_v12 = vadd.f32 %v608_v11, %v455_v42 }
  0xf3   : > { %v457_v54 = vpop.f32.mrf.mxu0  ;;  %v610_v13 = vpop.f32.mrf.mxu1  ;;  %2316 = vmatpush2.bf16.msra.mxu1 %v3429_v23 }
  0xf4   : > { %v611_v15 = vadd.f32 %v610_v13, %v457_v54  ;;  %v3435_v54 = vld [vmem:[%s4688_s5 + $0x60] ss:$8 sps:$4 sm:$0xff]  }
  0xf5   : > { %v461_v62 = vpop.f32.mrf.mxu0  ;;  %v614_v17 = vpop.f32.mrf.mxu1 }
  0xf6   : > { %v615_v18 = vadd.f32 %v614_v17, %v461_v62 }
  0xf7   : > { %v463_v19 = vpop.f32.mrf.mxu0  ;;  %v616_v20 = vpop.f32.mrf.mxu1 }
  0xf8   : > { %v617_v22 = vadd.f32 %v616_v20, %v463_v19  ;;  %v3438_v19 = vld [vmem:[%s4688_s5 + $0x50] ss:$8 sps:$4 sm:$0xff]  }
  0xf9   : > { %v465_v24 = vpop.f32.mrf.mxu0  ;;  %v618_v25 = vpop.f32.mrf.mxu1 }
  0xfa   : > { %v619_v26 = vadd.f32 %v618_v25, %v465_v24 }
  0xfb   : > { %v467_v27 = vpop.f32.mrf.mxu0  ;;  %v620_v28 = vpop.f32.mrf.mxu1 }
  0xfc   : > { %v621_v29 = vadd.f32 %v620_v28, %v467_v27  ;;  %v3441_v27 = vld [vmem:[%s4688_s5 + $0x40] ss:$8 sps:$4 sm:$0xff]  }
  0xfd   : > { %v471_v30 = vpop.f32.mrf.mxu0  ;;  %v624_v31 = vpop.f32.mrf.mxu1 }
  0xfe   : > { %v625_v32 = vadd.f32 %v624_v31, %v471_v30  ;;  %v3446_v30 = vld [vmem:[%s4688_s5 + $0x34] ss:$8 sps:$4 sm:$0xff]  }
  0xff   : > { %v473_v33 = vpop.f32.mrf.mxu0  ;;  %v626_v35 = vpop.f32.mrf.mxu1 }
 0x100   : > { %v627_v34 = vadd.f32 %v626_v35, %v473_v33 }
 0x101   : > { %v475_v36 = vpop.f32.mrf.mxu0  ;;  %v628_v37 = vpop.f32.mrf.mxu1 }
 0x102   : > { %v4246_v38 = vadd.f32 %v628_v37, %v475_v36 }
 0x103   : > { %v477_v39 = vpop.f32.mrf.mxu0  ;;  %v630_v40 = vpop.f32.mrf.mxu1 }
 0x104   : > { %v4248_v41 = vadd.f32 %v630_v40, %v477_v39 }
 0x105   : > { %v481_v43 = vpop.f32.mrf.mxu0  ;;  %v634_v2 = vpop.f32.mrf.mxu1 }
 0x106   : > { %v4250_v44 = vadd.f32 %v634_v2, %v481_v43  ;;  %v3447_v2 = vld [vmem:[%s4688_s5 + $0x20] ss:$8 sps:$4 sm:$0xff]  }
 0x107   : > { %v483_v45 = vpop.f32.mrf.mxu0  ;;  %v636_v46 = vpop.f32.mrf.mxu1 }
 0x108   : > { %v4252_v47 = vadd.f32 %v636_v46, %v483_v45 }
 0x109   : > { %v485_v48 = vpop.f32.mrf.mxu0  ;;  %v638_v49 = vpop.f32.mrf.mxu1 }
 0x10a   : > { %v4254_v50 = vadd.f32 %v638_v49, %v485_v48 }
 0x10b   : > { %v487_v51 = vpop.f32.mrf.mxu0  ;;  %v640_v52 = vpop.f32.mrf.mxu1 }
 0x10c   : > { %v4256_v53 = vadd.f32 %v640_v52, %v487_v51  ;;  %v3450_v52 = vld [vmem:[%s4688_s5 + $0x10] ss:$8 sps:$4 sm:$0xff]  }
 0x10d   : > { %v786_v55 = vpop.f32.mrf.mxu0  ;;  %v4258_v56 = vpop.f32.mrf.mxu1 }
 0x10e   : > { %v4260_v57 = vadd.f32 %v786_v55, %v605_v5  ;;  %v3432_v5 = vld [vmem:[%s4688_s5 + $0x70] ss:$8 sps:$4 sm:$0xff]  }
 0x10f   : > { %v788_v58 = vpop.f32.mrf.mxu0  ;;  %v4262_v59 = vpop.f32.mrf.mxu1  ;;  %2587 = vmatpush1.bf16.msra.mxu0 %v3432_v5 }
 0x110   : > { %v4264_v60 = vadd.f32 %v788_v58, %v607_v9  ;;  %2588 = vmatprep.subr.bf16.mxu0 %v3437_v10 }
 0x111   : > { %v790_v61 = vpop.f32.mrf.mxu0  ;;  %v4266_v63 = vpop.f32.mrf.mxu1 }
 0x112   : > { %v4268_v0 = vadd.f32 %v790_v61, %v609_v12 }
 0x113   : > { %v792_v1 = vpop.f32.mrf.mxu0  ;;  %v4270_v3 = vpop.f32.mrf.mxu1  ;;  %2589 = vmatpush1.bf16.msra.mxu0 %v3435_v54  ;;  %v3456_v54 = vld [vmem:[%s4688_s5 + $0xf0] ss:$8 sps:$4 sm:$0xff]  }
 0x114   : > { %v4272_v4 = vadd.f32 %v792_v1, %v611_v15  ;;  %v3440_v15 = vld [vmem:[%s4688_s5 + $0x54] ss:$8 sps:$4 sm:$0xff]  }
 0x115   : > { %v796_v6 = vpop.f32.mrf.mxu0  ;;  %v4274_v7 = vpop.f32.mrf.mxu1  ;;  %2590 = vmatprep.subr.bf16.mxu0 %v3440_v15 }
 0x116   : > { %v4282_v9 = vadd.f32 %v796_v6, %v615_v18 }
 0x117   : > { %v798_v42 = vpop.f32.mrf.mxu0  ;;  %v4287_v11 = vpop.f32.mrf.mxu1  ;;  %2591 = vmatpush1.bf16.msra.mxu0 %v3438_v19 }
 0x118   : > { %v4289_v12 = vadd.f32 %v798_v42, %v617_v22  ;;  %v3443_v22 = vld [vmem:[%s4688_s5 + $0x44] ss:$8 sps:$4 sm:$0xff]  }
 0x119   : > { %v800_v13 = vpop.f32.mrf.mxu0  ;;  %v4294_v14 = vpop.f32.mrf.mxu1  ;;  %2592 = vmatprep.subr.bf16.mxu0 %v3443_v22  ;;  %v3459_v22 = vld [vmem:[%s4688_s5 + $0xe0] ss:$8 sps:$4 sm:$0xff]  }
 0x11a   : > { %v4299_v16 = vadd.f32 %v800_v13, %v619_v26 }
 0x11b   : > { %v802_v62 = vpop.f32.mrf.mxu0  ;;  %v4301_v17 = vpop.f32.mrf.mxu1  ;;  %2593 = vmatpush1.bf16.msra.mxu0 %v3441_v27 }
 0x11c   : > { %v4303_v18 = vadd.f32 %v802_v62, %v621_v29  ;;  %2594 = vmatprep.subr.bf16.mxu0 %v3446_v30  ;;  %v3461_v62 = vld [vmem:[%s4688_s5 + $0xe4] ss:$8 sps:$4 sm:$0xff]  }
 0x11d   : > { %v806_v20 = vpop.f32.mrf.mxu0  ;;  %v4308_v21 = vpop.f32.mrf.mxu1 }
 0x11e   : > { %v4313_v23 = vadd.f32 %v806_v20, %v625_v32 }
 0x11f   : > { %v808_v24 = vpop.f32.mrf.mxu0  ;;  %v4315_v25 = vpop.f32.mrf.mxu1 }
 0x120   : > { %v4317_v26 = vadd.f32 %v808_v24, %v627_v34  ;;  %v3444_v34 = vld [vmem:[%s4688_s5 + $0x30] ss:$8 sps:$4 sm:$0xff]  }
 0x121   : > { %v810_v28 = vpop.f32.mrf.mxu0  ;;  %v4322_v29 = vpop.f32.mrf.mxu1  ;;  %2595 = vmatpush1.bf16.msra.mxu0 %v3444_v34  ;;  %v3462_v34 = vld [vmem:[%s4688_s5 + $0xd0] ss:$8 sps:$4 sm:$0xff]  }
 0x122   : > { %v4328_v31 = vadd.f32 %v810_v28, %v4246_v38  ;;  %v3449_v38 = vld [vmem:[%s4688_s5 + $0x24] ss:$8 sps:$4 sm:$0xff]   ;;  %v3464_v28 = vld [vmem:[%s4688_s5 + $0xd4] ss:$8 sps:$4 sm:$0xff]  }
 0x123   : > { %v812_v32 = vpop.f32.mrf.mxu0  ;;  %v4330_v33 = vpop.f32.mrf.mxu1  ;;  %2596 = vmatprep.subr.bf16.mxu0 %v3449_v38 }
 0x124   : > { %v4333_v35 = vadd.f32 %v812_v32, %v4248_v41 }
 0x125   : > { %v816_v36 = vpop.f32.mrf.mxu0  ;;  %v4338_v37 = vpop.f32.mrf.mxu1  ;;  %2597 = vmatpush1.bf16.msra.mxu0 %v3447_v2 }
 0x126   : > { %v4344_v39 = vadd.f32 %v816_v36, %v4250_v44  ;;  %v3452_v44 = vld [vmem:[%s4688_s5 + $0x14] ss:$8 sps:$4 sm:$0xff]  }
 0x127   : > { %v818_v40 = vpop.f32.mrf.mxu0  ;;  %v4346_v43 = vpop.f32.mrf.mxu1  ;;  %2598 = vmatprep.subr.bf16.mxu0 %v3452_v44  ;;  %v3465_v44 = vld [vmem:[%s4688_s5 + $0xc0] ss:$8 sps:$4 sm:$0xff]  }
 0x128   : > { %v4349_v41 = vadd.f32 %v818_v40, %v4252_v47  ;;  %v3467_v40 = vld [vmem:[%s4688_s5 + $0xc4] ss:$8 sps:$4 sm:$0xff]  }
 0x129   : > { %v820_v45 = vpop.f32.mrf.mxu0  ;;  %v4354_v46 = vpop.f32.mrf.mxu1  ;;  %2599 = vmatpush1.bf16.msra.mxu0 %v3450_v52 }
 0x12a   : > { %4691 = vst [vmem:[#allocation2_spill] sm:$0xff] %v4354_v46  ;;  %v4360_v48 = vadd.f32 %v820_v45, %v4254_v50  ;;  %v3455_v50 = vld [vmem:[%s4688_s5 + $0x4] ss:$8 sps:$4 sm:$0xff]  }
 0x12b   : > { %v822_v49 = vpop.f32.mrf.mxu0  ;;  %v4362_v51 = vpop.f32.mrf.mxu1  ;;  %2600 = vmatprep.subr.bf16.mxu0 %v3455_v50  ;;  %v3470_v50 = vld [vmem:[%s4688_s5 + $0xb4] ss:$8 sps:$4 sm:$0xff]  }
 0x12c   : > { %4692 = vst [vmem:[#allocation3_spill] sm:$0xff] %v4360_v48  ;;  %4693 = vst [vmem:[#allocation4_spill] sm:$0xff] %v4362_v51  ;;  %v4365_v47 = vadd.f32 %v822_v49, %v4256_v53  ;;  %v3453_v53 = vld [vmem:[%s4688_s5] ss:$8 sps:$4 sm:$0xff]  }
 0x12d   : > { %v4370_v55 = vpop.f32.mrf.mxu0  ;;  %v4372_v58 = vpop.f32.mrf.mxu1  ;;  %2601 = vmatpush1.bf16.msra.mxu0 %v3453_v53 }
 0x12e   : > { %4694 = vst [vmem:[#allocation5_spill] sm:$0xff] %v4365_v47  ;;  %2602 = vmatprep.subr.bf16.mxu0 %v3458_v8 }
 0x12f   : > { %v4377_v61 = vpop.f32.mrf.mxu0  ;;  %v4379_v1 = vpop.f32.mrf.mxu1 }
 0x131   : > { %v4384_v6 = vpop.f32.mrf.mxu0  ;;  %v4386_v5 = vpop.f32.mrf.mxu1  ;;  %2603 = vmatpush2.bf16.msra.mxu0 %v3456_v54  ;;  %v3468_v54 = vld [vmem:[%s4688_s5 + $0xb0] ss:$8 sps:$4 sm:$0xff]  }
 0x132   : > { %2604 = vmatprep.subr.bf16.mxu0 %v3461_v62 }
 0x133   : > { %v4391_v10 = vpop.f32.mrf.mxu0  ;;  %v4393_v42 = vpop.f32.mrf.mxu1 }
 0x135   : > { %v4398_v13 = vpop.f32.mrf.mxu0  ;;  %v4400_v15 = vpop.f32.mrf.mxu1  ;;  %2605 = vmatpush2.bf16.msra.mxu0 %v3459_v22 }
 0x136   : > { %2606 = vmatprep.subr.bf16.mxu0 %v3464_v28 }
 0x137   : > { %v4405_v19 = vpop.f32.mrf.mxu0  ;;  %v4407_v20 = vpop.f32.mrf.mxu1 }
 0x139   : > { %v4412_v24 = vpop.f32.mrf.mxu0  ;;  %v4414_v27 = vpop.f32.mrf.mxu1  ;;  %2607 = vmatpush2.bf16.msra.mxu0 %v3462_v34 }
 0x13a   : > { %2608 = vmatprep.subr.bf16.mxu0 %v3467_v40 }
 0x13b   : > { %v4419_v30 = vpop.f32.mrf.mxu0  ;;  %v4421_v32 = vpop.f32.mrf.mxu1 }
 0x13c   : > { %4695 = vst [vmem:[#allocation6_spill] sm:$0xff] %v4421_v32  ;;  %v1024_v32 = vadd.f32 %v4262_v59, %v4264_v60 }
 0x13d   : > { %v4426_v36 = vpop.f32.mrf.mxu0  ;;  %v4428_v38 = vpop.f32.mrf.mxu1  ;;  %2609 = vmatpush2.bf16.msra.mxu0 %v3465_v44 }
 0x13e   : > { %4696 = vst [vmem:[#allocation7_spill] sm:$0xff] %v4428_v38  ;;  %2610 = vmatprep.subr.bf16.mxu0 %v3470_v50 }
 0x13f   : > { %v4433_v2 = vpop.f32.mrf.mxu0  ;;  %v4435_v45 = vpop.f32.mrf.mxu1 }
 0x140   : > { %4697 = vst [vmem:[#allocation8_spill] sm:$0xff] %v4433_v2  ;;  %4698 = vst [vmem:[#allocation9_spill] sm:$0xff] %v4435_v45  ;;  %v2031_v2 = vlaneseq }
 0x141   : > { %v4440_v49 = vpop.f32.mrf.mxu0  ;;  %v4442_v52 = vpop.f32.mrf.mxu1  ;;  %2611 = vmatpush2.bf16.msra.mxu0 %v3468_v54 }
 0x142   : > { %4699 = vst [vmem:[#allocation10_spill] sm:$0xff] %v4440_v49  ;;  %4700 = vst [vmem:[#allocation11_spill] sm:$0xff] %v4442_v52  ;;  %v1023_v49 = vadd.f32 %v4258_v56, %v4260_v57  ;;  %v2032_v56 = vshrl.u32 %v2031_v2, 7  ;;  %v1026_v57 = vadd.f32 %v4270_v3, %v4272_v4 }
 0x143   : > { %v4447_v53 = vpop.f32.mrf.mxu0  ;;  %v4449_v8 = vpop.f32.mrf.mxu1 }
 0x144   : > { %4701 = vst [vmem:[#allocation12_spill] sm:$0xff] %v4447_v53  ;;  %4702 = vst [vmem:[#allocation13_spill] sm:$0xff] %v4449_v8  ;;  %v4518_v4 = vsub.s32 0, %v2032_v56 }
 0x145   : > { %v4454_v62 = vpop.f32.mrf.mxu0  ;;  %v4456_v22 = vpop.f32.mrf.mxu1 }
 0x146   : > { %4703 = vst [vmem:[#allocation14_spill] sm:$0xff] %v4454_v62  ;;  %4704 = vst [vmem:[#allocation15_spill] sm:$0xff] %v4456_v22 }
 0x147   : > { %v4458_v28 = vpop.f32.mrf.mxu0  ;;  %v4460_v34 = vpop.f32.mrf.mxu1 }
 0x148   : > { %4705 = vst [vmem:[#allocation16_spill] sm:$0xff] %v4458_v28  ;;  %4706 = vst [vmem:[#allocation17_spill] sm:$0xff] %v4460_v34 }
 0x149   : > { %v4462_v40 = vpop.f32.mrf.mxu0  ;;  %v4464_v51 = vpop.f32.mrf.mxu1 }
 0x14a   : > { %4707 = vst [vmem:[#allocation18_spill] sm:$0xff] %v4462_v40  ;;  %4708 = vst [vmem:[#allocation19_spill] sm:$0xff] %v4464_v51 }
 0x14b   : > { %v4466_v8 = vpop.f32.mrf.mxu0  ;;  %v4468_v44 = vpop.f32.mrf.mxu1 }
 0x14c   : > { %4709 = vst [vmem:[#allocation20_spill] sm:$0xff] %v4466_v8  ;;  %4710 = vst [vmem:[#allocation21_spill] sm:$0xff] %v4468_v44 }
 0x14d   : > { %v1578_v47 = vpop.f32.mrf.mxu0  ;;  %v1776_v52 = vpop.f32.mrf.mxu1 }
 0x14f   : > { %v1580_v46 = vpop.f32.mrf.mxu0  ;;  %v1778_v62 = vpop.f32.mrf.mxu1 }
 0x151   : > { %v1582_v48 = vpop.f32.mrf.mxu0  ;;  %v1780_v50 = vpop.f32.mrf.mxu1 }
 0x153   : > { %v1584_v22 = vpop.f32.mrf.mxu0  ;;  %v4470_v28 = vpop.f32.mrf.mxu1 }
 0x155   : > { %v1588_v53 = vpop.f32.mrf.mxu0  ;;  %v4476_v40 = vpop.f32.mrf.mxu1 }
 0x156   : > { %4712 = vst [vmem:[#allocation23_spill] sm:$0xff] %v4476_v40 }
 0x157   : > { %v4472_v34 = vpop.f32.mrf.mxu0  ;;  %v4482_v44 = vpop.f32.mrf.mxu1 }
 0x158   : > { %4715 = vst [vmem:[#allocation26_spill] sm:$0xff] %v4482_v44 }
 0x159   : > { %v4474_v54 = vpop.f32.mrf.mxu0  ;;  %v4493_v40 = vpop.f32.mrf.mxu1 }
 0x15a   : > { %4711 = vst [vmem:[#allocation22_spill] sm:$0xff] %v4474_v54  ;;  %v1221_v54 = vadd.f32 %v4370_v55, %v1023_v49  ;;  %v1027_v49 = vadd.f32 %v4274_v7, %v4282_v9  ;;  %v2029_v7 = vld [vmem:[%s4685_s2] sm:$0x3]  ;;  %v1029_v9 = vadd.f32 %v4294_v14, %v4299_v16 }
 0x15b   : > { %v4478_v51 = vpop.f32.mrf.mxu0  ;;  %v4506_v60 = vpop.f32.mrf.mxu1 }
 0x15c   : > { %4713 = vst [vmem:[#allocation24_spill] sm:$0xff] %v4478_v51  ;;  %v1225_v2 = vadd.f32 %v4398_v13, %v1027_v49  ;;  %v1227_v13 = vadd.f32 %v4412_v24, %v1029_v9 }
 0x15d   : > { %v4480_v8 = vpop.f32.mrf.mxu0 }
 0x15e   : > { %4714 = vst [vmem:[#allocation25_spill] sm:$0xff] %v4480_v8  ;;  %v1025_v8 = vadd.f32 %v4266_v63, %v4268_v0  ;;  %v1224_v0 = vadd.f32 %v4391_v10, %v1026_v57  ;;  %v1423_v16 = vadd.f32 %v4400_v15, %v1225_v2  ;;  %v1033_v57 = vadd.f32 %v4322_v29, %v4328_v31  ;;  %v4723_v2 = vld [vmem:[#allocation10_spill] sm:$0xff] }
 0x15f   : > { %v4484_v45 = vpop.f32.mrf.mxu0 }
 0x160   : > { %4716 = vst [vmem:[#allocation27_spill] sm:$0xff] %v4484_v45  ;;  %v1222_v45 = vadd.f32 %v4377_v61, %v1024_v32  ;;  %v1223_v59 = vadd.f32 %v4384_v6, %v1025_v8  ;;  %v1028_v32 = vadd.f32 %v4287_v11, %v4289_v12  ;;  %v4530_v12 = vpop.f32.mrf.mxu1 }
 0x161   : > { %v4488_v38 = vpop.f32.mrf.mxu0  ;;  %v4720_v49 = vld [vmem:[#allocation22_spill] sm:$0xff] }
 0x162   : > { %4717 = vst [vmem:[#allocation28_spill] sm:$0xff] %v4488_v38  ;;  %v1419_v38 = vadd.f32 %v4372_v58, %v1221_v54  ;;  %v1420_v63 = vadd.f32 %v4379_v1, %v1222_v45  ;;  %v4520_v58 = vsub.s32 1, %v2032_v56  ;;  %v1421_v6 = vadd.f32 %v4386_v5, %v1223_v59  ;;  %v4551_v24 = vpop.f32.mrf.mxu1 }
 0x163   : > { %v4495_v51 = vpop.f32.mrf.mxu0  ;;  %v1226_v11 = vadd.f32 %v4405_v19, %v1028_v32  ;;  %v1422_v1 = vadd.f32 %v4393_v42, %v1224_v0  ;;  %v4539_v45 = vrot.slane %v2029_v7, %v4518_v4  ;;  %v1034_v59 = vadd.f32 %v4330_v33, %v4333_v35  ;;  %v4719_v35 = vld [vmem:[#allocation8_spill] sm:$0xff]  ;;  %v4721_v0 = vld [vmem:[#allocation23_spill] sm:$0xff] }
 0x164   : > { %v1617_v61 = vadd.f32 %v1578_v47, %v1419_v38  ;;  %v1618_v8 = vadd.f32 %v1580_v46, %v1420_v63  ;;  %v1619_v5 = vadd.f32 %v1582_v48, %v1421_v6  ;;  %v1030_v46 = vadd.f32 %v4301_v17, %v4303_v18  ;;  %v1800_v63 = vpop.f32.mrf.mxu1  ;;  %v4722_v32 = vld [vmem:[#allocation7_spill] sm:$0xff] }
 0x165   : > { %v4500_v44 = vpop.f32.mrf.mxu0  ;;  %v4542_v14 = vrot.slane %v2029_v7, %v4520_v58  ;;  %v1620_v54 = vadd.f32 %v1584_v22, %v1422_v1  ;;  %v1031_v48 = vadd.f32 %v4308_v21, %v4313_v23  ;;  %v1032_v17 = vadd.f32 %v4315_v25, %v4317_v26  ;;  %v4725_v7 = vld [vmem:[#allocation24_spill] sm:$0xff] }
 0x166   : > { %v1815_v10 = vadd.f32 %v1776_v52, %v1617_v61  ;;  %v1816_v19 = vadd.f32 %v1778_v62, %v1618_v8  ;;  %v1424_v18 = vadd.f32 %v4407_v20, %v1226_v11  ;;  %v1228_v42 = vadd.f32 %v4419_v30, %v1030_v46 }
 0x167   : > { %v4508_v55 = vpop.f32.mrf.mxu0  ;;  %v1817_v15 = vadd.f32 %v1780_v50, %v1619_v5  ;;  %v1621_v62 = vadd.f32 %v1588_v53, %v1423_v16  ;;  %v1425_v21 = vadd.f32 %v4414_v27, %v1227_v13  ;;  %v1229_v23 = vadd.f32 %v4426_v36, %v1031_v48  ;;  %v4718_v50 = vld [vmem:[#allocation6_spill] sm:$0xff]  ;;  %v4726_v13 = vld [vmem:[#allocation9_spill] sm:$0xff]  ;;  %v4727_v16 = vld [vmem:[#allocation12_spill] sm:$0xff] }
 0x168   : > { %v1622_v25 = vadd.f32 %v4472_v34, %v1424_v18  ;;  %v1035_v20 = vadd.f32 %v4338_v37, %v4344_v39  ;;  %v1818_v30 = vadd.f32 %v4470_v28, %v1620_v54  ;;  %v1036_v53 = vadd.f32 %v4346_v43, %v4349_v41  ;;  %v4724_v43 = vld [vmem:[#allocation26_spill] sm:$0xff] }
 0x169   : > { %v4516_v3 = vpop.f32.mrf.mxu0  ;;  %v1426_v33 = vadd.f32 %v4718_v50, %v1228_v42  ;;  %v1230_v27 = vadd.f32 %v4719_v35, %v1032_v17  ;;  %v1623_v36 = vadd.f32 %v4720_v49, %v1425_v21  ;;  %v1819_v61 = vadd.f32 %v4721_v0, %v1621_v62  ;;  %v1802_v17 = vpop.f32.mrf.mxu1  ;;  %v4729_v62 = vld [vmem:[#allocation3_spill] sm:$0xff]  ;;  %v4735_v49 = vld [vmem:[#allocation4_spill] sm:$0xff] }
 0x16a   : > { %v1427_v6 = vadd.f32 %v4722_v32, %v1229_v23  ;;  %v1231_v8 = vadd.f32 %v4723_v2, %v1033_v57  ;;  %v1820_v41 = vadd.f32 %v4724_v43, %v1622_v25  ;;  %v4731_v23 = vld [vmem:[#allocation11_spill] sm:$0xff] }
 0x16b   : > { %v4532_v47 = vpop.f32.mrf.mxu0  ;;  %v1624_v9 = vadd.f32 %v4725_v7, %v1426_v33  ;;  %v1821_v54 = vadd.f32 %v4493_v40, %v1623_v36  ;;  %v1806_v32 = vpop.f32.mrf.mxu1  ;;  %v4739_v43 = vld [vmem:[#allocation15_spill] sm:$0xff]  ;;  %v4740_v7 = vld [vmem:[#allocation18_spill] sm:$0xff] }
 0x16c   : > { %v1429_v25 = vadd.f32 %v4731_v23, %v1231_v8 }
 0x16d   : > { %v1974_v38 = vpop.f32.mrf.mxu0  ;;  %v1822_v40 = vadd.f32 %v4506_v60, %v1624_v9 }
 0x16e   : > { %v2013_v56 = vadd.f32 %v1974_v38, %v1815_v10  ;;  %v1428_v38 = vadd.f32 %v4726_v13, %v1230_v27  ;;  %v4734_v27 = vld [vmem:[#allocation5_spill] sm:$0xff] }
 0x16f   : > { %v1976_v52 = vpop.f32.mrf.mxu0  ;;  %v1038_v36 = vadd.f32 %v4735_v49, %v4734_v27  ;;  %v4741_v13 = vld [vmem:[#allocation17_spill] sm:$0xff] }
 0x170   : > { %v2014_v22 = vadd.f32 %v1976_v52, %v1816_v19  ;;  %v2041_v29 = vadd.f32 %v4539_v45, %v2013_v56  ;;  %v1232_v19 = vadd.f32 %v4727_v16, %v1034_v59  ;;  %v4728_v56 = vld [vmem:[#allocation25_spill] sm:$0xff]  ;;  %v4742_v16 = vld [vmem:[#allocation20_spill] sm:$0xff] }
 0x171   : > { %v1978_v26 = vpop.f32.mrf.mxu0  ;;  %v1625_v48 = vadd.f32 %v4728_v56, %v1427_v6 }
 0x172   : > { %v2015_v31 = vadd.f32 %v1978_v26, %v1817_v15  ;;  %v2042_v37 = vadd.f32 %v4542_v14, %v2014_v22  ;;  %v2057_v1 = vmax.f32 %v2041_v29, 0.0  ;;  %v4730_v22 = vld [vmem:[#allocation2_spill] sm:$0xff]  ;;  %v4733_v29 = vld [vmem:[#allocation27_spill] sm:$0xff] }
 0x173   : > { %v1980_v34 = vpop.f32.mrf.mxu0  ;;  %v1037_v21 = vadd.f32 %v4730_v22, %v4729_v62  ;;  %v4732_v26 = vld [vmem:[#allocation14_spill] sm:$0xff]  ;;  %v1823_v6 = vadd.f32 %v4530_v12, %v1625_v48  ;;  %v1808_v48 = vpop.f32.mrf.mxu1 }
 0x174   : > { %v2043_v39 = vadd.f32 %v4539_v45, %v2015_v31  ;;  %v2016_v28 = vadd.f32 %v1980_v34, %v1818_v30  ;;  %v2058_v42 = vmax.f32 %v2042_v37, 0.0  ;;  %v1233_v30 = vadd.f32 %v4732_v26, %v1035_v20  ;;  %v4736_v34 = vld [vmem:[#allocation13_spill] sm:$0xff] }
 0x175   : > { %v1984_v11 = vpop.f32.mrf.mxu0  ;;  %v1626_v31 = vadd.f32 %v4733_v29, %v1428_v38  ;;  %v1430_v0 = vadd.f32 %v4736_v34, %v1232_v19  ;;  %v1235_v9 = vadd.f32 %v4740_v7, %v1037_v21  ;;  %v1236_v19 = vadd.f32 %v4742_v16, %v1038_v36  ;;  %v1810_v29 = vpop.f32.mrf.mxu1  ;;  %v3477_v16 = vld [vmem:[%s4688_s5 + $0x80] ss:$8 sps:$4 sm:$0xff]  }
 0x176   : > { %v2059_v10 = vmax.f32 %v2043_v39, 0.0  ;;  %v2044_v5 = vadd.f32 %v4542_v14, %v2016_v28  ;;  %v2017_v46 = vadd.f32 %v1984_v11, %v1819_v61  ;;  %v4737_v61 = vld [vmem:[#allocation16_spill] sm:$0xff] }
 0x177   : > { %v1986_v18 = vpop.f32.mrf.mxu0  ;;  %v1234_v37 = vadd.f32 %v4737_v61, %v1036_v53  ;;  %v4738_v39 = vld [vmem:[#allocation28_spill] sm:$0xff]  ;;  %v1824_v11 = vadd.f32 %v4551_v24, %v1626_v31  ;;  %v1628_v53 = vadd.f32 %v4495_v51, %v1430_v0  ;;  %v1812_v0 = vpop.f32.mrf.mxu1 }
 0x178   : > { %v2073_v52 = vpack.c.bf16 %v2059_v10, %v2057_v1  ;;  %v2060_v57 = vmax.f32 %v2044_v5, 0.0  ;;  %v2018_v15 = vadd.f32 %v1986_v18, %v1820_v41  ;;  %v2045_v50 = vadd.f32 %v4539_v45, %v2017_v46 }
 0x179   : > { %v1988_v59 = vpop.f32.mrf.mxu0  ;;  %v1627_v28 = vadd.f32 %v4738_v39, %v1429_v25  ;;  %v1431_v41 = vadd.f32 %v4739_v43, %v1233_v30  ;;  %v1432_v38 = vadd.f32 %v4741_v13, %v1234_v37  ;;  %v1826_v21 = vadd.f32 %v1802_v17, %v1628_v53  ;;  %v4744_v30 = vld [vmem:[#allocation21_spill] sm:$0xff] }
 0x17a   : > { %v2019_v33 = vadd.f32 %v1988_v59, %v1821_v54  ;;  %v2074_v35 = vpack.c.bf16 %v2060_v57, %v2058_v42  ;;  %v2046_v2 = vadd.f32 %v4542_v14, %v2018_v15  ;;  %v2061_v10 = vmax.f32 %v2045_v50, 0.0  ;;  %v4743_v15 = vld [vmem:[#allocation19_spill] sm:$0xff]  ;;  %v3474_v13 = vld [vmem:[%s4688_s5 + $0x90] ss:$8 sps:$4 sm:$0xff]  }
 0x17b   : > { %v1990_v20 = vpop.f32.mrf.mxu0  ;;  %v1825_v54 = vadd.f32 %v1800_v63, %v1627_v28  ;;  %v1629_v56 = vadd.f32 %v4500_v44, %v1431_v41  ;;  %v1630_v62 = vadd.f32 %v4508_v55, %v1432_v38  ;;  %v1434_v63 = vadd.f32 %v4744_v30, %v1236_v19  ;;  %v3479_v38 = vld [vmem:[%s4688_s5 + $0x84] ss:$8 sps:$4 sm:$0xff]   ;;  %v2113_v19 = vld [vmem:[%s4687_s4] sm:$0x3] }
 0x17c   : > { %v2047_v60 = vadd.f32 %v4539_v45, %v2019_v33  ;;  %v2020_v8 = vadd.f32 %v1990_v20, %v1822_v40  ;;  %2317 = vmatprep.mubr.bf16.mxu1 %v2074_v35  ;;  %v2062_v42 = vmax.f32 %v2046_v2, 0.0 }
 0x17d   : > { %v1994_v1 = vpop.f32.mrf.mxu0  ;;  %2318 = vmatmul.mubr.bf16.vlgmr.msra.gmra.mxu1 %v2073_v52  ;;  %v1433_v52 = vadd.f32 %v4743_v15, %v1235_v9  ;;  %v1827_v59 = vadd.f32 %v1806_v32, %v1629_v56  ;;  %v1828_v55 = vadd.f32 %v1808_v48, %v1630_v62  ;;  %v1632_v17 = vadd.f32 %v4532_v47, %v1434_v63 }
 0x17e   : > { %v2063_v5 = vmax.f32 %v2047_v60, 0.0  ;;  %v2048_v12 = vadd.f32 %v4542_v14, %v2020_v8  ;;  %v2021_v46 = vadd.f32 %v1994_v1, %v1823_v6  ;;  %v2122_v56 = vrot.slane %v2113_v19, %v4520_v58 }
 0x17f   : > { %v1996_v18 = vpop.f32.mrf.mxu0  ;;  %v1631_v44 = vadd.f32 %v4516_v3, %v1433_v52  ;;  %v1830_v6 = vadd.f32 %v1812_v0, %v1632_v17  ;;  %v2118_v48 = vrot.slane %v2113_v19, %v4518_v4 }
 0x180   : > { %v2064_v24 = vmax.f32 %v2048_v12, 0.0  ;;  %v2022_v57 = vadd.f32 %v1996_v18, %v1824_v11  ;;  %v2075_v51 = vpack.c.bf16 %v2063_v5, %v2061_v10  ;;  %v2049_v23 = vadd.f32 %v4539_v45, %v2021_v46  ;;  %v3473_v46 = vld [vmem:[%s4688_s5 + $0xa4] ss:$8 sps:$4 sm:$0xff]  }
 0x181   : > { %v1998_v22 = vpop.f32.mrf.mxu0  ;;  %v1829_v3 = vadd.f32 %v1810_v29, %v1631_v44  ;;  %2612 = vmatprep.subr.bf16.mxu0 %v3473_v46 }
 0x182   : > { %v2023_v25 = vadd.f32 %v1998_v22, %v1825_v54  ;;  %v2076_v26 = vpack.c.bf16 %v2064_v24, %v2062_v42  ;;  %v2050_v40 = vadd.f32 %v4542_v14, %v2022_v57  ;;  %v2065_v27 = vmax.f32 %v2049_v23, 0.0 }
 0x183   : > { %v2000_v31 = vpop.f32.mrf.mxu0 }
 0x184   : > { %v2051_v50 = vadd.f32 %v4539_v45, %v2023_v25  ;;  %v2024_v33 = vadd.f32 %v2000_v31, %v1826_v21  ;;  %2327 = vmatprep.mubr.bf16.mxu1 %v2076_v26  ;;  %v2066_v37 = vmax.f32 %v2050_v40, 0.0 }
 0x185   : > { %v2004_v35 = vpop.f32.mrf.mxu0  ;;  %2328 = vmatmul.mubr.bf16.gmra.mxu1 %v2075_v51 }
 0x186   : > { %v2067_v49 = vmax.f32 %v2051_v50, 0.0  ;;  %v2052_v36 = vadd.f32 %v4542_v14, %v2024_v33  ;;  %v2025_v34 = vadd.f32 %v2004_v35, %v1827_v59 }
 0x187   : > { %v2006_v61 = vpop.f32.mrf.mxu0 }
 0x188   : > { %v2068_v39 = vmax.f32 %v2052_v36, 0.0  ;;  %v2026_v28 = vadd.f32 %v2006_v61, %v1828_v55  ;;  %v2077_v32 = vpack.c.bf16 %v2067_v49, %v2065_v27  ;;  %v2053_v2 = vadd.f32 %v4539_v45, %v2025_v34 }
 0x189   : > { %v2008_v20 = vpop.f32.mrf.mxu0 }
 0x18a   : > { %v2027_v60 = vadd.f32 %v2008_v20, %v1829_v3  ;;  %v2078_v47 = vpack.c.bf16 %v2068_v39, %v2066_v37  ;;  %v2054_v43 = vadd.f32 %v4542_v14, %v2026_v28  ;;  %v2069_v9 = vmax.f32 %v2053_v2, 0.0 }
 0x18b   : > { %v2010_v8 = vpop.f32.mrf.mxu0 }
 0x18c   : > { %v2055_v41 = vadd.f32 %v4539_v45, %v2027_v60  ;;  %v2028_v7 = vadd.f32 %v2010_v8, %v1830_v6  ;;  %2337 = vmatprep.mubr.bf16.mxu1 %v2078_v47  ;;  %v2070_v1 = vmax.f32 %v2054_v43, 0.0  ;;  %v3471_v45 = vld [vmem:[%s4688_s5 + $0xa0] ss:$8 sps:$4 sm:$0xff]  }
 0x18d   : > { %2338 = vmatmul.mubr.bf16.gmra.mxu1 %v2077_v32  ;;  %2613 = vmatpush2.bf16.msra.mxu0 %v3471_v45 }
 0x18e   : > { %v2071_v11 = vmax.f32 %v2055_v41, 0.0  ;;  %v2056_v53 = vadd.f32 %v4542_v14, %v2028_v7  ;;  %v3476_v14 = vld [vmem:[%s4688_s5 + $0x94] ss:$8 sps:$4 sm:$0xff]  }
 0x18f   : > { %2614 = vmatprep.subr.bf16.mxu0 %v3476_v14 }
 0x190   : > { %v2072_v10 = vmax.f32 %v2056_v53, 0.0  ;;  %v2079_v5 = vpack.c.bf16 %v2071_v11, %v2069_v9 }
 0x191   : > { %2615 = vmatpush2.bf16.msra.mxu0 %v3474_v13  ;;  %v2414_v13 = vld [vmem:[%s4689_s6] sm:$0x3] }
 0x192   : > { %v2080_v12 = vpack.c.bf16 %v2072_v10, %v2070_v1  ;;  %2616 = vmatprep.subr.bf16.mxu0 %v3479_v38  ;;  %v4644_v38 = vrot.slane %v2414_v13, %v4518_v4 }
 0x194   : > { %2347 = vmatprep.mubr.bf16.mxu1 %v2080_v12 }
 0x195   : > { %2348 = vmatmul.mubr.bf16.gmra.mxu1 %v2079_v5  ;;  %2617 = vmatpush2.bf16.msra.mxu0 %v3477_v16  ;;  %v4647_v16 = vrot.slane %v2414_v13, %v4520_v58 }
 0x23d   : > { %v2319_v54 = vpop.f32.mrf.mxu1 }
 0x23e   : > { %v2320_v51 = vadd.f32 %v2319_v54, %v2118_v48 }
 0x23f   : > { %v2321_v18 = vpop.f32.mrf.mxu1 }
 0x240   : > { %v2322_v24 = vadd.f32 %v2321_v18, %v2122_v56  ;;  %v2358_v25 = vmax.f32 %v2320_v51, 0.0 }
 0x241   : > { %v2323_v42 = vpop.f32.mrf.mxu1 }
 0x242   : > { %v2324_v57 = vadd.f32 %v2323_v42, %v2118_v48  ;;  %v2359_v21 = vmax.f32 %v2322_v24, 0.0 }
 0x243   : > { %v2325_v15 = vpop.f32.mrf.mxu1 }
 0x244   : > { %v2326_v52 = vadd.f32 %v2325_v15, %v2122_v56  ;;  %v2360_v62 = vmax.f32 %v2324_v57, 0.0 }
 0x245   : > { %v2329_v22 = vpop.f32.mrf.mxu1 }
 0x246   : > { %v2361_v23 = vmax.f32 %v2326_v52, 0.0  ;;  %v2374_v63 = vpack.c.bf16 %v2360_v62, %v2358_v25  ;;  %v2330_v59 = vadd.f32 %v2329_v22, %v2118_v48 }
 0x247   : > { %v2331_v26 = vpop.f32.mrf.mxu1 }
 0x248   : > { %v2375_v30 = vpack.c.bf16 %v2361_v23, %v2359_v21  ;;  %v2332_v29 = vadd.f32 %v2331_v26, %v2122_v56  ;;  %v2362_v27 = vmax.f32 %v2330_v59, 0.0 }
 0x249   : > { %v2333_v44 = vpop.f32.mrf.mxu1 }
 0x24a   : > { %v2334_v31 = vadd.f32 %v2333_v44, %v2118_v48  ;;  %2618 = vmatprep.mubr.bf16.mxu0 %v2375_v30  ;;  %v2363_v17 = vmax.f32 %v2332_v29, 0.0 }
 0x24b   : > { %v2335_v40 = vpop.f32.mrf.mxu1  ;;  %2619 = vmatmul.mubr.bf16.vlgmr.msra.gmra.mxu0 %v2374_v63 }
 0x24c   : > { %v2336_v50 = vadd.f32 %v2335_v40, %v2122_v56  ;;  %v2364_v33 = vmax.f32 %v2334_v31, 0.0 }
 0x24d   : > { %v2339_v55 = vpop.f32.mrf.mxu1 }
 0x24e   : > { %v2365_v35 = vmax.f32 %v2336_v50, 0.0  ;;  %v2376_v34 = vpack.c.bf16 %v2364_v33, %v2362_v27  ;;  %v2340_v37 = vadd.f32 %v2339_v55, %v2118_v48 }
 0x24f   : > { %v2341_v49 = vpop.f32.mrf.mxu1 }
 0x250   : > { %v2377_v36 = vpack.c.bf16 %v2365_v35, %v2363_v17  ;;  %v2342_v0 = vadd.f32 %v2341_v49, %v2122_v56  ;;  %v2366_v60 = vmax.f32 %v2340_v37, 0.0 }
 0x251   : > { %v2343_v3 = vpop.f32.mrf.mxu1 }
 0x252   : > { %v2344_v61 = vadd.f32 %v2343_v3, %v2118_v48  ;;  %2628 = vmatprep.mubr.bf16.mxu0 %v2377_v36  ;;  %v2367_v6 = vmax.f32 %v2342_v0, 0.0 }
 0x253   : > { %v2345_v39 = vpop.f32.mrf.mxu1  ;;  %2629 = vmatmul.mubr.bf16.gmra.mxu0 %v2376_v34 }
 0x254   : > { %v2346_v28 = vadd.f32 %v2345_v39, %v2122_v56  ;;  %v2368_v32 = vmax.f32 %v2344_v61, 0.0 }
 0x255   : > { %v2349_v20 = vpop.f32.mrf.mxu1 }
 0x256   : > { %v2369_v2 = vmax.f32 %v2346_v28, 0.0  ;;  %v2378_v43 = vpack.c.bf16 %v2368_v32, %v2366_v60  ;;  %v2350_v11 = vadd.f32 %v2349_v20, %v2118_v48 }
 0x257   : > { %v2351_v47 = vpop.f32.mrf.mxu1 }
 0x258   : > { %v2379_v8 = vpack.c.bf16 %v2369_v2, %v2367_v6  ;;  %v2352_v7 = vadd.f32 %v2351_v47, %v2122_v56  ;;  %v2370_v46 = vmax.f32 %v2350_v11, 0.0 }
 0x259   : > { %v2353_v41 = vpop.f32.mrf.mxu1 }
 0x25a   : > { %v2354_v9 = vadd.f32 %v2353_v41, %v2118_v48  ;;  %2638 = vmatprep.mubr.bf16.mxu0 %v2379_v8  ;;  %v2371_v5 = vmax.f32 %v2352_v7, 0.0 }
 0x25b   : > { %v2355_v53 = vpop.f32.mrf.mxu1  ;;  %2639 = vmatmul.mubr.bf16.gmra.mxu0 %v2378_v43 }
 0x25c   : > { %v2356_v1 = vadd.f32 %v2355_v53, %v2122_v56  ;;  %v2372_v10 = vmax.f32 %v2354_v9, 0.0 }
 0x25e   : > { %v2373_v12 = vmax.f32 %v2356_v1, 0.0  ;;  %v2380_v14 = vpack.c.bf16 %v2372_v10, %v2370_v46  ;;  %v2737_v10 = vld [vmem:[%s4656_s26 + $0x38] sm:$0xff] }
 0x260   : > { %v2381_v45 = vpack.c.bf16 %v2373_v12, %v2371_v5 }
 0x262   : > { %2648 = vmatprep.mubr.bf16.mxu0 %v2381_v45 }
 0x263   : > { %2649 = vmatmul.mubr.bf16.gmra.mxu0 %v2380_v14 }
 0x30b   : > { %v2620_v19 = vpop.f32.mrf.mxu0 }
 0x30c   : > { %v2621_v54 = vadd.f32 %v2620_v19, %v4644_v38 }
 0x30d   : > { %v2622_v56 = vpop.f32.mrf.mxu0 }
 0x30e   : > { %v2623_v48 = vadd.f32 %v2622_v56, %v4647_v16  ;;  %v2659_v42 = vmax.f32 %v2621_v54, 0.0 }
 0x30f   : > { %v2624_v18 = vpop.f32.mrf.mxu0 }
 0x310   : > { %v2660_v24 = vmax.f32 %v2623_v48, 0.0  ;;  %v2625_v57 = vadd.f32 %v2624_v18, %v4644_v38 }
 0x311   : > { %v2626_v4 = vpop.f32.mrf.mxu0 }
 0x312   : > { %v3150_v58 = vpack.c.bf16 %v2660_v24, %v2659_v42  ;;  %v2627_v51 = vadd.f32 %v2626_v4, %v4647_v16  ;;  %v2661_v52 = vmax.f32 %v2625_v57, 0.0 }
 0x313   : > { %v2630_v15 = vpop.f32.mrf.mxu0 }
 0x314   : > { %2723 = vst [vmem:[%s4656_s26] sm:$0xff] %v3150_v58  ;;  %v2662_v62 = vmax.f32 %v2627_v51, 0.0  ;;  %v2631_v22 = vadd.f32 %v2630_v15, %v4644_v38 }
 0x315   : > { %v2632_v21 = vpop.f32.mrf.mxu0 }
 0x316   : > { %v3151_v23 = vpack.c.bf16 %v2662_v62, %v2661_v52  ;;  %v2633_v25 = vadd.f32 %v2632_v21, %v4647_v16  ;;  %v2663_v30 = vmax.f32 %v2631_v22, 0.0 }
 0x317   : > { %v2634_v26 = vpop.f32.mrf.mxu0 }
 0x318   : > { %2724 = vst [vmem:[%s4656_s26 + $0x8] sm:$0xff] %v3151_v23  ;;  %v2664_v63 = vmax.f32 %v2633_v25, 0.0  ;;  %v2635_v44 = vadd.f32 %v2634_v26, %v4644_v38 }
 0x319   : > { %v2636_v29 = vpop.f32.mrf.mxu0 }
 0x31a   : > { %v3152_v31 = vpack.c.bf16 %v2664_v63, %v2663_v30  ;;  %v2637_v59 = vadd.f32 %v2636_v29, %v4647_v16  ;;  %v2665_v50 = vmax.f32 %v2635_v44, 0.0 }
 0x31b   : > { %v2640_v40 = vpop.f32.mrf.mxu0 }
 0x31c   : > { %2725 = vst [vmem:[%s4656_s26 + $0x10] sm:$0xff] %v3152_v31  ;;  %v2666_v33 = vmax.f32 %v2637_v59, 0.0  ;;  %v2641_v55 = vadd.f32 %v2640_v40, %v4644_v38 }
 0x31d   : > { %v2642_v17 = vpop.f32.mrf.mxu0 }
 0x31e   : > { %v3153_v35 = vpack.c.bf16 %v2666_v33, %v2665_v50  ;;  %v2643_v27 = vadd.f32 %v2642_v17, %v4647_v16  ;;  %v2667_v36 = vmax.f32 %v2641_v55, 0.0 }
 0x31f   : > { %v2644_v49 = vpop.f32.mrf.mxu0 }
 0x320   : > { %2726 = vst [vmem:[%s4656_s26 + $0x18] sm:$0xff] %v3153_v35  ;;  %v2668_v34 = vmax.f32 %v2643_v27, 0.0  ;;  %v2645_v3 = vadd.f32 %v2644_v49, %v4644_v38 }
 0x321   : > { %v2646_v0 = vpop.f32.mrf.mxu0 }
 0x322   : > { %v3154_v61 = vpack.c.bf16 %v2668_v34, %v2667_v36  ;;  %v2647_v37 = vadd.f32 %v2646_v0, %v4647_v16  ;;  %v2669_v28 = vmax.f32 %v2645_v3, 0.0 }
 0x323   : > { %v2650_v39 = vpop.f32.mrf.mxu0 }
 0x324   : > { %2727 = vst [vmem:[%s4656_s26 + $0x20] sm:$0xff] %v3154_v61  ;;  %v2670_v32 = vmax.f32 %v2647_v37, 0.0  ;;  %v2651_v20 = vadd.f32 %v2650_v39, %v4644_v38 }
 0x325   : > { %v2652_v6 = vpop.f32.mrf.mxu0 }
 0x326   : > { %v3155_v2 = vpack.c.bf16 %v2670_v32, %v2669_v28  ;;  %v2653_v60 = vadd.f32 %v2652_v6, %v4647_v16  ;;  %v2671_v8 = vmax.f32 %v2651_v20, 0.0 }
 0x327   : > { %v2654_v47 = vpop.f32.mrf.mxu0 }
 0x328   : > { %2728 = vst [vmem:[%s4656_s26 + $0x28] sm:$0xff] %v3155_v2  ;;  %v2672_v43 = vmax.f32 %v2653_v60, 0.0  ;;  %v2655_v41 = vadd.f32 %v2654_v47, %v4644_v38 }
 0x329   : > { %v2656_v7 = vpop.f32.mrf.mxu0 }
 0x32a   : > { %v3156_v9 = vpack.c.bf16 %v2672_v43, %v2671_v8  ;;  %v2657_v11 = vadd.f32 %v2656_v7, %v4647_v16  ;;  %v2673_v53 = vmax.f32 %v2655_v41, 0.0 }
 0x32c   : > { %2729 = vst [vmem:[%s4656_s26 + $0x30] sm:$0xff] %v3156_v9  ;;  %v2674_v1 = vmax.f32 %v2657_v11, 0.0 }
 0x32e   : > { %v3157_v5 = vpack.c.bf16 %v2674_v1, %v2673_v53 }
 0x330   : > { %v2738_v12 = vsel %vm2736_vm6, %v3157_v5, %v2737_v10 }
 0x331   : > { %2739 = vst [vmem:[%s4656_s26 + $0x38] sm:$0xff] %v2738_v12 }
 0x332 PF: > { %s17_s24 = sadd.s32 1, %s3486_s24  }
 0x333   : > { %p14_p4 = scmp.ge.s32.totalorder %s17_s24, 4  }
 0x335   :  { %16 = sbr.rel (!%p14_p4) target bundleno = 1 (0x1), region = 86 }

// kernel: nin_forward.6
= control target key start
LH: loop header
LB: loop body
LE: loop exit
PB: predicated region body
PF: predicated region fallthrough
CT: control target
= control target key end

     0   :  { %s7923_s24 = smov 0   ;;  %s9971_s0 = inlined_call_operand.vmem [shape: f32[2,30,256], index: 0, kind: input, shape index: {}]   ;;  %s9972_s1 = inlined_call_operand.vmem [shape: bf16[9,256,384], index: 1, kind: input, shape index: {}]   ;;  %s9973_s2 = inlined_call_operand.vmem [shape: f32[1,384], index: 2, kind: input, shape index: {}]   ;;  %s9974_s3 = inlined_call_operand.vmem [shape: bf16[384,384], index: 3, kind: input, shape index: {}]   ;;  %s9975_s4 = inlined_call_operand.vmem [shape: f32[1,384], index: 4, kind: input, shape index: {}]   ;;  %s9976_s5 = inlined_call_operand.vmem [shape: bf16[384,384], index: 5, kind: input, shape index: {}]   ;;  %s9977_s6 = inlined_call_operand.vmem [shape: f32[1,384], index: 6, kind: input, shape index: {}]   ;;  %s9978_s7 = inlined_call_operand.vmem [shape: bf16[2,15,384], index: 7, kind: output, shape index: {}]  }
   0x1 LB: > { %s5683_s25 = sadd.s32 4294967295, %s7878_s24   ;;  %p5687_p0 = scmp.ge.s32.totalorder %s7878_s24, 1  ;;  %s7878_s24 = sphi %s7923_s24, %s17_s24  }
   0x2   : > { %p237_p1 = scmp.lt.s32.totalorder %s7878_s24, 3 }
   0x4   : > { %p238_p2 = pnand %p5687_p0, %p237_p1 }
   0x5   : > { %p269_p3 = scmp.lt.s32.totalorder (!%p238_p2), %s5683_s25, 1 }
   0x6   : > { %241 = sbr.rel (%p238_p2) target bundleno = 1146 (0x47a), region = 48 }
   0xb   : > { %v7102_v0 = vld [vmem:[%s9972_s1 + $0x22c] ss:$12 sps:$4 sm:$0xff]   ;;  %v7104_v1 = vld [vmem:[%s9972_s1 + $0x2f0] ss:$12 sps:$4 sm:$0xff]   ;;  %v7105_v2 = vld [vmem:[%s9972_s1 + $0x228] ss:$12 sps:$4 sm:$0xff]  }
   0xc   : > { %693 = vmatprep.subr.bf16.mxu0 %v7102_v0  ;;  %6790 = vmatprep.subr.bf16.mxu1 %v7104_v1  ;;  %v7106_v3 = vld [vmem:[%s9972_s1 + $0x230] ss:$12 sps:$4 sm:$0xff]   ;;  %v7107_v4 = vld [vmem:[%s9972_s1 + $0x214] ss:$12 sps:$4 sm:$0xff]   ;;  %v7109_v5 = vld [vmem:[%s9972_s1 + $0x2d8] ss:$12 sps:$4 sm:$0xff]  }
   0xd   : > { %694 = vmatpush1.bf16.msra.mxu0 %v7105_v2  ;;  %6791 = vmatpush3.bf16.msra.mxu1 %v7106_v3  ;;  %v7110_v6 = vld [vmem:[%s9972_s1 + $0x210] ss:$12 sps:$4 sm:$0xff]   ;;  %v7111_v7 = vld [vmem:[%s9972_s1 + $0x218] ss:$12 sps:$4 sm:$0xff]   ;;  %v7114_v9 = vld [vmem:[%s9972_s1 + $0x2c0] ss:$12 sps:$4 sm:$0xff]  }
   0xe   : > { %695 = vmatprep.subr.bf16.mxu0 %v7107_v4  ;;  %6792 = vmatprep.subr.bf16.mxu1 %v7109_v5  ;;  %v7112_v8 = vld [vmem:[%s9972_s1 + $0x1fc] ss:$12 sps:$4 sm:$0xff]   ;;  %v7115_v10 = vld [vmem:[%s9972_s1 + $0x1f8] ss:$12 sps:$4 sm:$0xff]   ;;  %v7116_v11 = vld [vmem:[%s9972_s1 + $0x200] ss:$12 sps:$4 sm:$0xff]  }
   0xf   : > { %v7117_v12 = vld [vmem:[%s9972_s1 + $0x1e4] ss:$12 sps:$4 sm:$0xff]   ;;  %v7119_v13 = vld [vmem:[%s9972_s1 + $0x2a8] ss:$12 sps:$4 sm:$0xff]   ;;  %v7120_v14 = vld [vmem:[%s9972_s1 + $0x1e0] ss:$12 sps:$4 sm:$0xff]  }
  0x10   : > { %v7121_v15 = vld [vmem:[%s9972_s1 + $0x1e8] ss:$12 sps:$4 sm:$0xff]   ;;  %v7122_v16 = vld [vmem:[%s9972_s1 + $0x1cc] ss:$12 sps:$4 sm:$0xff]   ;;  %v7124_v17 = vld [vmem:[%s9972_s1 + $0x290] ss:$12 sps:$4 sm:$0xff]  }
  0x11   : > { %696 = vmatpush1.bf16.msra.mxu0 %v7110_v6  ;;  %6793 = vmatpush3.bf16.msra.mxu1 %v7111_v7  ;;  %v7125_v18 = vld [vmem:[%s9972_s1 + $0x1c8] ss:$12 sps:$4 sm:$0xff]   ;;  %v7126_v19 = vld [vmem:[%s9972_s1 + $0x1d0] ss:$12 sps:$4 sm:$0xff]   ;;  %s9987_s25 = smov (!%p269_p3, %s5683_s25), 1  ;;  %vm1196_vm0 = vcmask 1046528  }
  0x12   : > { %697 = vmatprep.subr.bf16.mxu0 %v7112_v8  ;;  %6794 = vmatprep.subr.bf16.mxu1 %v7114_v9  ;;  %v7127_v20 = vld [vmem:[%s9972_s1 + $0x1b4] ss:$12 sps:$4 sm:$0xff]   ;;  %v7129_v21 = vld [vmem:[%s9972_s1 + $0x278] ss:$12 sps:$4 sm:$0xff]   ;;  %v7130_v22 = vld [vmem:[%s9972_s1 + $0x1b0] ss:$12 sps:$4 sm:$0xff]  }
  0x13   : > { %v7131_v23 = vld [vmem:[%s9972_s1 + $0x1b8] ss:$12 sps:$4 sm:$0xff]   ;;  %s6785_s9 = sshll.u32 %s9987_s25, 6  ;;  %v7132_v24 = vld [vmem:[%s9972_s1 + $0x19c] ss:$12 sps:$4 sm:$0xff]   ;;  %vm2084_vm2 = vcmask 1044480  }
  0x14   : > { %v7134_v25 = vld [vmem:[%s9972_s1 + $0x260] ss:$12 sps:$4 sm:$0xff]   ;;  %v7135_v26 = vld [vmem:[%s9972_s1 + $0x198] ss:$12 sps:$4 sm:$0xff]   ;;  %s8022_s18 = scalar_lea.vmem %s9971_s0, %s6785_s9  ;;  %v7139_v29 = vld [vmem:[%s9972_s1 + $0x248] ss:$12 sps:$4 sm:$0xff]  }
  0x15   : > { %698 = vmatpush1.bf16.msra.mxu0 %v7115_v10  ;;  %6795 = vmatpush3.bf16.msra.mxu1 %v7116_v11  ;;  %v7136_v27 = vld [vmem:[%s9972_s1 + $0x1a0] ss:$12 sps:$4 sm:$0xff]   ;;  %v7137_v28 = vld [vmem:[%s9972_s1 + $0x184] ss:$12 sps:$4 sm:$0xff]   ;;  %v8038_v32 = vld [vmem:[%s8022_s18 + $0x18] sm:$0xff]  ;;  %vm3861_vm5 = vcmask 1045504  }
  0x16   : > { %699 = vmatprep.subr.bf16.mxu0 %v7117_v12  ;;  %6796 = vmatprep.subr.bf16.mxu1 %v7119_v13  ;;  %v7140_v30 = vld [vmem:[%s9972_s1 + $0x180] ss:$12 sps:$4 sm:$0xff]   ;;  %v7141_v33 = vld [vmem:[%s9972_s1 + $0x188] ss:$12 sps:$4 sm:$0xff]   ;;  %v7153_v51 = vld [vmem:[%s9972_s1 + $0x2d0] ss:$12 sps:$4 sm:$0xff]  }
  0x17   : > { %v351_v31 = vld [vmem:[%s8022_s18 + $0x8] sm:$0xfe]  ;;  %v350_v37 = vld [vmem:[%s8022_s18] sm:$0xfe]  ;;  %v8052_v38 = vld [vmem:[%s8022_s18 + $0x10] sm:$0xff]  ;;  %vm7882_vm6 = vmmov 0  }
  0x18   : > { %v7142_v34 = vld [vmem:[%s9972_s1 + $0x2ec] ss:$12 sps:$4 sm:$0xff]   ;;  %v355_v35 = vpack.c.bf16 %v8038_v32, %v351_v31  ;;  %v354_v41 = vpack.c.bf16 %v8052_v38, %v350_v37  ;;  %v7147_v42 = vld [vmem:[%s9972_s1 + $0x2e8] ss:$12 sps:$4 sm:$0xff]   ;;  %v7150_v54 = vld [vmem:[%s9972_s1 + $0x90] ss:$12 sps:$4 sm:$0xff]  }
  0x19   : > { %700 = vmatpush1.bf16.msra.mxu0 %v7120_v14  ;;  %6797 = vmatpush3.bf16.msra.mxu1 %v7121_v15  ;;  %v7146_v36 = vld [vmem:[%s9972_s1 + $0xac] ss:$12 sps:$4 sm:$0xff]   ;;  %v7148_v46 = vld [vmem:[%s9972_s1 + $0x2d4] ss:$12 sps:$4 sm:$0xff]   ;;  %v7154_v53 = vld [vmem:[%s9972_s1 + $0x2bc] ss:$12 sps:$4 sm:$0xff]  }
  0x1a   : > { %701 = vmatprep.subr.bf16.mxu0 %v7122_v16  ;;  %6798 = vmatprep.subr.bf16.mxu1 %v7124_v17  ;;  %v429_v39 = vshrl.u32 %v355_v35, 16  ;;  %v431_v40 = vshll.u32 %v355_v35, 16  ;;  %v422_v44 = vshrl.u32 %v354_v41, 16  ;;  %v424_v45 = vshll.u32 %v354_v41, 16  ;;  %v7144_v48 = vld [vmem:[%s9972_s1 + $0xa8] ss:$12 sps:$4 sm:$0xff]  }
  0x1b   : > { %v7152_v50 = vld [vmem:[%s9972_s1 + $0x94] ss:$12 sps:$4 sm:$0xff]   ;;  %v7159_v55 = vld [vmem:[%s9972_s1 + $0x2b8] ss:$12 sps:$4 sm:$0xff]   ;;  %v7158_v56 = vld [vmem:[%s9972_s1 + $0x7c] ss:$12 sps:$4 sm:$0xff]  }
  0x1c   : > { %v433_v43 = vrot.slane %v431_v40, 1  ;;  %v426_v49 = vrot.slane %v424_v45, 1  ;;  %v7160_v57 = vld [vmem:[%s9972_s1 + $0x2a4] ss:$12 sps:$4 sm:$0xff]   ;;  %v7165_v60 = vld [vmem:[%s9972_s1 + $0x2a0] ss:$12 sps:$4 sm:$0xff]  }
  0x1d   : > { %702 = vmatpush1.bf16.msra.mxu0 %v7125_v18  ;;  %6799 = vmatpush3.bf16.msra.mxu1 %v7126_v19  ;;  %v7156_v58 = vld [vmem:[%s9972_s1 + $0x78] ss:$12 sps:$4 sm:$0xff]   ;;  %v7162_v62 = vld [vmem:[%s9972_s1 + $0x60] ss:$12 sps:$4 sm:$0xff]   ;;  %v7171_v63 = vld [vmem:[%s9972_s1 + $0x288] ss:$12 sps:$4 sm:$0xff]  }
  0x1e   : > { %703 = vmatprep.subr.bf16.mxu0 %v7127_v20  ;;  %6800 = vmatprep.subr.bf16.mxu1 %v7129_v21  ;;  %v434_v47 = vor.u32 %v433_v43, %v429_v39  ;;  %v427_v52 = vor.u32 %v426_v49, %v422_v44  ;;  %v7164_v59 = vld [vmem:[%s9972_s1 + $0x64] ss:$12 sps:$4 sm:$0xff]   ;;  %v7166_v61 = vld [vmem:[%s9972_s1 + $0x28c] ss:$12 sps:$4 sm:$0xff]   ;;  %v7172_v1 = vld [vmem:[%s9972_s1 + $0x274] ss:$12 sps:$4 sm:$0xff]  }
  0x1f   : > { %v7170_v0 = vld [vmem:[%s9972_s1 + $0x4c] ss:$12 sps:$4 sm:$0xff]   ;;  %v7168_v2 = vld [vmem:[%s9972_s1 + $0x48] ss:$12 sps:$4 sm:$0xff]   ;;  %v7177_v4 = vld [vmem:[%s9972_s1 + $0x270] ss:$12 sps:$4 sm:$0xff]  }
  0x20   : > { %768 = vmatprep.mubr.bf16.mxu1 %v434_v47  ;;  %725 = vmatprep.mubr.bf16.mxu0 %v434_v47  ;;  %v7176_v3 = vld [vmem:[%s9972_s1 + $0x34] ss:$12 sps:$4 sm:$0xff]   ;;  %v7178_v5 = vld [vmem:[%s9972_s1 + $0x25c] ss:$12 sps:$4 sm:$0xff]   ;;  %v7183_v7 = vld [vmem:[%s9972_s1 + $0x258] ss:$12 sps:$4 sm:$0xff]  }
  0x21   : > { %704 = vmatpush1.bf16.msra.mxu0 %v7130_v22  ;;  %6801 = vmatpush3.bf16.msra.mxu1 %v7131_v23  ;;  %v7174_v6 = vld [vmem:[%s9972_s1 + $0x30] ss:$12 sps:$4 sm:$0xff]   ;;  %v7180_v10 = vld [vmem:[%s9972_s1 + $0x18] ss:$12 sps:$4 sm:$0xff]   ;;  %v7189_v12 = vld [vmem:[%s9972_s1 + $0x240] ss:$12 sps:$4 sm:$0xff]  }
  0x22   : > { %705 = vmatprep.subr.bf16.mxu0 %v7132_v24  ;;  %6802 = vmatprep.subr.bf16.mxu1 %v7134_v25  ;;  %v7182_v8 = vld [vmem:[%s9972_s1 + $0x1c] ss:$12 sps:$4 sm:$0xff]   ;;  %v7184_v9 = vld [vmem:[%s9972_s1 + $0x244] ss:$12 sps:$4 sm:$0xff]   ;;  %v7186_v14 = vld [vmem:[%s9972_s1] ss:$12 sps:$4 sm:$0xff]  }
  0x23   : > { %v7188_v11 = vld [vmem:[%s9972_s1 + $0x4] ss:$12 sps:$4 sm:$0xff]   ;;  %v7192_v15 = vld [vmem:[%s9972_s1 + $0x16c] ss:$12 sps:$4 sm:$0xff]   ;;  %v7190_v18 = vld [vmem:[%s9972_s1 + $0x168] ss:$12 sps:$4 sm:$0xff]  }
  0x24   : > { %v7193_v13 = vld [vmem:[%s9972_s1 + $0x170] ss:$12 sps:$4 sm:$0xff]   ;;  %v7198_v17 = vld [vmem:[%s9972_s1 + $0x158] ss:$12 sps:$4 sm:$0xff]   ;;  %v7197_v19 = vld [vmem:[%s9972_s1 + $0x154] ss:$12 sps:$4 sm:$0xff]  }
  0x25   : > { %706 = vmatpush1.bf16.msra.mxu0 %v7135_v26  ;;  %6803 = vmatpush3.bf16.msra.mxu1 %v7136_v27  ;;  %v7194_v16 = vld [vmem:[%s9972_s1 + $0xb0] ss:$12 sps:$4 sm:$0xff]   ;;  %v7199_v20 = vld [vmem:[%s9972_s1 + $0x98] ss:$12 sps:$4 sm:$0xff]   ;;  %v7203_v21 = vld [vmem:[%s9972_s1 + $0x140] ss:$12 sps:$4 sm:$0xff]  }
  0x26   : > { %707 = vmatprep.subr.bf16.mxu0 %v7137_v28  ;;  %6804 = vmatprep.subr.bf16.mxu1 %v7139_v29  ;;  %v7195_v22 = vld [vmem:[%s9972_s1 + $0x150] ss:$12 sps:$4 sm:$0xff]   ;;  %v7204_v24 = vld [vmem:[%s9972_s1 + $0x80] ss:$12 sps:$4 sm:$0xff]   ;;  %v7208_v25 = vld [vmem:[%s9972_s1 + $0x128] ss:$12 sps:$4 sm:$0xff]  }
  0x27   : > { %v7202_v23 = vld [vmem:[%s9972_s1 + $0x13c] ss:$12 sps:$4 sm:$0xff]   ;;  %v7200_v26 = vld [vmem:[%s9972_s1 + $0x138] ss:$12 sps:$4 sm:$0xff]   ;;  %v7217_v41 = vld [vmem:[%s9972_s1 + $0xf4] ss:$12 sps:$4 sm:$0xff]  }
  0x28   : > { %v7209_v27 = vld [vmem:[%s9972_s1 + $0x68] ss:$12 sps:$4 sm:$0xff]   ;;  %v283_v29 = vld [vmem:[%s8022_s18 + $0x18] sm:$0x7f]  ;;  %v7224_v45 = vld [vmem:[%s9972_s1 + $0x20] ss:$12 sps:$4 sm:$0xff]  }
  0x29   : > { %708 = vmatpush1.bf16.msra.mxu0 %v7140_v30  ;;  %6805 = vmatpush3.bf16.msra.mxu1 %v7141_v33  ;;  %v281_v28 = vld [vmem:[%s8022_s18 + $0x8] sm:$0xff]  ;;  %v7207_v30 = vld [vmem:[%s9972_s1 + $0x124] ss:$12 sps:$4 sm:$0xff]   ;;  %vm1624_vm1 = vsmask.f32 5376  ;;  %s7090_s28 = smul.u32 24, %s9987_s25 }
  0x2a   : > { %709 = vmatprep.subr.bf16.mxu0 %v7142_v34  ;;  %1033 = vmatprep.subr.bf16.mxu1 %v7146_v36  ;;  %v7213_v31 = vld [vmem:[%s9972_s1 + $0x110] ss:$12 sps:$4 sm:$0xff]   ;;  %v285_v33 = vpack.c.bf16 %v283_v29, %v281_v28  ;;  %v7205_v34 = vld [vmem:[%s9972_s1 + $0x120] ss:$12 sps:$4 sm:$0xff]   ;;  %v7218_v37 = vld [vmem:[%s9972_s1 + $0xf8] ss:$12 sps:$4 sm:$0xff]  }
  0x2b   : > { %v7212_v35 = vld [vmem:[%s9972_s1 + $0x10c] ss:$12 sps:$4 sm:$0xff]   ;;  %v7214_v36 = vld [vmem:[%s9972_s1 + $0x50] ss:$12 sps:$4 sm:$0xff]   ;;  %v7210_v39 = vld [vmem:[%s9972_s1 + $0x108] ss:$12 sps:$4 sm:$0xff]   ;;  %s9951_s8 = scalar_lea.vmem %s9978_s7, %s7090_s28 }
  0x2c   : > { %769 = vmatmul.mubr.bf16.vlgmr.msra.gmra.mxu1 %v427_v52  ;;  %v7219_v40 = vld [vmem:[%s9972_s1 + $0x38] ss:$12 sps:$4 sm:$0xff]   ;;  %v7215_v43 = vld [vmem:[%s9972_s1 + $0xf0] ss:$12 sps:$4 sm:$0xff]   ;;  %v7265_v28 = vld [vmem:[%s9972_s1 + $0x300] ss:$12 sps:$4 sm:$0xff]  }
  0x2d   : > { %710 = vmatpush2.bf16.msra.mxu0 %v7147_v42  ;;  %1034 = vmatpush1.bf16.msra.mxu1 %v7144_v48  ;;  %v7223_v42 = vld [vmem:[%s9972_s1 + $0xe0] ss:$12 sps:$4 sm:$0xff]   ;;  %v7222_v44 = vld [vmem:[%s9972_s1 + $0xdc] ss:$12 sps:$4 sm:$0xff]   ;;  %v7220_v47 = vld [vmem:[%s9972_s1 + $0xd8] ss:$12 sps:$4 sm:$0xff]  }
  0x2e   : > { %711 = vmatprep.subr.bf16.mxu0 %v7148_v46  ;;  %1035 = vmatprep.subr.bf16.mxu1 %v7152_v50  ;;  %v7228_v46 = vld [vmem:[%s9972_s1 + $0xc8] ss:$12 sps:$4 sm:$0xff]   ;;  %v7227_v49 = vld [vmem:[%s9972_s1 + $0xc4] ss:$12 sps:$4 sm:$0xff]   ;;  %vm2512_vm3 = vsmask.f32 4352 }
  0x2f   : > { %1065 = vmatprep.mubr.bf16.mxu1 %v285_v33  ;;  %v7229_v48 = vld [vmem:[%s9972_s1 + $0x8] ss:$12 sps:$4 sm:$0xff]   ;;  %v280_v50 = vld [vmem:[%s8022_s18] sm:$0xff]  ;;  %vm3401_vm4 = vsmask.f32 6400  ;;  %vm5615_vm7 = vcmask 1043456  }
  0x30   : > { %vm5616_vm8 = vsmask.f32 3328  ;;  %vm5618_vm9 = vcmask 1047556   ;;  %vm5619_vm10 = vsmask.f32 7424 }
  0x31   : > { %712 = vmatpush2.bf16.msra.mxu0 %v7153_v51  ;;  %1036 = vmatpush1.bf16.msra.mxu1 %v7150_v54  ;;  %v282_v51 = vld [vmem:[%s8022_s18 + $0x10] sm:$0x7f]  ;;  %vm9953_vm11 = vmand %vm5615_vm7, %vm5616_vm8 }
  0x32   : > { %713 = vmatprep.subr.bf16.mxu0 %v7154_v53  ;;  %1037 = vmatprep.subr.bf16.mxu1 %v7158_v56  ;;  %v7225_v53 = vld [vmem:[%s9972_s1 + $0xc0] ss:$12 sps:$4 sm:$0xff]   ;;  %v284_v54 = vpack.c.bf16 %v282_v51, %v280_v50  ;;  %v7233_v56 = vld [vmem:[%s9972_s1 + $0x470] ss:$12 sps:$4 sm:$0xff]   ;;  %vm5620_vm12 = vmand %vm5618_vm9, %vm5619_vm10 }
  0x33   : > { %v7288_v50 = vld [vmem:[%s9972_s1 + $0x420] ss:$12 sps:$4 sm:$0xff]   ;;  %v7293_v51 = vld [vmem:[%s9972_s1 + $0x4e4] ss:$12 sps:$4 sm:$0xff]   ;;  %vm5621_vm13 = vmor %vm5620_vm12, %vm9953_vm11 }
  0x35   : > { %714 = vmatpush2.bf16.msra.mxu0 %v7159_v55  ;;  %1038 = vmatpush1.bf16.msra.mxu1 %v7156_v58  ;;  %v7230_v55 = vld [vmem:[%s9972_s1 + $0x3a8] ss:$12 sps:$4 sm:$0xff]   ;;  %v7234_v58 = vld [vmem:[%s9972_s1 + $0x3b0] ss:$12 sps:$4 sm:$0xff]  }
  0x36   : > { %715 = vmatprep.subr.bf16.mxu0 %v7160_v57  ;;  %1039 = vmatprep.subr.bf16.mxu1 %v7164_v59  ;;  %v7237_v57 = vld [vmem:[%s9972_s1 + $0x394] ss:$12 sps:$4 sm:$0xff]   ;;  %v7235_v59 = vld [vmem:[%s9972_s1 + $0x390] ss:$12 sps:$4 sm:$0xff]  }
  0x39   : > { %716 = vmatpush2.bf16.msra.mxu0 %v7165_v60  ;;  %1040 = vmatpush1.bf16.msra.mxu1 %v7162_v62  ;;  %v7238_v60 = vld [vmem:[%s9972_s1 + $0x458] ss:$12 sps:$4 sm:$0xff]  }
  0x3a   : > { %717 = vmatprep.subr.bf16.mxu0 %v7166_v61  ;;  %1041 = vmatprep.subr.bf16.mxu1 %v7170_v0  ;;  %v7242_v61 = vld [vmem:[%s9972_s1 + $0x37c] ss:$12 sps:$4 sm:$0xff]   ;;  %v7239_v62 = vld [vmem:[%s9972_s1 + $0x398] ss:$12 sps:$4 sm:$0xff]   ;;  %v7243_v0 = vld [vmem:[%s9972_s1 + $0x440] ss:$12 sps:$4 sm:$0xff]  }
  0x3d   : > { %718 = vmatpush2.bf16.msra.mxu0 %v7171_v63  ;;  %1042 = vmatpush1.bf16.msra.mxu1 %v7168_v2  ;;  %v7240_v63 = vld [vmem:[%s9972_s1 + $0x378] ss:$12 sps:$4 sm:$0xff]   ;;  %v1122_v2 = vld [vmem:[%s8022_s18 + $0x28] sm:$0x1] }
  0x3e   : > { %719 = vmatprep.subr.bf16.mxu0 %v7172_v1  ;;  %1043 = vmatprep.subr.bf16.mxu1 %v7176_v3  ;;  %v1118_v1 = vld [vmem:[%s8022_s18 + $0x8] sm:$0xfc]  ;;  %v7247_v3 = vld [vmem:[%s9972_s1 + $0x364] ss:$12 sps:$4 sm:$0xff]  }
  0x41   : > { %720 = vmatpush2.bf16.msra.mxu0 %v7177_v4  ;;  %1044 = vmatpush1.bf16.msra.mxu1 %v7174_v6  ;;  %v1124_v4 = vpack.c.bf16 %v8038_v32, %v1118_v1  ;;  %v7244_v6 = vld [vmem:[%s9972_s1 + $0x380] ss:$12 sps:$4 sm:$0xff]   ;;  %v7309_v1 = vld [vmem:[%s9972_s1 + $0x498] ss:$12 sps:$4 sm:$0xff]  }
  0x42   : > { %721 = vmatprep.subr.bf16.mxu0 %v7178_v5  ;;  %1045 = vmatprep.subr.bf16.mxu1 %v7182_v8  ;;  %v1126_v5 = vpack.c.bf16 %v1122_v2, %v1122_v2  ;;  %v1552_v2 = vld [vmem:[%s8022_s18 + $0x8] sm:$0xe0] }
  0x44   : > { %v1201_v8 = vrot.slane %v1126_v5, 1  ;;  %v1556_v5 = vpack.c.bf16 %v8038_v32, %v1552_v2  ;;  %v7315_v32 = vld [vmem:[%s9972_s1 + $0x480] ss:$12 sps:$4 sm:$0xff]  }
  0x45   : > { %722 = vmatpush2.bf16.msra.mxu0 %v7183_v7  ;;  %1046 = vmatpush1.bf16.msra.mxu1 %v7180_v10  ;;  %v1200_v7 = vrot.slane %v1124_v4, 1  ;;  %v7248_v10 = vld [vmem:[%s9972_s1 + $0x428] ss:$12 sps:$4 sm:$0xff]   ;;  %v7312_v4 = vld [vmem:[%s9972_s1 + $0x3c0] ss:$12 sps:$4 sm:$0xff]  }
  0x46   : > { %723 = vmatprep.subr.bf16.mxu0 %v7184_v9  ;;  %1047 = vmatprep.subr.bf16.mxu1 %v7188_v11  ;;  %v7245_v9 = vld [vmem:[%s9972_s1 + $0x360] ss:$12 sps:$4 sm:$0xff]  }
  0x47   : > { %v7252_v11 = vld [vmem:[%s9972_s1 + $0x34c] ss:$12 sps:$4 sm:$0xff]  }
  0x49   : > { %724 = vmatpush2.bf16.msra.mxu0 %v7189_v12  ;;  %1048 = vmatpush1.bf16.msra.mxu1 %v7186_v14  ;;  %v1202_v12 = vsel %vm1196_vm0, %v1200_v7, %v1201_v8  ;;  %v7250_v14 = vld [vmem:[%s9972_s1 + $0x348] ss:$12 sps:$4 sm:$0xff]   ;;  %v7317_v7 = vld [vmem:[%s9972_s1 + $0x484] ss:$12 sps:$4 sm:$0xff]  }
  0x4a   : > { %6812 = vmatprep.subr.bf16.mxu0 %v7193_v13  ;;  %1049 = vmatprep.subr.bf16.mxu1 %v7192_v15  ;;  %v7249_v13 = vld [vmem:[%s9972_s1 + $0x368] ss:$12 sps:$4 sm:$0xff]   ;;  %v7253_v15 = vld [vmem:[%s9972_s1 + $0x410] ss:$12 sps:$4 sm:$0xff]  }
  0x4b   : > { %v7321_v8 = vld [vmem:[%s9972_s1 + $0x5f0] ss:$12 sps:$4 sm:$0xff]  }
  0x4c   : > { %726 = vmatmul.mubr.bf16.vlgmr.msra.gmra.mxu0 %v427_v52  ;;  %v7232_v52 = vld [vmem:[%s9972_s1 + $0x3ac] ss:$12 sps:$4 sm:$0xff]  }
  0x4d   : > { %6813 = vmatpush3.bf16.msra.mxu0 %v7194_v16  ;;  %1050 = vmatpush2.bf16.msra.mxu1 %v7190_v18  ;;  %v7257_v16 = vld [vmem:[%s9972_s1 + $0x334] ss:$12 sps:$4 sm:$0xff]   ;;  %v7255_v18 = vld [vmem:[%s9972_s1 + $0x330] ss:$12 sps:$4 sm:$0xff]  }
  0x4e   : > { %6814 = vmatprep.subr.bf16.mxu0 %v7198_v17  ;;  %1051 = vmatprep.subr.bf16.mxu1 %v7197_v19  ;;  %v7254_v17 = vld [vmem:[%s9972_s1 + $0x350] ss:$12 sps:$4 sm:$0xff]   ;;  %v7258_v19 = vld [vmem:[%s9972_s1 + $0x3f8] ss:$12 sps:$4 sm:$0xff]  }
  0x4f   : > { %1108 = vmatprep.mubr.bf16.mxu0 %v285_v33  ;;  %v7272_v33 = vld [vmem:[%s9972_s1 + $0x46c] ss:$12 sps:$4 sm:$0xff]  }
  0x51   : > { %6815 = vmatpush3.bf16.msra.mxu0 %v7199_v20  ;;  %1052 = vmatpush2.bf16.msra.mxu1 %v7195_v22  ;;  %v7262_v20 = vld [vmem:[%s9972_s1 + $0x31c] ss:$12 sps:$4 sm:$0xff]   ;;  %v7260_v22 = vld [vmem:[%s9972_s1 + $0x318] ss:$12 sps:$4 sm:$0xff]  }
  0x52   : > { %6816 = vmatprep.subr.bf16.mxu0 %v7203_v21  ;;  %1053 = vmatprep.subr.bf16.mxu1 %v7202_v23  ;;  %v7259_v21 = vld [vmem:[%s9972_s1 + $0x338] ss:$12 sps:$4 sm:$0xff]   ;;  %v7263_v23 = vld [vmem:[%s9972_s1 + $0x3e0] ss:$12 sps:$4 sm:$0xff]  }
  0x55   : > { %6817 = vmatpush3.bf16.msra.mxu0 %v7204_v24  ;;  %1054 = vmatpush2.bf16.msra.mxu1 %v7200_v26  ;;  %v7267_v24 = vld [vmem:[%s9972_s1 + $0x304] ss:$12 sps:$4 sm:$0xff]   ;;  %v1121_v26 = vld [vmem:[%s8022_s18 + $0x20] sm:$0x1] }
  0x56   : > { %6818 = vmatprep.subr.bf16.mxu0 %v7208_v25  ;;  %1055 = vmatprep.subr.bf16.mxu1 %v7207_v30  ;;  %v1117_v25 = vld [vmem:[%s8022_s18] sm:$0xfc]  ;;  %v1125_v30 = vpack.c.bf16 %v1121_v26, %v1121_v26 }
  0x57   : > { %v1123_v29 = vpack.c.bf16 %v8052_v38, %v1117_v25  ;;  %v7325_v25 = vld [vmem:[%s9972_s1 + $0x5d4] ss:$12 sps:$4 sm:$0xff]  }
  0x58   : > { %v7331_v26 = vld [vmem:[%s9972_s1 + $0x5c0] ss:$12 sps:$4 sm:$0xff]  }
  0x59   : > { %6819 = vmatpush3.bf16.msra.mxu0 %v7209_v27  ;;  %1056 = vmatpush2.bf16.msra.mxu1 %v7205_v34  ;;  %v7264_v27 = vld [vmem:[%s9972_s1 + $0x320] ss:$12 sps:$4 sm:$0xff]   ;;  %v7269_v34 = vld [vmem:[%s9972_s1 + $0x308] ss:$12 sps:$4 sm:$0xff]   ;;  %v1197_v38 = vrot.slane %v1123_v29, 1 }
  0x5a   : > { %6820 = vmatprep.subr.bf16.mxu0 %v7213_v31  ;;  %1057 = vmatprep.subr.bf16.mxu1 %v7212_v35  ;;  %v7268_v31 = vld [vmem:[%s9972_s1 + $0x3c8] ss:$12 sps:$4 sm:$0xff]   ;;  %v7332_v29 = vld [vmem:[%s9972_s1 + $0x500] ss:$12 sps:$4 sm:$0xff]  }
  0x5b   : > { %v7270_v35 = vld [vmem:[%s9972_s1 + $0x468] ss:$12 sps:$4 sm:$0xff]  }
  0x5d   : > { %6821 = vmatpush3.bf16.msra.mxu0 %v7214_v36  ;;  %1058 = vmatpush2.bf16.msra.mxu1 %v7210_v39  ;;  %v1198_v36 = vrot.slane %v1125_v30, 1  ;;  %v7278_v39 = vld [vmem:[%s9972_s1 + $0x454] ss:$12 sps:$4 sm:$0xff]  }
  0x5e   : > { %6822 = vmatprep.subr.bf16.mxu0 %v7218_v37  ;;  %1059 = vmatprep.subr.bf16.mxu1 %v7217_v41  ;;  %v7275_v37 = vld [vmem:[%s9972_s1 + $0x52c] ss:$12 sps:$4 sm:$0xff]   ;;  %v7276_v41 = vld [vmem:[%s9972_s1 + $0x450] ss:$12 sps:$4 sm:$0xff]   ;;  %v7336_v30 = vld [vmem:[%s9972_s1 + $0x5a8] ss:$12 sps:$4 sm:$0xff]  }
  0x61   : > { %6823 = vmatpush3.bf16.msra.mxu0 %v7219_v40  ;;  %1060 = vmatpush2.bf16.msra.mxu1 %v7215_v43  ;;  %v7273_v40 = vld [vmem:[%s9972_s1 + $0x528] ss:$12 sps:$4 sm:$0xff]  }
  0x62   : > { %6824 = vmatprep.subr.bf16.mxu0 %v7223_v42  ;;  %1061 = vmatprep.subr.bf16.mxu1 %v7222_v44  ;;  %v8367_v42 = vsel %vm1196_vm0, %v1197_v38, %v1198_v36  ;;  %v7281_v43 = vld [vmem:[%s9972_s1 + $0x514] ss:$12 sps:$4 sm:$0xff]   ;;  %v7284_v44 = vld [vmem:[%s9972_s1 + $0x43c] ss:$12 sps:$4 sm:$0xff]   ;;  %v1551_v38 = vld [vmem:[%s8022_s18] sm:$0xe0] }
  0x63   : > { %v1553_v36 = vld [vmem:[%s8022_s18 + $0x20] sm:$0xf] }
  0x65   : > { %6825 = vmatpush3.bf16.msra.mxu0 %v7224_v45  ;;  %1062 = vmatpush2.bf16.msra.mxu1 %v7220_v47  ;;  %v7279_v45 = vld [vmem:[%s9972_s1 + $0x510] ss:$12 sps:$4 sm:$0xff]  }
  0x66   : > { %6826 = vmatprep.subr.bf16.mxu0 %v7228_v46  ;;  %1063 = vmatprep.subr.bf16.mxu1 %v7227_v49  ;;  %v7282_v46 = vld [vmem:[%s9972_s1 + $0x438] ss:$12 sps:$4 sm:$0xff]   ;;  %v7287_v47 = vld [vmem:[%s9972_s1 + $0x4fc] ss:$12 sps:$4 sm:$0xff]  }
  0x67   : > { %v7285_v49 = vld [vmem:[%s9972_s1 + $0x4f8] ss:$12 sps:$4 sm:$0xff]  }
  0x69   : > { %6827 = vmatpush3.bf16.msra.mxu0 %v7229_v48  ;;  %1064 = vmatpush2.bf16.msra.mxu1 %v7225_v53  ;;  %v7290_v48 = vld [vmem:[%s9972_s1 + $0x424] ss:$12 sps:$4 sm:$0xff]   ;;  %v7291_v53 = vld [vmem:[%s9972_s1 + $0x4e0] ss:$12 sps:$4 sm:$0xff]  }
  0x6a   : > { %1461 = vmatprep.subr.bf16.mxu0 %v7232_v52  ;;  %6834 = vmatprep.subr.bf16.mxu1 %v7233_v56  ;;  %v7296_v52 = vld [vmem:[%s9972_s1 + $0x40c] ss:$12 sps:$4 sm:$0xff]   ;;  %v7302_v56 = vld [vmem:[%s9972_s1 + $0x3f4] ss:$12 sps:$4 sm:$0xff]  }
  0x6c   : > { %1109 = vmatmul.mubr.bf16.vlgmr.msra.gmra.mxu0 %v284_v54  ;;  %1066 = vmatmul.mubr.bf16.vlgmr.msra.gmra.mxu1 %v284_v54  ;;  %v7294_v54 = vld [vmem:[%s9972_s1 + $0x408] ss:$12 sps:$4 sm:$0xff]  }
  0x6d   : > { %1462 = vmatpush1.bf16.msra.mxu0 %v7230_v55  ;;  %6835 = vmatpush3.bf16.msra.mxu1 %v7234_v58  ;;  %v7299_v55 = vld [vmem:[%s9972_s1 + $0x4cc] ss:$12 sps:$4 sm:$0xff]   ;;  %v7300_v58 = vld [vmem:[%s9972_s1 + $0x3f0] ss:$12 sps:$4 sm:$0xff]  }
  0x6e   : > { %1463 = vmatprep.subr.bf16.mxu0 %v7237_v57  ;;  %6836 = vmatprep.subr.bf16.mxu1 %v7238_v60  ;;  %v7297_v57 = vld [vmem:[%s9972_s1 + $0x4c8] ss:$12 sps:$4 sm:$0xff]  }
  0x6f   : > { %1536 = vmatprep.mubr.bf16.mxu1 %v1202_v12  ;;  %1493 = vmatprep.mubr.bf16.mxu0 %v1202_v12  ;;  %v7308_v60 = vld [vmem:[%s9972_s1 + $0x3dc] ss:$12 sps:$4 sm:$0xff]  }
  0x71   : > { %1464 = vmatpush1.bf16.msra.mxu0 %v7235_v59  ;;  %6837 = vmatpush3.bf16.msra.mxu1 %v7239_v62  ;;  %v7305_v59 = vld [vmem:[%s9972_s1 + $0x4b4] ss:$12 sps:$4 sm:$0xff]   ;;  %v7306_v62 = vld [vmem:[%s9972_s1 + $0x3d8] ss:$12 sps:$4 sm:$0xff]  }
  0x72   : > { %1465 = vmatprep.subr.bf16.mxu0 %v7242_v61  ;;  %6838 = vmatprep.subr.bf16.mxu1 %v7243_v0  ;;  %v7303_v61 = vld [vmem:[%s9972_s1 + $0x4b0] ss:$12 sps:$4 sm:$0xff]  }
  0x73   : > { %v7314_v0 = vld [vmem:[%s9972_s1 + $0x3c4] ss:$12 sps:$4 sm:$0xff]  }
  0x75   : > { %1466 = vmatpush1.bf16.msra.mxu0 %v7240_v63  ;;  %6839 = vmatpush3.bf16.msra.mxu1 %v7244_v6  ;;  %v7311_v63 = vld [vmem:[%s9972_s1 + $0x49c] ss:$12 sps:$4 sm:$0xff]  }
  0x76   : > { %1467 = vmatprep.subr.bf16.mxu0 %v7247_v3  ;;  %6840 = vmatprep.subr.bf16.mxu1 %v7248_v10  ;;  %v1554_v3 = vld [vmem:[%s8022_s18 + $0x28] sm:$0xf]  ;;  %v1646_v10 = vshll.u32 %v1556_v5, 16 }
  0x77   : > { %v1558_v6 = vpack.c.bf16 %v1554_v3, %v1554_v3  ;;  %v7355_v3 = vld [vmem:[%s9972_s1 + $0x544] ss:$12 sps:$4 sm:$0xff]  }
  0x79   : > { %1468 = vmatpush1.bf16.msra.mxu0 %v7245_v9  ;;  %6841 = vmatpush3.bf16.msra.mxu1 %v7249_v13  ;;  %v1643_v9 = vshrl.u32 %v1556_v5, 16  ;;  %v1654_v12 = vshll.u32 %v1558_v6, 16  ;;  %v8558_v5 = vld [vmem:[%s8022_s18 + $0x18] sm:$0xff] }
  0x7a   : > { %1469 = vmatprep.subr.bf16.mxu0 %v7252_v11  ;;  %6842 = vmatprep.subr.bf16.mxu1 %v7253_v15  ;;  %v1651_v11 = vshrl.u32 %v1558_v6, 16 }
  0x7b   : > { %v1645_v13 = vrot.slane %v1643_v9, 2 }
  0x7c   : > { %v1653_v15 = vrot.slane %v1651_v11, 2  ;;  %v7361_v11 = vld [vmem:[%s9972_s1 + $0x770] ss:$12 sps:$4 sm:$0xff]  }
  0x7d   : > { %1470 = vmatpush1.bf16.msra.mxu0 %v7250_v14  ;;  %6843 = vmatpush3.bf16.msra.mxu1 %v7254_v17  ;;  %v1648_v14 = vrot.slane %v1646_v10, 3  ;;  %v7320_v17 = vld [vmem:[%s9972_s1 + $0x5ec] ss:$12 sps:$4 sm:$0xff]   ;;  %v7358_v10 = vld [vmem:[%s9972_s1 + $0x6a8] ss:$12 sps:$4 sm:$0xff]  }
  0x7e   : > { %1471 = vmatprep.subr.bf16.mxu0 %v7257_v16  ;;  %6844 = vmatprep.subr.bf16.mxu1 %v7258_v19  ;;  %v1656_v16 = vrot.slane %v1654_v12, 3  ;;  %v7326_v19 = vld [vmem:[%s9972_s1 + $0x5d8] ss:$12 sps:$4 sm:$0xff]   ;;  %v7365_v12 = vld [vmem:[%s9972_s1 + $0x694] ss:$12 sps:$4 sm:$0xff]  }
  0x81   : > { %1472 = vmatpush1.bf16.msra.mxu0 %v7255_v18  ;;  %6845 = vmatpush3.bf16.msra.mxu1 %v7259_v21  ;;  %v7322_v18 = vld [vmem:[%s9972_s1 + $0x530] ss:$12 sps:$4 sm:$0xff]   ;;  %v1657_v21 = vor.u32 %v1656_v16, %v1653_v15  ;;  %v7366_v16 = vld [vmem:[%s9972_s1 + $0x758] ss:$12 sps:$4 sm:$0xff]  }
  0x82   : > { %1473 = vmatprep.subr.bf16.mxu0 %v7262_v20  ;;  %6846 = vmatprep.subr.bf16.mxu1 %v7263_v23  ;;  %v1649_v20 = vor.u32 %v1648_v14, %v1645_v13  ;;  %v7362_v14 = vld [vmem:[%s9972_s1 + $0x6b0] ss:$12 sps:$4 sm:$0xff]  }
  0x83   : > { %v7363_v15 = vld [vmem:[%s9972_s1 + $0x690] ss:$12 sps:$4 sm:$0xff]  }
  0x84   : > { %v1658_v23 = vsel %vm1624_vm1, %v1649_v20, %v1657_v21  ;;  %v7368_v20 = vld [vmem:[%s9972_s1 + $0x678] ss:$12 sps:$4 sm:$0xff]   ;;  %v7371_v21 = vld [vmem:[%s9972_s1 + $0x740] ss:$12 sps:$4 sm:$0xff]  }
  0x85   : > { %1474 = vmatpush1.bf16.msra.mxu0 %v7260_v22  ;;  %6847 = vmatpush3.bf16.msra.mxu1 %v7264_v27  ;;  %v7318_v22 = vld [vmem:[%s9972_s1 + $0x5e8] ss:$12 sps:$4 sm:$0xff]   ;;  %v7323_v27 = vld [vmem:[%s9972_s1 + $0x5d0] ss:$12 sps:$4 sm:$0xff]  }
  0x86   : > { %1475 = vmatprep.subr.bf16.mxu0 %v7267_v24  ;;  %6848 = vmatprep.subr.bf16.mxu1 %v7268_v31  ;;  %v7327_v24 = vld [vmem:[%s9972_s1 + $0x518] ss:$12 sps:$4 sm:$0xff]  }
  0x87   : > { %v7328_v31 = vld [vmem:[%s9972_s1 + $0x5b8] ss:$12 sps:$4 sm:$0xff]  }
  0x89   : > { %1476 = vmatpush1.bf16.msra.mxu0 %v7265_v28  ;;  %6849 = vmatpush3.bf16.msra.mxu1 %v7269_v34  ;;  %v7330_v28 = vld [vmem:[%s9972_s1 + $0x5bc] ss:$12 sps:$4 sm:$0xff]  }
  0x8a   : > { %1477 = vmatprep.subr.bf16.mxu0 %v7272_v33  ;;  %1917 = vmatprep.subr.bf16.mxu1 %v7275_v37  ;;  %v7335_v33 = vld [vmem:[%s9972_s1 + $0x5a4] ss:$12 sps:$4 sm:$0xff]   ;;  %v7337_v34 = vld [vmem:[%s9972_s1 + $0x4e8] ss:$12 sps:$4 sm:$0xff]   ;;  %v7333_v37 = vld [vmem:[%s9972_s1 + $0x5a0] ss:$12 sps:$4 sm:$0xff]  }
  0x8c   : > { %1537 = vmatmul.mubr.bf16.vlgmr.msra.gmra.mxu1 %v8367_v42 }
  0x8d   : > { %1478 = vmatpush2.bf16.msra.mxu0 %v7270_v35  ;;  %1918 = vmatpush1.bf16.msra.mxu1 %v7273_v40  ;;  %v7341_v35 = vld [vmem:[%s9972_s1 + $0x590] ss:$12 sps:$4 sm:$0xff]  }
  0x8e   : > { %1479 = vmatprep.subr.bf16.mxu0 %v7278_v39  ;;  %1919 = vmatprep.subr.bf16.mxu1 %v7281_v43  ;;  %v7340_v39 = vld [vmem:[%s9972_s1 + $0x58c] ss:$12 sps:$4 sm:$0xff]   ;;  %v8510_v40 = vld [vmem:[%s8022_s18 + $0x10] sm:$0xff]  ;;  %v1557_v43 = vpack.c.bf16 %v1553_v36, %v1553_v36 }
  0x8f   : > { %1949 = vmatprep.mubr.bf16.mxu1 %v1658_v23  ;;  %v7388_v36 = vld [vmem:[%s9972_s1 + $0x618] ss:$12 sps:$4 sm:$0xff]  }
  0x91   : > { %1480 = vmatpush2.bf16.msra.mxu0 %v7276_v41  ;;  %1920 = vmatpush1.bf16.msra.mxu1 %v7279_v45  ;;  %v1555_v41 = vpack.c.bf16 %v8510_v40, %v1551_v38  ;;  %v7338_v45 = vld [vmem:[%s9972_s1 + $0x588] ss:$12 sps:$4 sm:$0xff]   ;;  %v7387_v38 = vld [vmem:[%s9972_s1 + $0x638] ss:$12 sps:$4 sm:$0xff]  }
  0x92   : > { %1481 = vmatprep.subr.bf16.mxu0 %v7284_v44  ;;  %1921 = vmatprep.subr.bf16.mxu1 %v7287_v47  ;;  %v7346_v44 = vld [vmem:[%s9972_s1 + $0x578] ss:$12 sps:$4 sm:$0xff]   ;;  %v7345_v47 = vld [vmem:[%s9972_s1 + $0x574] ss:$12 sps:$4 sm:$0xff]  }
  0x95   : > { %1482 = vmatpush2.bf16.msra.mxu0 %v7282_v46  ;;  %1922 = vmatpush1.bf16.msra.mxu1 %v7285_v49  ;;  %v7347_v46 = vld [vmem:[%s9972_s1 + $0x4b8] ss:$12 sps:$4 sm:$0xff]   ;;  %v1629_v49 = vshll.u32 %v1555_v41, 16 }
  0x96   : > { %1483 = vmatprep.subr.bf16.mxu0 %v7290_v48  ;;  %1923 = vmatprep.subr.bf16.mxu1 %v7293_v51  ;;  %v1626_v48 = vshrl.u32 %v1555_v41, 16  ;;  %v1637_v51 = vshll.u32 %v1557_v43, 16  ;;  %v2007_v41 = vld [vmem:[%s8022_s18] sm:$0xc0] }
  0x99   : > { %1484 = vmatpush2.bf16.msra.mxu0 %v7288_v50  ;;  %1924 = vmatpush1.bf16.msra.mxu1 %v7291_v53  ;;  %v1634_v50 = vshrl.u32 %v1557_v43, 16  ;;  %v7343_v53 = vld [vmem:[%s9972_s1 + $0x570] ss:$12 sps:$4 sm:$0xff]   ;;  %v7392_v43 = vld [vmem:[%s9972_s1 + $0x620] ss:$12 sps:$4 sm:$0xff]  }
  0x9a   : > { %1485 = vmatprep.subr.bf16.mxu0 %v7296_v52  ;;  %1925 = vmatprep.subr.bf16.mxu1 %v7299_v55  ;;  %v7351_v52 = vld [vmem:[%s9972_s1 + $0x560] ss:$12 sps:$4 sm:$0xff]  }
  0x9b   : > { %v7352_v55 = vld [vmem:[%s9972_s1 + $0x4a0] ss:$12 sps:$4 sm:$0xff]  }
  0x9d   : > { %1486 = vmatpush2.bf16.msra.mxu0 %v7294_v54  ;;  %1926 = vmatpush1.bf16.msra.mxu1 %v7297_v57  ;;  %v7350_v54 = vld [vmem:[%s9972_s1 + $0x55c] ss:$12 sps:$4 sm:$0xff]   ;;  %v1631_v57 = vrot.slane %v1629_v49, 3 }
  0x9e   : > { %1487 = vmatprep.subr.bf16.mxu0 %v7302_v56  ;;  %1927 = vmatprep.subr.bf16.mxu1 %v7305_v59  ;;  %v1628_v56 = vrot.slane %v1626_v48, 2  ;;  %v1639_v59 = vrot.slane %v1637_v51, 3  ;;  %v7400_v48 = vld [vmem:[%s9972_s1 + $0x76c] ss:$12 sps:$4 sm:$0xff]   ;;  %v7397_v49 = vld [vmem:[%s9972_s1 + $0x608] ss:$12 sps:$4 sm:$0xff]  }
  0xa1   : > { %1488 = vmatpush2.bf16.msra.mxu0 %v7300_v58  ;;  %1928 = vmatpush1.bf16.msra.mxu1 %v7303_v61  ;;  %v1636_v58 = vrot.slane %v1634_v50, 2  ;;  %v2008_v61 = vld [vmem:[%s8022_s18 + $0x8] sm:$0xc0]  ;;  %v7398_v50 = vld [vmem:[%s9972_s1 + $0x768] ss:$12 sps:$4 sm:$0xff]  }
  0xa2   : > { %1489 = vmatprep.subr.bf16.mxu0 %v7308_v60  ;;  %1929 = vmatprep.subr.bf16.mxu1 %v7311_v63  ;;  %v7356_v60 = vld [vmem:[%s9972_s1 + $0x548] ss:$12 sps:$4 sm:$0xff]   ;;  %v7348_v63 = vld [vmem:[%s9972_s1 + $0x558] ss:$12 sps:$4 sm:$0xff]   ;;  %v2012_v6 = vpack.c.bf16 %v8558_v5, %v2008_v61 }
  0xa3   : > { %v1640_v2 = vor.u32 %v1639_v59, %v1636_v58  ;;  %v7409_v58 = vld [vmem:[%s9972_s1 + $0x814] ss:$12 sps:$4 sm:$0xff]   ;;  %v7412_v59 = vld [vmem:[%s9972_s1 + $0x73c] ss:$12 sps:$4 sm:$0xff]   ;;  %v7410_v61 = vld [vmem:[%s9972_s1 + $0x738] ss:$12 sps:$4 sm:$0xff]  }
  0xa5   : > { %1490 = vmatpush2.bf16.msra.mxu0 %v7306_v62  ;;  %1930 = vmatpush1.bf16.msra.mxu1 %v7309_v1  ;;  %v2010_v62 = vld [vmem:[%s8022_s18 + $0x28] sm:$0x1f]  ;;  %v1632_v1 = vor.u32 %v1631_v57, %v1628_v56  ;;  %v7404_v57 = vld [vmem:[%s9972_s1 + $0x750] ss:$12 sps:$4 sm:$0xff]  }
  0xa6   : > { %1491 = vmatprep.subr.bf16.mxu0 %v7314_v0  ;;  %1931 = vmatprep.subr.bf16.mxu1 %v7317_v7  ;;  %v7357_v0 = vld [vmem:[%s9972_s1 + $0x488] ss:$12 sps:$4 sm:$0xff]   ;;  %v2014_v7 = vpack.c.bf16 %v2010_v62, %v2010_v62 }
  0xa7   : > { %v1641_v9 = vsel %vm1624_vm1, %v1632_v1, %v1640_v2  ;;  %v7415_v62 = vld [vmem:[%s9972_s1 + $0x7fc] ss:$12 sps:$4 sm:$0xff]   ;;  %v2440_v1 = vld [vmem:[%s8022_s18 + $0x8] sm:$0x80] }
  0xa8   : > { %v2089_v13 = vrot.slane %v2014_v7, 3  ;;  %v2442_v2 = vld [vmem:[%s8022_s18 + $0x28] sm:$0x3f]  ;;  %v7421_v7 = vld [vmem:[%s9972_s1 + $0x7e4] ss:$12 sps:$4 sm:$0xff]  }
  0xa9   : > { %1492 = vmatpush2.bf16.msra.mxu0 %v7312_v4  ;;  %1932 = vmatpush1.bf16.msra.mxu1 %v7315_v32  ;;  %v7360_v4 = vld [vmem:[%s9972_s1 + $0x6ac] ss:$12 sps:$4 sm:$0xff]   ;;  %v2088_v32 = vrot.slane %v2012_v6, 3  ;;  %v2446_v6 = vpack.c.bf16 %v2442_v2, %v2442_v2 }
  0xaa   : > { %6856 = vmatprep.subr.bf16.mxu0 %v7321_v8  ;;  %1933 = vmatprep.subr.bf16.mxu1 %v7320_v17  ;;  %v7353_v8 = vld [vmem:[%s9972_s1 + $0x540] ss:$12 sps:$4 sm:$0xff]   ;;  %v7370_v17 = vld [vmem:[%s9972_s1 + $0x67c] ss:$12 sps:$4 sm:$0xff]  }
  0xab   : > { %v7479_v2 = vld [vmem:[%s9972_s1 + $0x860] ss:$12 sps:$4 sm:$0xff]  }
  0xac   : > { %1494 = vmatmul.mubr.bf16.vlgmr.msra.gmra.mxu0 %v8367_v42  ;;  %v7342_v42 = vld [vmem:[%s9972_s1 + $0x4d0] ss:$12 sps:$4 sm:$0xff]  }
  0xad   : > { %6857 = vmatpush3.bf16.msra.mxu0 %v7322_v18  ;;  %1992 = vmatprep.mubr.bf16.mxu0 %v1658_v23  ;;  %v2090_v18 = vsel %vm2084_vm2, %v2088_v32, %v2089_v13  ;;  %v7372_v23 = vld [vmem:[%s9972_s1 + $0x680] ss:$12 sps:$4 sm:$0xff]  }
  0xae   : > { %6858 = vmatprep.subr.bf16.mxu0 %v7326_v19  ;;  %1934 = vmatpush2.bf16.msra.mxu1 %v7318_v22  ;;  %v7367_v19 = vld [vmem:[%s9972_s1 + $0x698] ss:$12 sps:$4 sm:$0xff]  }
  0xaf   : > { %1935 = vmatprep.subr.bf16.mxu1 %v7325_v25  ;;  %v7375_v22 = vld [vmem:[%s9972_s1 + $0x664] ss:$12 sps:$4 sm:$0xff]   ;;  %v7376_v25 = vld [vmem:[%s9972_s1 + $0x728] ss:$12 sps:$4 sm:$0xff]  }
  0xb1   : > { %6859 = vmatpush3.bf16.msra.mxu0 %v7327_v24  ;;  %v7373_v24 = vld [vmem:[%s9972_s1 + $0x660] ss:$12 sps:$4 sm:$0xff]  }
  0xb2   : > { %6860 = vmatprep.subr.bf16.mxu0 %v7331_v26  ;;  %1936 = vmatpush2.bf16.msra.mxu1 %v7323_v27  ;;  %v7380_v26 = vld [vmem:[%s9972_s1 + $0x64c] ss:$12 sps:$4 sm:$0xff]   ;;  %v7377_v27 = vld [vmem:[%s9972_s1 + $0x668] ss:$12 sps:$4 sm:$0xff]  }
  0xb3   : > { %1937 = vmatprep.subr.bf16.mxu1 %v7330_v28  ;;  %v7378_v28 = vld [vmem:[%s9972_s1 + $0x648] ss:$12 sps:$4 sm:$0xff]  }
  0xb5   : > { %6861 = vmatpush3.bf16.msra.mxu0 %v7332_v29  ;;  %v7381_v29 = vld [vmem:[%s9972_s1 + $0x710] ss:$12 sps:$4 sm:$0xff]  }
  0xb6   : > { %6862 = vmatprep.subr.bf16.mxu0 %v7336_v30  ;;  %1938 = vmatpush2.bf16.msra.mxu1 %v7328_v31  ;;  %v7385_v30 = vld [vmem:[%s9972_s1 + $0x634] ss:$12 sps:$4 sm:$0xff]   ;;  %v7382_v31 = vld [vmem:[%s9972_s1 + $0x650] ss:$12 sps:$4 sm:$0xff]  }
  0xb7   : > { %1939 = vmatprep.subr.bf16.mxu1 %v7335_v33  ;;  %v7383_v33 = vld [vmem:[%s9972_s1 + $0x630] ss:$12 sps:$4 sm:$0xff]  }
  0xb9   : > { %6863 = vmatpush3.bf16.msra.mxu0 %v7337_v34  ;;  %v7386_v34 = vld [vmem:[%s9972_s1 + $0x6f8] ss:$12 sps:$4 sm:$0xff]  }
  0xba   : > { %6864 = vmatprep.subr.bf16.mxu0 %v7341_v35  ;;  %1940 = vmatpush2.bf16.msra.mxu1 %v7333_v37  ;;  %v7390_v35 = vld [vmem:[%s9972_s1 + $0x61c] ss:$12 sps:$4 sm:$0xff]   ;;  %v7391_v37 = vld [vmem:[%s9972_s1 + $0x6e0] ss:$12 sps:$4 sm:$0xff]  }
  0xbb   : > { %1941 = vmatprep.subr.bf16.mxu1 %v7340_v39  ;;  %v7395_v39 = vld [vmem:[%s9972_s1 + $0x604] ss:$12 sps:$4 sm:$0xff]  }
  0xbd   : > { %6865 = vmatpush3.bf16.msra.mxu0 %v7342_v42  ;;  %v2009_v42 = vld [vmem:[%s8022_s18 + $0x20] sm:$0x1f] }
  0xbe   : > { %6866 = vmatprep.subr.bf16.mxu0 %v7346_v44  ;;  %1942 = vmatpush2.bf16.msra.mxu1 %v7338_v45  ;;  %v7393_v44 = vld [vmem:[%s9972_s1 + $0x600] ss:$12 sps:$4 sm:$0xff]   ;;  %v2011_v45 = vpack.c.bf16 %v8510_v40, %v2007_v41 }
  0xbf   : > { %1943 = vmatprep.subr.bf16.mxu1 %v7345_v47  ;;  %v7396_v47 = vld [vmem:[%s9972_s1 + $0x6c8] ss:$12 sps:$4 sm:$0xff]  }
  0xc0   : > { %v2085_v51 = vrot.slane %v2011_v45, 3  ;;  %v7453_v41 = vld [vmem:[%s9972_s1 + $0x8d4] ss:$12 sps:$4 sm:$0xff]   ;;  %v7458_v45 = vld [vmem:[%s9972_s1 + $0x8bc] ss:$12 sps:$4 sm:$0xff]  }
  0xc1   : > { %6867 = vmatpush3.bf16.msra.mxu0 %v7347_v46  ;;  %v2013_v46 = vpack.c.bf16 %v2009_v42, %v2009_v42  ;;  %v7455_v42 = vld [vmem:[%s9972_s1 + $0x818] ss:$12 sps:$4 sm:$0xff]  }
  0xc2   : > { %6868 = vmatprep.subr.bf16.mxu0 %v7351_v52  ;;  %1944 = vmatpush2.bf16.msra.mxu1 %v7343_v53  ;;  %v7403_v53 = vld [vmem:[%s9972_s1 + $0x82c] ss:$12 sps:$4 sm:$0xff]  }
  0xc3   : > { %1945 = vmatprep.subr.bf16.mxu1 %v7350_v54  ;;  %v2086_v52 = vrot.slane %v2013_v46, 3  ;;  %v7406_v54 = vld [vmem:[%s9972_s1 + $0x754] ss:$12 sps:$4 sm:$0xff]  }
  0xc4   : > { %v7460_v46 = vld [vmem:[%s9972_s1 + $0x800] ss:$12 sps:$4 sm:$0xff]  }
  0xc5   : > { %6869 = vmatpush3.bf16.msra.mxu0 %v7352_v55  ;;  %v7401_v55 = vld [vmem:[%s9972_s1 + $0x828] ss:$12 sps:$4 sm:$0xff]   ;;  %v8678_v56 = vsel %vm2084_vm2, %v2085_v51, %v2086_v52  ;;  %v7469_v51 = vld [vmem:[%s9972_s1 + $0x890] ss:$12 sps:$4 sm:$0xff]   ;;  %v2439_v52 = vld [vmem:[%s8022_s18] sm:$0x80] }
  0xc6   : > { %6870 = vmatprep.subr.bf16.mxu0 %v7356_v60  ;;  %1946 = vmatpush2.bf16.msra.mxu1 %v7348_v63  ;;  %v7407_v60 = vld [vmem:[%s9972_s1 + $0x810] ss:$12 sps:$4 sm:$0xff]  }
  0xc7   : > { %1947 = vmatprep.subr.bf16.mxu1 %v7355_v3  ;;  %v7418_v63 = vld [vmem:[%s9972_s1 + $0x724] ss:$12 sps:$4 sm:$0xff]   ;;  %v7416_v3 = vld [vmem:[%s9972_s1 + $0x720] ss:$12 sps:$4 sm:$0xff]  }
  0xc9   : > { %6871 = vmatpush3.bf16.msra.mxu0 %v7357_v0  ;;  %v7413_v0 = vld [vmem:[%s9972_s1 + $0x7f8] ss:$12 sps:$4 sm:$0xff]  }
  0xca   : > { %2349 = vmatprep.subr.bf16.mxu0 %v7360_v4  ;;  %1948 = vmatpush2.bf16.msra.mxu1 %v7353_v8  ;;  %v2444_v4 = vpack.c.bf16 %v8558_v5, %v2440_v1  ;;  %v7424_v8 = vld [vmem:[%s9972_s1 + $0x70c] ss:$12 sps:$4 sm:$0xff]  }
  0xcb   : > { %6878 = vmatprep.subr.bf16.mxu1 %v7361_v11  ;;  %v2539_v11 = vshrl.u32 %v2446_v6, 16 }
  0xcc   : > { %1993 = vmatmul.mubr.bf16.vlgmr.msra.gmra.mxu0 %v1641_v9 }
  0xcd   : > { %2350 = vmatpush1.bf16.msra.mxu0 %v7358_v10  ;;  %2381 = vmatprep.mubr.bf16.mxu0 %v2090_v18  ;;  %v2534_v10 = vshll.u32 %v2444_v4, 16  ;;  %v2541_v13 = vrot.slane %v2539_v11, 3 }
  0xce   : > { %2351 = vmatprep.subr.bf16.mxu0 %v7365_v12  ;;  %1950 = vmatmul.mubr.bf16.vlgmr.msra.gmra.mxu1 %v1641_v9  ;;  %v2531_v9 = vshrl.u32 %v2444_v4, 16  ;;  %v2542_v12 = vshll.u32 %v2446_v6, 16  ;;  %v7478_v4 = vld [vmem:[%s9972_s1 + $0x85c] ss:$12 sps:$4 sm:$0xff]   ;;  %v7480_v6 = vld [vmem:[%s9972_s1 + $0x7a0] ss:$12 sps:$4 sm:$0xff]  }
  0xcf   : > { %6879 = vmatpush3.bf16.msra.mxu1 %v7362_v14  ;;  %2424 = vmatprep.mubr.bf16.mxu1 %v2090_v18  ;;  %v2536_v5 = vrot.slane %v2534_v10, 4  ;;  %v7430_v18 = vld [vmem:[%s9972_s1 + $0x6f4] ss:$12 sps:$4 sm:$0xff]  }
  0xd0   : > { %6880 = vmatprep.subr.bf16.mxu1 %v7366_v16  ;;  %v2533_v32 = vrot.slane %v2531_v9, 3  ;;  %v2544_v14 = vrot.slane %v2542_v12, 4  ;;  %v7422_v16 = vld [vmem:[%s9972_s1 + $0x708] ss:$12 sps:$4 sm:$0xff]   ;;  %v2896_v12 = vld [vmem:[%s8022_s18 + $0x18] sm:$0xfc] }
  0xd1   : > { %2352 = vmatpush1.bf16.msra.mxu0 %v7363_v15  ;;  %v7419_v15 = vld [vmem:[%s9972_s1 + $0x7e0] ss:$12 sps:$4 sm:$0xff]  }
  0xd2   : > { %2353 = vmatprep.subr.bf16.mxu0 %v7370_v17  ;;  %v7427_v17 = vld [vmem:[%s9972_s1 + $0x7cc] ss:$12 sps:$4 sm:$0xff]  }
  0xd3   : > { %6881 = vmatpush3.bf16.msra.mxu1 %v7367_v19  ;;  %v2537_v19 = vor.u32 %v2536_v5, %v2533_v32  ;;  %v8858_v5 = vld [vmem:[%s8022_s18 + $0x28] sm:$0xff] }
  0xd4   : > { %6882 = vmatprep.subr.bf16.mxu1 %v7371_v21  ;;  %v7425_v21 = vld [vmem:[%s9972_s1 + $0x7c8] ss:$12 sps:$4 sm:$0xff]  }
  0xd5   : > { %2354 = vmatpush1.bf16.msra.mxu0 %v7368_v20  ;;  %v2545_v20 = vor.u32 %v2544_v14, %v2541_v13  ;;  %v2900_v13 = vld [vmem:[%s8022_s18 + $0x38] sm:$0x1] }
  0xd6   : > { %2355 = vmatprep.subr.bf16.mxu0 %v7375_v22  ;;  %v7476_v14 = vld [vmem:[%s9972_s1 + $0x858] ss:$12 sps:$4 sm:$0xff]  }
  0xd7   : > { %6883 = vmatpush3.bf16.msra.mxu1 %v7372_v23  ;;  %v2546_v22 = vsel %vm2512_vm3, %v2537_v19, %v2545_v20  ;;  %v7428_v23 = vld [vmem:[%s9972_s1 + $0x6f0] ss:$12 sps:$4 sm:$0xff]   ;;  %v7488_v20 = vld [vmem:[%s9972_s1 + $0x9ac] ss:$12 sps:$4 sm:$0xff]  }
  0xd8   : > { %6884 = vmatprep.subr.bf16.mxu1 %v7376_v25  ;;  %v7436_v25 = vld [vmem:[%s9972_s1 + $0x6dc] ss:$12 sps:$4 sm:$0xff]  }
  0xd9   : > { %2356 = vmatpush1.bf16.msra.mxu0 %v7373_v24  ;;  %v7433_v24 = vld [vmem:[%s9972_s1 + $0x7b4] ss:$12 sps:$4 sm:$0xff]  }
  0xda   : > { %2357 = vmatprep.subr.bf16.mxu0 %v7380_v26  ;;  %v7431_v26 = vld [vmem:[%s9972_s1 + $0x7b0] ss:$12 sps:$4 sm:$0xff]  }
  0xdb   : > { %6885 = vmatpush3.bf16.msra.mxu1 %v7377_v27  ;;  %v7434_v27 = vld [vmem:[%s9972_s1 + $0x6d8] ss:$12 sps:$4 sm:$0xff]  }
  0xdc   : > { %6886 = vmatprep.subr.bf16.mxu1 %v7381_v29  ;;  %v7442_v29 = vld [vmem:[%s9972_s1 + $0x6c4] ss:$12 sps:$4 sm:$0xff]  }
  0xdd   : > { %2358 = vmatpush1.bf16.msra.mxu0 %v7378_v28  ;;  %v7439_v28 = vld [vmem:[%s9972_s1 + $0x79c] ss:$12 sps:$4 sm:$0xff]  }
  0xde   : > { %2359 = vmatprep.subr.bf16.mxu0 %v7385_v30  ;;  %v7437_v30 = vld [vmem:[%s9972_s1 + $0x798] ss:$12 sps:$4 sm:$0xff]  }
  0xdf   : > { %6887 = vmatpush3.bf16.msra.mxu1 %v7382_v31  ;;  %v7440_v31 = vld [vmem:[%s9972_s1 + $0x6c0] ss:$12 sps:$4 sm:$0xff]  }
  0xe0   : > { %6888 = vmatprep.subr.bf16.mxu1 %v7386_v34  ;;  %v7449_v34 = vld [vmem:[%s9972_s1 + $0x8f0] ss:$12 sps:$4 sm:$0xff]  }
  0xe1   : > { %2360 = vmatpush1.bf16.msra.mxu0 %v7383_v33  ;;  %v7445_v33 = vld [vmem:[%s9972_s1 + $0x784] ss:$12 sps:$4 sm:$0xff]  }
  0xe2   : > { %2361 = vmatprep.subr.bf16.mxu0 %v7390_v35  ;;  %v7443_v35 = vld [vmem:[%s9972_s1 + $0x780] ss:$12 sps:$4 sm:$0xff]  }
  0xe3   : > { %6889 = vmatpush3.bf16.msra.mxu1 %v7387_v38  ;;  %v7448_v38 = vld [vmem:[%s9972_s1 + $0x8ec] ss:$12 sps:$4 sm:$0xff]  }
  0xe4   : > { %6890 = vmatprep.subr.bf16.mxu1 %v7391_v37  ;;  %v7454_v37 = vld [vmem:[%s9972_s1 + $0x8d8] ss:$12 sps:$4 sm:$0xff]  }
  0xe5   : > { %2362 = vmatpush1.bf16.msra.mxu0 %v7388_v36  ;;  %v7450_v36 = vld [vmem:[%s9972_s1 + $0x830] ss:$12 sps:$4 sm:$0xff]  }
  0xe6   : > { %2363 = vmatprep.subr.bf16.mxu0 %v7395_v39  ;;  %v7446_v39 = vld [vmem:[%s9972_s1 + $0x8e8] ss:$12 sps:$4 sm:$0xff]  }
  0xe7   : > { %6891 = vmatpush3.bf16.msra.mxu1 %v7392_v43  ;;  %v7459_v43 = vld [vmem:[%s9972_s1 + $0x8c0] ss:$12 sps:$4 sm:$0xff]  }
  0xe8   : > { %6892 = vmatprep.subr.bf16.mxu1 %v7396_v47  ;;  %v7464_v47 = vld [vmem:[%s9972_s1 + $0x8a8] ss:$12 sps:$4 sm:$0xff]  }
  0xe9   : > { %2364 = vmatpush1.bf16.msra.mxu0 %v7393_v44  ;;  %v7451_v44 = vld [vmem:[%s9972_s1 + $0x8d0] ss:$12 sps:$4 sm:$0xff]  }
  0xea   : > { %2365 = vmatprep.subr.bf16.mxu0 %v7400_v48  ;;  %v7456_v48 = vld [vmem:[%s9972_s1 + $0x8b8] ss:$12 sps:$4 sm:$0xff]  }
  0xeb   : > { %6893 = vmatpush3.bf16.msra.mxu1 %v7397_v49  ;;  %v7463_v49 = vld [vmem:[%s9972_s1 + $0x8a4] ss:$12 sps:$4 sm:$0xff]  }
  0xec   : > { %2805 = vmatprep.subr.bf16.mxu1 %v7403_v53  ;;  %v2441_v53 = vld [vmem:[%s8022_s18 + $0x20] sm:$0x3f]  ;;  %v8855_v32 = vpop.f32.mrf.mxu1 }
  0xed   : > { %2366 = vmatpush2.bf16.msra.mxu0 %v7398_v50  ;;  %v7465_v50 = vld [vmem:[%s9972_s1 + $0x7e8] ss:$12 sps:$4 sm:$0xff]  }
  0xee   : > { %2367 = vmatprep.subr.bf16.mxu0 %v7406_v54  ;;  %2425 = vmatmul.mubr.bf16.vlgmr.msra.gmra.mxu1 %v8678_v56  ;;  %v7461_v54 = vld [vmem:[%s9972_s1 + $0x8a0] ss:$12 sps:$4 sm:$0xff]   ;;  %v8870_v19 = vpop.f32.mrf.mxu1 }
  0xef   : > { %2806 = vmatpush1.bf16.msra.mxu1 %v7401_v55  ;;  %2837 = vmatprep.mubr.bf16.mxu1 %v2546_v22  ;;  %v2443_v55 = vpack.c.bf16 %v8510_v40, %v2439_v52  ;;  %v7466_v40 = vld [vmem:[%s9972_s1 + $0x888] ss:$12 sps:$4 sm:$0xff]   ;;  %v7501_v52 = vld [vmem:[%s9972_s1 + $0x960] ss:$12 sps:$4 sm:$0xff]  }
  0xf0   : > { %2807 = vmatprep.subr.bf16.mxu1 %v7409_v58  ;;  %v2445_v58 = vpack.c.bf16 %v2441_v53, %v2441_v53 }
  0xf1   : > { %2368 = vmatpush2.bf16.msra.mxu0 %v7404_v57  ;;  %v7470_v57 = vld [vmem:[%s9972_s1 + $0x7d0] ss:$12 sps:$4 sm:$0xff]  }
  0xf2   : > { %2369 = vmatprep.subr.bf16.mxu0 %v7412_v59  ;;  %v7474_v59 = vld [vmem:[%s9972_s1 + $0x878] ss:$12 sps:$4 sm:$0xff]   ;;  %v2525_v1 = vshll.u32 %v2445_v58, 16 }
  0xf3   : > { %2808 = vmatpush1.bf16.msra.mxu1 %v7407_v60  ;;  %v7473_v60 = vld [vmem:[%s9972_s1 + $0x874] ss:$12 sps:$4 sm:$0xff]  }
  0xf4   : > { %2809 = vmatprep.subr.bf16.mxu1 %v7415_v62  ;;  %v7475_v62 = vld [vmem:[%s9972_s1 + $0x7b8] ss:$12 sps:$4 sm:$0xff]   ;;  %v2527_v11 = vrot.slane %v2525_v1, 4  ;;  %v7518_v1 = vld [vmem:[%s9972_s1 + $0x91c] ss:$12 sps:$4 sm:$0xff]  }
  0xf5   : > { %2370 = vmatpush2.bf16.msra.mxu0 %v7410_v61  ;;  %v2514_v61 = vshrl.u32 %v2443_v55, 16 }
  0xf6   : > { %2371 = vmatprep.subr.bf16.mxu0 %v7418_v63  ;;  %v2517_v63 = vshll.u32 %v2443_v55, 16 }
  0xf7   : > { %2810 = vmatpush1.bf16.msra.mxu1 %v7413_v0  ;;  %v2522_v0 = vshrl.u32 %v2445_v58, 16 }
  0xf8   : > { %2811 = vmatprep.subr.bf16.mxu1 %v7421_v7  ;;  %v7484_v7 = vld [vmem:[%s9972_s1 + $0x848] ss:$12 sps:$4 sm:$0xff]   ;;  %v2519_v9 = vrot.slane %v2517_v63, 4  ;;  %v7511_v63 = vld [vmem:[%s9972_s1 + $0x930] ss:$12 sps:$4 sm:$0xff]  }
  0xf9   : > { %2372 = vmatpush2.bf16.msra.mxu0 %v7416_v3  ;;  %v7471_v3 = vld [vmem:[%s9972_s1 + $0x870] ss:$12 sps:$4 sm:$0xff]   ;;  %v2524_v10 = vrot.slane %v2522_v0, 3  ;;  %v7514_v0 = vld [vmem:[%s9972_s1 + $0x9f8] ss:$12 sps:$4 sm:$0xff]  }
  0xfa   : > { %2373 = vmatprep.subr.bf16.mxu0 %v7424_v8  ;;  %v2516_v8 = vrot.slane %v2514_v61, 3  ;;  %v7513_v61 = vld [vmem:[%s9972_s1 + $0x934] ss:$12 sps:$4 sm:$0xff]  }
  0xfb   : > { %2812 = vmatpush1.bf16.msra.mxu1 %v7419_v15  ;;  %v7483_v15 = vld [vmem:[%s9972_s1 + $0x844] ss:$12 sps:$4 sm:$0xff]  }
  0xfc   : > { %2813 = vmatprep.subr.bf16.mxu1 %v7427_v17  ;;  %v2520_v17 = vor.u32 %v2519_v9, %v2516_v8  ;;  %v8976_v8 = vld [vmem:[%s8022_s18 + $0x20] sm:$0xff]  ;;  %v2899_v9 = vld [vmem:[%s8022_s18 + $0x30] sm:$0x1] }
  0xfd   : > { %2374 = vmatpush2.bf16.msra.mxu0 %v7422_v16  ;;  %v7485_v16 = vld [vmem:[%s9972_s1 + $0x788] ss:$12 sps:$4 sm:$0xff]  }
  0xfe   : > { %2375 = vmatprep.subr.bf16.mxu0 %v7430_v18  ;;  %v2528_v18 = vor.u32 %v2527_v11, %v2524_v10  ;;  %v3329_v10 = vld [vmem:[%s8022_s18 + $0x18] sm:$0xf8]  ;;  %v3331_v11 = vld [vmem:[%s8022_s18 + $0x38] sm:$0x3] }
  0xff   : > { %2814 = vmatpush1.bf16.msra.mxu1 %v7425_v21  ;;  %v2902_v21 = vpack.c.bf16 %v8858_v5, %v2896_v12  ;;  %v7520_v12 = vld [vmem:[%s9972_s1 + $0x920] ss:$12 sps:$4 sm:$0xff]  }
 0x100   : > { %2815 = vmatprep.subr.bf16.mxu1 %v7433_v24  ;;  %v7486_v24 = vld [vmem:[%s9972_s1 + $0x9a8] ss:$12 sps:$4 sm:$0xff]  }
 0x101   : > { %2376 = vmatpush2.bf16.msra.mxu0 %v7428_v23  ;;  %v7481_v23 = vld [vmem:[%s9972_s1 + $0x840] ss:$12 sps:$4 sm:$0xff]  }
 0x102   : > { %2377 = vmatprep.subr.bf16.mxu0 %v7436_v25  ;;  %v2529_v25 = vsel %vm2512_vm3, %v2520_v17, %v2528_v18  ;;  %v7528_v17 = vld [vmem:[%s9972_s1 + $0xa6c] ss:$12 sps:$4 sm:$0xff]  }
 0x103   : > { %2816 = vmatpush1.bf16.msra.mxu1 %v7431_v26  ;;  %v7489_v26 = vld [vmem:[%s9972_s1 + $0xa70] ss:$12 sps:$4 sm:$0xff]  }
 0x104   : > { %2817 = vmatprep.subr.bf16.mxu1 %v7439_v28  ;;  %v8889_v28 = vpop.f32.mrf.mxu1 }
 0x105   : > { %2378 = vmatpush2.bf16.msra.mxu0 %v7434_v27  ;;  %v7493_v27 = vld [vmem:[%s9972_s1 + $0x994] ss:$12 sps:$4 sm:$0xff]  }
 0x106   : > { %2379 = vmatprep.subr.bf16.mxu0 %v7442_v29 }
 0x107   : > { %2818 = vmatpush1.bf16.msra.mxu1 %v7437_v30  ;;  %v2977_v30 = vrot.slane %v2902_v21, 1 }
 0x108   : > { %2819 = vmatprep.subr.bf16.mxu1 %v7445_v33  ;;  %v7490_v33 = vld [vmem:[%s9972_s1 + $0x9b0] ss:$12 sps:$4 sm:$0xff]  }
 0x109   : > { %2380 = vmatpush2.bf16.msra.mxu0 %v7440_v31 }
 0x10a   : > { %6900 = vmatprep.subr.bf16.mxu0 %v7449_v34  ;;  %v7491_v34 = vld [vmem:[%s9972_s1 + $0x990] ss:$12 sps:$4 sm:$0xff]  }
 0x10b   : > { %2820 = vmatpush1.bf16.msra.mxu1 %v7443_v35  ;;  %v7494_v35 = vld [vmem:[%s9972_s1 + $0xa58] ss:$12 sps:$4 sm:$0xff]  }
 0x10c   : > { %2382 = vmatmul.mubr.bf16.vlgmr.msra.gmra.mxu0 %v8678_v56  ;;  %2821 = vmatprep.subr.bf16.mxu1 %v7448_v38  ;;  %v7468_v56 = vld [vmem:[%s9972_s1 + $0x88c] ss:$12 sps:$4 sm:$0xff]   ;;  %v727_v29 = vpop.f32.mrf.mxu0  ;;  %v8900_v38 = vpop.f32.mrf.mxu1 }
 0x10d   : > { %6901 = vmatpush3.bf16.msra.mxu0 %v7450_v36  ;;  %2880 = vmatprep.mubr.bf16.mxu0 %v2546_v22  ;;  %v2904_v22 = vpack.c.bf16 %v2900_v13, %v2900_v13  ;;  %v7521_v13 = vld [vmem:[%s9972_s1 + $0x900] ss:$12 sps:$4 sm:$0xff]  }
 0x10e   : > { %6902 = vmatprep.subr.bf16.mxu0 %v7454_v37  ;;  %v729_v36 = vpop.f32.mrf.mxu0  ;;  %v7498_v37 = vld [vmem:[%s9972_s1 + $0x97c] ss:$12 sps:$4 sm:$0xff]  }
 0x10f   : > { %2822 = vmatpush2.bf16.msra.mxu1 %v7446_v39  ;;  %v2978_v31 = vrot.slane %v2904_v22, 1 }
 0x110   : > { %2823 = vmatprep.subr.bf16.mxu1 %v7453_v41 }
 0x111   : > { %6903 = vmatpush3.bf16.msra.mxu0 %v7455_v42  ;;  %v2979_v39 = vsel %vm1196_vm0, %v2977_v30, %v2978_v31  ;;  %v7495_v42 = vld [vmem:[%s9972_s1 + $0x998] ss:$12 sps:$4 sm:$0xff]  }
 0x112   : > { %6904 = vmatprep.subr.bf16.mxu0 %v7459_v43  ;;  %v7496_v43 = vld [vmem:[%s9972_s1 + $0x978] ss:$12 sps:$4 sm:$0xff]  }
 0x113   : > { %2824 = vmatpush2.bf16.msra.mxu1 %v7451_v44 }
 0x114   : > { %2825 = vmatprep.subr.bf16.mxu1 %v7458_v45  ;;  %v7499_v45 = vld [vmem:[%s9972_s1 + $0xa40] ss:$12 sps:$4 sm:$0xff]  }
 0x115   : > { %6905 = vmatpush3.bf16.msra.mxu0 %v7460_v46  ;;  %v731_v46 = vpop.f32.mrf.mxu0 }
 0x116   : > { %6906 = vmatprep.subr.bf16.mxu0 %v7464_v47 }
 0x117   : > { %2826 = vmatpush2.bf16.msra.mxu1 %v7456_v48  ;;  %v7503_v48 = vld [vmem:[%s9972_s1 + $0x964] ss:$12 sps:$4 sm:$0xff]   ;;  %v733_v55 = vpop.f32.mrf.mxu0 }
 0x118   : > { %2827 = vmatprep.subr.bf16.mxu1 %v7463_v49 }
 0x119   : > { %6907 = vmatpush3.bf16.msra.mxu0 %v7465_v50  ;;  %v7500_v50 = vld [vmem:[%s9972_s1 + $0x980] ss:$12 sps:$4 sm:$0xff]  }
 0x11a   : > { %6908 = vmatprep.subr.bf16.mxu0 %v7469_v51 }
 0x11b   : > { %2828 = vmatpush2.bf16.msra.mxu1 %v7461_v54  ;;  %v7504_v54 = vld [vmem:[%s9972_s1 + $0xa28] ss:$12 sps:$4 sm:$0xff]  }
 0x11c   : > { %2829 = vmatprep.subr.bf16.mxu1 %v7468_v56 }
 0x11d   : > { %6909 = vmatpush3.bf16.msra.mxu0 %v7470_v57  ;;  %v7508_v57 = vld [vmem:[%s9972_s1 + $0x94c] ss:$12 sps:$4 sm:$0xff]  }
 0x11e   : > { %6910 = vmatprep.subr.bf16.mxu0 %v7474_v59  ;;  %v7505_v59 = vld [vmem:[%s9972_s1 + $0x968] ss:$12 sps:$4 sm:$0xff]  }
 0x11f   : > { %2830 = vmatpush2.bf16.msra.mxu1 %v7466_v40  ;;  %v7506_v40 = vld [vmem:[%s9972_s1 + $0x948] ss:$12 sps:$4 sm:$0xff]  }
 0x120   : > { %2831 = vmatprep.subr.bf16.mxu1 %v7473_v60  ;;  %v7509_v60 = vld [vmem:[%s9972_s1 + $0xa10] ss:$12 sps:$4 sm:$0xff]  }
 0x121   : > { %6911 = vmatpush3.bf16.msra.mxu0 %v7475_v62  ;;  %v7510_v62 = vld [vmem:[%s9972_s1 + $0x950] ss:$12 sps:$4 sm:$0xff]  }
 0x122   : > { %6912 = vmatprep.subr.bf16.mxu0 %v7479_v2  ;;  %v7515_v2 = vld [vmem:[%s9972_s1 + $0x938] ss:$12 sps:$4 sm:$0xff]  }
 0x123   : > { %2832 = vmatpush2.bf16.msra.mxu1 %v7471_v3  ;;  %v7516_v3 = vld [vmem:[%s9972_s1 + $0x918] ss:$12 sps:$4 sm:$0xff]  }
 0x124   : > { %2833 = vmatprep.subr.bf16.mxu1 %v7478_v4  ;;  %v7519_v4 = vld [vmem:[%s9972_s1 + $0x9e0] ss:$12 sps:$4 sm:$0xff]  }
 0x125   : > { %6913 = vmatpush3.bf16.msra.mxu0 %v7480_v6  ;;  %v7523_v6 = vld [vmem:[%s9972_s1 + $0x904] ss:$12 sps:$4 sm:$0xff]  }
 0x126   : > { %6914 = vmatprep.subr.bf16.mxu0 %v7484_v7  ;;  %v2895_v7 = vld [vmem:[%s8022_s18 + $0x10] sm:$0xfc] }
 0x127   : > { %2834 = vmatpush2.bf16.msra.mxu1 %v7476_v14  ;;  %v3333_v14 = vpack.c.bf16 %v8858_v5, %v3329_v10  ;;  %v2901_v18 = vpack.c.bf16 %v8976_v8, %v2895_v7  ;;  %v7567_v7 = vld [vmem:[%s9972_s1 + $0xa9c] ss:$12 sps:$4 sm:$0xff]   ;;  %v7565_v10 = vld [vmem:[%s9972_s1 + $0xa98] ss:$12 sps:$4 sm:$0xff]  }
 0x128   : > { %2835 = vmatprep.subr.bf16.mxu1 %v7483_v15  ;;  %v3335_v15 = vpack.c.bf16 %v3331_v11, %v3331_v11  ;;  %v7568_v11 = vld [vmem:[%s9972_s1 + $0x9c0] ss:$12 sps:$4 sm:$0xff]  }
 0x129   : > { %6915 = vmatpush3.bf16.msra.mxu0 %v7485_v16  ;;  %v7524_v16 = vld [vmem:[%s9972_s1 + $0x9c8] ss:$12 sps:$4 sm:$0xff]   ;;  %v3420_v21 = vshrl.u32 %v3333_v14, 16  ;;  %v3423_v22 = vshll.u32 %v3333_v14, 16  ;;  %v7577_v14 = vld [vmem:[%s9972_s1 + $0xbf0] ss:$12 sps:$4 sm:$0xff]  }
 0x12a   : > { %3238 = vmatprep.subr.bf16.mxu0 %v7488_v20  ;;  %v2903_v20 = vpack.c.bf16 %v2899_v9, %v2899_v9  ;;  %v7570_v9 = vld [vmem:[%s9972_s1 + $0x9c4] ss:$12 sps:$4 sm:$0xff]  }
 0x12b   : > { %2836 = vmatpush2.bf16.msra.mxu1 %v7481_v23  ;;  %v3428_v23 = vshrl.u32 %v3335_v15, 16 }
 0x12c   : > { %2881 = vmatmul.mubr.bf16.vlgmr.msra.gmra.mxu0 %v2529_v25  ;;  %6922 = vmatprep.subr.bf16.mxu1 %v7489_v26  ;;  %v1067_v41 = vpop.f32.mrf.mxu1  ;;  %v7526_v26 = vld [vmem:[%s9972_s1 + $0xa68] ss:$12 sps:$4 sm:$0xff]  }
 0x12d   : > { %3239 = vmatpush1.bf16.msra.mxu0 %v7486_v24  ;;  %3270 = vmatprep.mubr.bf16.mxu0 %v2979_v39  ;;  %v8912_v44 = vadd.f32 %v1067_v41, %v727_v29  ;;  %v3431_v24 = vshll.u32 %v3335_v15, 16  ;;  %v3425_v29 = vrot.slane %v3423_v22, 2  ;;  %v3430_v30 = vrot.slane %v3428_v23, 1  ;;  %v7571_v15 = vld [vmem:[%s9972_s1 + $0xa80] ss:$12 sps:$4 sm:$0xff]  }
 0x12e   : > { %3240 = vmatprep.subr.bf16.mxu0 %v7493_v27  ;;  %2838 = vmatmul.mubr.bf16.vlgmr.msra.gmra.mxu1 %v2529_v25  ;;  %v1069_v47 = vpop.f32.mrf.mxu1  ;;  %v7525_v25 = vld [vmem:[%s9972_s1 + $0x908] ss:$12 sps:$4 sm:$0xff]   ;;  %v3422_v27 = vrot.slane %v3420_v21, 1 }
 0x12f   : > { %6923 = vmatpush3.bf16.msra.mxu1 %v7490_v33  ;;  %v8920_v49 = vadd.f32 %v1069_v47, %v729_v36  ;;  %3313 = vmatprep.mubr.bf16.mxu1 %v2979_v39  ;;  %v3433_v31 = vrot.slane %v3431_v24, 2  ;;  %v2974_v33 = vrot.slane %v2901_v18, 1  ;;  %v7534_v36 = vld [vmem:[%s9972_s1 + $0xa54] ss:$12 sps:$4 sm:$0xff]   ;;  %v7532_v39 = vld [vmem:[%s9972_s1 + $0xa50] ss:$12 sps:$4 sm:$0xff]  }
 0x130   : > { %6924 = vmatprep.subr.bf16.mxu1 %v7494_v35  ;;  %v1071_v51 = vpop.f32.mrf.mxu1  ;;  %v7531_v35 = vld [vmem:[%s9972_s1 + $0xb2c] ss:$12 sps:$4 sm:$0xff]   ;;  %v3426_v41 = vor.u32 %v3425_v29, %v3422_v27  ;;  %v7535_v47 = vld [vmem:[%s9972_s1 + $0xb10] ss:$12 sps:$4 sm:$0xff]   ;;  %v7574_v22 = vld [vmem:[%s9972_s1 + $0xbe8] ss:$12 sps:$4 sm:$0xff]  }
 0x131   : > { %3241 = vmatpush1.bf16.msra.mxu0 %v7491_v34  ;;  %v8928_v53 = vadd.f32 %v1071_v51, %v731_v46  ;;  %v2975_v34 = vrot.slane %v2903_v20, 1  ;;  %v7540_v46 = vld [vmem:[%s9972_s1 + $0xa3c] ss:$12 sps:$4 sm:$0xff]   ;;  %v7582_v20 = vld [vmem:[%s9972_s1 + $0xbd8] ss:$12 sps:$4 sm:$0xff]  }
 0x132   : > { %3242 = vmatprep.subr.bf16.mxu0 %v7498_v37  ;;  %v1073_v56 = vpop.f32.mrf.mxu1  ;;  %v7529_v37 = vld [vmem:[%s9972_s1 + $0xb28] ss:$12 sps:$4 sm:$0xff]   ;;  %v7579_v27 = vld [vmem:[%s9972_s1 + $0xbd0] ss:$12 sps:$4 sm:$0xff]  }
 0x133   : > { %6925 = vmatpush3.bf16.msra.mxu1 %v7495_v42  ;;  %v8936_v58 = vadd.f32 %v1073_v56, %v733_v55  ;;  %v3434_v42 = vor.u32 %v3433_v31, %v3430_v30  ;;  %v7543_v51 = vld [vmem:[%s9972_s1 + $0xafc] ss:$12 sps:$4 sm:$0xff]   ;;  %v7544_v55 = vld [vmem:[%s9972_s1 + $0xa20] ss:$12 sps:$4 sm:$0xff]   ;;  %v7549_v56 = vld [vmem:[%s9972_s1 + $0xae4] ss:$12 sps:$4 sm:$0xff]  }
 0x134   : > { %6926 = vmatprep.subr.bf16.mxu1 %v7499_v45  ;;  %v7537_v45 = vld [vmem:[%s9972_s1 + $0xb14] ss:$12 sps:$4 sm:$0xff]   ;;  %v7586_v29 = vld [vmem:[%s9972_s1 + $0xbbc] ss:$12 sps:$4 sm:$0xff]  }
 0x135   : > { %3243 = vmatpush1.bf16.msra.mxu0 %v7496_v43  ;;  %v9014_v43 = vsel %vm1196_vm0, %v2974_v33, %v2975_v34  ;;  %v7581_v23 = vld [vmem:[%s9972_s1 + $0xbd4] ss:$12 sps:$4 sm:$0xff]   ;;  %v7584_v33 = vld [vmem:[%s9972_s1 + $0xbb8] ss:$12 sps:$4 sm:$0xff]  }
 0x136   : > { %3244 = vmatprep.subr.bf16.mxu0 %v7503_v48  ;;  %v9027_v48 = vsel %vm3401_vm4, %v3426_v41, %v3434_v42  ;;  %v7592_v30 = vld [vmem:[%s9972_s1 + $0xba8] ss:$12 sps:$4 sm:$0xff]   ;;  %v7589_v41 = vld [vmem:[%s9972_s1 + $0xba0] ss:$12 sps:$4 sm:$0xff]   ;;  %v7598_v42 = vld [vmem:[%s9972_s1 + $0xad0] ss:$12 sps:$4 sm:$0xff]  }
 0x137   : > { %6927 = vmatpush3.bf16.msra.mxu1 %v7500_v50  ;;  %v7538_v50 = vld [vmem:[%s9972_s1 + $0xa38] ss:$12 sps:$4 sm:$0xff]   ;;  %v3328_v31 = vld [vmem:[%s8022_s18 + $0x10] sm:$0xf8] }
 0x138   : > { %6928 = vmatprep.subr.bf16.mxu1 %v7504_v54  ;;  %v7541_v54 = vld [vmem:[%s9972_s1 + $0xaf8] ss:$12 sps:$4 sm:$0xff]   ;;  %v7593_v34 = vld [vmem:[%s9972_s1 + $0xae8] ss:$12 sps:$4 sm:$0xff]  }
 0x139   : > { %3245 = vmatpush1.bf16.msra.mxu0 %v7501_v52  ;;  %v7546_v52 = vld [vmem:[%s9972_s1 + $0xa24] ss:$12 sps:$4 sm:$0xff]  }
 0x13a   : > { %3246 = vmatprep.subr.bf16.mxu0 %v7508_v57  ;;  %v7552_v57 = vld [vmem:[%s9972_s1 + $0xa0c] ss:$12 sps:$4 sm:$0xff]  }
 0x13b   : > { %6929 = vmatpush3.bf16.msra.mxu1 %v7505_v59  ;;  %v7547_v59 = vld [vmem:[%s9972_s1 + $0xae0] ss:$12 sps:$4 sm:$0xff]  }
 0x13c   : > { %6930 = vmatprep.subr.bf16.mxu1 %v7509_v60  ;;  %v7555_v60 = vld [vmem:[%s9972_s1 + $0xacc] ss:$12 sps:$4 sm:$0xff]  }
 0x13d   : > { %3247 = vmatpush1.bf16.msra.mxu0 %v7506_v40  ;;  %v7550_v40 = vld [vmem:[%s9972_s1 + $0xa08] ss:$12 sps:$4 sm:$0xff]  }
 0x13e   : > { %3248 = vmatprep.subr.bf16.mxu0 %v7513_v61  ;;  %v7558_v61 = vld [vmem:[%s9972_s1 + $0x9f4] ss:$12 sps:$4 sm:$0xff]  }
 0x13f   : > { %6931 = vmatpush3.bf16.msra.mxu1 %v7510_v62  ;;  %v7553_v62 = vld [vmem:[%s9972_s1 + $0xac8] ss:$12 sps:$4 sm:$0xff]  }
 0x140   : > { %6932 = vmatprep.subr.bf16.mxu1 %v7514_v0  ;;  %v7561_v0 = vld [vmem:[%s9972_s1 + $0xab4] ss:$12 sps:$4 sm:$0xff]  }
 0x141   : > { %3249 = vmatpush1.bf16.msra.mxu0 %v7511_v63  ;;  %v7556_v63 = vld [vmem:[%s9972_s1 + $0x9f0] ss:$12 sps:$4 sm:$0xff]  }
 0x142   : > { %3250 = vmatprep.subr.bf16.mxu0 %v7518_v1  ;;  %v9072_v1 = vpop.f32.mrf.mxu0 }
 0x143   : > { %6933 = vmatpush3.bf16.msra.mxu1 %v7515_v2  ;;  %v7564_v2 = vld [vmem:[%s9972_s1 + $0x9dc] ss:$12 sps:$4 sm:$0xff]  }
 0x144   : > { %6934 = vmatprep.subr.bf16.mxu1 %v7519_v4  ;;  %v7562_v4 = vld [vmem:[%s9972_s1 + $0x9d8] ss:$12 sps:$4 sm:$0xff]  }
 0x145   : > { %3251 = vmatpush1.bf16.msra.mxu0 %v7516_v3  ;;  %v7559_v3 = vld [vmem:[%s9972_s1 + $0xab0] ss:$12 sps:$4 sm:$0xff]  }
 0x146   : > { %3252 = vmatprep.subr.bf16.mxu0 %v7523_v6  ;;  %v9083_v6 = vpop.f32.mrf.mxu0 }
 0x147   : > { %6935 = vmatpush3.bf16.msra.mxu1 %v7520_v12 }
 0x148   : > { %6936 = vmatprep.subr.bf16.mxu1 %v7524_v16  ;;  %v9097_v12 = vpop.f32.mrf.mxu0  ;;  %v7576_v16 = vld [vmem:[%s9972_s1 + $0xbec] ss:$12 sps:$4 sm:$0xff]  }
 0x149   : > { %3253 = vmatpush1.bf16.msra.mxu0 %v7521_v13  ;;  %v7573_v13 = vld [vmem:[%s9972_s1 + $0xa84] ss:$12 sps:$4 sm:$0xff]  }
 0x14a   : > { %3254 = vmatprep.subr.bf16.mxu0 %v7528_v17  ;;  %v7578_v17 = vld [vmem:[%s9972_s1 + $0xb30] ss:$12 sps:$4 sm:$0xff]   ;;  %v9114_v18 = vpop.f32.mrf.mxu0 }
 0x14b   : > { %6937 = vmatpush3.bf16.msra.mxu1 %v7525_v25  ;;  %v7583_v25 = vld [vmem:[%s9972_s1 + $0xb18] ss:$12 sps:$4 sm:$0xff]  }
 0x14c   : > { %3694 = vmatprep.subr.bf16.mxu1 %v7531_v35  ;;  %v3330_v35 = vld [vmem:[%s8022_s18 + $0x30] sm:$0x3] }
 0x14d   : > { %3255 = vmatpush2.bf16.msra.mxu0 %v7526_v26  ;;  %v7587_v26 = vld [vmem:[%s9972_s1 + $0xbc0] ss:$12 sps:$4 sm:$0xff]  }
 0x14e   : > { %3256 = vmatprep.subr.bf16.mxu0 %v7534_v36  ;;  %3314 = vmatmul.mubr.bf16.vlgmr.msra.gmra.mxu1 %v9014_v43  ;;  %v7591_v36 = vld [vmem:[%s9972_s1 + $0xba4] ss:$12 sps:$4 sm:$0xff]  }
 0x14f   : > { %3695 = vmatpush1.bf16.msra.mxu1 %v7529_v37  ;;  %3726 = vmatprep.mubr.bf16.mxu1 %v9027_v48  ;;  %v7597_v37 = vld [vmem:[%s9972_s1 + $0xb90] ss:$12 sps:$4 sm:$0xff]  }
 0x150   : > { %3696 = vmatprep.subr.bf16.mxu1 %v7537_v45  ;;  %v7602_v45 = vld [vmem:[%s9972_s1 + $0xb78] ss:$12 sps:$4 sm:$0xff]  }
 0x151   : > { %3257 = vmatpush2.bf16.msra.mxu0 %v7532_v39  ;;  %v3332_v39 = vpack.c.bf16 %v8976_v8, %v3328_v31  ;;  %v7626_v31 = vld [vmem:[%s9972_s1 + $0xc7c] ss:$12 sps:$4 sm:$0xff]  }
 0x152   : > { %3258 = vmatprep.subr.bf16.mxu0 %v7540_v46  ;;  %v3334_v46 = vpack.c.bf16 %v3330_v35, %v3330_v35  ;;  %v7623_v35 = vld [vmem:[%s9972_s1 + $0xc98] ss:$12 sps:$4 sm:$0xff]  }
 0x153   : > { %3697 = vmatpush1.bf16.msra.mxu1 %v7535_v47  ;;  %v3403_v47 = vshrl.u32 %v3332_v39, 16 }
 0x154   : > { %3698 = vmatprep.subr.bf16.mxu1 %v7543_v51  ;;  %v3406_v51 = vshll.u32 %v3332_v39, 16  ;;  %v7627_v39 = vld [vmem:[%s9972_s1 + $0xd40] ss:$12 sps:$4 sm:$0xff]  }
 0x155   : > { %3259 = vmatpush2.bf16.msra.mxu0 %v7538_v50  ;;  %v7603_v50 = vld [vmem:[%s9972_s1 + $0xab8] ss:$12 sps:$4 sm:$0xff]  }
 0x156   : > { %3260 = vmatprep.subr.bf16.mxu0 %v7546_v52  ;;  %v7601_v52 = vld [vmem:[%s9972_s1 + $0xb74] ss:$12 sps:$4 sm:$0xff]  }
 0x157   : > { %3699 = vmatpush1.bf16.msra.mxu1 %v7541_v54  ;;  %v7607_v54 = vld [vmem:[%s9972_s1 + $0xb60] ss:$12 sps:$4 sm:$0xff]  }
 0x158   : > { %3700 = vmatprep.subr.bf16.mxu1 %v7549_v56  ;;  %v3414_v56 = vshll.u32 %v3334_v46, 16 }
 0x159   : > { %3261 = vmatpush2.bf16.msra.mxu0 %v7544_v55  ;;  %v3411_v55 = vshrl.u32 %v3334_v46, 16  ;;  %v7636_v46 = vld [vmem:[%s9972_s1 + $0xc4c] ss:$12 sps:$4 sm:$0xff]  }
 0x15a   : > { %3262 = vmatprep.subr.bf16.mxu0 %v7552_v57  ;;  %v3785_v57 = vld [vmem:[%s8022_s18 + $0x18] sm:$0xf0] }
 0x15b   : > { %3701 = vmatpush1.bf16.msra.mxu1 %v7547_v59  ;;  %v3405_v59 = vrot.slane %v3403_v47, 1  ;;  %v7633_v47 = vld [vmem:[%s9972_s1 + $0xc68] ss:$12 sps:$4 sm:$0xff]  }
 0x15c   : > { %3702 = vmatprep.subr.bf16.mxu1 %v7555_v60  ;;  %v7599_v60 = vld [vmem:[%s9972_s1 + $0xb70] ss:$12 sps:$4 sm:$0xff]  }
 0x15d   : > { %3263 = vmatpush2.bf16.msra.mxu0 %v7550_v40  ;;  %v3787_v40 = vld [vmem:[%s8022_s18 + $0x38] sm:$0x7] }
 0x15e   : > { %3264 = vmatprep.subr.bf16.mxu0 %v7558_v61  ;;  %v7608_v61 = vld [vmem:[%s9972_s1 + $0xaa0] ss:$12 sps:$4 sm:$0xff]  }
 0x15f   : > { %3703 = vmatpush1.bf16.msra.mxu1 %v7553_v62  ;;  %v3408_v62 = vrot.slane %v3406_v51, 2  ;;  %v7641_v51 = vld [vmem:[%s9972_s1 + $0xc34] ss:$12 sps:$4 sm:$0xff]  }
 0x160   : > { %3704 = vmatprep.subr.bf16.mxu1 %v7561_v0  ;;  %v7612_v0 = vld [vmem:[%s9972_s1 + $0xb48] ss:$12 sps:$4 sm:$0xff]  }
 0x161   : > { %3265 = vmatpush2.bf16.msra.mxu0 %v7556_v63  ;;  %v7606_v63 = vld [vmem:[%s9972_s1 + $0xb5c] ss:$12 sps:$4 sm:$0xff]  }
 0x162   : > { %3266 = vmatprep.subr.bf16.mxu0 %v7564_v2  ;;  %v3413_v2 = vrot.slane %v3411_v55, 1  ;;  %v7638_v55 = vld [vmem:[%s9972_s1 + $0xc50] ss:$12 sps:$4 sm:$0xff]  }
 0x163   : > { %3705 = vmatpush1.bf16.msra.mxu1 %v7559_v3  ;;  %v3416_v3 = vrot.slane %v3414_v56, 2  ;;  %v7639_v56 = vld [vmem:[%s9972_s1 + $0xc30] ss:$12 sps:$4 sm:$0xff]  }
 0x164   : > { %3706 = vmatprep.subr.bf16.mxu1 %v7567_v7  ;;  %v3789_v7 = vpack.c.bf16 %v8858_v5, %v3785_v57  ;;  %v3409_v5 = vor.u32 %v3408_v62, %v3405_v59  ;;  %v7642_v57 = vld [vmem:[%s9972_s1 + $0xcf8] ss:$12 sps:$4 sm:$0xff]   ;;  %v7646_v59 = vld [vmem:[%s9972_s1 + $0xc1c] ss:$12 sps:$4 sm:$0xff]  }
 0x165   : > { %3267 = vmatpush2.bf16.msra.mxu0 %v7562_v4  ;;  %v9201_v4 = vpop.f32.mrf.mxu1  ;;  %v7644_v62 = vld [vmem:[%s9972_s1 + $0xc18] ss:$12 sps:$4 sm:$0xff]  }
 0x166   : > { %3268 = vmatprep.subr.bf16.mxu0 %v7570_v9  ;;  %v7604_v9 = vld [vmem:[%s9972_s1 + $0xb58] ss:$12 sps:$4 sm:$0xff]  }
 0x167   : > { %3707 = vmatpush1.bf16.msra.mxu1 %v7565_v10  ;;  %v7613_v10 = vld [vmem:[%s9972_s1 + $0xa88] ss:$12 sps:$4 sm:$0xff]  }
 0x168   : > { %3708 = vmatprep.subr.bf16.mxu1 %v7573_v13  ;;  %v7611_v13 = vld [vmem:[%s9972_s1 + $0xb44] ss:$12 sps:$4 sm:$0xff]  }
 0x169   : > { %3269 = vmatpush2.bf16.msra.mxu0 %v7568_v11  ;;  %v3791_v11 = vpack.c.bf16 %v3787_v40, %v3787_v40 }
 0x16a   : > { %6944 = vmatprep.subr.bf16.mxu0 %v7577_v14  ;;  %v7616_v14 = vld [vmem:[%s9972_s1 + $0xcac] ss:$12 sps:$4 sm:$0xff]  }
 0x16b   : > { %3709 = vmatpush1.bf16.msra.mxu1 %v7571_v15  ;;  %v3417_v15 = vor.u32 %v3416_v3, %v3413_v2  ;;  %v7648_v3 = vld [vmem:[%s9972_s1 + $0xc20] ss:$12 sps:$4 sm:$0xff]  }
 0x16c   : > { %v1495_v21 = vpop.f32.mrf.mxu0  ;;  %3271 = vmatmul.mubr.bf16.vlgmr.msra.gmra.mxu0 %v9014_v43  ;;  %3710 = vmatprep.subr.bf16.mxu1 %v7576_v16  ;;  %v7596_v43 = vld [vmem:[%s9972_s1 + $0xb8c] ss:$12 sps:$4 sm:$0xff]   ;;  %v9216_v16 = vpop.f32.mrf.mxu1 }
 0x16d   : > { %v9127_v24 = vadd.f32 %v1495_v21, %v8912_v44  ;;  %6945 = vmatpush3.bf16.msra.mxu0 %v7578_v17  ;;  %v7588_v44 = vld [vmem:[%s9972_s1 + $0xb00] ss:$12 sps:$4 sm:$0xff]   ;;  %3769 = vmatprep.mubr.bf16.mxu0 %v9027_v48  ;;  %v7594_v48 = vld [vmem:[%s9972_s1 + $0xb88] ss:$12 sps:$4 sm:$0xff]   ;;  %v3865_v17 = vrot.slane %v3789_v7, 2 }
 0x16e   : > { %6946 = vmatprep.subr.bf16.mxu0 %v7582_v20  ;;  %v7609_v20 = vld [vmem:[%s9972_s1 + $0xb40] ss:$12 sps:$4 sm:$0xff]   ;;  %v7614_v21 = vld [vmem:[%s9972_s1 + $0xca8] ss:$12 sps:$4 sm:$0xff]  }
 0x16f   : > { %3711 = vmatpush2.bf16.msra.mxu1 %v7574_v22  ;;  %v3866_v22 = vrot.slane %v3791_v11, 2  ;;  %v7649_v7 = vld [vmem:[%s9972_s1 + $0xc00] ss:$12 sps:$4 sm:$0xff]   ;;  %v7653_v11 = vld [vmem:[%s9972_s1 + $0xc08] ss:$12 sps:$4 sm:$0xff]  }
 0x170   : > { %3712 = vmatprep.subr.bf16.mxu1 %v7581_v23  ;;  %v7617_v23 = vld [vmem:[%s9972_s1 + $0xd70] ss:$12 sps:$4 sm:$0xff]  }
 0x171   : > { %6947 = vmatpush3.bf16.msra.mxu0 %v7583_v25  ;;  %v7621_v25 = vld [vmem:[%s9972_s1 + $0xc94] ss:$12 sps:$4 sm:$0xff]  }
 0x172   : > { %6948 = vmatprep.subr.bf16.mxu0 %v7587_v26  ;;  %v3418_v26 = vsel %vm3401_vm4, %v3409_v5, %v3417_v15  ;;  %v7657_v5 = vld [vmem:[%s9972_s1 + $0xd50] ss:$12 sps:$4 sm:$0xff]  }
 0x173   : > { %3713 = vmatpush2.bf16.msra.mxu1 %v7579_v27  ;;  %v9231_v27 = vpop.f32.mrf.mxu1 }
 0x174   : > { %3714 = vmatprep.subr.bf16.mxu1 %v7586_v29  ;;  %v7619_v29 = vld [vmem:[%s9972_s1 + $0xc90] ss:$12 sps:$4 sm:$0xff]  }
 0x175   : > { %6949 = vmatpush3.bf16.msra.mxu0 %v7588_v44  ;;  %v7618_v44 = vld [vmem:[%s9972_s1 + $0xcb0] ss:$12 sps:$4 sm:$0xff]  }
 0x176   : > { %6950 = vmatprep.subr.bf16.mxu0 %v7592_v30  ;;  %v7622_v30 = vld [vmem:[%s9972_s1 + $0xd58] ss:$12 sps:$4 sm:$0xff]  }
 0x177   : > { %3715 = vmatpush2.bf16.msra.mxu1 %v7584_v33  ;;  %v9245_v33 = vpop.f32.mrf.mxu1 }
 0x178   : > { %3716 = vmatprep.subr.bf16.mxu1 %v7591_v36  ;;  %v7624_v36 = vld [vmem:[%s9972_s1 + $0xc78] ss:$12 sps:$4 sm:$0xff]  }
 0x179   : > { %6951 = vmatpush3.bf16.msra.mxu0 %v7593_v34  ;;  %v3867_v34 = vsel %vm3861_vm5, %v3865_v17, %v3866_v22  ;;  %v7662_v17 = vld [vmem:[%s9972_s1 + $0xd3c] ss:$12 sps:$4 sm:$0xff]   ;;  %v7663_v22 = vld [vmem:[%s9972_s1 + $0xd20] ss:$12 sps:$4 sm:$0xff]  }
 0x17a   : > { %6952 = vmatprep.subr.bf16.mxu0 %v7597_v37 }
 0x17b   : > { %3717 = vmatpush2.bf16.msra.mxu1 %v7589_v41  ;;  %v7631_v41 = vld [vmem:[%s9972_s1 + $0xc64] ss:$12 sps:$4 sm:$0xff]  }
 0x17c   : > { %3718 = vmatprep.subr.bf16.mxu1 %v7596_v43  ;;  %v7628_v43 = vld [vmem:[%s9972_s1 + $0xc80] ss:$12 sps:$4 sm:$0xff]  }
 0x17d   : > { %6953 = vmatpush3.bf16.msra.mxu0 %v7598_v42 }
 0x17e   : > { %6954 = vmatprep.subr.bf16.mxu0 %v7602_v45  ;;  %v7629_v45 = vld [vmem:[%s9972_s1 + $0xc60] ss:$12 sps:$4 sm:$0xff]  }
 0x17f   : > { %3719 = vmatpush2.bf16.msra.mxu1 %v7594_v48  ;;  %v7634_v48 = vld [vmem:[%s9972_s1 + $0xc48] ss:$12 sps:$4 sm:$0xff]  }
 0x180   : > { %3720 = vmatprep.subr.bf16.mxu1 %v7601_v52  ;;  %v3784_v52 = vld [vmem:[%s8022_s18 + $0x10] sm:$0xf0] }
 0x181   : > { %6955 = vmatpush3.bf16.msra.mxu0 %v7603_v50  ;;  %v7637_v50 = vld [vmem:[%s9972_s1 + $0xd10] ss:$12 sps:$4 sm:$0xff]   ;;  %v3788_v40 = vpack.c.bf16 %v8976_v8, %v3784_v52 }
 0x182   : > { %6956 = vmatprep.subr.bf16.mxu0 %v7607_v54  ;;  %v3786_v54 = vld [vmem:[%s8022_s18 + $0x30] sm:$0x7] }
 0x183   : > { %3721 = vmatpush2.bf16.msra.mxu1 %v7599_v60  ;;  %v3790_v60 = vpack.c.bf16 %v3786_v54, %v3786_v54  ;;  %v3862_v8 = vrot.slane %v3788_v40, 2  ;;  %v7701_v52 = vld [vmem:[%s9974_s3 + $0x1e4] ss:$12 sps:$4 sm:$0xff]   ;;  %v7696_v54 = vld [vmem:[%s9974_s3 + $0x60] ss:$12 sps:$4 sm:$0xff]  }
 0x184   : > { %3722 = vmatprep.subr.bf16.mxu1 %v7606_v63  ;;  %v7647_v63 = vld [vmem:[%s9972_s1 + $0xce0] ss:$12 sps:$4 sm:$0xff]   ;;  %v7705_v40 = vld [vmem:[%s9974_s3 + $0x1c8] ss:$12 sps:$4 sm:$0xff]  }
 0x185   : > { %6957 = vmatpush3.bf16.msra.mxu0 %v7608_v61  ;;  %v7643_v61 = vld [vmem:[%s9972_s1 + $0xc38] ss:$12 sps:$4 sm:$0xff]   ;;  %v3863_v2 = vrot.slane %v3790_v60, 2  ;;  %v7710_v60 = vld [vmem:[%s9974_s3 + $0x34] ss:$12 sps:$4 sm:$0xff]  }
 0x186   : > { %6958 = vmatprep.subr.bf16.mxu0 %v7612_v0  ;;  %v7651_v0 = vld [vmem:[%s9972_s1 + $0xc04] ss:$12 sps:$4 sm:$0xff]  }
 0x187   : > { %3723 = vmatpush2.bf16.msra.mxu1 %v7604_v9  ;;  %v7652_v9 = vld [vmem:[%s9972_s1 + $0xcc8] ss:$12 sps:$4 sm:$0xff]   ;;  %v3864_v15 = vsel %vm3861_vm5, %v3862_v8, %v3863_v2  ;;  %v7714_v8 = vld [vmem:[%s9974_s3 + $0x18] ss:$12 sps:$4 sm:$0xff]  }
 0x188   : > { %3724 = vmatprep.subr.bf16.mxu1 %v7611_v13  ;;  %v7654_v13 = vld [vmem:[%s9972_s1 + $0xd68] ss:$12 sps:$4 sm:$0xff]  }
 0x189   : > { %6959 = vmatpush3.bf16.msra.mxu0 %v7613_v10  ;;  %v7656_v10 = vld [vmem:[%s9972_s1 + $0xd6c] ss:$12 sps:$4 sm:$0xff]   ;;  %v7719_v2 = vld [vmem:[%s9974_s3 + $0x19c] ss:$12 sps:$4 sm:$0xff]  }
 0x18a   : > { %4126 = vmatprep.subr.bf16.mxu0 %v7616_v14  ;;  %v7659_v14 = vld [vmem:[%s9972_s1 + $0xd54] ss:$12 sps:$4 sm:$0xff]  }
 0x18b   : > { %3725 = vmatpush2.bf16.msra.mxu1 %v7609_v20  ;;  %v7660_v20 = vld [vmem:[%s9972_s1 + $0xd38] ss:$12 sps:$4 sm:$0xff]  }
 0x18c   : > { %3770 = vmatmul.mubr.bf16.vlgmr.msra.gmra.mxu0 %v3418_v26  ;;  %6966 = vmatprep.subr.bf16.mxu1 %v7617_v23  ;;  %v7668_v23 = vld [vmem:[%s9972_s1 + $0xd0c] ss:$12 sps:$4 sm:$0xff]  }
 0x18d   : > { %4127 = vmatpush1.bf16.msra.mxu0 %v7614_v21  ;;  %4158 = vmatprep.mubr.bf16.mxu0 %v3867_v34  ;;  %v7665_v21 = vld [vmem:[%s9972_s1 + $0xd24] ss:$12 sps:$4 sm:$0xff]  }
 0x18e   : > { %4128 = vmatprep.subr.bf16.mxu0 %v7621_v25  ;;  %v1951_v37 = vpop.f32.mrf.mxu1  ;;  %3727 = vmatmul.mubr.bf16.vlgmr.msra.gmra.mxu1 %v3418_v26  ;;  %v7666_v25 = vld [vmem:[%s9972_s1 + $0xd08] ss:$12 sps:$4 sm:$0xff]  }
 0x18f   : > { %v9261_v42 = vadd.f32 %v1951_v37, %v9127_v24  ;;  %6967 = vmatpush3.bf16.msra.mxu1 %v7618_v44  ;;  %4201 = vmatprep.mubr.bf16.mxu1 %v3867_v34  ;;  %v7632_v24 = vld [vmem:[%s9972_s1 + $0xd28] ss:$12 sps:$4 sm:$0xff]   ;;  %v7669_v44 = vld [vmem:[%s9972_s1 + $0xcf0] ss:$12 sps:$4 sm:$0xff]   ;;  %v7675_v34 = vld [vmem:[%s9972_s1 + $0xcc0] ss:$12 sps:$4 sm:$0xff]  }
 0x190   : > { %6968 = vmatprep.subr.bf16.mxu1 %v7622_v30  ;;  %v7671_v26 = vld [vmem:[%s9972_s1 + $0xcf4] ss:$12 sps:$4 sm:$0xff]   ;;  %v7672_v30 = vld [vmem:[%s9972_s1 + $0xcd8] ss:$12 sps:$4 sm:$0xff]  }
 0x191   : > { %4129 = vmatpush1.bf16.msra.mxu0 %v7619_v29  ;;  %v7674_v29 = vld [vmem:[%s9972_s1 + $0xcdc] ss:$12 sps:$4 sm:$0xff]  }
 0x192   : > { %4130 = vmatprep.subr.bf16.mxu0 %v7626_v31  ;;  %v7677_v31 = vld [vmem:[%s9972_s1 + $0xcc4] ss:$12 sps:$4 sm:$0xff]   ;;  %v7681_v37 = vld [vmem:[%s9974_s3 + $0x228] ss:$12 sps:$4 sm:$0xff]  }
 0x193   : > { %6969 = vmatpush3.bf16.msra.mxu1 %v7623_v35  ;;  %v7678_v35 = vld [vmem:[%s9974_s3 + $0xa8] ss:$12 sps:$4 sm:$0xff]  }
 0x194   : > { %6970 = vmatprep.subr.bf16.mxu1 %v7627_v39  ;;  %v7683_v39 = vld [vmem:[%s9974_s3 + $0x22c] ss:$12 sps:$4 sm:$0xff]  }
 0x195   : > { %4131 = vmatpush1.bf16.msra.mxu0 %v7624_v36  ;;  %v7680_v36 = vld [vmem:[%s9974_s3 + $0xac] ss:$12 sps:$4 sm:$0xff]  }
 0x196   : > { %4132 = vmatprep.subr.bf16.mxu0 %v7631_v41  ;;  %v7686_v41 = vld [vmem:[%s9974_s3 + $0x94] ss:$12 sps:$4 sm:$0xff]  }
 0x197   : > { %6971 = vmatpush3.bf16.msra.mxu1 %v7628_v43  ;;  %v7689_v43 = vld [vmem:[%s9974_s3 + $0x214] ss:$12 sps:$4 sm:$0xff]  }
 0x198   : > { %6972 = vmatprep.subr.bf16.mxu1 %v7632_v24  ;;  %v7687_v24 = vld [vmem:[%s9974_s3 + $0x210] ss:$12 sps:$4 sm:$0xff]  }
 0x199   : > { %4133 = vmatpush1.bf16.msra.mxu0 %v7629_v45  ;;  %v7684_v45 = vld [vmem:[%s9974_s3 + $0x90] ss:$12 sps:$4 sm:$0xff]  }
 0x19a   : > { %4134 = vmatprep.subr.bf16.mxu0 %v7636_v46  ;;  %v7692_v46 = vld [vmem:[%s9974_s3 + $0x7c] ss:$12 sps:$4 sm:$0xff]  }
 0x19b   : > { %6973 = vmatpush3.bf16.msra.mxu1 %v7633_v47  ;;  %v7695_v47 = vld [vmem:[%s9974_s3 + $0x1fc] ss:$12 sps:$4 sm:$0xff]  }
 0x19c   : > { %6974 = vmatprep.subr.bf16.mxu1 %v7637_v50  ;;  %v7693_v50 = vld [vmem:[%s9974_s3 + $0x1f8] ss:$12 sps:$4 sm:$0xff]  }
 0x19d   : > { %4135 = vmatpush1.bf16.msra.mxu0 %v7634_v48  ;;  %v7690_v48 = vld [vmem:[%s9974_s3 + $0x78] ss:$12 sps:$4 sm:$0xff]  }
 0x19e   : > { %4136 = vmatprep.subr.bf16.mxu0 %v7641_v51  ;;  %v7698_v51 = vld [vmem:[%s9974_s3 + $0x64] ss:$12 sps:$4 sm:$0xff]  }
 0x19f   : > { %6975 = vmatpush3.bf16.msra.mxu1 %v7638_v55  ;;  %v7699_v55 = vld [vmem:[%s9974_s3 + $0x1e0] ss:$12 sps:$4 sm:$0xff]  }
 0x1a0   : > { %6976 = vmatprep.subr.bf16.mxu1 %v7642_v57  ;;  %v7702_v57 = vld [vmem:[%s9974_s3 + $0x48] ss:$12 sps:$4 sm:$0xff]  }
 0x1a1   : > { %4137 = vmatpush1.bf16.msra.mxu0 %v7639_v56  ;;  %v7704_v56 = vld [vmem:[%s9974_s3 + $0x4c] ss:$12 sps:$4 sm:$0xff]  }
 0x1a2   : > { %4138 = vmatprep.subr.bf16.mxu0 %v7646_v59  ;;  %v7707_v59 = vld [vmem:[%s9974_s3 + $0x1cc] ss:$12 sps:$4 sm:$0xff]  }
 0x1a3   : > { %6977 = vmatpush3.bf16.msra.mxu1 %v7643_v61  ;;  %v7708_v61 = vld [vmem:[%s9974_s3 + $0x30] ss:$12 sps:$4 sm:$0xff]  }
 0x1a4   : > { %6978 = vmatprep.subr.bf16.mxu1 %v7647_v63  ;;  %v7711_v63 = vld [vmem:[%s9974_s3 + $0x1b0] ss:$12 sps:$4 sm:$0xff]  }
 0x1a5   : > { %4139 = vmatpush1.bf16.msra.mxu0 %v7644_v62  ;;  %v7713_v62 = vld [vmem:[%s9974_s3 + $0x1b4] ss:$12 sps:$4 sm:$0xff]  }
 0x1a6   : > { %4140 = vmatprep.subr.bf16.mxu0 %v7651_v0  ;;  %v7716_v0 = vld [vmem:[%s9974_s3 + $0x1c] ss:$12 sps:$4 sm:$0xff]  }
 0x1a7   : > { %6979 = vmatpush3.bf16.msra.mxu1 %v7648_v3  ;;  %v7717_v3 = vld [vmem:[%s9974_s3 + $0x198] ss:$12 sps:$4 sm:$0xff]  }
 0x1a8   : > { %6980 = vmatprep.subr.bf16.mxu1 %v7652_v9  ;;  %v7720_v9 = vld [vmem:[%s9974_s3] ss:$12 sps:$4 sm:$0xff]  }
 0x1a9   : > { %4141 = vmatpush1.bf16.msra.mxu0 %v7649_v7  ;;  %v7722_v7 = vld [vmem:[%s9974_s3 + $0x4] ss:$12 sps:$4 sm:$0xff]  }
 0x1aa   : > { %4142 = vmatprep.subr.bf16.mxu0 %v7656_v10  ;;  %v7725_v10 = vld [vmem:[%s9974_s3 + $0x184] ss:$12 sps:$4 sm:$0xff]  }
 0x1ab   : > { %6981 = vmatpush3.bf16.msra.mxu1 %v7653_v11  ;;  %v7723_v11 = vld [vmem:[%s9974_s3 + $0x180] ss:$12 sps:$4 sm:$0xff]  }
 0x1ac   : > { %4745 = vmatprep.subr.bf16.mxu1 %v7680_v36  ;;  %v7763_v36 = vld [vmem:[%s9974_s3 + $0xc4] ss:$12 sps:$4 sm:$0xff]  }
 0x1ad   : > { %4143 = vmatpush2.bf16.msra.mxu0 %v7654_v13  ;;  %v7728_v13 = vld [vmem:[%s9974_s3 + $0x16c] ss:$12 sps:$4 sm:$0xff]  }
 0x1ae   : > { %4144 = vmatprep.subr.bf16.mxu0 %v7659_v14  ;;  %4202 = vmatmul.mubr.bf16.vlgmr.msra.gmra.mxu1 %v3864_v15  ;;  %v7726_v14 = vld [vmem:[%s9974_s3 + $0x168] ss:$12 sps:$4 sm:$0xff]  }
 0x1af   : > { %4746 = vmatpush1.bf16.msra.mxu1 %v7678_v35  ;;  %v7761_v35 = vld [vmem:[%s9974_s3 + $0xc0] ss:$12 sps:$4 sm:$0xff]  }
 0x1b0   : > { %4747 = vmatprep.subr.bf16.mxu1 %v7686_v41 }
 0x1b1   : > { %4145 = vmatpush2.bf16.msra.mxu0 %v7657_v5  ;;  %v7729_v5 = vld [vmem:[%s9974_s3 + $0x170] ss:$12 sps:$4 sm:$0xff]  }
 0x1b2   : > { %4146 = vmatprep.subr.bf16.mxu0 %v7662_v17  ;;  %v7731_v17 = vld [vmem:[%s9974_s3 + $0x150] ss:$12 sps:$4 sm:$0xff]  }
 0x1b3   : > { %4748 = vmatpush1.bf16.msra.mxu1 %v7684_v45 }
 0x1b4   : > { %4749 = vmatprep.subr.bf16.mxu1 %v7692_v46 }
 0x1b5   : > { %4147 = vmatpush2.bf16.msra.mxu0 %v7660_v20  ;;  %v7733_v20 = vld [vmem:[%s9974_s3 + $0x154] ss:$12 sps:$4 sm:$0xff]  }
 0x1b6   : > { %4148 = vmatprep.subr.bf16.mxu0 %v7665_v21  ;;  %v7736_v21 = vld [vmem:[%s9974_s3 + $0x138] ss:$12 sps:$4 sm:$0xff]  }
 0x1b7   : > { %4750 = vmatpush1.bf16.msra.mxu1 %v7690_v48 }
 0x1b8   : > { %4751 = vmatprep.subr.bf16.mxu1 %v7698_v51 }
 0x1b9   : > { %4149 = vmatpush2.bf16.msra.mxu0 %v7663_v22  ;;  %v7738_v22 = vld [vmem:[%s9974_s3 + $0x13c] ss:$12 sps:$4 sm:$0xff]  }
 0x1ba   : > { %4150 = vmatprep.subr.bf16.mxu0 %v7668_v23  ;;  %v7741_v23 = vld [vmem:[%s9974_s3 + $0x120] ss:$12 sps:$4 sm:$0xff]  }
 0x1bb   : > { %4752 = vmatpush1.bf16.msra.mxu1 %v7696_v54 }
 0x1bc   : > { %4753 = vmatprep.subr.bf16.mxu1 %v7704_v56 }
 0x1bd   : > { %4151 = vmatpush2.bf16.msra.mxu0 %v7666_v25  ;;  %v7743_v25 = vld [vmem:[%s9974_s3 + $0x124] ss:$12 sps:$4 sm:$0xff]  }
 0x1be   : > { %4152 = vmatprep.subr.bf16.mxu0 %v7671_v26  ;;  %v7746_v26 = vld [vmem:[%s9974_s3 + $0x108] ss:$12 sps:$4 sm:$0xff]  }
 0x1bf   : > { %4754 = vmatpush1.bf16.msra.mxu1 %v7702_v57 }
 0x1c0   : > { %4755 = vmatprep.subr.bf16.mxu1 %v7710_v60 }
 0x1c1   : > { %4153 = vmatpush2.bf16.msra.mxu0 %v7669_v44  ;;  %v7748_v44 = vld [vmem:[%s9974_s3 + $0x10c] ss:$12 sps:$4 sm:$0xff]  }
 0x1c2   : > { %4154 = vmatprep.subr.bf16.mxu0 %v7674_v29  ;;  %v7753_v29 = vld [vmem:[%s9974_s3 + $0xf4] ss:$12 sps:$4 sm:$0xff]  }
 0x1c3   : > { %4756 = vmatpush1.bf16.msra.mxu1 %v7708_v61 }
 0x1c4   : > { %4757 = vmatprep.subr.bf16.mxu1 %v7716_v0 }
 0x1c5   : > { %4155 = vmatpush2.bf16.msra.mxu0 %v7672_v30  ;;  %v7751_v30 = vld [vmem:[%s9974_s3 + $0xf0] ss:$12 sps:$4 sm:$0xff]  }
 0x1c6   : > { %4156 = vmatprep.subr.bf16.mxu0 %v7677_v31  ;;  %v7758_v31 = vld [vmem:[%s9974_s3 + $0xdc] ss:$12 sps:$4 sm:$0xff]  }
 0x1c7   : > { %4758 = vmatpush1.bf16.msra.mxu1 %v7714_v8 }
 0x1c8   : > { %4759 = vmatprep.subr.bf16.mxu1 %v7722_v7 }
 0x1c9   : > { %4157 = vmatpush2.bf16.msra.mxu0 %v7675_v34  ;;  %v7756_v34 = vld [vmem:[%s9974_s3 + $0xd8] ss:$12 sps:$4 sm:$0xff]  }
 0x1ca   : > { %4788 = vmatprep.subr.bf16.mxu0 %v7683_v39  ;;  %v9524_v39 = vpop.f32.mrf.mxu0 }
 0x1cb   : > { %4760 = vmatpush1.bf16.msra.mxu1 %v7720_v9 }
 0x1cc   : > { %4159 = vmatmul.mubr.bf16.vlgmr.msra.gmra.mxu0 %v3864_v15  ;;  %4761 = vmatprep.subr.bf16.mxu1 %v7728_v13  ;;  %v9979_v15 = vmov 0   ;;  %v9526_v41 = vpop.f32.mrf.mxu0 }
 0x1cd   : > { %4789 = vmatpush1.bf16.msra.mxu0 %v7681_v37  ;;  %4820 = vmatprep.mubr.bf16.mxu0 %v9979_v15  ;;  %v9980_v37 = vmov 0.0  }
 0x1ce   : > { %4790 = vmatprep.subr.bf16.mxu0 %v7689_v43  ;;  %v9528_v43 = vpop.f32.mrf.mxu0 }
 0x1cf   : > { %4762 = vmatpush2.bf16.msra.mxu1 %v7726_v14 }
 0x1d0   : > { %4763 = vmatprep.subr.bf16.mxu1 %v7733_v20  ;;  %v6872_v45 = vpop.f32.mrf.mxu0 }
 0x1d1   : > { %4791 = vmatpush1.bf16.msra.mxu0 %v7687_v24  ;;  %v9530_v24 = vpop.f32.mrf.mxu1 }
 0x1d2   : > { %4792 = vmatprep.subr.bf16.mxu0 %v7695_v47  ;;  %v6873_v46 = vpop.f32.mrf.mxu0 }
 0x1d3   : > { %4764 = vmatpush2.bf16.msra.mxu1 %v7731_v17  ;;  %v9532_v47 = vpop.f32.mrf.mxu1 }
 0x1d4   : > { %4765 = vmatprep.subr.bf16.mxu1 %v7738_v22  ;;  %v6875_v48 = vpop.f32.mrf.mxu0  ;;  %v6830_v22 = vadd.f32 %v9083_v6, %v9072_v1  ;;  %v6855_v1 = vadd.f32 %v9245_v33, %v9231_v27 }
 0x1d5   : > { %4793 = vmatpush1.bf16.msra.mxu0 %v7693_v50  ;;  %v9534_v50 = vpop.f32.mrf.mxu1 }
 0x1d6   : > { %4794 = vmatprep.subr.bf16.mxu0 %v7701_v52  ;;  %v6876_v51 = vpop.f32.mrf.mxu0 }
 0x1d7   : > { %4766 = vmatpush2.bf16.msra.mxu1 %v7736_v21  ;;  %v6894_v52 = vpop.f32.mrf.mxu1 }
 0x1d8   : > { %4767 = vmatprep.subr.bf16.mxu1 %v7743_v25  ;;  %v9536_v54 = vpop.f32.mrf.mxu0  ;;  %v6808_v25 = vadd.f32 %v8870_v19, %v8855_v32  ;;  %v4218_v32 = vlaneseq }
 0x1d9   : > { %4795 = vmatpush1.bf16.msra.mxu0 %v7699_v55  ;;  %v6895_v55 = vpop.f32.mrf.mxu1 }
 0x1da   : > { %4796 = vmatprep.subr.bf16.mxu0 %v7707_v59  ;;  %v9538_v56 = vpop.f32.mrf.mxu0 }
 0x1db   : > { %4768 = vmatpush2.bf16.msra.mxu1 %v7741_v23  ;;  %v6897_v57 = vpop.f32.mrf.mxu1 }
 0x1dc   : > { %4769 = vmatprep.subr.bf16.mxu1 %v7748_v44  ;;  %v9540_v59 = vpop.f32.mrf.mxu0  ;;  %v6833_v44 = vadd.f32 %v9114_v18, %v9097_v12 }
 0x1dd   : > { %4797 = vmatpush1.bf16.msra.mxu0 %v7705_v40  ;;  %v6898_v40 = vpop.f32.mrf.mxu1 }
 0x1de   : > { %4798 = vmatprep.subr.bf16.mxu0 %v7713_v62  ;;  %v9542_v60 = vpop.f32.mrf.mxu0 }
 0x1df   : > { %4770 = vmatpush2.bf16.msra.mxu1 %v7746_v26  ;;  %v6852_v26 = vadd.f32 %v9216_v16, %v9201_v4  ;;  %v6877_v16 = vadd.f32 %v6876_v51, %v6875_v48  ;;  %v9585_v51 = vld [vmem:[%s9973_s2] sm:$0x7] }
 0x1e0   : > { %4771 = vmatprep.subr.bf16.mxu1 %v7753_v29 }
 0x1e1   : > { %4799 = vmatpush1.bf16.msra.mxu0 %v7711_v63 }
 0x1e2   : > { %4800 = vmatprep.subr.bf16.mxu0 %v7719_v2 }
 0x1e3   : > { %4772 = vmatpush2.bf16.msra.mxu1 %v7751_v30  ;;  %v1111_v30 = vadd.f32 %v6830_v22, %v6808_v25  ;;  %v4219_v25 = vshrl.u32 %v4218_v32, 7 }
 0x1e4   : > { %4773 = vmatprep.subr.bf16.mxu1 %v7758_v31  ;;  %v6874_v31 = vadd.f32 %v6873_v46, %v6872_v45  ;;  %v6899_v45 = vadd.f32 %v6898_v40, %v6897_v57 }
 0x1e5   : > { %4801 = vmatpush1.bf16.msra.mxu0 %v7717_v3 }
 0x1e6   : > { %4802 = vmatprep.subr.bf16.mxu0 %v7725_v10 }
 0x1e7   : > { %4774 = vmatpush2.bf16.msra.mxu1 %v7756_v34  ;;  %v6811_v34 = vadd.f32 %v8900_v38, %v8889_v28 }
 0x1e8   : > { %4775 = vmatprep.subr.bf16.mxu1 %v7763_v36  ;;  %v6896_v36 = vadd.f32 %v6895_v55, %v6894_v52 }
 0x1e9   : > { %4803 = vmatpush1.bf16.msra.mxu0 %v7723_v11  ;;  %v1114_v19 = vadd.f32 %v6833_v44, %v6811_v34 }
 0x1ea   : > { %6988 = vmatprep.subr.bf16.mxu0 %v7729_v5 }
 0x1eb   : > { %4776 = vmatpush2.bf16.msra.mxu1 %v7761_v35  ;;  %v1547_v35 = vadd.f32 %v6852_v26, %v1111_v30  ;;  %v1550_v18 = vadd.f32 %v6855_v1, %v1114_v19  ;;  %v7730_v19 = vld [vmem:[%s9974_s3 + $0xb0] ss:$12 sps:$4 sm:$0xff]  }
 0x1ec   : > { %7050 = vmatprep.subr.bf16.mxu1 %v9980_v37  ;;  %v6916_v62 = vpop.f32.mrf.mxu0 }
 0x1ed   : > { %v2003_v4 = vadd.f32 %v6874_v31, %v1547_v35  ;;  %v2006_v38 = vadd.f32 %v6877_v16, %v1550_v18  ;;  %v9580_v31 = vsub.s32 2, %v4219_v25  ;;  %v7735_v16 = vld [vmem:[%s9974_s3 + $0x98] ss:$12 sps:$4 sm:$0xff]   ;;  %v7739_v18 = vld [vmem:[%s9974_s3 + $0x140] ss:$12 sps:$4 sm:$0xff]  }
 0x1ee   : > { %v9544_v61 = vpop.f32.mrf.mxu1  ;;  %v6917_v0 = vpop.f32.mrf.mxu0 }
 0x1ef   : > { %v6918_v12 = vadd.f32 %v6917_v0, %v6916_v62  ;;  %v2435_v22 = vadd.f32 %v6896_v36, %v2003_v4  ;;  %v2438_v44 = vadd.f32 %v6899_v45, %v2006_v38  ;;  %v7734_v4 = vld [vmem:[%s9974_s3 + $0x158] ss:$12 sps:$4 sm:$0xff]   ;;  %v1549_v38 = vadd.f32 %v9528_v43, %v8936_v58 }
 0x1f0   : > { %v9546_v63 = vpop.f32.mrf.mxu1  ;;  %v6919_v2 = vpop.f32.mrf.mxu0 }
 0x1f1   : > { %v2891_v27 = vadd.f32 %v6918_v12, %v2435_v22  ;;  %v1546_v12 = vadd.f32 %v9524_v39, %v8920_v49  ;;  %v1548_v22 = vadd.f32 %v9526_v41, %v8928_v53  ;;  %v7740_v49 = vld [vmem:[%s9974_s3 + $0x80] ss:$12 sps:$4 sm:$0xff]   ;;  %v7744_v53 = vld [vmem:[%s9974_s3 + $0x128] ss:$12 sps:$4 sm:$0xff]  }
 0x1f2   : > { %v9548_v8 = vpop.f32.mrf.mxu1  ;;  %v6920_v7 = vpop.f32.mrf.mxu0 }
 0x1f3   : > { %v6921_v33 = vadd.f32 %v6920_v7, %v6919_v2  ;;  %v2002_v45 = vadd.f32 %v9530_v24, %v1546_v12  ;;  %v2004_v39 = vadd.f32 %v9532_v47, %v1548_v22  ;;  %v9626_v24 = vsub.s32 0, %v4219_v25  ;;  %v7768_v12 = vld [vmem:[%s9974_s3 + $0x200] ss:$12 sps:$4 sm:$0xff]   ;;  %v7782_v22 = vld [vmem:[%s9976_s5 + $0x7c] ss:$12 sps:$4 sm:$0xff]  }
 0x1f4   : > { %v9550_v3 = vpop.f32.mrf.mxu1 }
 0x1f5   : > { %v2894_v57 = vadd.f32 %v6921_v33, %v2438_v44  ;;  %v2436_v58 = vadd.f32 %v9540_v59, %v2004_v39  ;;  %v7749_v59 = vld [vmem:[%s9974_s3 + $0x110] ss:$12 sps:$4 sm:$0xff]   ;;  %v7783_v39 = vld [vmem:[%s9976_s5 + $0x60] ss:$12 sps:$4 sm:$0xff]  }
 0x20e   : > { %v6938_v9 = vpop.f32.mrf.mxu1 }
 0x210   : > { %v6939_v11 = vpop.f32.mrf.mxu1 }
 0x211   : > { %v6940_v46 = vadd.f32 %v6939_v11, %v6938_v9  ;;  %v4229_v11 = vrot.slane %v9585_v51, %v9580_v31 }
 0x212   : > { %v6941_v14 = vpop.f32.mrf.mxu1 }
 0x213   : > { %v3324_v30 = vadd.f32 %v6940_v46, %v2891_v27  ;;  %v2433_v46 = vadd.f32 %v9536_v54, %v9261_v42  ;;  %v2434_v27 = vadd.f32 %v9538_v56, %v2002_v45  ;;  %v2005_v42 = vadd.f32 %v9534_v50, %v1549_v38  ;;  %v7745_v54 = vld [vmem:[%s9974_s3 + $0x68] ss:$12 sps:$4 sm:$0xff]   ;;  %v7785_v38 = vld [vmem:[%s9976_s5 + $0x64] ss:$12 sps:$4 sm:$0xff]  }
 0x214   : > { %v6942_v17 = vpop.f32.mrf.mxu1  ;;  %v2892_v56 = vadd.f32 %v9548_v8, %v2436_v58  ;;  %v4221_v8 = vrot.slane %v9585_v51, %v9626_v24  ;;  %v7769_v45 = vld [vmem:[%s9974_s3 + $0x1e8] ss:$12 sps:$4 sm:$0xff]  }
 0x215   : > { %v6943_v34 = vadd.f32 %v6942_v17, %v6941_v14  ;;  %v2889_v33 = vadd.f32 %v9544_v61, %v2433_v46  ;;  %v2890_v41 = vadd.f32 %v9546_v63, %v2434_v27  ;;  %v2437_v47 = vadd.f32 %v9542_v60, %v2005_v42  ;;  %v7780_v46 = vld [vmem:[%s9976_s5 + $0x78] ss:$12 sps:$4 sm:$0xff]   ;;  %v7772_v42 = vld [vmem:[%s9974_s3 + $0x1a0] ss:$12 sps:$4 sm:$0xff]   ;;  %v7773_v58 = vld [vmem:[%s9974_s3 + $0x188] ss:$12 sps:$4 sm:$0xff]  }
 0x216   : > { %v9638_v63 = vsub.s32 1, %v4219_v25  ;;  %v7788_v27 = vld [vmem:[%s9976_s5 + $0x4c] ss:$12 sps:$4 sm:$0xff]  }
 0x217   : > { %v3327_v2 = vadd.f32 %v6943_v34, %v2894_v57  ;;  %v2893_v60 = vadd.f32 %v9550_v3, %v2437_v47  ;;  %v7789_v47 = vld [vmem:[%s9976_s5 + $0x30] ss:$12 sps:$4 sm:$0xff]  }
 0x22c   : > { %v9552_v10 = vpop.f32.mrf.mxu0 }
 0x22d   : > { %v3322_v43 = vadd.f32 %v9552_v10, %v2889_v33  ;;  %v7771_v33 = vld [vmem:[%s9974_s3 + $0x1b8] ss:$12 sps:$4 sm:$0xff]  }
 0x22e   : > { %v9554_v13 = vpop.f32.mrf.mxu0 }
 0x22f   : > { %v3323_v61 = vadd.f32 %v9554_v13, %v2890_v41  ;;  %v7750_v13 = vld [vmem:[%s9974_s3 + $0x50] ss:$12 sps:$4 sm:$0xff]   ;;  %v9983_v41 = vmov 0  }
 0x230   : > { %v9556_v5 = vpop.f32.mrf.mxu0 }
 0x232   : > { %v9558_v20 = vpop.f32.mrf.mxu0 }
 0x233   : > { %v3326_v25 = vadd.f32 %v9558_v20, %v2893_v60  ;;  %v7755_v20 = vld [vmem:[%s9974_s3 + $0x38] ss:$12 sps:$4 sm:$0xff]   ;;  %v7803_v60 = vld [vmem:[%s9976_s5 + $0x154] ss:$12 sps:$4 sm:$0xff]  }
 0x24c   : > { %v6960_v23 = vpop.f32.mrf.mxu0 }
 0x24e   : > { %v9560_v21 = vpop.f32.mrf.mxu1  ;;  %v6961_v6 = vpop.f32.mrf.mxu0 }
 0x24f   : > { %v6962_v26 = vadd.f32 %v6961_v6, %v6960_v23  ;;  %v3778_v50 = vadd.f32 %v9560_v21, %v3322_v43  ;;  %v7791_v43 = vld [vmem:[%s9976_s5 + $0x34] ss:$12 sps:$4 sm:$0xff]  }
 0x250   : > { %v9570_v29 = vpop.f32.mrf.mxu1  ;;  %v6963_v37 = vpop.f32.mrf.mxu0 }
 0x251   : > { %v3780_v40 = vadd.f32 %v6962_v26, %v3324_v30  ;;  %v3325_v26 = vadd.f32 %v9556_v5, %v2892_v56  ;;  %v4225_v5 = vrot.slane %v9585_v51, %v9638_v63  ;;  %v7759_v51 = vld [vmem:[%s9974_s3 + $0xe0] ss:$12 sps:$4 sm:$0xff]   ;;  %v7797_v56 = vld [vmem:[%s9976_s5 + $0x4] ss:$12 sps:$4 sm:$0xff]  }
 0x252   : > { %v9576_v15 = vpop.f32.mrf.mxu1  ;;  %v6964_v52 = vpop.f32.mrf.mxu0 }
 0x253   : > { %v6965_v62 = vadd.f32 %v6964_v52, %v6963_v37  ;;  %v3779_v52 = vadd.f32 %v9570_v29, %v3323_v61  ;;  %v3781_v44 = vadd.f32 %v9576_v15, %v3325_v26  ;;  %v7754_v29 = vld [vmem:[%s9974_s3 + $0xf8] ss:$12 sps:$4 sm:$0xff]   ;;  %v7795_v61 = vld [vmem:[%s9976_s5] ss:$12 sps:$4 sm:$0xff]   ;;  %v7806_v26 = vld [vmem:[%s9976_s5 + $0x13c] ss:$12 sps:$4 sm:$0xff]  }
 0x254   : > { %v9578_v28 = vpop.f32.mrf.mxu1 }
 0x255   : > { %v3783_v14 = vadd.f32 %v6965_v62, %v3327_v2  ;;  %v3782_v34 = vadd.f32 %v9578_v28, %v3326_v25  ;;  %v7760_v28 = vld [vmem:[%s9974_s3 + $0x20] ss:$12 sps:$4 sm:$0xff]  }
 0x256   : > { %v7815_v25 = vld [vmem:[%s9976_s5 + $0xf4] ss:$12 sps:$4 sm:$0xff]  }
 0x26e   : > { %v6982_v55 = vpop.f32.mrf.mxu1 }
 0x270   : > { %v6983_v48 = vpop.f32.mrf.mxu1 }
 0x271   : > { %v6984_v0 = vadd.f32 %v6983_v48, %v6982_v55 }
 0x272   : > { %v6985_v9 = vpop.f32.mrf.mxu1 }
 0x273   : > { %v4212_v7 = vadd.f32 %v6984_v0, %v3780_v40 }
 0x274   : > { %v6986_v23 = vpop.f32.mrf.mxu1 }
 0x275   : > { %v6987_v17 = vadd.f32 %v6986_v23, %v6985_v9  ;;  %v4235_v1 = vadd.f32 %v4229_v11, %v4212_v7 }
 0x277   : > { %v4215_v6 = vadd.f32 %v6987_v17, %v3783_v14  ;;  %v4241_v36 = vmax.f32 %v4235_v1, 0.0  ;;  %v7764_v17 = vld [vmem:[%s9974_s3 + $0xc8] ss:$12 sps:$4 sm:$0xff]  }
 0x279   : > { %v4238_v35 = vadd.f32 %v4229_v11, %v4215_v6  ;;  %v7766_v6 = vld [vmem:[%s9974_s3 + $0x230] ss:$12 sps:$4 sm:$0xff]  }
 0x27b   : > { %v4244_v32 = vmax.f32 %v4238_v35, 0.0  ;;  %v7765_v35 = vld [vmem:[%s9974_s3 + $0x8] ss:$12 sps:$4 sm:$0xff]  }
 0x27d   : > { %v9592_v37 = vpack.c.bf16 %v4244_v32, %v4241_v36  ;;  %v7776_v36 = vld [vmem:[%s9976_s5 + $0xac] ss:$12 sps:$4 sm:$0xff]  }
 0x27e   : > { %v7767_v32 = vld [vmem:[%s9974_s3 + $0x218] ss:$12 sps:$4 sm:$0xff]  }
 0x27f   : > { %4821 = vmatmul.mubr.bf16.vlgmr.msra.gmra.mxu0 %v9592_v37 }
 0x280   : > { %6989 = vmatpush3.bf16.msra.mxu0 %v7730_v19  ;;  %v9982_v19 = vmov 0.0  }
 0x281   : > { %6990 = vmatprep.subr.bf16.mxu0 %v7734_v4  ;;  %v7774_v4 = vld [vmem:[%s9976_s5 + $0xa8] ss:$12 sps:$4 sm:$0xff]  }
 0x284   : > { %6991 = vmatpush3.bf16.msra.mxu0 %v7735_v16  ;;  %v7779_v16 = vld [vmem:[%s9976_s5 + $0x94] ss:$12 sps:$4 sm:$0xff]  }
 0x285   : > { %6992 = vmatprep.subr.bf16.mxu0 %v7739_v18  ;;  %v7777_v18 = vld [vmem:[%s9976_s5 + $0x90] ss:$12 sps:$4 sm:$0xff]  }
 0x288   : > { %6993 = vmatpush3.bf16.msra.mxu0 %v7740_v49  ;;  %v7770_v49 = vld [vmem:[%s9974_s3 + $0x1d0] ss:$12 sps:$4 sm:$0xff]  }
 0x289   : > { %6994 = vmatprep.subr.bf16.mxu0 %v7744_v53  ;;  %v7786_v53 = vld [vmem:[%s9976_s5 + $0x48] ss:$12 sps:$4 sm:$0xff]  }
 0x28c   : > { %v4160_v10 = vpop.f32.mrf.mxu0  ;;  %6995 = vmatpush3.bf16.msra.mxu0 %v7745_v54  ;;  %v7794_v54 = vld [vmem:[%s9976_s5 + $0x1c] ss:$12 sps:$4 sm:$0xff]  }
 0x28d   : > { %v4210_v55 = vadd.f32 %v4160_v10, %v3778_v50  ;;  %6996 = vmatprep.subr.bf16.mxu0 %v7749_v59  ;;  %v7800_v50 = vld [vmem:[%s9976_s5 + $0x16c] ss:$12 sps:$4 sm:$0xff]   ;;  %v7798_v59 = vld [vmem:[%s9976_s5 + $0x168] ss:$12 sps:$4 sm:$0xff]   ;;  %v7801_v10 = vld [vmem:[%s9976_s5 + $0x150] ss:$12 sps:$4 sm:$0xff]  }
 0x28e   : > { %v4162_v21 = vpop.f32.mrf.mxu0 }
 0x28f   : > { %v4211_v3 = vadd.f32 %v4162_v21, %v3779_v52  ;;  %v4233_v48 = vadd.f32 %v4221_v8, %v4210_v55  ;;  %v7804_v52 = vld [vmem:[%s9976_s5 + $0x138] ss:$12 sps:$4 sm:$0xff]   ;;  %v7810_v21 = vld [vmem:[%s9976_s5 + $0x108] ss:$12 sps:$4 sm:$0xff]  }
 0x290   : > { %v4164_v30 = vpop.f32.mrf.mxu0  ;;  %6997 = vmatpush3.bf16.msra.mxu0 %v7750_v13  ;;  %v7809_v55 = vld [vmem:[%s9976_s5 + $0x124] ss:$12 sps:$4 sm:$0xff]   ;;  %v7812_v13 = vld [vmem:[%s9976_s5 + $0x10c] ss:$12 sps:$4 sm:$0xff]  }
 0x291   : > { %v4213_v57 = vadd.f32 %v4164_v30, %v3781_v44  ;;  %v4234_v40 = vadd.f32 %v4225_v5, %v4211_v3  ;;  %6998 = vmatprep.subr.bf16.mxu0 %v7754_v29  ;;  %v4239_v9 = vmax.f32 %v4233_v48, 0.0  ;;  %v7813_v44 = vld [vmem:[%s9976_s5 + $0xf0] ss:$12 sps:$4 sm:$0xff]   ;;  %v7819_v29 = vld [vmem:[%s9976_s5 + $0x228] ss:$12 sps:$4 sm:$0xff]  }
 0x292   : > { %v4166_v15 = vpop.f32.mrf.mxu0  ;;  %v7818_v3 = vld [vmem:[%s9976_s5 + $0xdc] ss:$12 sps:$4 sm:$0xff]   ;;  %v7821_v30 = vld [vmem:[%s9976_s5 + $0x22c] ss:$12 sps:$4 sm:$0xff]   ;;  %v7824_v48 = vld [vmem:[%s9976_s5 + $0xc4] ss:$12 sps:$4 sm:$0xff]  }
 0x293   : > { %v4236_v62 = vadd.f32 %v4221_v8, %v4213_v57  ;;  %v4214_v0 = vadd.f32 %v4166_v15, %v3782_v34  ;;  %v4240_v11 = vmax.f32 %v4234_v40, 0.0  ;;  %v7807_v8 = vld [vmem:[%s9976_s5 + $0x120] ss:$12 sps:$4 sm:$0xff]   ;;  %v7831_v15 = vld [vmem:[%s9976_s5 + $0x1fc] ss:$12 sps:$4 sm:$0xff]  }
 0x294   : > { %6999 = vmatpush3.bf16.msra.mxu0 %v7755_v20  ;;  %v7822_v34 = vld [vmem:[%s9976_s5 + $0xc0] ss:$12 sps:$4 sm:$0xff]   ;;  %v7825_v20 = vld [vmem:[%s9976_s5 + $0x210] ss:$12 sps:$4 sm:$0xff]   ;;  %v7829_v40 = vld [vmem:[%s9976_s5 + $0x1f8] ss:$12 sps:$4 sm:$0xff]  }
 0x295   : > { %v4242_v2 = vmax.f32 %v4236_v62, 0.0  ;;  %v4237_v7 = vadd.f32 %v4225_v5, %v4214_v0  ;;  %7000 = vmatprep.subr.bf16.mxu0 %v7759_v51  ;;  %v7816_v5 = vld [vmem:[%s9976_s5 + $0xd8] ss:$12 sps:$4 sm:$0xff]   ;;  %v7827_v57 = vld [vmem:[%s9976_s5 + $0x214] ss:$12 sps:$4 sm:$0xff]  }
 0x296   : > { %v7835_v62 = vld [vmem:[%s9976_s5 + $0x1e4] ss:$12 sps:$4 sm:$0xff]   ;;  %v7833_v0 = vld [vmem:[%s9976_s5 + $0x1e0] ss:$12 sps:$4 sm:$0xff]  }
 0x297   : > { %v4245_v23 = vpack.c.bf16 %v4242_v2, %v4239_v9  ;;  %v4243_v14 = vmax.f32 %v4237_v7, 0.0  ;;  %v7839_v51 = vld [vmem:[%s9976_s5 + $0x1cc] ss:$12 sps:$4 sm:$0xff]   ;;  %v7837_v9 = vld [vmem:[%s9976_s5 + $0x1c8] ss:$12 sps:$4 sm:$0xff]  }
 0x298   : > { %7001 = vmatpush3.bf16.msra.mxu0 %v7760_v28  ;;  %v7843_v2 = vld [vmem:[%s9976_s5 + $0x1b4] ss:$12 sps:$4 sm:$0xff]   ;;  %v7841_v7 = vld [vmem:[%s9976_s5 + $0x1b0] ss:$12 sps:$4 sm:$0xff]   ;;  %v7845_v28 = vld [vmem:[%s9976_s5 + $0x198] ss:$12 sps:$4 sm:$0xff]  }
 0x299   : > { %v4246_v1 = vpack.c.bf16 %v4243_v14, %v4240_v11  ;;  %7002 = vmatprep.subr.bf16.mxu0 %v7764_v17  ;;  %v7847_v11 = vld [vmem:[%s9976_s5 + $0x19c] ss:$12 sps:$4 sm:$0xff]   ;;  %v7849_v14 = vld [vmem:[%s9976_s5 + $0x180] ss:$12 sps:$4 sm:$0xff]  }
 0x29a   : > { %v7853_v17 = vld [vmem:[%s9976_s5 + $0x170] ss:$12 sps:$4 sm:$0xff]  }
 0x29b   : > { %4777 = vmatprep.mubr.bf16.mxu1 %v4246_v1  ;;  %4863 = vmatprep.mubr.bf16.mxu0 %v4246_v1 }
 0x29c   : > { %4778 = vmatmul.mubr.bf16.vlgmr.msra.gmra.mxu1 %v4245_v23  ;;  %7003 = vmatpush3.bf16.msra.mxu0 %v7765_v35 }
 0x29d   : > { %7051 = vmatpush3.bf16.msra.mxu1 %v7766_v6  ;;  %7066 = vmatprep.mubr.msk.bf16.mxu1 %vm7882_vm6, %v9982_v19  ;;  %v4344_v6 = vld [vmem:[%s9975_s4] sm:$0x7] }
 0x29e   : > { %7052 = vmatprep.subr.bf16.mxu1 %v9982_v19  ;;  %5419 = vmatprep.subr.bf16.mxu0 %v7776_v36  ;;  %v4353_v35 = vrot.slane %v4344_v6, %v9638_v63 }
 0x29f   : > { %4864 = vmatmul.mubr.bf16.vlgmr.msra.gmra.mxu0 %v4245_v23  ;;  %v7851_v23 = vld [vmem:[%s9976_s5 + $0x184] ss:$12 sps:$4 sm:$0xff]  }
 0x2a0   : > { %5420 = vmatpush1.bf16.msra.mxu0 %v7774_v4 }
 0x2a1   : > { %7053 = vmatpush3.bf16.msra.mxu1 %v7767_v32  ;;  %5421 = vmatprep.subr.bf16.mxu0 %v7779_v16  ;;  %v4349_v32 = vrot.slane %v4344_v6, %v9626_v24 }
 0x2a2   : > { %7054 = vmatprep.subr.bf16.mxu1 %v9982_v19 }
 0x2a4   : > { %5422 = vmatpush1.bf16.msra.mxu0 %v7777_v18 }
 0x2a5   : > { %7055 = vmatpush3.bf16.msra.mxu1 %v7768_v12  ;;  %5423 = vmatprep.subr.bf16.mxu0 %v7782_v22 }
 0x2a6   : > { %7056 = vmatprep.subr.bf16.mxu1 %v9982_v19 }
 0x2a8   : > { %5424 = vmatpush1.bf16.msra.mxu0 %v7780_v46 }
 0x2a9   : > { %7057 = vmatpush3.bf16.msra.mxu1 %v7769_v45  ;;  %5425 = vmatprep.subr.bf16.mxu0 %v7785_v38 }
 0x2aa   : > { %7058 = vmatprep.subr.bf16.mxu1 %v9982_v19 }
 0x2ac   : > { %5426 = vmatpush1.bf16.msra.mxu0 %v7783_v39 }
 0x2ad   : > { %7059 = vmatpush3.bf16.msra.mxu1 %v7770_v49  ;;  %5427 = vmatprep.subr.bf16.mxu0 %v7788_v27 }
 0x2ae   : > { %7060 = vmatprep.subr.bf16.mxu1 %v9982_v19 }
 0x2b0   : > { %5428 = vmatpush1.bf16.msra.mxu0 %v7786_v53 }
 0x2b1   : > { %7061 = vmatpush3.bf16.msra.mxu1 %v7771_v33  ;;  %5429 = vmatprep.subr.bf16.mxu0 %v7791_v43 }
 0x2b2   : > { %7062 = vmatprep.subr.bf16.mxu1 %v9982_v19 }
 0x2b4   : > { %5430 = vmatpush1.bf16.msra.mxu0 %v7789_v47 }
 0x2b5   : > { %7063 = vmatpush3.bf16.msra.mxu1 %v7772_v42  ;;  %5431 = vmatprep.subr.bf16.mxu0 %v7794_v54 }
 0x2b6   : > { %7064 = vmatprep.subr.bf16.mxu1 %v9982_v19 }
 0x2b9   : > { %7065 = vmatpush3.bf16.msra.mxu1 %v7773_v58 }
 0x2ba   : > { %5462 = vmatprep.subr.bf16.mxu1 %v7821_v30 }
 0x2bc   : > { %7067 = vmatmul.mubr.bf16.vlgmr.msra.gmra.mxu1 %v9592_v37  ;;  %v7792_v37 = vld [vmem:[%s9976_s5 + $0x18] ss:$12 sps:$4 sm:$0xff]  }
 0x2bd   : > { %5494 = vmatprep.mubr.bf16.mxu1 %v9983_v41  ;;  %5432 = vmatpush1.bf16.msra.mxu0 %v7792_v37  ;;  %v7828_v37 = vld [vmem:[%s9976_s5 + $0x230] ss:$12 sps:$4 sm:$0xff]  }
 0x2be   : > { %5433 = vmatprep.subr.bf16.mxu0 %v7797_v56  ;;  %5463 = vmatpush1.bf16.msra.mxu1 %v7819_v29 }
 0x2bf   : > { %5464 = vmatprep.subr.bf16.mxu1 %v7827_v57  ;;  %v7852_v57 = vld [vmem:[%s9976_s5 + $0x1a0] ss:$12 sps:$4 sm:$0xff]  }
 0x2c1   : > { %5434 = vmatpush1.bf16.msra.mxu0 %v7795_v61 }
 0x2c2   : > { %5435 = vmatprep.subr.bf16.mxu0 %v7800_v50  ;;  %5465 = vmatpush1.bf16.msra.mxu1 %v7825_v20  ;;  %v7832_v50 = vld [vmem:[%s9976_s5 + $0x218] ss:$12 sps:$4 sm:$0xff]  }
 0x2c3   : > { %5466 = vmatprep.subr.bf16.mxu1 %v7831_v15 }
 0x2c5   : > { %5436 = vmatpush2.bf16.msra.mxu0 %v7798_v59 }
 0x2c6   : > { %5437 = vmatprep.subr.bf16.mxu0 %v7803_v60  ;;  %5467 = vmatpush1.bf16.msra.mxu1 %v7829_v40  ;;  %v7836_v60 = vld [vmem:[%s9976_s5 + $0x200] ss:$12 sps:$4 sm:$0xff]  }
 0x2c7   : > { %5468 = vmatprep.subr.bf16.mxu1 %v7835_v62  ;;  %v7854_v62 = vld [vmem:[%s9976_s5 + $0xb0] ss:$12 sps:$4 sm:$0xff]  }
 0x2c9   : > { %5438 = vmatpush2.bf16.msra.mxu0 %v7801_v10 }
 0x2ca   : > { %5439 = vmatprep.subr.bf16.mxu0 %v7806_v26  ;;  %5469 = vmatpush1.bf16.msra.mxu1 %v7833_v0  ;;  %v7840_v26 = vld [vmem:[%s9976_s5 + $0x1e8] ss:$12 sps:$4 sm:$0xff]  }
 0x2cb   : > { %5470 = vmatprep.subr.bf16.mxu1 %v7839_v51  ;;  %v7855_v51 = vld [vmem:[%s9976_s5 + $0x188] ss:$12 sps:$4 sm:$0xff]  }
 0x2cd   : > { %5440 = vmatpush2.bf16.msra.mxu0 %v7804_v52 }
 0x2ce   : > { %5441 = vmatprep.subr.bf16.mxu0 %v7809_v55  ;;  %5471 = vmatpush1.bf16.msra.mxu1 %v7837_v9  ;;  %v7856_v9 = vld [vmem:[%s9976_s5 + $0x158] ss:$12 sps:$4 sm:$0xff]  }
 0x2cf   : > { %5472 = vmatprep.subr.bf16.mxu1 %v7843_v2  ;;  %v7857_v2 = vld [vmem:[%s9976_s5 + $0x98] ss:$12 sps:$4 sm:$0xff]  }
 0x2d1   : > { %5442 = vmatpush2.bf16.msra.mxu0 %v7807_v8  ;;  %v4357_v8 = vrot.slane %v4344_v6, %v9580_v31  ;;  %v7866_v6 = vld [vmem:[%s9976_s5 + $0xe0] ss:$12 sps:$4 sm:$0xff]  }
 0x2d2   : > { %5443 = vmatprep.subr.bf16.mxu0 %v7812_v13  ;;  %5473 = vmatpush1.bf16.msra.mxu1 %v7841_v7  ;;  %v7844_v13 = vld [vmem:[%s9976_s5 + $0x1d0] ss:$12 sps:$4 sm:$0xff]   ;;  %v7858_v7 = vld [vmem:[%s9976_s5 + $0x140] ss:$12 sps:$4 sm:$0xff]  }
 0x2d3   : > { %5474 = vmatprep.subr.bf16.mxu1 %v7847_v11  ;;  %v7861_v11 = vld [vmem:[%s9976_s5 + $0x68] ss:$12 sps:$4 sm:$0xff]  }
 0x2d5   : > { %5444 = vmatpush2.bf16.msra.mxu0 %v7810_v21 }
 0x2d6   : > { %5445 = vmatprep.subr.bf16.mxu0 %v7815_v25  ;;  %5475 = vmatpush1.bf16.msra.mxu1 %v7845_v28  ;;  %v7859_v28 = vld [vmem:[%s9976_s5 + $0x80] ss:$12 sps:$4 sm:$0xff]  }
 0x2d7   : > { %5476 = vmatprep.subr.bf16.mxu1 %v7851_v23  ;;  %v7862_v23 = vld [vmem:[%s9976_s5 + $0x110] ss:$12 sps:$4 sm:$0xff]  }
 0x2d9   : > { %5446 = vmatpush2.bf16.msra.mxu0 %v7813_v44 }
 0x2da   : > { %5447 = vmatprep.subr.bf16.mxu0 %v7818_v3  ;;  %5477 = vmatpush1.bf16.msra.mxu1 %v7849_v14  ;;  %v7848_v3 = vld [vmem:[%s9976_s5 + $0x1b8] ss:$12 sps:$4 sm:$0xff]   ;;  %v7863_v14 = vld [vmem:[%s9976_s5 + $0x50] ss:$12 sps:$4 sm:$0xff]  }
 0x2db   : > { %7019 = vmatprep.subr.bf16.mxu1 %v7853_v17  ;;  %v7864_v17 = vld [vmem:[%s9976_s5 + $0xf8] ss:$12 sps:$4 sm:$0xff]  }
 0x2dd   : > { %5448 = vmatpush2.bf16.msra.mxu0 %v7816_v5 }
 0x2de   : > { %5449 = vmatprep.subr.bf16.mxu0 %v7824_v48 }
 0x2e1   : > { %5450 = vmatpush2.bf16.msra.mxu0 %v7822_v34 }
 0x2e2   : > { %7070 = vmatprep.subr.bf16.mxu0 %v9982_v19 }
 0x33f   : > { %v4822_v1 = vpop.f32.mrf.mxu0 }
 0x341   : > { %v4824_v36 = vpop.f32.mrf.mxu0 }
 0x343   : > { %v4826_v18 = vpop.f32.mrf.mxu0 }
 0x345   : > { %v4828_v33 = vpop.f32.mrf.mxu0 }
 0x35c   : > { %v4779_v4 = vpop.f32.mrf.mxu1 }
 0x35d   : > { %v4780_v22 = vadd.f32 %v4779_v4, %v4349_v32 }
 0x35e   : > { %v4781_v16 = vpop.f32.mrf.mxu1 }
 0x35f   : > { %v4782_v12 = vadd.f32 %v4781_v16, %v4353_v35  ;;  %v4823_v53 = vadd.f32 %v4822_v1, %v4780_v22  ;;  %v7004_v61 = vpop.f32.mrf.mxu0  ;;  %v7865_v1 = vld [vmem:[%s9976_s5 + $0x38] ss:$12 sps:$4 sm:$0xff]   ;;  %v5018_v16 = vld [vmem:[%s9977_s6] sm:$0x7] }
 0x360   : > { %v4783_v45 = vpop.f32.mrf.mxu1  ;;  %v5027_v22 = vrot.slane %v5018_v16, %v9638_v63 }
 0x361   : > { %v4784_v46 = vadd.f32 %v4783_v45, %v4349_v32  ;;  %v4825_v49 = vadd.f32 %v4824_v36, %v4782_v12  ;;  %v4913_v47 = vmax.f32 %v4823_v53, 0.0  ;;  %v7005_v59 = vpop.f32.mrf.mxu0  ;;  %v7868_v36 = vld [vmem:[%s9976_s5 + $0xc8] ss:$12 sps:$4 sm:$0xff]  }
 0x362   : > { %v4785_v38 = vpop.f32.mrf.mxu1  ;;  %v7006_v55 = vadd.f32 %v7005_v59, %v7004_v61  ;;  %v7869_v32 = vld [vmem:[%s9976_s5 + $0x8] ss:$12 sps:$4 sm:$0xff]  }
 0x363   : > { %v4827_v39 = vadd.f32 %v4826_v18, %v4784_v46  ;;  %v4786_v27 = vadd.f32 %v4785_v38, %v4353_v35  ;;  %v4914_v41 = vmax.f32 %v4825_v49, 0.0  ;;  %v7007_v10 = vpop.f32.mrf.mxu0  ;;  %v7867_v35 = vld [vmem:[%s9976_s5 + $0x20] ss:$12 sps:$4 sm:$0xff]   ;;  %v5023_v18 = vrot.slane %v5018_v16, %v9626_v24 }
 0x364   : > { %v4866_v44 = vadd.f32 %v7006_v55, %v4357_v8 }
 0x365   : > { %v4829_v42 = vadd.f32 %v4828_v33, %v4786_v27  ;;  %v4916_v58 = vmax.f32 %v4827_v39, 0.0  ;;  %v7008_v52 = vpop.f32.mrf.mxu0 }
 0x366   : > { %v7009_v21 = vadd.f32 %v7008_v52, %v7007_v10 }
 0x367   : > { %v4917_v43 = vmax.f32 %v4829_v42, 0.0  ;;  %v9862_v56 = vpack.c.bf16 %v4916_v58, %v4913_v47 }
 0x368   : > { %v4869_v30 = vadd.f32 %v7009_v21, %v4357_v8  ;;  %v5031_v21 = vrot.slane %v5018_v16, %v9580_v31 }
 0x369   : > { %v4920_v54 = vpack.c.bf16 %v4917_v43, %v4914_v41 }
 0x36b   : > { %5451 = vmatprep.mubr.bf16.mxu0 %v4920_v54 }
 0x36c   : > { %5452 = vmatmul.mubr.bf16.vlgmr.msra.gmra.mxu0 %v9862_v56 }
 0x36d   : > { %7071 = vmatpush3.bf16.msra.mxu0 %v7828_v37  ;;  %7086 = vmatprep.mubr.msk.bf16.mxu0 %vm7882_vm6, %v9982_v19 }
 0x36e   : > { %7072 = vmatprep.subr.bf16.mxu0 %v9982_v19 }
 0x371   : > { %7073 = vmatpush3.bf16.msra.mxu0 %v7832_v50 }
 0x372   : > { %7074 = vmatprep.subr.bf16.mxu0 %v9982_v19 }
 0x375   : > { %7075 = vmatpush3.bf16.msra.mxu0 %v7836_v60 }
 0x376   : > { %7076 = vmatprep.subr.bf16.mxu0 %v9982_v19 }
 0x379   : > { %7077 = vmatpush3.bf16.msra.mxu0 %v7840_v26  ;;  %v5622_v26 = vld [vmem:[%s9951_s8 + $0xc] sm:$0xff] }
 0x37a   : > { %7078 = vmatprep.subr.bf16.mxu0 %v9982_v19 }
 0x37c   : > { %v4906_v25 = vpop.f32.mrf.mxu1 }
 0x37d   : > { %7079 = vmatpush3.bf16.msra.mxu0 %v7844_v13  ;;  %v4907_v29 = vadd.f32 %v4906_v25, %v4866_v44 }
 0x37e   : > { %v7068_v5 = vpop.f32.mrf.mxu1  ;;  %7080 = vmatprep.subr.bf16.mxu0 %v9982_v19 }
 0x37f   : > { %v4915_v15 = vmax.f32 %v4907_v29, 0.0 }
 0x380   : > { %v4909_v34 = vpop.f32.mrf.mxu1 }
 0x381   : > { %v4910_v48 = vadd.f32 %v4909_v34, %v4869_v30  ;;  %7081 = vmatpush3.bf16.msra.mxu0 %v7848_v3 }
 0x382   : > { %v7069_v20 = vpop.f32.mrf.mxu1  ;;  %7082 = vmatprep.subr.bf16.mxu0 %v9982_v19 }
 0x383   : > { %v4918_v40 = vmax.f32 %v4910_v48, 0.0 }
 0x385   : > { %v4921_v0 = vpack.c.bf16 %v4918_v40, %v4915_v15  ;;  %7083 = vmatpush3.bf16.msra.mxu0 %v7852_v57 }
 0x386   : > { %7084 = vmatprep.subr.bf16.mxu0 %v9982_v19  ;;  %v7860_v19 = vld [vmem:[%s9976_s5 + $0x128] ss:$12 sps:$4 sm:$0xff]  }
 0x387   : > { %5495 = vmatmul.mubr.bf16.vlgmr.msra.gmra.mxu1 %v4921_v0 }
 0x388   : > { %7020 = vmatpush3.bf16.msra.mxu1 %v7854_v62  ;;  %5537 = vmatprep.mubr.bf16.mxu1 %v4920_v54  ;;  %v5625_v62 = vld [vmem:[%s9951_s8 + $0x14] sm:$0xf] }
 0x389   : > { %7085 = vmatpush3.bf16.msra.mxu0 %v7855_v51  ;;  %7021 = vmatprep.subr.bf16.mxu1 %v7856_v9 }
 0x38c   : > { %7022 = vmatpush3.bf16.msra.mxu1 %v7857_v2  ;;  %7087 = vmatmul.mubr.bf16.vlgmr.msra.gmra.mxu0 %v4921_v0 }
 0x38d   : > { %7023 = vmatprep.subr.bf16.mxu1 %v7858_v7 }
 0x390   : > { %7024 = vmatpush3.bf16.msra.mxu1 %v7859_v28 }
 0x391   : > { %7025 = vmatprep.subr.bf16.mxu1 %v7860_v19 }
 0x394   : > { %7026 = vmatpush3.bf16.msra.mxu1 %v7861_v11 }
 0x395   : > { %7027 = vmatprep.subr.bf16.mxu1 %v7862_v23 }
 0x398   : > { %7028 = vmatpush3.bf16.msra.mxu1 %v7863_v14 }
 0x399   : > { %7029 = vmatprep.subr.bf16.mxu1 %v7864_v17 }
 0x39c   : > { %7030 = vmatpush3.bf16.msra.mxu1 %v7865_v1 }
 0x39d   : > { %7031 = vmatprep.subr.bf16.mxu1 %v7866_v6 }
 0x3a0   : > { %7032 = vmatpush3.bf16.msra.mxu1 %v7867_v35 }
 0x3a1   : > { %7033 = vmatprep.subr.bf16.mxu1 %v7868_v36 }
 0x3a4   : > { %7034 = vmatpush3.bf16.msra.mxu1 %v7869_v32 }
 0x3a7   : > { %5538 = vmatmul.mubr.bf16.vlgmr.msra.gmra.mxu1 %v9862_v56 }
 0x42c   : > { %v5453_v4 = vpop.f32.mrf.mxu0 }
 0x42d   : > { %v5454_v46 = vadd.f32 %v5453_v4, %v5023_v18 }
 0x42e   : > { %v5455_v12 = vpop.f32.mrf.mxu0 }
 0x42f   : > { %v5456_v49 = vadd.f32 %v5455_v12, %v5027_v22 }
 0x430   : > { %v5457_v45 = vpop.f32.mrf.mxu0 }
 0x431   : > { %v5458_v53 = vadd.f32 %v5457_v45, %v5023_v18 }
 0x432   : > { %v5459_v27 = vpop.f32.mrf.mxu0 }
 0x433   : > { %v5460_v41 = vadd.f32 %v5459_v27, %v5027_v22 }
 0x447   : > { %v5496_v38 = vpop.f32.mrf.mxu1 }
 0x448   : > { %v5497_v39 = vadd.f32 %v5496_v38, %v5454_v46 }
 0x449   : > { %v5498_v33 = vpop.f32.mrf.mxu1 }
 0x44a   : > { %v5499_v42 = vadd.f32 %v5498_v33, %v5456_v49  ;;  %v5587_v43 = vmax.f32 %v5497_v39, 0.0 }
 0x44b   : > { %v5500_v58 = vpop.f32.mrf.mxu1 }
 0x44c   : > { %v5588_v24 = vmax.f32 %v5499_v42, 0.0  ;;  %v5501_v47 = vadd.f32 %v5500_v58, %v5458_v53  ;;  %v5580_v63 = vpop.f32.mrf.mxu0 }
 0x44d   : > { %v5502_v54 = vpop.f32.mrf.mxu1 }
 0x44e   : > { %v6786_v56 = vpack.c.bf16 %v5588_v24, %v5587_v43  ;;  %v5503_v61 = vadd.f32 %v5502_v54, %v5460_v41  ;;  %v7088_v50 = vpop.f32.mrf.mxu0  ;;  %v5590_v59 = vmax.f32 %v5501_v47, 0.0 }
 0x450   : > { %5613 = vst [vmem:[%s9951_s8] sm:$0xff] %v6786_v56  ;;  %v5591_v60 = vmax.f32 %v5503_v61, 0.0  ;;  %v5583_v10 = vpop.f32.mrf.mxu0 }
 0x452   : > { %v6788_v52 = vpack.c.bf16 %v5591_v60, %v5590_v59  ;;  %v7089_v55 = vpop.f32.mrf.mxu0 }
 0x454   : > { %v5623_v8 = vsel %vm5621_vm13, %v6788_v52, %v5622_v26 }
 0x455   : > { %5624 = vst [vmem:[%s9951_s8 + $0xc] sm:$0xff] %v5623_v8 }
 0x467   : > { %v7035_v13 = vpop.f32.mrf.mxu1 }
 0x469   : > { %v7036_v25 = vpop.f32.mrf.mxu1 }
 0x46a   : > { %v7037_v44 = vadd.f32 %v7036_v25, %v7035_v13 }
 0x46b   : > { %v7038_v3 = vpop.f32.mrf.mxu1 }
 0x46c   : > { %v5540_v5 = vadd.f32 %v7037_v44, %v5031_v21 }
 0x46d   : > { %v7039_v29 = vpop.f32.mrf.mxu1 }
 0x46e   : > { %v5581_v30 = vadd.f32 %v5580_v63, %v5540_v5  ;;  %v7040_v34 = vadd.f32 %v7039_v29, %v7038_v3 }
 0x470   : > { %v5589_v48 = vmax.f32 %v5581_v30, 0.0  ;;  %v5543_v57 = vadd.f32 %v7040_v34, %v5031_v21 }
 0x472   : > { %v6787_v20 = vpack.c.bf16 %v5589_v48, %v5589_v48  ;;  %v5584_v15 = vadd.f32 %v5583_v10, %v5543_v57 }
 0x474   : > { %5614 = vst [vmem:[%s9951_s8 + $0x8] sm:$0xf] %v6787_v20  ;;  %v5592_v40 = vmax.f32 %v5584_v15, 0.0 }
 0x476   : > { %v6789_v0 = vpack.c.bf16 %v5592_v40, %v5592_v40 }
 0x478   : > { %v5626_v51 = vsel %vm9953_vm11, %v6789_v0, %v5625_v62 }
 0x479   : > { %5627 = vst [vmem:[%s9951_s8 + $0x14] sm:$0xf] %v5626_v51 }
 0x47a PF: > { %s17_s24 = sadd.s32 1, %s7878_s24  }
 0x47b   : > { %p14_p4 = scmp.ge.s32.totalorder %s17_s24, 4  }
 0x47d   :  { %16 = sbr.rel (!%p14_p4) target bundleno = 1 (0x1), region = 86 }

// kernel: nin_forward.7
= control target key start
LH: loop header
LB: loop body
LE: loop exit
PB: predicated region body
PF: predicated region fallthrough
CT: control target
= control target key end

     0   :  { %s4666_s24 = smov 0   ;;  %s5544_s0 = inlined_call_operand.vmem [shape: f32[2,12,384], index: 0, kind: input, shape index: {}]   ;;  %s5545_s1 = inlined_call_operand.vmem [shape: bf16[9,384,128], index: 1, kind: input, shape index: {}]   ;;  %s5546_s2 = inlined_call_operand.vmem [shape: f32[1,128], index: 2, kind: input, shape index: {}]   ;;  %s5547_s3 = inlined_call_operand.vmem [shape: bf16[128,128], index: 3, kind: input, shape index: {}]   ;;  %s5548_s4 = inlined_call_operand.vmem [shape: f32[1,128], index: 4, kind: input, shape index: {}]   ;;  %s5549_s5 = inlined_call_operand.vmem [shape: bf16[128,128], index: 5, kind: input, shape index: {}]   ;;  %s5550_s6 = inlined_call_operand.vmem [shape: f32[1,128], index: 6, kind: input, shape index: {}]   ;;  %s5551_s7 = inlined_call_operand.vmem [shape: bf16[2,3,128], index: 7, kind: output, shape index: {}]  }
   0x1 LB: > { %s3228_s25 = sadd.s32 4294967295, %s4622_s24   ;;  %p3232_p0 = scmp.ge.s32.totalorder %s4622_s24, 1  ;;  %s4622_s24 = sphi %s4666_s24, %s17_s24  }
   0x2   : > { %p237_p1 = scmp.lt.s32.totalorder %s4622_s24, 3 }
   0x4   : > { %p238_p2 = pnand %p3232_p0, %p237_p1 }
   0x5   : > { %p268_p3 = scmp.lt.s32.totalorder (!%p238_p2), %s3228_s25, 1 }
   0x6   : > { %241 = sbr.rel (%p238_p2) target bundleno = 908 (0x38c), region = 48 }
   0xb   : > { %v4384_v0 = vld [vmem:[%s5545_s1 + $0x138] sm:$0xff]   ;;  %v4624_v1 = vmov 0.0   ;;  %vm4625_vm0 = vmmov 0   ;;  %v4387_v4 = vld [vmem:[%s5545_s1 + $0x130] sm:$0xff]   ;;  %v4390_v7 = vld [vmem:[%s5545_s1 + $0x128] sm:$0xff]   ;;  %s5553_s25 = smov (!%p268_p3, %s3228_s25), 1 }
   0xc   : > { %4153 = vmatprep.subr.bf16.mxu1 %v4624_v1  ;;  %v4385_v2 = vld [vmem:[%s5545_s1 + $0x178] sm:$0xff]   ;;  %3856 = vmatprep.subr.bf16.mxu0 %v4384_v0  ;;  %v4388_v5 = vld [vmem:[%s5545_s1 + $0x170] sm:$0xff]   ;;  %v4391_v8 = vld [vmem:[%s5545_s1 + $0x168] sm:$0xff]   ;;  %s4373_s14 = smul.u32 48, %s5553_s25  ;;  %s3234_s11 = sshll.u32 %s5553_s25, 1  ;;  %vm3169_vm1 = vcmask 1041408  }
   0xd   : > { %v4386_v3 = vld [vmem:[%s5545_s1 + $0xf8] sm:$0xff]   ;;  %4169 = vmatprep.mubr.msk.bf16.mxu1 %vm4625_vm0, %v4624_v1  ;;  %4154 = vmatpush3.bf16.msra.mxu1 %v4385_v2  ;;  %v4389_v6 = vld [vmem:[%s5545_s1 + $0xf0] sm:$0xff]   ;;  %v4392_v9 = vld [vmem:[%s5545_s1 + $0xe8] sm:$0xff]   ;;  %s276_s16 = scalar_lea.vmem %s5551_s7, %s3234_s11  ;;  %vm3170_vm2 = vsmask.f32 1280 }
   0xe   : > { %3857 = vmatpush3.bf16.msra.mxu0 %v4386_v3  ;;  %4155 = vmatprep.subr.bf16.mxu1 %v4624_v1  ;;  %v4393_v10 = vld [vmem:[%s5545_s1 + $0x120] sm:$0xff]   ;;  %v4396_v13 = vld [vmem:[%s5545_s1 + $0x118] sm:$0xff]   ;;  %v4399_v16 = vld [vmem:[%s5545_s1 + $0x110] sm:$0xff]   ;;  %s4749_s23 = scalar_lea.vmem %s5544_s0, %s4373_s14 }
   0xf   : > { %3858 = vmatprep.subr.bf16.mxu0 %v4387_v4  ;;  %v4394_v11 = vld [vmem:[%s5545_s1 + $0x160] sm:$0xff]   ;;  %v4397_v14 = vld [vmem:[%s5545_s1 + $0x158] sm:$0xff]   ;;  %v4400_v17 = vld [vmem:[%s5545_s1 + $0x150] sm:$0xff]  }
  0x10   : > { %v4395_v12 = vld [vmem:[%s5545_s1 + $0xe0] sm:$0xff]   ;;  %v4398_v15 = vld [vmem:[%s5545_s1 + $0xd8] sm:$0xff]   ;;  %v4401_v18 = vld [vmem:[%s5545_s1 + $0xd0] sm:$0xff]  }
  0x11   : > { %4156 = vmatpush3.bf16.msra.mxu1 %v4388_v5  ;;  %v4402_v19 = vld [vmem:[%s5545_s1 + $0x108] sm:$0xff]   ;;  %v334_v23 = vld [vmem:[%s4749_s23 + $0x10] sm:$0xe]  ;;  %v332_v24 = vld [vmem:[%s4749_s23] sm:$0xe] }
  0x12   : > { %3859 = vmatpush3.bf16.msra.mxu0 %v4389_v6  ;;  %4157 = vmatprep.subr.bf16.mxu1 %v4624_v1  ;;  %v4403_v20 = vld [vmem:[%s5545_s1 + $0x148] sm:$0xff]   ;;  %v4405_v25 = vld [vmem:[%s5545_s1 + $0x100] sm:$0xff]   ;;  %v337_v27 = vpack.c.bf16 %v334_v23, %v334_v23  ;;  %v335_v28 = vpack.c.bf16 %v332_v24, %v332_v24  ;;  %v4408_v37 = vld [vmem:[%s5545_s1 + $0x78] sm:$0xff]  }
  0x13   : > { %3860 = vmatprep.subr.bf16.mxu0 %v4390_v7  ;;  %v4404_v21 = vld [vmem:[%s5545_s1 + $0xc8] sm:$0xff]   ;;  %v4406_v29 = vld [vmem:[%s5545_s1 + $0x140] sm:$0xff]   ;;  %v4409_v43 = vld [vmem:[%s5545_s1 + $0xb8] sm:$0xff]  }
  0x14   : > { %v333_v22 = vld [vmem:[%s4749_s23 + $0x8] sm:$0xe]  ;;  %v402_v32 = vshrl.u32 %v337_v27, 16  ;;  %v404_v33 = vshll.u32 %v337_v27, 16  ;;  %v4407_v34 = vld [vmem:[%s5545_s1 + $0xc0] sm:$0xff]   ;;  %v388_v35 = vshrl.u32 %v335_v28, 16  ;;  %vm3171_vm3 = vmand %vm3169_vm1, %vm3170_vm2 }
  0x15   : > { %4158 = vmatpush3.bf16.msra.mxu1 %v4391_v8  ;;  %v336_v26 = vpack.c.bf16 %v333_v22, %v333_v22  ;;  %v390_v36 = vshll.u32 %v335_v28, 16  ;;  %v4410_v45 = vld [vmem:[%s5545_s1 + $0x38] sm:$0xff]   ;;  %v4411_v46 = vld [vmem:[%s5545_s1 + $0x70] sm:$0xff]   ;;  %v4414_v49 = vld [vmem:[%s5545_s1 + $0x68] sm:$0xff]  }
  0x16   : > { %3861 = vmatpush3.bf16.msra.mxu0 %v4392_v9  ;;  %4159 = vmatprep.subr.bf16.mxu1 %v4624_v1  ;;  %v406_v39 = vrot.slane %v404_v33, 1  ;;  %v4412_v47 = vld [vmem:[%s5545_s1 + $0xb0] sm:$0xff]   ;;  %v4415_v50 = vld [vmem:[%s5545_s1 + $0xa8] sm:$0xff]   ;;  %v4417_v52 = vld [vmem:[%s5545_s1 + $0x60] sm:$0xff]  }
  0x17   : > { %3862 = vmatprep.subr.bf16.mxu0 %v4393_v10  ;;  %v395_v30 = vshrl.u32 %v336_v26, 16  ;;  %v397_v31 = vshll.u32 %v336_v26, 16  ;;  %v392_v40 = vrot.slane %v390_v36, 1  ;;  %v4413_v48 = vld [vmem:[%s5545_s1 + $0x30] sm:$0xff]   ;;  %v4416_v51 = vld [vmem:[%s5545_s1 + $0x28] sm:$0xff]   ;;  %v4418_v53 = vld [vmem:[%s5545_s1 + $0xa0] sm:$0xff]  }
  0x18   : > { %v407_v42 = vor.u32 %v406_v39, %v402_v32  ;;  %v4419_v54 = vld [vmem:[%s5545_s1 + $0x20] sm:$0xff]   ;;  %v4420_v55 = vld [vmem:[%s5545_s1 + $0x58] sm:$0xff]   ;;  %v4423_v58 = vld [vmem:[%s5545_s1 + $0x50] sm:$0xff]  }
  0x19   : > { %4160 = vmatpush3.bf16.msra.mxu1 %v4394_v11  ;;  %v399_v38 = vrot.slane %v397_v31, 1  ;;  %v393_v44 = vor.u32 %v392_v40, %v388_v35  ;;  %v4421_v56 = vld [vmem:[%s5545_s1 + $0x98] sm:$0xff]   ;;  %v279_v59 = vld [vmem:[%s4749_s23 + $0x8] sm:$0x7]  ;;  %v4424_v60 = vld [vmem:[%s5545_s1 + $0x90] sm:$0xff]  }
  0x1a   : > { %3863 = vmatpush3.bf16.msra.mxu0 %v4395_v12  ;;  %4161 = vmatprep.subr.bf16.mxu1 %v4624_v1  ;;  %v4422_v57 = vld [vmem:[%s5545_s1 + $0x18] sm:$0xff]   ;;  %v282_v61 = vpack.c.bf16 %v279_v59, %v279_v59  ;;  %v4425_v62 = vld [vmem:[%s5545_s1 + $0x10] sm:$0xff]   ;;  %v4426_v63 = vld [vmem:[%s5545_s1 + $0x48] sm:$0xff]  }
  0x1b   : > { %3864 = vmatprep.subr.bf16.mxu0 %v4396_v13  ;;  %v400_v41 = vor.u32 %v399_v38, %v395_v30  ;;  %v4427_v0 = vld [vmem:[%s5545_s1 + $0x88] sm:$0xff]   ;;  %v4429_v3 = vld [vmem:[%s5545_s1 + $0x40] sm:$0xff]   ;;  %v280_v6 = vld [vmem:[%s4749_s23 + $0x10] sm:$0x7] }
  0x1c   : > { %v4428_v2 = vld [vmem:[%s5545_s1 + $0x8] sm:$0xff]   ;;  %v4430_v4 = vld [vmem:[%s5545_s1 + $0x80] sm:$0xff]   ;;  %v4432_v8 = vld [vmem:[%s5545_s1 + $0x1f8] sm:$0xff]   ;;  %v283_v9 = vpack.c.bf16 %v280_v6, %v280_v6 }
  0x1d   : > { %4162 = vmatpush3.bf16.msra.mxu1 %v4397_v14  ;;  %587 = vmatprep.mubr.bf16.mxu0 %v400_v41  ;;  %v4431_v5 = vld [vmem:[%s5545_s1] sm:$0xff]   ;;  %v4433_v11 = vld [vmem:[%s5545_s1 + $0x238] sm:$0xff]   ;;  %v4435_v13 = vld [vmem:[%s5545_s1 + $0x1f0] sm:$0xff]  }
  0x1e   : > { %3865 = vmatpush3.bf16.msra.mxu0 %v4398_v15  ;;  %4163 = vmatprep.subr.bf16.mxu1 %v4624_v1  ;;  %v278_v7 = vld [vmem:[%s4749_s23] sm:$0x7]  ;;  %v4434_v12 = vld [vmem:[%s5545_s1 + $0x1b8] sm:$0xff]   ;;  %v4436_v14 = vld [vmem:[%s5545_s1 + $0x230] sm:$0xff]  }
  0x1f   : > { %3866 = vmatprep.subr.bf16.mxu0 %v4399_v16  ;;  %v281_v10 = vpack.c.bf16 %v278_v7, %v278_v7  ;;  %v4437_v15 = vld [vmem:[%s5545_s1 + $0x1b0] sm:$0xff]   ;;  %v4438_v16 = vld [vmem:[%s5545_s1 + $0x1e8] sm:$0xff]   ;;  %v4443_v22 = vld [vmem:[%s5545_s1 + $0x1a0] sm:$0xff]  }
  0x20   : > { %v4444_v24 = vld [vmem:[%s5545_s1 + $0x1d8] sm:$0xff]   ;;  %v4447_v28 = vld [vmem:[%s5545_s1 + $0x1d0] sm:$0xff]   ;;  %v4450_v31 = vld [vmem:[%s5545_s1 + $0x1c8] sm:$0xff]  }
  0x21   : > { %4164 = vmatpush3.bf16.msra.mxu1 %v4400_v17  ;;  %v4439_v17 = vld [vmem:[%s5545_s1 + $0x228] sm:$0xff]   ;;  %v4446_v27 = vld [vmem:[%s5545_s1 + $0x198] sm:$0xff]   ;;  %v4449_v30 = vld [vmem:[%s5545_s1 + $0x190] sm:$0xff]  }
  0x22   : > { %3867 = vmatpush3.bf16.msra.mxu0 %v4401_v18  ;;  %4165 = vmatprep.subr.bf16.mxu1 %v4624_v1  ;;  %v4440_v18 = vld [vmem:[%s5545_s1 + $0x1a8] sm:$0xff]   ;;  %v859_v35 = vld [vmem:[%s4749_s23] sm:$0x1c]  ;;  %v4456_v41 = vld [vmem:[%s5545_s1 + $0x2b8] sm:$0xff]  }
  0x23   : > { %3868 = vmatprep.subr.bf16.mxu0 %v4402_v19  ;;  %v4441_v19 = vld [vmem:[%s5545_s1 + $0x1e0] sm:$0xff]   ;;  %v4451_v32 = vld [vmem:[%s5545_s1 + $0x208] sm:$0xff]   ;;  %v862_v39 = vpack.c.bf16 %v859_v35, %v859_v35  ;;  %v4473_v7 = vld [vmem:[%s5545_s1 + $0x250] sm:$0xff]  }
  0x24   : > { %v4452_v33 = vld [vmem:[%s5545_s1 + $0x188] sm:$0xff]   ;;  %v4453_v36 = vld [vmem:[%s5545_s1 + $0x1c0] sm:$0xff]  }
  0x25   : > { %4166 = vmatpush3.bf16.msra.mxu1 %v4403_v20  ;;  %v4442_v20 = vld [vmem:[%s5545_s1 + $0x220] sm:$0xff]   ;;  %v4487_v35 = vld [vmem:[%s5545_s1 + $0x3a8] sm:$0xff]  }
  0x26   : > { %3869 = vmatpush3.bf16.msra.mxu0 %v4404_v21  ;;  %4167 = vmatprep.subr.bf16.mxu1 %v4624_v1  ;;  %v860_v21 = vld [vmem:[%s4749_s23 + $0x8] sm:$0x1c]  ;;  %v4454_v38 = vld [vmem:[%s5545_s1 + $0x200] sm:$0xff]  }
  0x27   : > { %3870 = vmatprep.subr.bf16.mxu0 %v4405_v25  ;;  %v863_v23 = vpack.c.bf16 %v860_v21, %v860_v21  ;;  %v4445_v25 = vld [vmem:[%s5545_s1 + $0x218] sm:$0xff]   ;;  %v4455_v40 = vld [vmem:[%s5545_s1 + $0x180] sm:$0xff]  }
  0x28   : > { %v4466_v59 = vld [vmem:[%s5545_s1 + $0x2e0] sm:$0xff]  }
  0x29   : > { %4168 = vmatpush3.bf16.msra.mxu1 %v4406_v29  ;;  %v918_v26 = vrot.slane %v863_v23, 1  ;;  %v4448_v29 = vld [vmem:[%s5545_s1 + $0x210] sm:$0xff]   ;;  %v4480_v23 = vld [vmem:[%s5545_s1 + $0x378] sm:$0xff]  }
  0x2a   : > { %3871 = vmatpush3.bf16.msra.mxu0 %v4407_v34  ;;  %4173 = vmatprep.subr.bf16.mxu1 %v4624_v1  ;;  %v861_v34 = vld [vmem:[%s4749_s23 + $0x10] sm:$0x1c] }
  0x2b   : > { %3887 = vmatprep.subr.bf16.mxu0 %v4408_v37  ;;  %v864_v37 = vpack.c.bf16 %v861_v34, %v861_v34  ;;  %v4486_v34 = vld [vmem:[%s5545_s1 + $0x368] sm:$0xff]  }
  0x2c   : > { %4170 = vmatmul.mubr.bf16.vlgmr.msra.gmra.mxu1 %v407_v42 }
  0x2d   : > { %588 = vmatmul.mubr.bf16.vlgmr.msra.gmra.mxu0 %v393_v44  ;;  %4174 = vmatpush3.bf16.msra.mxu1 %v4409_v43  ;;  %v919_v42 = vrot.slane %v864_v37, 1  ;;  %v917_v43 = vrot.slane %v862_v39, 1  ;;  %v4457_v44 = vld [vmem:[%s5545_s1 + $0x2f8] sm:$0xff]   ;;  %v4489_v37 = vld [vmem:[%s5545_s1 + $0x360] sm:$0xff]  }
  0x2e   : > { %3888 = vmatpush3.bf16.msra.mxu0 %v4410_v45  ;;  %4175 = vmatprep.subr.bf16.mxu1 %v4624_v1  ;;  %v4458_v45 = vld [vmem:[%s5545_s1 + $0x278] sm:$0xff]   ;;  %v4491_v39 = vld [vmem:[%s5545_s1 + $0x320] sm:$0xff]  }
  0x2f   : > { %3889 = vmatprep.subr.bf16.mxu0 %v4411_v46  ;;  %4189 = vmatprep.mubr.msk.bf16.mxu1 %vm4625_vm0, %v4624_v1  ;;  %v4459_v46 = vld [vmem:[%s5545_s1 + $0x2b0] sm:$0xff]  }
  0x30   : > { %811 = vmatprep.mubr.bf16.mxu0 %v282_v61 }
  0x31   : > { %4176 = vmatpush3.bf16.msra.mxu1 %v4412_v47  ;;  %v4460_v47 = vld [vmem:[%s5545_s1 + $0x2f0] sm:$0xff]  }
  0x32   : > { %3890 = vmatpush3.bf16.msra.mxu0 %v4413_v48  ;;  %4177 = vmatprep.subr.bf16.mxu1 %v4624_v1  ;;  %v4461_v48 = vld [vmem:[%s5545_s1 + $0x270] sm:$0xff]  }
  0x33   : > { %3891 = vmatprep.subr.bf16.mxu0 %v4414_v49  ;;  %v1149_v49 = vld [vmem:[%s4749_s23 + $0x8] sm:$0x38] }
  0x35   : > { %4178 = vmatpush3.bf16.msra.mxu1 %v4415_v50  ;;  %v4462_v50 = vld [vmem:[%s5545_s1 + $0x2a8] sm:$0xff]  }
  0x36   : > { %3892 = vmatpush3.bf16.msra.mxu0 %v4416_v51  ;;  %4179 = vmatprep.subr.bf16.mxu1 %v4624_v1  ;;  %v1152_v51 = vpack.c.bf16 %v1149_v49, %v1149_v49  ;;  %v1745_v49 = vld [vmem:[%s4749_s23 + $0x8] sm:$0xe0] }
  0x37   : > { %3893 = vmatprep.subr.bf16.mxu0 %v4417_v52  ;;  %v4463_v52 = vld [vmem:[%s5545_s1 + $0x2e8] sm:$0xff]  }
  0x39   : > { %4180 = vmatpush3.bf16.msra.mxu1 %v4418_v53  ;;  %v1212_v53 = vshrl.u32 %v1152_v51, 16 }
  0x3a   : > { %3894 = vmatpush3.bf16.msra.mxu0 %v4419_v54  ;;  %4181 = vmatprep.subr.bf16.mxu1 %v4624_v1  ;;  %v1215_v54 = vshll.u32 %v1152_v51, 16  ;;  %v1455_v51 = vld [vmem:[%s4749_s23] sm:$0x70] }
  0x3b   : > { %3895 = vmatprep.subr.bf16.mxu0 %v4420_v55  ;;  %v4464_v55 = vld [vmem:[%s5545_s1 + $0x268] sm:$0xff]  }
  0x3d   : > { %4182 = vmatpush3.bf16.msra.mxu1 %v4421_v56  ;;  %v4465_v56 = vld [vmem:[%s5545_s1 + $0x2a0] sm:$0xff]  }
  0x3e   : > { %3896 = vmatpush3.bf16.msra.mxu0 %v4422_v57  ;;  %4183 = vmatprep.subr.bf16.mxu1 %v4624_v1  ;;  %v1214_v57 = vrot.slane %v1212_v53, 1  ;;  %v4501_v53 = vld [vmem:[%s5545_s1 + $0x340] sm:$0xff]  }
  0x3f   : > { %3897 = vmatprep.subr.bf16.mxu0 %v4423_v58  ;;  %v1217_v58 = vrot.slane %v1215_v54, 2 }
  0x41   : > { %4184 = vmatpush3.bf16.msra.mxu1 %v4424_v60  ;;  %v4467_v60 = vld [vmem:[%s5545_s1 + $0x260] sm:$0xff]   ;;  %v1218_v61 = vor.u32 %v1217_v58, %v1214_v57  ;;  %v1458_v58 = vpack.c.bf16 %v1455_v51, %v1455_v51  ;;  %v4535_v51 = vld [vmem:[%s5545_s1 + $0x528] sm:$0xff]  }
  0x42   : > { %3898 = vmatpush3.bf16.msra.mxu0 %v4425_v62  ;;  %4185 = vmatprep.subr.bf16.mxu1 %v4624_v1  ;;  %v4468_v62 = vld [vmem:[%s5545_s1 + $0x298] sm:$0xff]   ;;  %v4502_v57 = vld [vmem:[%s5545_s1 + $0x380] sm:$0xff]  }
  0x43   : > { %3899 = vmatprep.subr.bf16.mxu0 %v4426_v63  ;;  %v4469_v63 = vld [vmem:[%s5545_s1 + $0x2d8] sm:$0xff]  }
  0x45   : > { %4186 = vmatpush3.bf16.msra.mxu1 %v4427_v0  ;;  %v4470_v0 = vld [vmem:[%s5545_s1 + $0x258] sm:$0xff]  }
  0x46   : > { %3900 = vmatpush3.bf16.msra.mxu0 %v4428_v2  ;;  %4187 = vmatprep.subr.bf16.mxu1 %v4624_v1  ;;  %v1150_v2 = vld [vmem:[%s4749_s23 + $0x10] sm:$0x38] }
  0x47   : > { %3901 = vmatprep.subr.bf16.mxu0 %v4429_v3  ;;  %v1148_v3 = vld [vmem:[%s4749_s23] sm:$0x38]  ;;  %v1153_v6 = vpack.c.bf16 %v1150_v2, %v1150_v2  ;;  %v4505_v2 = vld [vmem:[%s5545_s1 + $0x478] sm:$0xff]  }
  0x49   : > { %4188 = vmatpush3.bf16.msra.mxu1 %v4430_v4  ;;  %v4471_v4 = vld [vmem:[%s5545_s1 + $0x290] sm:$0xff]  }
  0x4a   : > { %3902 = vmatpush3.bf16.msra.mxu0 %v4431_v5  ;;  %4193 = vmatprep.subr.bf16.mxu1 %v4624_v1  ;;  %v4472_v5 = vld [vmem:[%s5545_s1 + $0x2d0] sm:$0xff]  }
  0x4b   : > { %3918 = vmatprep.subr.bf16.mxu0 %v4432_v8  ;;  %v1151_v8 = vpack.c.bf16 %v1148_v3, %v1148_v3  ;;  %v4506_v3 = vld [vmem:[%s5545_s1 + $0x3f8] sm:$0xff]  }
  0x4c   : > { %4190 = vmatmul.mubr.bf16.vlgmr.msra.gmra.mxu1 %v283_v9  ;;  %v4474_v9 = vld [vmem:[%s5545_s1 + $0x288] sm:$0xff]  }
  0x4d   : > { %812 = vmatmul.mubr.bf16.vlgmr.msra.gmra.mxu0 %v281_v10  ;;  %4194 = vmatpush3.bf16.msra.mxu1 %v4433_v11  ;;  %v4475_v10 = vld [vmem:[%s5545_s1 + $0x2c8] sm:$0xff]  }
  0x4e   : > { %3919 = vmatpush3.bf16.msra.mxu0 %v4434_v12  ;;  %4195 = vmatprep.subr.bf16.mxu1 %v4624_v1  ;;  %v4476_v11 = vld [vmem:[%s5545_s1 + $0x248] sm:$0xff]   ;;  %v1220_v12 = vshrl.u32 %v1153_v6, 16 }
  0x4f   : > { %3920 = vmatprep.subr.bf16.mxu0 %v4435_v13  ;;  %4209 = vmatprep.mubr.msk.bf16.mxu1 %vm4625_vm0, %v4624_v1  ;;  %v1223_v13 = vshll.u32 %v1153_v6, 16  ;;  %v4508_v6 = vld [vmem:[%s5545_s1 + $0x470] sm:$0xff]  }
  0x50   : > { %1099 = vmatprep.mubr.bf16.mxu0 %v918_v26 }
  0x51   : > { %4196 = vmatpush3.bf16.msra.mxu1 %v4436_v14  ;;  %v1204_v14 = vshrl.u32 %v1151_v8, 16 }
  0x52   : > { %3921 = vmatpush3.bf16.msra.mxu0 %v4437_v15  ;;  %4197 = vmatprep.subr.bf16.mxu1 %v4624_v1  ;;  %v1207_v15 = vshll.u32 %v1151_v8, 16  ;;  %v4510_v8 = vld [vmem:[%s5545_s1 + $0x428] sm:$0xff]  }
  0x53   : > { %3922 = vmatprep.subr.bf16.mxu0 %v4438_v16  ;;  %v4477_v16 = vld [vmem:[%s5545_s1 + $0x280] sm:$0xff]  }
  0x54   : > { %v1209_v21 = vrot.slane %v1207_v15, 2  ;;  %v1746_v15 = vld [vmem:[%s4749_s23 + $0x10] sm:$0xe0] }
  0x55   : > { %4198 = vmatpush3.bf16.msra.mxu1 %v4439_v17  ;;  %v4478_v17 = vld [vmem:[%s5545_s1 + $0x2c0] sm:$0xff]  }
  0x56   : > { %3923 = vmatpush3.bf16.msra.mxu0 %v4440_v18  ;;  %4199 = vmatprep.subr.bf16.mxu1 %v4624_v1  ;;  %v1222_v18 = vrot.slane %v1220_v12, 1  ;;  %v4514_v12 = vld [vmem:[%s5545_s1 + $0x460] sm:$0xff]  }
  0x57   : > { %3924 = vmatprep.subr.bf16.mxu0 %v4441_v19  ;;  %v1225_v19 = vrot.slane %v1223_v13, 2  ;;  %v4515_v13 = vld [vmem:[%s5545_s1 + $0x3e0] sm:$0xff]  }
  0x59   : > { %4200 = vmatpush3.bf16.msra.mxu1 %v4442_v20  ;;  %v1206_v20 = vrot.slane %v1204_v14, 1  ;;  %v4516_v14 = vld [vmem:[%s5545_s1 + $0x418] sm:$0xff]  }
  0x5a   : > { %3925 = vmatpush3.bf16.msra.mxu0 %v4443_v22  ;;  %4201 = vmatprep.subr.bf16.mxu1 %v4624_v1  ;;  %v4479_v22 = vld [vmem:[%s5545_s1 + $0x240] sm:$0xff]  }
  0x5b   : > { %3926 = vmatprep.subr.bf16.mxu0 %v4444_v24  ;;  %v1226_v24 = vor.u32 %v1225_v19, %v1222_v18  ;;  %v1210_v26 = vor.u32 %v1209_v21, %v1206_v20  ;;  %v4518_v18 = vld [vmem:[%s5545_s1 + $0x3d8] sm:$0xff]   ;;  %v1749_v19 = vpack.c.bf16 %v1746_v15, %v1746_v15  ;;  %v4519_v20 = vld [vmem:[%s5545_s1 + $0x410] sm:$0xff]   ;;  %v4551_v15 = vld [vmem:[%s5545_s1 + $0x480] sm:$0xff]  }
  0x5d   : > { %4202 = vmatpush3.bf16.msra.mxu1 %v4445_v25  ;;  %v1456_v25 = vld [vmem:[%s4749_s23 + $0x8] sm:$0x70] }
  0x5e   : > { %3927 = vmatpush3.bf16.msra.mxu0 %v4446_v27  ;;  %4203 = vmatprep.subr.bf16.mxu1 %v4624_v1  ;;  %v4481_v27 = vld [vmem:[%s5545_s1 + $0x3b8] sm:$0xff]  }
  0x5f   : > { %3928 = vmatprep.subr.bf16.mxu0 %v4447_v28  ;;  %v1459_v28 = vpack.c.bf16 %v1456_v25, %v1456_v25  ;;  %v1816_v25 = vshrl.u32 %v1749_v19, 16 }
  0x61   : > { %4204 = vmatpush3.bf16.msra.mxu1 %v4448_v29  ;;  %v4482_v29 = vld [vmem:[%s5545_s1 + $0x338] sm:$0xff]  }
  0x62   : > { %3929 = vmatpush3.bf16.msra.mxu0 %v4449_v30  ;;  %4205 = vmatprep.subr.bf16.mxu1 %v4624_v1  ;;  %v4483_v30 = vld [vmem:[%s5545_s1 + $0x370] sm:$0xff]  }
  0x63   : > { %3930 = vmatprep.subr.bf16.mxu0 %v4450_v31  ;;  %v4484_v31 = vld [vmem:[%s5545_s1 + $0x3b0] sm:$0xff]  }
  0x65   : > { %4206 = vmatpush3.bf16.msra.mxu1 %v4451_v32  ;;  %v1514_v32 = vrot.slane %v1459_v28, 2 }
  0x66   : > { %3931 = vmatpush3.bf16.msra.mxu0 %v4452_v33  ;;  %4207 = vmatprep.subr.bf16.mxu1 %v4624_v1  ;;  %v4485_v33 = vld [vmem:[%s5545_s1 + $0x330] sm:$0xff]  }
  0x67   : > { %3932 = vmatprep.subr.bf16.mxu0 %v4453_v36  ;;  %v4488_v36 = vld [vmem:[%s5545_s1 + $0x328] sm:$0xff]  }
  0x69   : > { %4208 = vmatpush3.bf16.msra.mxu1 %v4454_v38  ;;  %v4490_v38 = vld [vmem:[%s5545_s1 + $0x3a0] sm:$0xff]  }
  0x6a   : > { %3933 = vmatpush3.bf16.msra.mxu0 %v4455_v40  ;;  %4213 = vmatprep.subr.bf16.mxu1 %v4624_v1  ;;  %v4492_v40 = vld [vmem:[%s5545_s1 + $0x358] sm:$0xff]  }
  0x6b   : > { %3949 = vmatprep.subr.bf16.mxu0 %v4456_v41  ;;  %v4493_v41 = vld [vmem:[%s5545_s1 + $0x398] sm:$0xff]  }
  0x6c   : > { %4210 = vmatmul.mubr.bf16.vlgmr.msra.gmra.mxu1 %v919_v42  ;;  %v4494_v42 = vld [vmem:[%s5545_s1 + $0x318] sm:$0xff]  }
  0x6d   : > { %1100 = vmatmul.mubr.bf16.vlgmr.msra.gmra.mxu0 %v917_v43  ;;  %4214 = vmatpush3.bf16.msra.mxu1 %v4457_v44  ;;  %v4495_v43 = vld [vmem:[%s5545_s1 + $0x350] sm:$0xff]  }
  0x6e   : > { %3950 = vmatpush3.bf16.msra.mxu0 %v4458_v45  ;;  %4215 = vmatprep.subr.bf16.mxu1 %v4624_v1  ;;  %v4496_v44 = vld [vmem:[%s5545_s1 + $0x390] sm:$0xff]  }
  0x6f   : > { %3951 = vmatprep.subr.bf16.mxu0 %v4459_v46  ;;  %4229 = vmatprep.mubr.msk.bf16.mxu1 %vm4625_vm0, %v4624_v1  ;;  %v4497_v45 = vld [vmem:[%s5545_s1 + $0x310] sm:$0xff]   ;;  %v4498_v46 = vld [vmem:[%s5545_s1 + $0x348] sm:$0xff]  }
  0x70   : > { %1406 = vmatprep.mubr.bf16.mxu0 %v1218_v61  ;;  %v4504_v61 = vld [vmem:[%s5545_s1 + $0x438] sm:$0xff]  }
  0x71   : > { %4216 = vmatpush3.bf16.msra.mxu1 %v4460_v47  ;;  %v1457_v47 = vld [vmem:[%s4749_s23 + $0x10] sm:$0x70] }
  0x72   : > { %3952 = vmatpush3.bf16.msra.mxu0 %v4461_v48  ;;  %4217 = vmatprep.subr.bf16.mxu1 %v4624_v1  ;;  %v4499_v48 = vld [vmem:[%s5545_s1 + $0x388] sm:$0xff]   ;;  %v1460_v54 = vpack.c.bf16 %v1457_v47, %v1457_v47 }
  0x73   : > { %3953 = vmatprep.subr.bf16.mxu0 %v4462_v50  ;;  %v4500_v50 = vld [vmem:[%s5545_s1 + $0x308] sm:$0xff]  }
  0x75   : > { %4218 = vmatpush3.bf16.msra.mxu1 %v4463_v52  ;;  %v1748_v52 = vpack.c.bf16 %v1745_v49, %v1745_v49  ;;  %v4533_v49 = vld [vmem:[%s5545_s1 + $0x4b0] sm:$0xff]  }
  0x76   : > { %3954 = vmatpush3.bf16.msra.mxu0 %v4464_v55  ;;  %4219 = vmatprep.subr.bf16.mxu1 %v4624_v1 }
  0x77   : > { %3955 = vmatprep.subr.bf16.mxu0 %v4465_v56  ;;  %v1808_v55 = vshrl.u32 %v1748_v52, 16  ;;  %v1811_v56 = vshll.u32 %v1748_v52, 16  ;;  %v4536_v52 = vld [vmem:[%s5545_s1 + $0x4a8] sm:$0xff]  }
  0x79   : > { %4220 = vmatpush3.bf16.msra.mxu1 %v4466_v59  ;;  %v4503_v59 = vld [vmem:[%s5545_s1 + $0x300] sm:$0xff]  }
  0x7a   : > { %3956 = vmatpush3.bf16.msra.mxu0 %v4467_v60  ;;  %4221 = vmatprep.subr.bf16.mxu1 %v4624_v1  ;;  %v1515_v60 = vrot.slane %v1460_v54, 2  ;;  %v4538_v54 = vld [vmem:[%s5545_s1 + $0x520] sm:$0xff]  }
  0x7b   : > { %3957 = vmatprep.subr.bf16.mxu0 %v4468_v62  ;;  %v1810_v62 = vrot.slane %v1808_v55, 2  ;;  %v4539_v55 = vld [vmem:[%s5545_s1 + $0x4a0] sm:$0xff]  }
  0x7d   : > { %4222 = vmatpush3.bf16.msra.mxu1 %v4469_v63  ;;  %v1813_v63 = vrot.slane %v1811_v56, 3  ;;  %v4540_v56 = vld [vmem:[%s5545_s1 + $0x4d8] sm:$0xff]  }
  0x7e   : > { %3958 = vmatpush3.bf16.msra.mxu0 %v4470_v0  ;;  %4223 = vmatprep.subr.bf16.mxu1 %v4624_v1  ;;  %v1513_v0 = vrot.slane %v1458_v58, 2  ;;  %v4542_v58 = vld [vmem:[%s5545_s1 + $0x498] sm:$0xff]  }
  0x7f   : > { %3959 = vmatprep.subr.bf16.mxu0 %v4471_v4  ;;  %v4507_v4 = vld [vmem:[%s5545_s1 + $0x430] sm:$0xff]  }
  0x81   : > { %4224 = vmatpush3.bf16.msra.mxu1 %v4472_v5  ;;  %v1814_v5 = vor.u32 %v1813_v63, %v1810_v62  ;;  %v2344_v62 = vld [vmem:[%s4749_s23 + $0x8] sm:$0x80]  ;;  %v2347_v63 = vld [vmem:[%s4749_s23 + $0x20] sm:$0x3] }
  0x82   : > { %3960 = vmatpush3.bf16.msra.mxu0 %v4473_v7  ;;  %4225 = vmatprep.subr.bf16.mxu1 %v4624_v1  ;;  %v4509_v7 = vld [vmem:[%s5545_s1 + $0x3f0] sm:$0xff]  }
  0x83   : > { %3961 = vmatprep.subr.bf16.mxu0 %v4474_v9  ;;  %v4511_v9 = vld [vmem:[%s5545_s1 + $0x468] sm:$0xff]  }
  0x85   : > { %4226 = vmatpush3.bf16.msra.mxu1 %v4475_v10  ;;  %v4512_v10 = vld [vmem:[%s5545_s1 + $0x3e8] sm:$0xff]  }
  0x86   : > { %3962 = vmatpush3.bf16.msra.mxu0 %v4476_v11  ;;  %4227 = vmatprep.subr.bf16.mxu1 %v4624_v1  ;;  %v4513_v11 = vld [vmem:[%s5545_s1 + $0x420] sm:$0xff]  }
  0x87   : > { %3963 = vmatprep.subr.bf16.mxu0 %v4477_v16  ;;  %v1744_v16 = vld [vmem:[%s4749_s23] sm:$0xe0] }
  0x88   : > { %v1747_v21 = vpack.c.bf16 %v1744_v16, %v1744_v16 }
  0x89   : > { %4228 = vmatpush3.bf16.msra.mxu1 %v4478_v17  ;;  %v4517_v17 = vld [vmem:[%s5545_s1 + $0x458] sm:$0xff]  }
  0x8a   : > { %3964 = vmatpush3.bf16.msra.mxu0 %v4479_v22  ;;  %4233 = vmatprep.subr.bf16.mxu1 %v4624_v1  ;;  %v4520_v22 = vld [vmem:[%s5545_s1 + $0x450] sm:$0xff]   ;;  %v1800_v28 = vshrl.u32 %v1747_v21, 16 }
  0x8b   : > { %3980 = vmatprep.subr.bf16.mxu0 %v4480_v23  ;;  %v4521_v23 = vld [vmem:[%s5545_s1 + $0x3d0] sm:$0xff]  }
  0x8c   : > { %4230 = vmatmul.mubr.bf16.vlgmr.msra.gmra.mxu1 %v1226_v24  ;;  %v4522_v24 = vld [vmem:[%s5545_s1 + $0x408] sm:$0xff]  }
  0x8d   : > { %1407 = vmatmul.mubr.bf16.vlgmr.msra.gmra.mxu0 %v1210_v26  ;;  %4234 = vmatpush3.bf16.msra.mxu1 %v4481_v27  ;;  %v1819_v26 = vshll.u32 %v1749_v19, 16  ;;  %v4523_v27 = vld [vmem:[%s5545_s1 + $0x448] sm:$0xff]  }
  0x8e   : > { %3981 = vmatpush3.bf16.msra.mxu0 %v4482_v29  ;;  %4235 = vmatprep.subr.bf16.mxu1 %v4624_v1  ;;  %v1803_v29 = vshll.u32 %v1747_v21, 16  ;;  %v4553_v21 = vld [vmem:[%s5545_s1 + $0x5f8] sm:$0xff]  }
  0x8f   : > { %3982 = vmatprep.subr.bf16.mxu0 %v4483_v30  ;;  %4249 = vmatprep.mubr.msk.bf16.mxu1 %vm4625_vm0, %v4624_v1  ;;  %v4524_v30 = vld [vmem:[%s5545_s1 + $0x3c8] sm:$0xff]  }
  0x90   : > { %1695 = vmatprep.mubr.bf16.mxu0 %v1514_v32  ;;  %v1818_v32 = vrot.slane %v1816_v25, 2 }
  0x91   : > { %4236 = vmatpush3.bf16.msra.mxu1 %v4484_v31  ;;  %v4525_v31 = vld [vmem:[%s5545_s1 + $0x400] sm:$0xff]  }
  0x92   : > { %3983 = vmatpush3.bf16.msra.mxu0 %v4485_v33  ;;  %4237 = vmatprep.subr.bf16.mxu1 %v4624_v1  ;;  %v1821_v33 = vrot.slane %v1819_v26, 3 }
  0x93   : > { %3984 = vmatprep.subr.bf16.mxu0 %v4486_v34  ;;  %v4526_v34 = vld [vmem:[%s5545_s1 + $0x440] sm:$0xff]  }
  0x95   : > { %4238 = vmatpush3.bf16.msra.mxu1 %v4487_v35  ;;  %v1802_v35 = vrot.slane %v1800_v28, 2 }
  0x96   : > { %3985 = vmatpush3.bf16.msra.mxu0 %v4488_v36  ;;  %4239 = vmatprep.subr.bf16.mxu1 %v4624_v1  ;;  %v1805_v36 = vrot.slane %v1803_v29, 3  ;;  %v4557_v29 = vld [vmem:[%s5545_s1 + $0x570] sm:$0xff]  }
  0x97   : > { %3986 = vmatprep.subr.bf16.mxu0 %v4489_v37  ;;  %v2052_v37 = vld [vmem:[%s4749_s23 + $0x8] sm:$0xc0] }
  0x99   : > { %4240 = vmatpush3.bf16.msra.mxu1 %v4490_v38  ;;  %v2055_v38 = vld [vmem:[%s4749_s23 + $0x20] sm:$0x1] }
  0x9a   : > { %3987 = vmatpush3.bf16.msra.mxu0 %v4491_v39  ;;  %4241 = vmatprep.subr.bf16.mxu1 %v4624_v1  ;;  %v4527_v39 = vld [vmem:[%s5545_s1 + $0x3c0] sm:$0xff]  }
  0x9b   : > { %3988 = vmatprep.subr.bf16.mxu0 %v4492_v40  ;;  %v4528_v40 = vld [vmem:[%s5545_s1 + $0x4f8] sm:$0xff]  }
  0x9d   : > { %4242 = vmatpush3.bf16.msra.mxu1 %v4493_v41  ;;  %v1822_v41 = vor.u32 %v1821_v33, %v1818_v32 }
  0x9e   : > { %3989 = vmatpush3.bf16.msra.mxu0 %v4494_v42  ;;  %4243 = vmatprep.subr.bf16.mxu1 %v4624_v1  ;;  %v2058_v42 = vpack.c.bf16 %v2055_v38, %v2052_v37  ;;  %v4560_v38 = vld [vmem:[%s5545_s1 + $0x568] sm:$0xff]  }
  0x9f   : > { %3990 = vmatprep.subr.bf16.mxu0 %v4495_v43  ;;  %v1806_v43 = vor.u32 %v1805_v36, %v1802_v35  ;;  %v4559_v35 = vld [vmem:[%s5545_s1 + $0x5e8] sm:$0xff]  }
  0xa0   : > { %v2113_v47 = vrot.slane %v2058_v42, 3  ;;  %v4563_v42 = vld [vmem:[%s5545_s1 + $0x560] sm:$0xff]  }
  0xa1   : > { %4244 = vmatpush3.bf16.msra.mxu1 %v4496_v44  ;;  %v4529_v44 = vld [vmem:[%s5545_s1 + $0x538] sm:$0xff]  }
  0xa2   : > { %3991 = vmatpush3.bf16.msra.mxu0 %v4497_v45  ;;  %4245 = vmatprep.subr.bf16.mxu1 %v4624_v1  ;;  %v4530_v45 = vld [vmem:[%s5545_s1 + $0x4b8] sm:$0xff]  }
  0xa3   : > { %3992 = vmatprep.subr.bf16.mxu0 %v4498_v46  ;;  %v4531_v46 = vld [vmem:[%s5545_s1 + $0x4f0] sm:$0xff]  }
  0xa5   : > { %4246 = vmatpush3.bf16.msra.mxu1 %v4499_v48  ;;  %v4532_v48 = vld [vmem:[%s5545_s1 + $0x530] sm:$0xff]  }
  0xa6   : > { %3993 = vmatpush3.bf16.msra.mxu0 %v4500_v50  ;;  %4247 = vmatprep.subr.bf16.mxu1 %v4624_v1  ;;  %v4534_v50 = vld [vmem:[%s5545_s1 + $0x4e8] sm:$0xff]  }
  0xa7   : > { %3994 = vmatprep.subr.bf16.mxu0 %v4501_v53  ;;  %v4537_v53 = vld [vmem:[%s5545_s1 + $0x4e0] sm:$0xff]  }
  0xa9   : > { %4248 = vmatpush3.bf16.msra.mxu1 %v4502_v57  ;;  %v4541_v57 = vld [vmem:[%s5545_s1 + $0x518] sm:$0xff]  }
  0xaa   : > { %3995 = vmatpush3.bf16.msra.mxu0 %v4503_v59  ;;  %4253 = vmatprep.subr.bf16.mxu1 %v4624_v1  ;;  %v4543_v59 = vld [vmem:[%s5545_s1 + $0x4d0] sm:$0xff]  }
  0xab   : > { %4011 = vmatprep.subr.bf16.mxu0 %v4504_v61  ;;  %v4545_v61 = vld [vmem:[%s5545_s1 + $0x490] sm:$0xff]  }
  0xac   : > { %4250 = vmatmul.mubr.bf16.vlgmr.msra.gmra.mxu1 %v1515_v60  ;;  %v4544_v60 = vld [vmem:[%s5545_s1 + $0x510] sm:$0xff]  }
  0xad   : > { %1696 = vmatmul.mubr.bf16.vlgmr.msra.gmra.mxu0 %v1513_v0  ;;  %4254 = vmatpush3.bf16.msra.mxu1 %v4505_v2  ;;  %v4546_v0 = vld [vmem:[%s5545_s1 + $0x4c8] sm:$0xff]  }
  0xae   : > { %4012 = vmatpush3.bf16.msra.mxu0 %v4506_v3  ;;  %4255 = vmatprep.subr.bf16.mxu1 %v4624_v1  ;;  %v4547_v2 = vld [vmem:[%s5545_s1 + $0x508] sm:$0xff]   ;;  %v2053_v3 = vld [vmem:[%s4749_s23 + $0x10] sm:$0xc0] }
  0xaf   : > { %4013 = vmatprep.subr.bf16.mxu0 %v4507_v4  ;;  %4269 = vmatprep.mubr.msk.bf16.mxu1 %vm4625_vm0, %v4624_v1  ;;  %v4548_v4 = vld [vmem:[%s5545_s1 + $0x488] sm:$0xff]  }
  0xb0   : > { %2002 = vmatprep.mubr.bf16.mxu0 %v1814_v5  ;;  %v2056_v5 = vld [vmem:[%s4749_s23 + $0x28] sm:$0x1] }
  0xb1   : > { %4256 = vmatpush3.bf16.msra.mxu1 %v4508_v6  ;;  %v2350_v6 = vpack.c.bf16 %v2347_v63, %v2344_v62  ;;  %v4573_v62 = vld [vmem:[%s5545_s1 + $0x580] sm:$0xff]  }
  0xb2   : > { %4014 = vmatpush3.bf16.msra.mxu0 %v4509_v7  ;;  %4257 = vmatprep.subr.bf16.mxu1 %v4624_v1  ;;  %v2051_v7 = vld [vmem:[%s4749_s23] sm:$0xc0] }
  0xb3   : > { %4015 = vmatprep.subr.bf16.mxu0 %v4510_v8  ;;  %v2054_v8 = vld [vmem:[%s4749_s23 + $0x18] sm:$0x1] }
  0xb5   : > { %4258 = vmatpush3.bf16.msra.mxu1 %v4511_v9  ;;  %v4549_v9 = vld [vmem:[%s5545_s1 + $0x4c0] sm:$0xff]  }
  0xb6   : > { %4016 = vmatpush3.bf16.msra.mxu0 %v4512_v10  ;;  %4259 = vmatprep.subr.bf16.mxu1 %v4624_v1  ;;  %v2059_v10 = vpack.c.bf16 %v2056_v5, %v2053_v3  ;;  %v4575_v5 = vld [vmem:[%s5545_s1 + $0x540] sm:$0xff]  }
  0xb7   : > { %4017 = vmatprep.subr.bf16.mxu0 %v4513_v11  ;;  %v2410_v11 = vshrl.u32 %v2350_v6, 16 }
  0xb8   : > { %v2114_v16 = vrot.slane %v2059_v10, 3  ;;  %v2654_v10 = vld [vmem:[%s4749_s23 + $0x20] sm:$0x7] }
  0xb9   : > { %4260 = vmatpush3.bf16.msra.mxu1 %v4514_v12  ;;  %v2413_v12 = vshll.u32 %v2350_v6, 16  ;;  %v4576_v6 = vld [vmem:[%s5545_s1 + $0x678] sm:$0xff]  }
  0xba   : > { %4018 = vmatpush3.bf16.msra.mxu0 %v4515_v13  ;;  %4261 = vmatprep.subr.bf16.mxu1 %v4624_v1  ;;  %v4550_v13 = vld [vmem:[%s5545_s1 + $0x500] sm:$0xff]  }
  0xbb   : > { %4019 = vmatprep.subr.bf16.mxu0 %v4516_v14  ;;  %v2057_v14 = vpack.c.bf16 %v2054_v8, %v2051_v7  ;;  %v2415_v19 = vrot.slane %v2413_v12, 4  ;;  %v4579_v12 = vld [vmem:[%s5545_s1 + $0x670] sm:$0xff]  }
  0xbd   : > { %4262 = vmatpush3.bf16.msra.mxu1 %v4517_v17  ;;  %v4552_v17 = vld [vmem:[%s5545_s1 + $0x5b8] sm:$0xff]  }
  0xbe   : > { %4020 = vmatpush3.bf16.msra.mxu0 %v4518_v18  ;;  %4263 = vmatprep.subr.bf16.mxu1 %v4624_v1  ;;  %v2412_v18 = vrot.slane %v2410_v11, 3  ;;  %v4578_v11 = vld [vmem:[%s5545_s1 + $0x638] sm:$0xff]  }
  0xbf   : > { %4021 = vmatprep.subr.bf16.mxu0 %v4519_v20  ;;  %v2112_v20 = vrot.slane %v2057_v14, 3  ;;  %v2657_v14 = vpack.c.bf16 %v2654_v10, %v2654_v10  ;;  %v4602_v10 = vld [vmem:[%s5547_s3 + $0x28] sm:$0xff]  }
  0xc0   : > { %v2416_v25 = vor.u32 %v2415_v19, %v2412_v18  ;;  %v4581_v18 = vld [vmem:[%s5545_s1 + $0x630] sm:$0xff]  }
  0xc1   : > { %4264 = vmatpush3.bf16.msra.mxu1 %v4520_v22  ;;  %v4554_v22 = vld [vmem:[%s5545_s1 + $0x578] sm:$0xff]  }
  0xc2   : > { %4022 = vmatpush3.bf16.msra.mxu0 %v4521_v23  ;;  %4265 = vmatprep.subr.bf16.mxu1 %v4624_v1  ;;  %v4555_v23 = vld [vmem:[%s5545_s1 + $0x5b0] sm:$0xff]  }
  0xc3   : > { %4023 = vmatprep.subr.bf16.mxu0 %v4522_v24 }
  0xc5   : > { %4266 = vmatpush3.bf16.msra.mxu1 %v4523_v27  ;;  %v4556_v27 = vld [vmem:[%s5545_s1 + $0x5f0] sm:$0xff]  }
  0xc6   : > { %4024 = vmatpush3.bf16.msra.mxu0 %v4524_v30  ;;  %4267 = vmatprep.subr.bf16.mxu1 %v4624_v1 }
  0xc7   : > { %4025 = vmatprep.subr.bf16.mxu0 %v4525_v31  ;;  %v4558_v31 = vld [vmem:[%s5545_s1 + $0x5a8] sm:$0xff]  }
  0xc9   : > { %4268 = vmatpush3.bf16.msra.mxu1 %v4526_v34 }
  0xca   : > { %4026 = vmatpush3.bf16.msra.mxu0 %v4527_v39  ;;  %4273 = vmatprep.subr.bf16.mxu1 %v4624_v1  ;;  %v4561_v39 = vld [vmem:[%s5545_s1 + $0x5a0] sm:$0xff]  }
  0xcb   : > { %4042 = vmatprep.subr.bf16.mxu0 %v4528_v40 }
  0xcc   : > { %4270 = vmatmul.mubr.bf16.vlgmr.msra.gmra.mxu1 %v1822_v41  ;;  %v4562_v41 = vld [vmem:[%s5545_s1 + $0x5e0] sm:$0xff]  }
  0xcd   : > { %2003 = vmatmul.mubr.bf16.vlgmr.msra.gmra.mxu0 %v1806_v43  ;;  %4274 = vmatpush3.bf16.msra.mxu1 %v4529_v44  ;;  %v4564_v43 = vld [vmem:[%s5545_s1 + $0x598] sm:$0xff]  }
  0xce   : > { %4043 = vmatpush3.bf16.msra.mxu0 %v4530_v45  ;;  %4275 = vmatprep.subr.bf16.mxu1 %v4624_v1  ;;  %v4565_v44 = vld [vmem:[%s5545_s1 + $0x5d8] sm:$0xff]   ;;  %v2345_v45 = vld [vmem:[%s4749_s23 + $0x10] sm:$0x80] }
  0xcf   : > { %4044 = vmatprep.subr.bf16.mxu0 %v4531_v46  ;;  %4289 = vmatprep.mubr.msk.bf16.mxu1 %vm4625_vm0, %v4624_v1  ;;  %v2348_v46 = vld [vmem:[%s4749_s23 + $0x28] sm:$0x3] }
  0xd0   : > { %2294 = vmatprep.mubr.bf16.mxu0 %v2113_v47  ;;  %v4566_v47 = vld [vmem:[%s5545_s1 + $0x558] sm:$0xff]  }
  0xd1   : > { %4276 = vmatpush3.bf16.msra.mxu1 %v4532_v48  ;;  %v2343_v48 = vld [vmem:[%s4749_s23] sm:$0x80] }
  0xd2   : > { %4045 = vmatpush3.bf16.msra.mxu0 %v4533_v49  ;;  %4277 = vmatprep.subr.bf16.mxu1 %v4624_v1  ;;  %v2346_v49 = vld [vmem:[%s4749_s23 + $0x18] sm:$0x3] }
  0xd3   : > { %4046 = vmatprep.subr.bf16.mxu0 %v4534_v50  ;;  %v4567_v50 = vld [vmem:[%s5545_s1 + $0x590] sm:$0xff]  }
  0xd5   : > { %4278 = vmatpush3.bf16.msra.mxu1 %v4535_v51  ;;  %v2351_v51 = vpack.c.bf16 %v2348_v46, %v2345_v45  ;;  %v4599_v45 = vld [vmem:[%s5545_s1 + $0x600] sm:$0xff]   ;;  %v2653_v46 = vld [vmem:[%s4749_s23 + $0x18] sm:$0x7] }
  0xd6   : > { %4047 = vmatpush3.bf16.msra.mxu0 %v4536_v52  ;;  %4279 = vmatprep.subr.bf16.mxu1 %v4624_v1  ;;  %v4568_v52 = vld [vmem:[%s5545_s1 + $0x5d0] sm:$0xff]  }
  0xd7   : > { %4048 = vmatprep.subr.bf16.mxu0 %v4537_v53  ;;  %v2349_v53 = vpack.c.bf16 %v2346_v49, %v2343_v48  ;;  %v2656_v48 = vpack.c.bf16 %v2653_v46, %v2653_v46 }
  0xd9   : > { %4280 = vmatpush3.bf16.msra.mxu1 %v4538_v54  ;;  %v4569_v54 = vld [vmem:[%s5545_s1 + $0x550] sm:$0xff]  }
  0xda   : > { %4049 = vmatpush3.bf16.msra.mxu0 %v4539_v55  ;;  %4281 = vmatprep.subr.bf16.mxu1 %v4624_v1  ;;  %v4570_v55 = vld [vmem:[%s5545_s1 + $0x588] sm:$0xff]  }
  0xdb   : > { %4050 = vmatprep.subr.bf16.mxu0 %v4540_v56  ;;  %v2418_v56 = vshrl.u32 %v2351_v51, 16 }
  0xdd   : > { %4282 = vmatpush3.bf16.msra.mxu1 %v4541_v57  ;;  %v2421_v57 = vshll.u32 %v2351_v51, 16  ;;  %v2420_v63 = vrot.slane %v2418_v56, 3 }
  0xde   : > { %4051 = vmatpush3.bf16.msra.mxu0 %v4542_v58  ;;  %4283 = vmatprep.subr.bf16.mxu1 %v4624_v1  ;;  %v4571_v58 = vld [vmem:[%s5545_s1 + $0x5c8] sm:$0xff]  }
  0xdf   : > { %4052 = vmatprep.subr.bf16.mxu0 %v4543_v59  ;;  %v2402_v59 = vshrl.u32 %v2349_v53, 16 }
  0xe1   : > { %4284 = vmatpush3.bf16.msra.mxu1 %v4544_v60  ;;  %v2405_v60 = vshll.u32 %v2349_v53, 16  ;;  %v2404_v3 = vrot.slane %v2402_v59, 3 }
  0xe2   : > { %4053 = vmatpush3.bf16.msra.mxu0 %v4545_v61  ;;  %4285 = vmatprep.subr.bf16.mxu1 %v4624_v1  ;;  %v4572_v61 = vld [vmem:[%s5545_s1 + $0x548] sm:$0xff]  }
  0xe3   : > { %4054 = vmatprep.subr.bf16.mxu0 %v4546_v0  ;;  %v2423_v0 = vrot.slane %v2421_v57, 4 }
  0xe5   : > { %4286 = vmatpush3.bf16.msra.mxu1 %v4547_v2  ;;  %v4574_v2 = vld [vmem:[%s5545_s1 + $0x5c0] sm:$0xff]   ;;  %v2424_v7 = vor.u32 %v2423_v0, %v2420_v63 }
  0xe6   : > { %4055 = vmatpush3.bf16.msra.mxu0 %v4548_v4  ;;  %4287 = vmatprep.subr.bf16.mxu1 %v4624_v1  ;;  %v2407_v4 = vrot.slane %v2405_v60, 4 }
  0xe7   : > { %4056 = vmatprep.subr.bf16.mxu0 %v4549_v9  ;;  %v4577_v9 = vld [vmem:[%s5545_s1 + $0x6b8] sm:$0xff]  }
  0xe8   : > { %v2408_v8 = vor.u32 %v2407_v4, %v2404_v3 }
  0xe9   : > { %4288 = vmatpush3.bf16.msra.mxu1 %v4550_v13 }
  0xea   : > { %4057 = vmatpush3.bf16.msra.mxu0 %v4551_v15  ;;  %4293 = vmatprep.subr.bf16.mxu1 %v4624_v1 }
  0xeb   : > { %4073 = vmatprep.subr.bf16.mxu0 %v4552_v17 }
  0xec   : > { %v629_v24 = vpop.f32.mrf.mxu1  ;;  %4290 = vmatmul.mubr.bf16.vlgmr.msra.gmra.mxu1 %v2114_v16  ;;  %v4580_v16 = vld [vmem:[%s5545_s1 + $0x6b0] sm:$0xff]  }
  0xed   : > { %v3872_v26 = vpop.f32.mrf.mxu0  ;;  %2295 = vmatmul.mubr.bf16.vlgmr.msra.gmra.mxu0 %v2112_v20  ;;  %4294 = vmatpush3.bf16.msra.mxu1 %v4553_v21  ;;  %v4582_v20 = vld [vmem:[%s5545_s1 + $0x668] sm:$0xff]  }
  0xee   : > { %v4171_v28 = vpop.f32.mrf.mxu1  ;;  %4074 = vmatpush3.bf16.msra.mxu0 %v4554_v22  ;;  %4295 = vmatprep.subr.bf16.mxu1 %v4624_v1 }
  0xef   : > { %v3873_v30 = vpop.f32.mrf.mxu0  ;;  %4075 = vmatprep.subr.bf16.mxu0 %v4555_v23  ;;  %4309 = vmatprep.mubr.msk.bf16.mxu1 %vm4625_vm0, %v4624_v1 }
  0xf0   : > { %v3874_v32 = vadd.f32 %v3873_v30, %v3872_v26  ;;  %v632_v33 = vpop.f32.mrf.mxu1  ;;  %2604 = vmatprep.mubr.bf16.mxu0 %v2416_v25 }
  0xf1   : > { %v3875_v34 = vpop.f32.mrf.mxu0  ;;  %4296 = vmatpush3.bf16.msra.mxu1 %v4556_v27  ;;  %v4584_v27 = vld [vmem:[%s5545_s1 + $0x628] sm:$0xff]   ;;  %v4588_v33 = vld [vmem:[%s5545_s1 + $0x658] sm:$0xff]  }
  0xf2   : > { %v5314_v36 = vadd.f32 %v3874_v32, %v629_v24  ;;  %v4172_v37 = vpop.f32.mrf.mxu1  ;;  %4076 = vmatpush3.bf16.msra.mxu0 %v4557_v29  ;;  %4297 = vmatprep.subr.bf16.mxu1 %v4624_v1  ;;  %v4583_v24 = vld [vmem:[%s5545_s1 + $0x6a8] sm:$0xff]   ;;  %v4585_v29 = vld [vmem:[%s5545_s1 + $0x660] sm:$0xff]   ;;  %v4589_v34 = vld [vmem:[%s5545_s1 + $0x698] sm:$0xff]  }
  0xf3   : > { %v3876_v40 = vpop.f32.mrf.mxu0  ;;  %4077 = vmatprep.subr.bf16.mxu0 %v4558_v31  ;;  %v4586_v31 = vld [vmem:[%s5545_s1 + $0x6a0] sm:$0xff]   ;;  %v4592_v37 = vld [vmem:[%s5545_s1 + $0x690] sm:$0xff]  }
  0xf4   : > { %v4587_v32 = vld [vmem:[%s5545_s1 + $0x620] sm:$0xff]   ;;  %v4595_v40 = vld [vmem:[%s5545_s1 + $0x688] sm:$0xff]  }
  0xf5   : > { %4298 = vmatpush3.bf16.msra.mxu1 %v4559_v35  ;;  %v4590_v35 = vld [vmem:[%s5545_s1 + $0x618] sm:$0xff]  }
  0xf6   : > { %4078 = vmatpush3.bf16.msra.mxu0 %v4560_v38  ;;  %4299 = vmatprep.subr.bf16.mxu1 %v4624_v1  ;;  %v4593_v38 = vld [vmem:[%s5545_s1 + $0x610] sm:$0xff]  }
  0xf7   : > { %4079 = vmatprep.subr.bf16.mxu0 %v4561_v39  ;;  %v4594_v39 = vld [vmem:[%s5545_s1 + $0x648] sm:$0xff]  }
  0xf9   : > { %4300 = vmatpush3.bf16.msra.mxu1 %v4562_v41  ;;  %v4596_v41 = vld [vmem:[%s5545_s1 + $0x608] sm:$0xff]  }
  0xfa   : > { %4080 = vmatpush3.bf16.msra.mxu0 %v4563_v42  ;;  %4301 = vmatprep.subr.bf16.mxu1 %v4624_v1  ;;  %v4597_v42 = vld [vmem:[%s5545_s1 + $0x640] sm:$0xff]  }
  0xfb   : > { %4081 = vmatprep.subr.bf16.mxu0 %v4564_v43  ;;  %v4598_v43 = vld [vmem:[%s5545_s1 + $0x680] sm:$0xff]  }
  0xfd   : > { %4302 = vmatpush3.bf16.msra.mxu1 %v4565_v44  ;;  %v2655_v44 = vld [vmem:[%s4749_s23 + $0x28] sm:$0x7] }
  0xfe   : > { %4082 = vmatpush3.bf16.msra.mxu0 %v4566_v47  ;;  %4303 = vmatprep.subr.bf16.mxu1 %v4624_v1  ;;  %v2658_v47 = vpack.c.bf16 %v2655_v44, %v2655_v44 }
  0xff   : > { %4083 = vmatprep.subr.bf16.mxu0 %v4567_v50 }
 0x101   : > { %4304 = vmatpush3.bf16.msra.mxu1 %v4568_v52 }
 0x102   : > { %4084 = vmatpush3.bf16.msra.mxu0 %v4569_v54  ;;  %4305 = vmatprep.subr.bf16.mxu1 %v4624_v1 }
 0x103   : > { %4085 = vmatprep.subr.bf16.mxu0 %v4570_v55 }
 0x105   : > { %4306 = vmatpush3.bf16.msra.mxu1 %v4571_v58 }
 0x106   : > { %4086 = vmatpush3.bf16.msra.mxu0 %v4572_v61  ;;  %4307 = vmatprep.subr.bf16.mxu1 %v4624_v1 }
 0x107   : > { %4087 = vmatprep.subr.bf16.mxu0 %v4573_v62 }
 0x109   : > { %4308 = vmatpush3.bf16.msra.mxu1 %v4574_v2 }
 0x10a   : > { %4088 = vmatpush3.bf16.msra.mxu0 %v4575_v5  ;;  %4313 = vmatprep.subr.bf16.mxu1 %v4624_v1 }
 0x10b   : > { %4104 = vmatprep.subr.bf16.mxu0 %v4576_v6 }
 0x10c   : > { %v853_v13 = vpop.f32.mrf.mxu1  ;;  %4310 = vmatmul.mubr.bf16.vlgmr.msra.gmra.mxu1 %v2424_v7 }
 0x10d   : > { %v3903_v15 = vpop.f32.mrf.mxu0  ;;  %2605 = vmatmul.mubr.bf16.vlgmr.msra.gmra.mxu0 %v2408_v8  ;;  %4314 = vmatpush3.bf16.msra.mxu1 %v4577_v9  ;;  %v4600_v8 = vld [vmem:[%s5547_s3 + $0x38] sm:$0xff]   ;;  %v4601_v9 = vld [vmem:[%s5547_s3 + $0x30] sm:$0xff]  }
 0x10e   : > { %v4191_v17 = vpop.f32.mrf.mxu1  ;;  %4105 = vmatpush3.bf16.msra.mxu0 %v4578_v11  ;;  %4315 = vmatprep.subr.bf16.mxu1 %v4624_v1  ;;  %v4603_v11 = vld [vmem:[%s5547_s3 + $0x20] sm:$0xff]  }
 0x10f   : > { %v3904_v19 = vpop.f32.mrf.mxu0  ;;  %4106 = vmatprep.subr.bf16.mxu0 %v4579_v12  ;;  %4329 = vmatprep.mubr.msk.bf16.mxu1 %vm4625_vm0, %v4624_v1  ;;  %v4604_v12 = vld [vmem:[%s5547_s3 + $0x18] sm:$0xff]   ;;  %v4605_v17 = vld [vmem:[%s5547_s3 + $0x10] sm:$0xff]  }
 0x110   : > { %v3905_v21 = vadd.f32 %v3904_v19, %v3903_v15  ;;  %v856_v22 = vpop.f32.mrf.mxu1  ;;  %2884 = vmatprep.mubr.bf16.mxu0 %v2657_v14 }
 0x111   : > { %v3906_v23 = vpop.f32.mrf.mxu0  ;;  %4316 = vmatpush3.bf16.msra.mxu1 %v4580_v16 }
 0x112   : > { %v814_v25 = vadd.f32 %v3905_v21, %v5314_v36  ;;  %v4192_v26 = vpop.f32.mrf.mxu1  ;;  %4107 = vmatpush3.bf16.msra.mxu0 %v4581_v18  ;;  %4317 = vmatprep.subr.bf16.mxu1 %v4624_v1  ;;  %v4591_v36 = vld [vmem:[%s5545_s1 + $0x650] sm:$0xff]  }
 0x113   : > { %v3907_v28 = vpop.f32.mrf.mxu0  ;;  %4108 = vmatprep.subr.bf16.mxu0 %v4582_v20  ;;  %v4607_v26 = vld [vmem:[%s5547_s3] sm:$0xff]  }
 0x114   : > { %v854_v30 = vadd.f32 %v853_v13, %v814_v25  ;;  %v4609_v28 = vld [vmem:[%s5549_s5 + $0x30] sm:$0xff]  }
 0x115   : > { %4318 = vmatpush3.bf16.msra.mxu1 %v4583_v24  ;;  %v4606_v24 = vld [vmem:[%s5547_s3 + $0x8] sm:$0xff]  }
 0x116   : > { %4109 = vmatpush3.bf16.msra.mxu0 %v4584_v27  ;;  %4319 = vmatprep.subr.bf16.mxu1 %v4624_v1  ;;  %v4608_v27 = vld [vmem:[%s5549_s5 + $0x38] sm:$0xff]  }
 0x117   : > { %4110 = vmatprep.subr.bf16.mxu0 %v4585_v29  ;;  %v4610_v29 = vld [vmem:[%s5549_s5 + $0x28] sm:$0xff]  }
 0x119   : > { %4320 = vmatpush3.bf16.msra.mxu1 %v4586_v31  ;;  %v4612_v31 = vld [vmem:[%s5549_s5 + $0x18] sm:$0xff]  }
 0x11a   : > { %4111 = vmatpush3.bf16.msra.mxu0 %v4587_v32  ;;  %4321 = vmatprep.subr.bf16.mxu1 %v4624_v1 }
 0x11b   : > { %4112 = vmatprep.subr.bf16.mxu0 %v4588_v33 }
 0x11d   : > { %4322 = vmatpush3.bf16.msra.mxu1 %v4589_v34 }
 0x11e   : > { %4113 = vmatpush3.bf16.msra.mxu0 %v4590_v35  ;;  %4323 = vmatprep.subr.bf16.mxu1 %v4624_v1  ;;  %v4613_v35 = vld [vmem:[%s5549_s5 + $0x10] sm:$0xff]  }
 0x11f   : > { %4114 = vmatprep.subr.bf16.mxu0 %v4591_v36 }
 0x121   : > { %4324 = vmatpush3.bf16.msra.mxu1 %v4592_v37 }
 0x122   : > { %4115 = vmatpush3.bf16.msra.mxu0 %v4593_v38  ;;  %4325 = vmatprep.subr.bf16.mxu1 %v4624_v1 }
 0x123   : > { %4116 = vmatprep.subr.bf16.mxu0 %v4594_v39 }
 0x125   : > { %4326 = vmatpush3.bf16.msra.mxu1 %v4595_v40 }
 0x126   : > { %4117 = vmatpush3.bf16.msra.mxu0 %v4596_v41  ;;  %4327 = vmatprep.subr.bf16.mxu1 %v4624_v1 }
 0x127   : > { %4118 = vmatprep.subr.bf16.mxu0 %v4597_v42 }
 0x129   : > { %4328 = vmatpush3.bf16.msra.mxu1 %v4598_v43 }
 0x12a   : > { %4119 = vmatpush3.bf16.msra.mxu0 %v4599_v45  ;;  %4353 = vmatprep.subr.bf16.mxu1 %v4624_v1 }
 0x12b   : > { %4333 = vmatprep.subr.bf16.mxu0 %v4624_v1 }
 0x12c   : > { %v1141_v49 = vpop.f32.mrf.mxu1  ;;  %4330 = vmatmul.mubr.bf16.vlgmr.msra.gmra.mxu1 %v2658_v47 }
 0x12d   : > { %v3934_v50 = vpop.f32.mrf.mxu0  ;;  %2885 = vmatmul.mubr.bf16.vlgmr.msra.gmra.mxu0 %v2656_v48  ;;  %4369 = vmatprep.mubr.msk.bf16.mxu1 %vm4625_vm0, %v4624_v1 }
 0x12e   : > { %v4211_v51 = vpop.f32.mrf.mxu1  ;;  %4349 = vmatprep.mubr.msk.bf16.mxu0 %vm4625_vm0, %v4624_v1  ;;  %4334 = vmatpush3.bf16.msra.mxu0 %v4600_v8 }
 0x12f   : > { %v3935_v52 = vpop.f32.mrf.mxu0  ;;  %4335 = vmatprep.subr.bf16.mxu0 %v4624_v1  ;;  %4354 = vmatpush3.bf16.msra.mxu1 %v4608_v27 }
 0x130   : > { %v3936_v53 = vadd.f32 %v3935_v52, %v3934_v50  ;;  %v1144_v54 = vpop.f32.mrf.mxu1  ;;  %4355 = vmatprep.subr.bf16.mxu1 %v4624_v1 }
 0x131   : > { %v3937_v55 = vpop.f32.mrf.mxu0 }
 0x132   : > { %v1142_v56 = vadd.f32 %v3936_v53, %v1141_v49  ;;  %v4212_v57 = vpop.f32.mrf.mxu1  ;;  %4336 = vmatpush3.bf16.msra.mxu0 %v4601_v9 }
 0x133   : > { %v3938_v58 = vpop.f32.mrf.mxu0  ;;  %4337 = vmatprep.subr.bf16.mxu0 %v4624_v1  ;;  %4356 = vmatpush3.bf16.msra.mxu1 %v4609_v28 }
 0x134   : > { %v1147_v59 = vadd.f32 %v1142_v56, %v854_v30  ;;  %4357 = vmatprep.subr.bf16.mxu1 %v4624_v1  ;;  %v4611_v30 = vld [vmem:[%s5549_s5 + $0x20] sm:$0xff]  }
 0x136   : > { %4338 = vmatpush3.bf16.msra.mxu0 %v4602_v10 }
 0x137   : > { %4339 = vmatprep.subr.bf16.mxu0 %v4624_v1  ;;  %4358 = vmatpush3.bf16.msra.mxu1 %v4610_v29 }
 0x138   : > { %4359 = vmatprep.subr.bf16.mxu1 %v4624_v1 }
 0x13a   : > { %4340 = vmatpush3.bf16.msra.mxu0 %v4603_v11 }
 0x13b   : > { %4341 = vmatprep.subr.bf16.mxu0 %v4624_v1  ;;  %4360 = vmatpush3.bf16.msra.mxu1 %v4611_v30 }
 0x13c   : > { %4361 = vmatprep.subr.bf16.mxu1 %v4624_v1 }
 0x13e   : > { %4342 = vmatpush3.bf16.msra.mxu0 %v4604_v12  ;;  %v3835_v12 = vld [vmem:[%s5546_s2] ss:$0 sm:$0xff] }
 0x13f   : > { %4343 = vmatprep.subr.bf16.mxu0 %v4624_v1  ;;  %4362 = vmatpush3.bf16.msra.mxu1 %v4612_v31 }
 0x140   : > { %4363 = vmatprep.subr.bf16.mxu1 %v4624_v1 }
 0x142   : > { %4344 = vmatpush3.bf16.msra.mxu0 %v4605_v17 }
 0x143   : > { %4345 = vmatprep.subr.bf16.mxu0 %v4624_v1  ;;  %4364 = vmatpush3.bf16.msra.mxu1 %v4613_v35 }
 0x144   : > { %4365 = vmatprep.subr.bf16.mxu1 %v4624_v1 }
 0x146   : > { %4346 = vmatpush3.bf16.msra.mxu0 %v4606_v24 }
 0x147   : > { %4347 = vmatprep.subr.bf16.mxu0 %v4624_v1 }
 0x14a   : > { %4348 = vmatpush3.bf16.msra.mxu0 %v4607_v26 }
 0x14c   : > { %v1448_v60 = vpop.f32.mrf.mxu1 }
 0x14d   : > { %v3965_v61 = vpop.f32.mrf.mxu0 }
 0x14e   : > { %v4231_v62 = vpop.f32.mrf.mxu1 }
 0x14f   : > { %v3966_v63 = vpop.f32.mrf.mxu0 }
 0x150   : > { %v3967_v0 = vadd.f32 %v3966_v63, %v3965_v61  ;;  %v1451_v2 = vpop.f32.mrf.mxu1 }
 0x151   : > { %v3968_v3 = vpop.f32.mrf.mxu0 }
 0x152   : > { %v1449_v4 = vadd.f32 %v3967_v0, %v1448_v60  ;;  %v4232_v5 = vpop.f32.mrf.mxu1 }
 0x153   : > { %v3969_v6 = vpop.f32.mrf.mxu0 }
 0x154   : > { %v1454_v7 = vadd.f32 %v1449_v4, %v1147_v59 }
 0x16c   : > { %v1737_v13 = vpop.f32.mrf.mxu1 }
 0x16d   : > { %v3996_v14 = vpop.f32.mrf.mxu0 }
 0x16e   : > { %v4251_v15 = vpop.f32.mrf.mxu1 }
 0x16f   : > { %v3997_v16 = vpop.f32.mrf.mxu0 }
 0x170   : > { %v3998_v18 = vadd.f32 %v3997_v16, %v3996_v14  ;;  %v1740_v19 = vpop.f32.mrf.mxu1 }
 0x171   : > { %v3999_v20 = vpop.f32.mrf.mxu0  ;;  %v4615_v19 = vld [vmem:[%s5549_s5] sm:$0xff]  }
 0x172   : > { %v1738_v21 = vadd.f32 %v3998_v18, %v1737_v13  ;;  %v4252_v22 = vpop.f32.mrf.mxu1  ;;  %v4614_v18 = vld [vmem:[%s5549_s5 + $0x8] sm:$0xff]   ;;  %v3836_v20 = vld [vmem:[%s5548_s4] ss:$0 sm:$0xff] }
 0x173   : > { %v4000_v23 = vpop.f32.mrf.mxu0  ;;  %4366 = vmatpush3.bf16.msra.mxu1 %v4614_v18 }
 0x174   : > { %v1743_v25 = vadd.f32 %v1738_v21, %v1454_v7  ;;  %4367 = vmatprep.subr.bf16.mxu1 %v4624_v1  ;;  %v3845_v1 = vld [vmem:[%s5550_s6] ss:$0 sm:$0xff] }
 0x177   : > { %4368 = vmatpush3.bf16.msra.mxu1 %v4615_v19 }
 0x18c   : > { %v2044_v32 = vpop.f32.mrf.mxu1 }
 0x18d   : > { %v4027_v33 = vpop.f32.mrf.mxu0 }
 0x18e   : > { %v4271_v34 = vpop.f32.mrf.mxu1 }
 0x18f   : > { %v4028_v36 = vpop.f32.mrf.mxu0 }
 0x190   : > { %v4029_v37 = vadd.f32 %v4028_v36, %v4027_v33  ;;  %v2047_v38 = vpop.f32.mrf.mxu1 }
 0x191   : > { %v4030_v39 = vpop.f32.mrf.mxu0 }
 0x192   : > { %v2045_v40 = vadd.f32 %v4029_v37, %v2044_v32  ;;  %v4272_v41 = vpop.f32.mrf.mxu1  ;;  %v3172_v32 = vld [vmem:[%s276_s16] sm:$0x3] }
 0x193   : > { %v4031_v42 = vpop.f32.mrf.mxu0 }
 0x194   : > { %v2050_v43 = vadd.f32 %v2045_v40, %v1743_v25 }
 0x1ac   : > { %v2336_v44 = vpop.f32.mrf.mxu1 }
 0x1ad   : > { %v4058_v45 = vpop.f32.mrf.mxu0 }
 0x1ae   : > { %v4291_v46 = vpop.f32.mrf.mxu1 }
 0x1af   : > { %v4059_v47 = vpop.f32.mrf.mxu0 }
 0x1b0   : > { %v4060_v48 = vadd.f32 %v4059_v47, %v4058_v45  ;;  %v2339_v49 = vpop.f32.mrf.mxu1 }
 0x1b1   : > { %v4061_v50 = vpop.f32.mrf.mxu0 }
 0x1b2   : > { %v2337_v51 = vadd.f32 %v4060_v48, %v2336_v44  ;;  %v4292_v52 = vpop.f32.mrf.mxu1 }
 0x1b3   : > { %v4062_v53 = vpop.f32.mrf.mxu0 }
 0x1b4   : > { %v2342_v54 = vadd.f32 %v2337_v51, %v2050_v43 }
 0x1cc   : > { %v2646_v55 = vpop.f32.mrf.mxu1 }
 0x1cd   : > { %v4089_v56 = vpop.f32.mrf.mxu0 }
 0x1ce   : > { %v4311_v57 = vpop.f32.mrf.mxu1 }
 0x1cf   : > { %v4090_v58 = vpop.f32.mrf.mxu0 }
 0x1d0   : > { %v2649_v59 = vpop.f32.mrf.mxu1  ;;  %v4091_v63 = vadd.f32 %v4090_v58, %v4089_v56 }
 0x1d1   : > { %v4092_v60 = vpop.f32.mrf.mxu0 }
 0x1d2   : > { %v4312_v61 = vpop.f32.mrf.mxu1  ;;  %v2647_v3 = vadd.f32 %v4091_v63, %v2646_v55 }
 0x1d3   : > { %v4093_v62 = vpop.f32.mrf.mxu0 }
 0x1d4   : > { %v2652_v9 = vadd.f32 %v2647_v3, %v2342_v54 }
 0x1ec   : > { %v2926_v0 = vpop.f32.mrf.mxu1 }
 0x1ed   : > { %v4120_v2 = vpop.f32.mrf.mxu0 }
 0x1ee   : > { %v4331_v4 = vpop.f32.mrf.mxu1 }
 0x1ef   : > { %v4121_v5 = vpop.f32.mrf.mxu0 }
 0x1f0   : > { %v4122_v6 = vadd.f32 %v4121_v5, %v4120_v2  ;;  %v2929_v7 = vpop.f32.mrf.mxu1 }
 0x1f1   : > { %v4123_v8 = vpop.f32.mrf.mxu0 }
 0x1f2   : > { %v2927_v10 = vadd.f32 %v4122_v6, %v2926_v0  ;;  %v4332_v11 = vpop.f32.mrf.mxu1 }
 0x1f3   : > { %v4124_v13 = vpop.f32.mrf.mxu0 }
 0x1f4   : > { %v2932_v14 = vadd.f32 %v2927_v10, %v2652_v9 }
 0x1f6   : > { %v2940_v15 = vadd.f32 %v3835_v12, %v2932_v14 }
 0x1f8   : > { %v2941_v16 = vmax.f32 %v2940_v15, 0.0 }
 0x1fa   : > { %v2942_v17 = vpack.c.bf16 %v2941_v16, %v2941_v16 }
 0x1fc   : > { %4350 = vmatmul.mubr.bf16.vlgmr.msra.gmra.mxu0 %v2942_v17 }
 0x2bc   : > { %v3048_v21 = vpop.f32.mrf.mxu0 }
 0x2bd   : > { %v3049_v22 = vadd.f32 %v3836_v20, %v3048_v21 }
 0x2be   : > { %v4351_v23 = vpop.f32.mrf.mxu0 }
 0x2bf   : > { %v3054_v24 = vmax.f32 %v3049_v22, 0.0 }
 0x2c0   : > { %v3051_v25 = vpop.f32.mrf.mxu0 }
 0x2c1   : > { %v3055_v26 = vpack.c.bf16 %v3054_v24, %v3054_v24 }
 0x2c2   : > { %v4352_v27 = vpop.f32.mrf.mxu0 }
 0x2c3   : > { %4370 = vmatmul.mubr.bf16.vlgmr.msra.gmra.mxu1 %v3055_v26 }
 0x383   : > { %v3161_v28 = vpop.f32.mrf.mxu1 }
 0x384   : > { %v3162_v29 = vadd.f32 %v3845_v1, %v3161_v28 }
 0x385   : > { %v4371_v30 = vpop.f32.mrf.mxu1 }
 0x386   : > { %v3167_v31 = vmax.f32 %v3162_v29, 0.0 }
 0x387   : > { %v3164_v33 = vpop.f32.mrf.mxu1 }
 0x388   : > { %v3168_v34 = vpack.c.bf16 %v3167_v31, %v3167_v31 }
 0x389   : > { %v4372_v35 = vpop.f32.mrf.mxu1 }
 0x38a   : > { %v3173_v36 = vsel %vm3171_vm3, %v3168_v34, %v3172_v32 }
 0x38b   : > { %3174 = vst [vmem:[%s276_s16] sm:$0x3] %v3173_v36 }
 0x38c PF: > { %s17_s24 = sadd.s32 1, %s4622_s24  }
 0x38d   : > { %p14_p4 = scmp.ge.s32.totalorder %s17_s24, 4  }
 0x38f   :  { %16 = sbr.rel (!%p14_p4) target bundleno = 1 (0x1), region = 86 }

</bundles_post_ra>
